<compile_context>
chip_gen: v7x
topology: tpu7x:2x2x1
jax: 0.10.0
libtpu: 0.0.40
codegen_flags: <defaults>
</compile_context>

<pallas_src>
import functools

import jax
import jax.numpy as jnp
from jax import lax
from jax.experimental import pallas as pl
from jax.experimental.pallas import tpu as pltpu

BN_EPS = 1e-5
LANE = 128
PAD_L = 8  # left pad of the scratch W axis: >=1 halo col and an 8-aligned interior


def _round_up(x, m):
    return ((x + m - 1) // m) * m


# ----------------------------------------------------------------------------
# Fused Pallas kernel: max-unpool 2x2 + three conv3x3+BN+ReLU layers
# ----------------------------------------------------------------------------
def _up3_kernel(vu_ref, iu_ref,
                w1_ref, s1_ref, b1_ref,
                w2_ref, s2_ref, b2_ref,
                w3_ref, s3_ref, b3_ref,
                o_ref, pa_ref, pb_ref, *, H, W, pad_l):
    cin = pa_ref.shape[-1]
    cout = o_ref.shape[-1]

    # Zero both padded activation scratches (the 1-px halo must read as zero).
    pa_ref[...] = jnp.zeros_like(pa_ref)
    pb_ref[...] = jnp.zeros_like(pb_ref)

    # ---- MaxUnpool2d(2,2): place value where stored flat index == output pos ----
    r = lax.broadcasted_iota(jnp.int32, (H, W, cin), 0)
    c = lax.broadcasted_iota(jnp.int32, (H, W, cin), 1)
    pos = r * W + c
    unpooled = jnp.where(iu_ref[0] == pos, vu_ref[0], 0.0)
    pa_ref[pl.ds(1, H), pl.ds(pad_l, W), :] = unpooled

    def conv_bn_relu(src_ref, w_ref, s_ref, b_ref):
        # 3x3 conv as ONE MXU contraction: im2col tile (H*W, 9*Cin) built from
        # 9 shifted static slices of the resident padded activation (bf16 operands,
        # f32 accumulation), then folded-BN scale/bias + ReLU in f32.
        c_in = src_ref.shape[-1]
        taps = []
        for ky in range(3):
            for kx in range(3):
                t = src_ref[pl.ds(ky, H), pl.ds(pad_l - 1 + kx, W), :]
                taps.append(t.reshape(H * W, c_in).astype(jnp.bfloat16))
        patches = jnp.concatenate(taps, axis=1)            # (H*W, 9*Cin) bf16
        acc = jnp.dot(patches, w_ref[...],
                      preferred_element_type=jnp.float32)  # (H*W, Cout) f32
        y = acc * s_ref[...] + b_ref[...]
        return jnp.maximum(y, 0.0)

    # conv1 (Cin->Cin): read pa, write into pb's interior.
    y1 = conv_bn_relu(pa_ref, w1_ref, s1_ref, b1_ref)
    pb_ref[pl.ds(1, H), pl.ds(pad_l, W), :] = y1.reshape(H, W, cin)
    # conv2 (Cin->Cin): read pb, write back into pa's interior (reuse scratch).
    y2 = conv_bn_relu(pb_ref, w2_ref, s2_ref, b2_ref)
    pa_ref[pl.ds(1, H), pl.ds(pad_l, W), :] = y2.reshape(H, W, cin)
    # conv3 (Cin->Cout): read pa, write the block output.
    y3 = conv_bn_relu(pa_ref, w3_ref, s3_ref, b3_ref)
    o_ref[0] = y3.reshape(H, W, cout)


# ----------------------------------------------------------------------------
# Wrapper: layout conversion, channel padding, BN folding, pallas_call
# ----------------------------------------------------------------------------
def _fold_bn_pad(w, b, gamma, beta, mean, var, cin_p, cout_p):
    """PyTorch (Cout,Cin,3,3) conv + BN(eval) -> (9*Cin_p, Cout_p) bf16 weight and
    f32 per-channel scale/bias (padded channels get scale=0, bias=0)."""
    cout, cin = w.shape[0], w.shape[1]
    w_t = jnp.transpose(w, (2, 3, 1, 0))                       # (ky, kx, Cin, Cout)
    w_t = jnp.pad(w_t, ((0, 0), (0, 0), (0, cin_p - cin), (0, cout_p - cout)))
    w2d = w_t.reshape(9 * cin_p, cout_p).astype(jnp.bfloat16)
    s = gamma / jnp.sqrt(var + BN_EPS)
    bias = (b - mean) * s + beta
    s_p = jnp.pad(s, (0, cout_p - cout)).reshape(1, cout_p).astype(jnp.float32)
    b_p = jnp.pad(bias, (0, cout_p - cout)).reshape(1, cout_p).astype(jnp.float32)
    return w2d, s_p, b_p


def segnet_up3_pallas(inputs, indices, out_hw, params):
    """segnetUp3 forward.

    inputs : (N, Cin, Hp, Wp) f32 pooled activations (PyTorch NCHW)
    indices: (N, Cin, Hp, Wp) int   flat argmax indices into the H*W output plane
    out_hw : (H, W) unpooled spatial size (H = 2*Hp, W = 2*Wp)
    params : [(w, b, gamma, beta, mean, var)] for conv1, conv2, conv3
    returns: (N, Cout, H, W) f32
    """
    N, cin, Hp, Wp = inputs.shape
    H, W = out_hw
    assert H == 2 * Hp and W == 2 * Wp, "unpool must exactly double spatial dims"
    cout = params[2][0].shape[0]
    cp_in = _round_up(cin, LANE)
    cp_out = _round_up(cout, LANE)

    # NHWC + lane-dense channel padding.
    v = jnp.transpose(inputs, (0, 2, 3, 1)).astype(jnp.float32)
    ix = jnp.transpose(indices, (0, 2, 3, 1)).astype(jnp.int32)
    v = jnp.pad(v, ((0, 0), (0, 0), (0, 0), (0, cp_in - cin)))
    ix = jnp.pad(ix, ((0, 0), (0, 0), (0, 0), (0, cp_in - cin)), constant_values=-1)

    # 2x nearest upsample of vals/indices (XLA glue; see TODO at top).
    v_up = jnp.repeat(jnp.repeat(v, 2, axis=1), 2, axis=2)
    i_up = jnp.repeat(jnp.repeat(ix, 2, axis=1), 2, axis=2)

    w1, s1, b1 = _fold_bn_pad(*params[0], cp_in, cp_in)
    w2, s2, b2 = _fold_bn_pad(*params[1], cp_in, cp_in)
    w3, s3, b3 = _fold_bn_pad(*params[2], cp_in, cp_out)

    act_spec = pl.BlockSpec((1, H, W, cp_in), lambda n: (n, 0, 0, 0))

    def const_spec(shape):
        return pl.BlockSpec(shape, lambda n: (0,) * len(shape))

    scratch_w = PAD_L + W + 8

    out = pl.pallas_call(
        functools.partial(_up3_kernel, H=H, W=W, pad_l=PAD_L),
        out_shape=jax.ShapeDtypeStruct((N, H, W, cp_out), jnp.float32),
        grid=(N,),
        in_specs=[
            act_spec, act_spec,
            const_spec((9 * cp_in, cp_in)), const_spec((1, cp_in)), const_spec((1, cp_in)),
            const_spec((9 * cp_in, cp_in)), const_spec((1, cp_in)), const_spec((1, cp_in)),
            const_spec((9 * cp_in, cp_out)), const_spec((1, cp_out)), const_spec((1, cp_out)),
        ],
        out_specs=pl.BlockSpec((1, H, W, cp_out), lambda n: (n, 0, 0, 0)),
        scratch_shapes=[
            pltpu.VMEM((H + 2, scratch_w, cp_in), jnp.float32),
            pltpu.VMEM((H + 2, scratch_w, cp_in), jnp.float32),
        ],
        compiler_params=pltpu.CompilerParams(
            dimension_semantics=("parallel",),          # v7x: shard batch over 2 TCs
            vmem_limit_bytes=48 * 1024 * 1024,          # budget within v7x's 64 MiB
        ),
    )(v_up, i_up, w1, s1, b1, w2, s2, b2, w3, s3, b3)

    out = out[..., :cout]                               # drop padded output channels
    return jnp.transpose(out, (0, 3, 1, 2))             # back to NCHW


# ----------------------------------------------------------------------------
# Pure-JAX reference (correctness cross-check)
# ----------------------------------------------------------------------------
def segnet_up3_ref(inputs, indices, out_hw, params):
    N, cin, Hp, Wp = inputs.shape
    H, W = out_hw
    x = jnp.transpose(inputs, (0, 2, 3, 1))
    idx = jnp.transpose(indices, (0, 2, 3, 1)).astype(jnp.int32)
    v_up = jnp.repeat(jnp.repeat(x, 2, axis=1), 2, axis=2)
    i_up = jnp.repeat(jnp.repeat(idx, 2, axis=1), 2, axis=2)
    r = jnp.arange(H).reshape(1, H, 1, 1)
    c = jnp.arange(W).reshape(1, 1, W, 1)
    pos = (r * W + c).astype(jnp.int32)
    y = jnp.where(i_up == pos, v_up, 0.0)
    for (w, b, gamma, beta, mean, var) in params:
        w_hwio = jnp.transpose(w, (2, 3, 1, 0))
        y = lax.conv_general_dilated(
            y, w_hwio, window_strides=(1, 1), padding=((1, 1), (1, 1)),
            dimension_numbers=("NHWC", "HWIO", "NHWC"))
        s = gamma / jnp.sqrt(var + BN_EPS)
        y = (y + b - mean) * s + beta
        y = jnp.maximum(y, 0.0)
    return jnp.transpose(y, (0, 3, 1, 2))


def make_cbr_params(key, cin, cout):
    ks = jax.random.split(key, 6)
    w = 0.1 * jax.random.normal(ks[0], (cout, cin, 3, 3), jnp.float32)
    b = 0.05 * jax.random.normal(ks[1], (cout,), jnp.float32)
    gamma = 1.0 + 0.1 * jax.random.normal(ks[2], (cout,), jnp.float32)
    beta = 0.05 * jax.random.normal(ks[3], (cout,), jnp.float32)
    mean = 0.05 * jax.random.normal(ks[4], (cout,), jnp.float32)
    var = 1.0 + 0.2 * jax.random.uniform(ks[5], (cout,), jnp.float32)
    return (w, b, gamma, beta, mean, var)


# ----------------------------------------------------------------------------
# Main
# ----------------------------------------------------------------------------
if __name__ == "__main__":
    IN_SIZE, OUT_SIZE = 8, 4
    N, Hp, Wp = 2, 8, 8
    H, W = 2 * Hp, 2 * Wp

    root = jax.random.PRNGKey(0)
    k_layers, kx, kdy, kdx = jax.random.split(root, 4)
    lk = jax.random.split(k_layers, 3)
    params = [
        make_cbr_params(lk[0], IN_SIZE, IN_SIZE),
        make_cbr_params(lk[1], IN_SIZE, IN_SIZE),
        make_cbr_params(lk[2], IN_SIZE, OUT_SIZE),
    ]

    inputs = jax.random.normal(kx, (N, IN_SIZE, Hp, Wp), jnp.float32)
    # MaxPool2d(2,2,return_indices=True)-style flat indices (one per 2x2 window).
    dy = jax.random.randint(kdy, (N, IN_SIZE, Hp, Wp), 0, 2)
    dx = jax.random.randint(kdx, (N, IN_SIZE, Hp, Wp), 0, 2)
    ii = jnp.arange(Hp).reshape(1, 1, Hp, 1)
    jj = jnp.arange(Wp).reshape(1, 1, 1, Wp)
    indices = ((2 * ii + dy) * W + (2 * jj + dx)).astype(jnp.int32)

    @jax.jit
    def run(inp, idx, prm):
        return segnet_up3_pallas(inp, idx, (H, W), prm)

    out = run(inputs, indices, params)
    jax.block_until_ready(out)

    ref = segnet_up3_ref(inputs, indices, (H, W), params)
    jax.block_until_ready(ref)

    assert out.shape == (N, OUT_SIZE, H, W), out.shape
    if not jnp.allclose(out, ref, rtol=5e-2, atol=5e-2):
        err = float(jnp.max(jnp.abs(out - ref)))
        raise AssertionError(f"Pallas segnetUp3 mismatch vs JAX reference (max abs err {err})")

    print("KERNEL_OK")
</pallas_src>

<mosaic_0001>
module attributes {stable_mosaic.version = 11 : i64} {
  func.func @_up3_kernel(%arg0: i32, %arg1: memref<1x16x16x128xf32, #tpu.memory_space<vmem>>, %arg2: memref<1x16x16x128xi32, #tpu.memory_space<vmem>>, %arg3: memref<1152x128xbf16, #tpu.memory_space<vmem>>, %arg4: memref<1x128xf32, #tpu.memory_space<vmem>>, %arg5: memref<1x128xf32, #tpu.memory_space<vmem>>, %arg6: memref<1152x128xbf16, #tpu.memory_space<vmem>>, %arg7: memref<1x128xf32, #tpu.memory_space<vmem>>, %arg8: memref<1x128xf32, #tpu.memory_space<vmem>>, %arg9: memref<1152x128xbf16, #tpu.memory_space<vmem>>, %arg10: memref<1x128xf32, #tpu.memory_space<vmem>>, %arg11: memref<1x128xf32, #tpu.memory_space<vmem>>, %arg12: memref<1x16x16x128xf32, #tpu.memory_space<vmem>>, %arg13: memref<18x32x128xf32, #tpu.memory_space<vmem>>, %arg14: memref<18x32x128xf32, #tpu.memory_space<vmem>>) attributes {dimension_semantics = [#tpu.dimension_semantics<parallel>], iteration_bounds = array<i64: 2>, scalar_prefetch = 0 : i64, scratch_operands = 2 : i64, tpu.core_type = #tpu.core_type<tc>, window_params = [{transform_indices = @transform_0, window_bounds = array<i64: 1, 16, 16, 128>}, {transform_indices = @transform_1, window_bounds = array<i64: 1, 16, 16, 128>}, {pipeline_mode = #tpu.pipeline_mode<synchronous>, transform_indices = @transform_2, window_bounds = array<i64: 1152, 128>}, {pipeline_mode = #tpu.pipeline_mode<synchronous>, transform_indices = @transform_3, window_bounds = array<i64: 1, 128>}, {pipeline_mode = #tpu.pipeline_mode<synchronous>, transform_indices = @transform_4, window_bounds = array<i64: 1, 128>}, {pipeline_mode = #tpu.pipeline_mode<synchronous>, transform_indices = @transform_5, window_bounds = array<i64: 1152, 128>}, {pipeline_mode = #tpu.pipeline_mode<synchronous>, transform_indices = @transform_6, window_bounds = array<i64: 1, 128>}, {pipeline_mode = #tpu.pipeline_mode<synchronous>, transform_indices = @transform_7, window_bounds = array<i64: 1, 128>}, {pipeline_mode = #tpu.pipeline_mode<synchronous>, transform_indices = @transform_8, window_bounds = array<i64: 1152, 128>}, {pipeline_mode = #tpu.pipeline_mode<synchronous>, transform_indices = @transform_9, window_bounds = array<i64: 1, 128>}, {pipeline_mode = #tpu.pipeline_mode<synchronous>, transform_indices = @transform_10, window_bounds = array<i64: 1, 128>}, {transform_indices = @transform_11, window_bounds = array<i64: 1, 16, 16, 128>}]} {
    %cst = arith.constant 0.000000e+00 : f32
    %0 = vector.broadcast %cst : f32 to vector<18x32x128xf32>
    %c0 = arith.constant 0 : index
    %c0_0 = arith.constant 0 : index
    %c0_1 = arith.constant 0 : index
    %1 = vector.load %arg13[%c0, %c0_0, %c0_1] : memref<18x32x128xf32, #tpu.memory_space<vmem>>, vector<18x32x128xf32>
    tpu.vector_store %arg13[%c0, %c0_0, %c0_1], %0 {strides = array<i32>} : memref<18x32x128xf32, #tpu.memory_space<vmem>>, vector<18x32x128xf32>,
    %cst_2 = arith.constant 0.000000e+00 : f32
    %2 = vector.broadcast %cst_2 : f32 to vector<18x32x128xf32>
    %c0_3 = arith.constant 0 : index
    %c0_4 = arith.constant 0 : index
    %c0_5 = arith.constant 0 : index
    %3 = vector.load %arg14[%c0_3, %c0_4, %c0_5] : memref<18x32x128xf32, #tpu.memory_space<vmem>>, vector<18x32x128xf32>
    tpu.vector_store %arg14[%c0_3, %c0_4, %c0_5], %2 {strides = array<i32>} : memref<18x32x128xf32, #tpu.memory_space<vmem>>, vector<18x32x128xf32>,
    %4 = tpu.iota {dimensions = array<i32: 0>} : vector<16x16x128xi32>
    %5 = tpu.iota {dimensions = array<i32: 1>} : vector<16x16x128xi32>
    %c16_i32 = arith.constant 16 : i32
    %6 = vector.broadcast %c16_i32 : i32 to vector<16x16x128xi32>
    %7 = arith.muli %4, %6 : vector<16x16x128xi32>
    %8 = arith.addi %7, %5 : vector<16x16x128xi32>
    %c0_6 = arith.constant 0 : index
    %c0_7 = arith.constant 0 : index
    %c0_8 = arith.constant 0 : index
    %c0_9 = arith.constant 0 : index
    %9 = vector.load %arg2[%c0_6, %c0_7, %c0_8, %c0_9] : memref<1x16x16x128xi32, #tpu.memory_space<vmem>>, vector<1x16x16x128xi32>
    %10 = vector.shape_cast %9 : vector<1x16x16x128xi32> to vector<16x16x128xi32>
    %11 = arith.cmpi eq, %10, %8 : vector<16x16x128xi32>
    %c0_10 = arith.constant 0 : index
    %c0_11 = arith.constant 0 : index
    %c0_12 = arith.constant 0 : index
    %c0_13 = arith.constant 0 : index
    %12 = vector.load %arg1[%c0_10, %c0_11, %c0_12, %c0_13] : memref<1x16x16x128xf32, #tpu.memory_space<vmem>>, vector<1x16x16x128xf32>
    %13 = vector.shape_cast %12 : vector<1x16x16x128xf32> to vector<16x16x128xf32>
    %cst_14 = arith.constant 0.000000e+00 : f32
    %14 = vector.broadcast %cst_14 : f32 to vector<16x16x128xf32>
    %15 = arith.select %11, %13, %14 : vector<16x16x128xi1>, vector<16x16x128xf32>
    %c1 = arith.constant 1 : index
    %c8 = arith.constant 8 : index
    %c0_15 = arith.constant 0 : index
    %16 = vector.load %arg13[%c1, %c8, %c0_15] : memref<18x32x128xf32, #tpu.memory_space<vmem>>, vector<16x16x128xf32>
    tpu.vector_store %arg13[%c1, %c8, %c0_15], %15 {strides = array<i32>} : memref<18x32x128xf32, #tpu.memory_space<vmem>>, vector<16x16x128xf32>,
    %c0_16 = arith.constant 0 : index
    %c7 = arith.constant 7 : index
    %c0_17 = arith.constant 0 : index
    %17 = vector.load %arg13[%c0_16, %c7, %c0_17] : memref<18x32x128xf32, #tpu.memory_space<vmem>>, vector<16x16x128xf32>
    %18 = vector.shape_cast %17 : vector<16x16x128xf32> to vector<256x128xf32>
    %19 = arith.truncf %18 : vector<256x128xf32> to vector<256x128xbf16>
    %c0_18 = arith.constant 0 : index
    %c8_19 = arith.constant 8 : index
    %c0_20 = arith.constant 0 : index
    %20 = vector.load %arg13[%c0_18, %c8_19, %c0_20] : memref<18x32x128xf32, #tpu.memory_space<vmem>>, vector<16x16x128xf32>
    %21 = vector.shape_cast %20 : vector<16x16x128xf32> to vector<256x128xf32>
    %22 = arith.truncf %21 : vector<256x128xf32> to vector<256x128xbf16>
    %c0_21 = arith.constant 0 : index
    %c9 = arith.constant 9 : index
    %c0_22 = arith.constant 0 : index
    %23 = vector.load %arg13[%c0_21, %c9, %c0_22] : memref<18x32x128xf32, #tpu.memory_space<vmem>>, vector<16x16x128xf32>
    %24 = vector.shape_cast %23 : vector<16x16x128xf32> to vector<256x128xf32>
    %25 = arith.truncf %24 : vector<256x128xf32> to vector<256x128xbf16>
    %c1_23 = arith.constant 1 : index
    %c7_24 = arith.constant 7 : index
    %c0_25 = arith.constant 0 : index
    %26 = vector.load %arg13[%c1_23, %c7_24, %c0_25] : memref<18x32x128xf32, #tpu.memory_space<vmem>>, vector<16x16x128xf32>
    %27 = vector.shape_cast %26 : vector<16x16x128xf32> to vector<256x128xf32>
    %28 = arith.truncf %27 : vector<256x128xf32> to vector<256x128xbf16>
    %c1_26 = arith.constant 1 : index
    %c8_27 = arith.constant 8 : index
    %c0_28 = arith.constant 0 : index
    %29 = vector.load %arg13[%c1_26, %c8_27, %c0_28] : memref<18x32x128xf32, #tpu.memory_space<vmem>>, vector<16x16x128xf32>
    %30 = vector.shape_cast %29 : vector<16x16x128xf32> to vector<256x128xf32>
    %31 = arith.truncf %30 : vector<256x128xf32> to vector<256x128xbf16>
    %c1_29 = arith.constant 1 : index
    %c9_30 = arith.constant 9 : index
    %c0_31 = arith.constant 0 : index
    %32 = vector.load %arg13[%c1_29, %c9_30, %c0_31] : memref<18x32x128xf32, #tpu.memory_space<vmem>>, vector<16x16x128xf32>
    %33 = vector.shape_cast %32 : vector<16x16x128xf32> to vector<256x128xf32>
    %34 = arith.truncf %33 : vector<256x128xf32> to vector<256x128xbf16>
    %c2 = arith.constant 2 : index
    %c7_32 = arith.constant 7 : index
    %c0_33 = arith.constant 0 : index
    %35 = vector.load %arg13[%c2, %c7_32, %c0_33] : memref<18x32x128xf32, #tpu.memory_space<vmem>>, vector<16x16x128xf32>
    %36 = vector.shape_cast %35 : vector<16x16x128xf32> to vector<256x128xf32>
    %37 = arith.truncf %36 : vector<256x128xf32> to vector<256x128xbf16>
    %c2_34 = arith.constant 2 : index
    %c8_35 = arith.constant 8 : index
    %c0_36 = arith.constant 0 : index
    %38 = vector.load %arg13[%c2_34, %c8_35, %c0_36] : memref<18x32x128xf32, #tpu.memory_space<vmem>>, vector<16x16x128xf32>
    %39 = vector.shape_cast %38 : vector<16x16x128xf32> to vector<256x128xf32>
    %40 = arith.truncf %39 : vector<256x128xf32> to vector<256x128xbf16>
    %c2_37 = arith.constant 2 : index
    %c9_38 = arith.constant 9 : index
    %c0_39 = arith.constant 0 : index
    %41 = vector.load %arg13[%c2_37, %c9_38, %c0_39] : memref<18x32x128xf32, #tpu.memory_space<vmem>>, vector<16x16x128xf32>
    %42 = vector.shape_cast %41 : vector<16x16x128xf32> to vector<256x128xf32>
    %43 = arith.truncf %42 : vector<256x128xf32> to vector<256x128xbf16>
    %44 = tpu.concatenate %19, %22, %25, %28, %31, %34, %37, %40, %43 in 1 : vector<256x128xbf16>, vector<256x128xbf16>, vector<256x128xbf16>, vector<256x128xbf16>, vector<256x128xbf16>, vector<256x128xbf16>, vector<256x128xbf16>, vector<256x128xbf16>, vector<256x128xbf16> -> vector<256x1152xbf16>
    %c0_40 = arith.constant 0 : index
    %c0_41 = arith.constant 0 : index
    %45 = vector.load %arg3[%c0_40, %c0_41] : memref<1152x128xbf16, #tpu.memory_space<vmem>>, vector<1152x128xbf16>
    %cst_42 = arith.constant dense<0.000000e+00> : vector<256x128xf32>
    %46 = tpu.matmul %44, %45, %cst_42 {dimension_numbers = #tpu.dot_dimension_numbers<[1], [0], [0], [1], [0, 0, 1, 1], [], []>} : vector<256x1152xbf16>, vector<1152x128xbf16>, vector<256x128xf32> -> vector<256x128xf32>
    %c0_43 = arith.constant 0 : index
    %c0_44 = arith.constant 0 : index
    %47 = vector.load %arg4[%c0_43, %c0_44] : memref<1x128xf32, #tpu.memory_space<vmem>>, vector<1x128xf32>
    %48 = vector.broadcast %47 : vector<1x128xf32> to vector<256x128xf32>
    %49 = arith.mulf %46, %48 : vector<256x128xf32>
    %c0_45 = arith.constant 0 : index
    %c0_46 = arith.constant 0 : index
    %50 = vector.load %arg5[%c0_45, %c0_46] : memref<1x128xf32, #tpu.memory_space<vmem>>, vector<1x128xf32>
    %51 = vector.broadcast %50 : vector<1x128xf32> to vector<256x128xf32>
    %52 = arith.addf %49, %51 : vector<256x128xf32>
    %cst_47 = arith.constant 0.000000e+00 : f32
    %53 = vector.broadcast %cst_47 : f32 to vector<256x128xf32>
    %54 = arith.maximumf %52, %53 : vector<256x128xf32>
    %55 = vector.shape_cast %54 : vector<256x128xf32> to vector<16x16x128xf32>
    %c1_48 = arith.constant 1 : index
    %c8_49 = arith.constant 8 : index
    %c0_50 = arith.constant 0 : index
    %56 = vector.load %arg14[%c1_48, %c8_49, %c0_50] : memref<18x32x128xf32, #tpu.memory_space<vmem>>, vector<16x16x128xf32>
    tpu.vector_store %arg14[%c1_48, %c8_49, %c0_50], %55 {strides = array<i32>} : memref<18x32x128xf32, #tpu.memory_space<vmem>>, vector<16x16x128xf32>,
    %c0_51 = arith.constant 0 : index
    %c7_52 = arith.constant 7 : index
    %c0_53 = arith.constant 0 : index
    %57 = vector.load %arg14[%c0_51, %c7_52, %c0_53] : memref<18x32x128xf32, #tpu.memory_space<vmem>>, vector<16x16x128xf32>
    %58 = vector.shape_cast %57 : vector<16x16x128xf32> to vector<256x128xf32>
    %59 = arith.truncf %58 : vector<256x128xf32> to vector<256x128xbf16>
    %c0_54 = arith.constant 0 : index
    %c8_55 = arith.constant 8 : index
    %c0_56 = arith.constant 0 : index
    %60 = vector.load %arg14[%c0_54, %c8_55, %c0_56] : memref<18x32x128xf32, #tpu.memory_space<vmem>>, vector<16x16x128xf32>
    %61 = vector.shape_cast %60 : vector<16x16x128xf32> to vector<256x128xf32>
    %62 = arith.truncf %61 : vector<256x128xf32> to vector<256x128xbf16>
    %c0_57 = arith.constant 0 : index
    %c9_58 = arith.constant 9 : index
    %c0_59 = arith.constant 0 : index
    %63 = vector.load %arg14[%c0_57, %c9_58, %c0_59] : memref<18x32x128xf32, #tpu.memory_space<vmem>>, vector<16x16x128xf32>
    %64 = vector.shape_cast %63 : vector<16x16x128xf32> to vector<256x128xf32>
    %65 = arith.truncf %64 : vector<256x128xf32> to vector<256x128xbf16>
    %c1_60 = arith.constant 1 : index
    %c7_61 = arith.constant 7 : index
    %c0_62 = arith.constant 0 : index
    %66 = vector.load %arg14[%c1_60, %c7_61, %c0_62] : memref<18x32x128xf32, #tpu.memory_space<vmem>>, vector<16x16x128xf32>
    %67 = vector.shape_cast %66 : vector<16x16x128xf32> to vector<256x128xf32>
    %68 = arith.truncf %67 : vector<256x128xf32> to vector<256x128xbf16>
    %c1_63 = arith.constant 1 : index
    %c8_64 = arith.constant 8 : index
    %c0_65 = arith.constant 0 : index
    %69 = vector.load %arg14[%c1_63, %c8_64, %c0_65] : memref<18x32x128xf32, #tpu.memory_space<vmem>>, vector<16x16x128xf32>
    %70 = vector.shape_cast %69 : vector<16x16x128xf32> to vector<256x128xf32>
    %71 = arith.truncf %70 : vector<256x128xf32> to vector<256x128xbf16>
    %c1_66 = arith.constant 1 : index
    %c9_67 = arith.constant 9 : index
    %c0_68 = arith.constant 0 : index
    %72 = vector.load %arg14[%c1_66, %c9_67, %c0_68] : memref<18x32x128xf32, #tpu.memory_space<vmem>>, vector<16x16x128xf32>
    %73 = vector.shape_cast %72 : vector<16x16x128xf32> to vector<256x128xf32>
    %74 = arith.truncf %73 : vector<256x128xf32> to vector<256x128xbf16>
    %c2_69 = arith.constant 2 : index
    %c7_70 = arith.constant 7 : index
    %c0_71 = arith.constant 0 : index
    %75 = vector.load %arg14[%c2_69, %c7_70, %c0_71] : memref<18x32x128xf32, #tpu.memory_space<vmem>>, vector<16x16x128xf32>
    %76 = vector.shape_cast %75 : vector<16x16x128xf32> to vector<256x128xf32>
    %77 = arith.truncf %76 : vector<256x128xf32> to vector<256x128xbf16>
    %c2_72 = arith.constant 2 : index
    %c8_73 = arith.constant 8 : index
    %c0_74 = arith.constant 0 : index
    %78 = vector.load %arg14[%c2_72, %c8_73, %c0_74] : memref<18x32x128xf32, #tpu.memory_space<vmem>>, vector<16x16x128xf32>
    %79 = vector.shape_cast %78 : vector<16x16x128xf32> to vector<256x128xf32>
    %80 = arith.truncf %79 : vector<256x128xf32> to vector<256x128xbf16>
    %c2_75 = arith.constant 2 : index
    %c9_76 = arith.constant 9 : index
    %c0_77 = arith.constant 0 : index
    %81 = vector.load %arg14[%c2_75, %c9_76, %c0_77] : memref<18x32x128xf32, #tpu.memory_space<vmem>>, vector<16x16x128xf32>
    %82 = vector.shape_cast %81 : vector<16x16x128xf32> to vector<256x128xf32>
    %83 = arith.truncf %82 : vector<256x128xf32> to vector<256x128xbf16>
    %84 = tpu.concatenate %59, %62, %65, %68, %71, %74, %77, %80, %83 in 1 : vector<256x128xbf16>, vector<256x128xbf16>, vector<256x128xbf16>, vector<256x128xbf16>, vector<256x128xbf16>, vector<256x128xbf16>, vector<256x128xbf16>, vector<256x128xbf16>, vector<256x128xbf16> -> vector<256x1152xbf16>
    %c0_78 = arith.constant 0 : index
    %c0_79 = arith.constant 0 : index
    %85 = vector.load %arg6[%c0_78, %c0_79] : memref<1152x128xbf16, #tpu.memory_space<vmem>>, vector<1152x128xbf16>
    %cst_80 = arith.constant dense<0.000000e+00> : vector<256x128xf32>
    %86 = tpu.matmul %84, %85, %cst_80 {dimension_numbers = #tpu.dot_dimension_numbers<[1], [0], [0], [1], [0, 0, 1, 1], [], []>} : vector<256x1152xbf16>, vector<1152x128xbf16>, vector<256x128xf32> -> vector<256x128xf32>
    %c0_81 = arith.constant 0 : index
    %c0_82 = arith.constant 0 : index
    %87 = vector.load %arg7[%c0_81, %c0_82] : memref<1x128xf32, #tpu.memory_space<vmem>>, vector<1x128xf32>
    %88 = vector.broadcast %87 : vector<1x128xf32> to vector<256x128xf32>
    %89 = arith.mulf %86, %88 : vector<256x128xf32>
    %c0_83 = arith.constant 0 : index
    %c0_84 = arith.constant 0 : index
    %90 = vector.load %arg8[%c0_83, %c0_84] : memref<1x128xf32, #tpu.memory_space<vmem>>, vector<1x128xf32>
    %91 = vector.broadcast %90 : vector<1x128xf32> to vector<256x128xf32>
    %92 = arith.addf %89, %91 : vector<256x128xf32>
    %cst_85 = arith.constant 0.000000e+00 : f32
    %93 = vector.broadcast %cst_85 : f32 to vector<256x128xf32>
    %94 = arith.maximumf %92, %93 : vector<256x128xf32>
    %95 = vector.shape_cast %94 : vector<256x128xf32> to vector<16x16x128xf32>
    %c1_86 = arith.constant 1 : index
    %c8_87 = arith.constant 8 : index
    %c0_88 = arith.constant 0 : index
    %96 = vector.load %arg13[%c1_86, %c8_87, %c0_88] : memref<18x32x128xf32, #tpu.memory_space<vmem>>, vector<16x16x128xf32>
    tpu.vector_store %arg13[%c1_86, %c8_87, %c0_88], %95 {strides = array<i32>} : memref<18x32x128xf32, #tpu.memory_space<vmem>>, vector<16x16x128xf32>,
    %c0_89 = arith.constant 0 : index
    %c7_90 = arith.constant 7 : index
    %c0_91 = arith.constant 0 : index
    %97 = vector.load %arg13[%c0_89, %c7_90, %c0_91] : memref<18x32x128xf32, #tpu.memory_space<vmem>>, vector<16x16x128xf32>
    %98 = vector.shape_cast %97 : vector<16x16x128xf32> to vector<256x128xf32>
    %99 = arith.truncf %98 : vector<256x128xf32> to vector<256x128xbf16>
    %c0_92 = arith.constant 0 : index
    %c8_93 = arith.constant 8 : index
    %c0_94 = arith.constant 0 : index
    %100 = vector.load %arg13[%c0_92, %c8_93, %c0_94] : memref<18x32x128xf32, #tpu.memory_space<vmem>>, vector<16x16x128xf32>
    %101 = vector.shape_cast %100 : vector<16x16x128xf32> to vector<256x128xf32>
    %102 = arith.truncf %101 : vector<256x128xf32> to vector<256x128xbf16>
    %c0_95 = arith.constant 0 : index
    %c9_96 = arith.constant 9 : index
    %c0_97 = arith.constant 0 : index
    %103 = vector.load %arg13[%c0_95, %c9_96, %c0_97] : memref<18x32x128xf32, #tpu.memory_space<vmem>>, vector<16x16x128xf32>
    %104 = vector.shape_cast %103 : vector<16x16x128xf32> to vector<256x128xf32>
    %105 = arith.truncf %104 : vector<256x128xf32> to vector<256x128xbf16>
    %c1_98 = arith.constant 1 : index
    %c7_99 = arith.constant 7 : index
    %c0_100 = arith.constant 0 : index
    %106 = vector.load %arg13[%c1_98, %c7_99, %c0_100] : memref<18x32x128xf32, #tpu.memory_space<vmem>>, vector<16x16x128xf32>
    %107 = vector.shape_cast %106 : vector<16x16x128xf32> to vector<256x128xf32>
    %108 = arith.truncf %107 : vector<256x128xf32> to vector<256x128xbf16>
    %c1_101 = arith.constant 1 : index
    %c8_102 = arith.constant 8 : index
    %c0_103 = arith.constant 0 : index
    %109 = vector.load %arg13[%c1_101, %c8_102, %c0_103] : memref<18x32x128xf32, #tpu.memory_space<vmem>>, vector<16x16x128xf32>
    %110 = vector.shape_cast %109 : vector<16x16x128xf32> to vector<256x128xf32>
    %111 = arith.truncf %110 : vector<256x128xf32> to vector<256x128xbf16>
    %c1_104 = arith.constant 1 : index
    %c9_105 = arith.constant 9 : index
    %c0_106 = arith.constant 0 : index
    %112 = vector.load %arg13[%c1_104, %c9_105, %c0_106] : memref<18x32x128xf32, #tpu.memory_space<vmem>>, vector<16x16x128xf32>
    %113 = vector.shape_cast %112 : vector<16x16x128xf32> to vector<256x128xf32>
    %114 = arith.truncf %113 : vector<256x128xf32> to vector<256x128xbf16>
    %c2_107 = arith.constant 2 : index
    %c7_108 = arith.constant 7 : index
    %c0_109 = arith.constant 0 : index
    %115 = vector.load %arg13[%c2_107, %c7_108, %c0_109] : memref<18x32x128xf32, #tpu.memory_space<vmem>>, vector<16x16x128xf32>
    %116 = vector.shape_cast %115 : vector<16x16x128xf32> to vector<256x128xf32>
    %117 = arith.truncf %116 : vector<256x128xf32> to vector<256x128xbf16>
    %c2_110 = arith.constant 2 : index
    %c8_111 = arith.constant 8 : index
    %c0_112 = arith.constant 0 : index
    %118 = vector.load %arg13[%c2_110, %c8_111, %c0_112] : memref<18x32x128xf32, #tpu.memory_space<vmem>>, vector<16x16x128xf32>
    %119 = vector.shape_cast %118 : vector<16x16x128xf32> to vector<256x128xf32>
    %120 = arith.truncf %119 : vector<256x128xf32> to vector<256x128xbf16>
    %c2_113 = arith.constant 2 : index
    %c9_114 = arith.constant 9 : index
    %c0_115 = arith.constant 0 : index
    %121 = vector.load %arg13[%c2_113, %c9_114, %c0_115] : memref<18x32x128xf32, #tpu.memory_space<vmem>>, vector<16x16x128xf32>
    %122 = vector.shape_cast %121 : vector<16x16x128xf32> to vector<256x128xf32>
    %123 = arith.truncf %122 : vector<256x128xf32> to vector<256x128xbf16>
    %124 = tpu.concatenate %99, %102, %105, %108, %111, %114, %117, %120, %123 in 1 : vector<256x128xbf16>, vector<256x128xbf16>, vector<256x128xbf16>, vector<256x128xbf16>, vector<256x128xbf16>, vector<256x128xbf16>, vector<256x128xbf16>, vector<256x128xbf16>, vector<256x128xbf16> -> vector<256x1152xbf16>
    %c0_116 = arith.constant 0 : index
    %c0_117 = arith.constant 0 : index
    %125 = vector.load %arg9[%c0_116, %c0_117] : memref<1152x128xbf16, #tpu.memory_space<vmem>>, vector<1152x128xbf16>
    %cst_118 = arith.constant dense<0.000000e+00> : vector<256x128xf32>
    %126 = tpu.matmul %124, %125, %cst_118 {dimension_numbers = #tpu.dot_dimension_numbers<[1], [0], [0], [1], [0, 0, 1, 1], [], []>} : vector<256x1152xbf16>, vector<1152x128xbf16>, vector<256x128xf32> -> vector<256x128xf32>
    %c0_119 = arith.constant 0 : index
    %c0_120 = arith.constant 0 : index
    %127 = vector.load %arg10[%c0_119, %c0_120] : memref<1x128xf32, #tpu.memory_space<vmem>>, vector<1x128xf32>
    %128 = vector.broadcast %127 : vector<1x128xf32> to vector<256x128xf32>
    %129 = arith.mulf %126, %128 : vector<256x128xf32>
    %c0_121 = arith.constant 0 : index
    %c0_122 = arith.constant 0 : index
    %130 = vector.load %arg11[%c0_121, %c0_122] : memref<1x128xf32, #tpu.memory_space<vmem>>, vector<1x128xf32>
    %131 = vector.broadcast %130 : vector<1x128xf32> to vector<256x128xf32>
    %132 = arith.addf %129, %131 : vector<256x128xf32>
    %cst_123 = arith.constant 0.000000e+00 : f32
    %133 = vector.broadcast %cst_123 : f32 to vector<256x128xf32>
    %134 = arith.maximumf %132, %133 : vector<256x128xf32>
    %135 = vector.shape_cast %134 : vector<256x128xf32> to vector<16x16x128xf32>
    %c0_124 = arith.constant 0 : index
    %c0_125 = arith.constant 0 : index
    %c0_126 = arith.constant 0 : index
    %c0_127 = arith.constant 0 : index
    %136 = vector.load %arg12[%c0_124, %c0_125, %c0_126, %c0_127] : memref<1x16x16x128xf32, #tpu.memory_space<vmem>>, vector<1x16x16x128xf32>
    %137 = vector.shape_cast %136 : vector<1x16x16x128xf32> to vector<16x16x128xf32>
    %138 = vector.shape_cast %135 : vector<16x16x128xf32> to vector<1x16x16x128xf32>
    tpu.vector_store %arg12[%c0_124, %c0_125, %c0_126, %c0_127], %138 {strides = array<i32>} : memref<1x16x16x128xf32, #tpu.memory_space<vmem>>, vector<1x16x16x128xf32>,
    return
  }
  func.func @transform_0(%arg0: i32) -> (i32, i32, i32, i32) {
    %c0_i32 = arith.constant 0 : i32
    %c0_i32_0 = arith.constant 0 : i32
    %c0_i32_1 = arith.constant 0 : i32
    %c0_i32_2 = arith.constant 0 : i32
    return %arg0, %c0_i32, %c0_i32_0, %c0_i32_1 : i32, i32, i32, i32
  }
  func.func @transform_1(%arg0: i32) -> (i32, i32, i32, i32) {
    %c0_i32 = arith.constant 0 : i32
    %c0_i32_0 = arith.constant 0 : i32
    %c0_i32_1 = arith.constant 0 : i32
    %c0_i32_2 = arith.constant 0 : i32
    return %arg0, %c0_i32, %c0_i32_0, %c0_i32_1 : i32, i32, i32, i32
  }
  func.func @transform_2(%arg0: i32) -> (i32, i32) {
    %c0_i32 = arith.constant 0 : i32
    %c0_i32_0 = arith.constant 0 : i32
    %c0_i32_1 = arith.constant 0 : i32
    return %c0_i32, %c0_i32_0 : i32, i32
  }
  func.func @transform_3(%arg0: i32) -> (i32, i32) {
    %c0_i32 = arith.constant 0 : i32
    %c0_i32_0 = arith.constant 0 : i32
    %c0_i32_1 = arith.constant 0 : i32
    return %c0_i32, %c0_i32_0 : i32, i32
  }
  func.func @transform_4(%arg0: i32) -> (i32, i32) {
    %c0_i32 = arith.constant 0 : i32
    %c0_i32_0 = arith.constant 0 : i32
    %c0_i32_1 = arith.constant 0 : i32
    return %c0_i32, %c0_i32_0 : i32, i32
  }
  func.func @transform_5(%arg0: i32) -> (i32, i32) {
    %c0_i32 = arith.constant 0 : i32
    %c0_i32_0 = arith.constant 0 : i32
    %c0_i32_1 = arith.constant 0 : i32
    return %c0_i32, %c0_i32_0 : i32, i32
  }
  func.func @transform_6(%arg0: i32) -> (i32, i32) {
    %c0_i32 = arith.constant 0 : i32
    %c0_i32_0 = arith.constant 0 : i32
    %c0_i32_1 = arith.constant 0 : i32
    return %c0_i32, %c0_i32_0 : i32, i32
  }
  func.func @transform_7(%arg0: i32) -> (i32, i32) {
    %c0_i32 = arith.constant 0 : i32
    %c0_i32_0 = arith.constant 0 : i32
    %c0_i32_1 = arith.constant 0 : i32
    return %c0_i32, %c0_i32_0 : i32, i32
  }
  func.func @transform_8(%arg0: i32) -> (i32, i32) {
    %c0_i32 = arith.constant 0 : i32
    %c0_i32_0 = arith.constant 0 : i32
    %c0_i32_1 = arith.constant 0 : i32
    return %c0_i32, %c0_i32_0 : i32, i32
  }
  func.func @transform_9(%arg0: i32) -> (i32, i32) {
    %c0_i32 = arith.constant 0 : i32
    %c0_i32_0 = arith.constant 0 : i32
    %c0_i32_1 = arith.constant 0 : i32
    return %c0_i32, %c0_i32_0 : i32, i32
  }
  func.func @transform_10(%arg0: i32) -> (i32, i32) {
    %c0_i32 = arith.constant 0 : i32
    %c0_i32_0 = arith.constant 0 : i32
    %c0_i32_1 = arith.constant 0 : i32
    return %c0_i32, %c0_i32_0 : i32, i32
  }
  func.func @transform_11(%arg0: i32) -> (i32, i32, i32, i32) {
    %c0_i32 = arith.constant 0 : i32
    %c0_i32_0 = arith.constant 0 : i32
    %c0_i32_1 = arith.constant 0 : i32
    %c0_i32_2 = arith.constant 0 : i32
    return %arg0, %c0_i32, %c0_i32_0, %c0_i32_1 : i32, i32, i32, i32
  }
}

</mosaic_0001>

<bundles_post_ra>
// kernel: run.1
= control target key start
LH: loop header
LB: loop body
LE: loop exit
PB: predicated region body
PF: predicated region fallthrough
CT: control target
= control target key end

     0   :  { %s8898_s17 = smov 0   ;;  %s11805_s0 = inlined_call_operand.vmem [shape: f32[2,16,16,128], index: 0, kind: input, shape index: {}]   ;;  %s11806_s1 = inlined_call_operand.vmem [shape: s32[2,16,16,128], index: 1, kind: input, shape index: {}]   ;;  %s11807_s2 = inlined_call_operand.vmem [shape: bf16[1152,128], index: 2, kind: input, shape index: {}]   ;;  %s11808_s3 = inlined_call_operand.vmem [shape: f32[1,128], index: 3, kind: input, shape index: {}]   ;;  %s11809_s4 = inlined_call_operand.vmem [shape: f32[1,128], index: 4, kind: input, shape index: {}]   ;;  %s11810_s5 = inlined_call_operand.vmem [shape: bf16[1152,128], index: 5, kind: input, shape index: {}]   ;;  %s11811_s6 = inlined_call_operand.vmem [shape: f32[1,128], index: 6, kind: input, shape index: {}]   ;;  %s11812_s7 = inlined_call_operand.vmem [shape: f32[1,128], index: 7, kind: input, shape index: {}]   ;;  %s11813_s8 = inlined_call_operand.vmem [shape: bf16[1152,128], index: 8, kind: input, shape index: {}]   ;;  %s11814_s9 = inlined_call_operand.vmem [shape: f32[1,128], index: 9, kind: input, shape index: {}]   ;;  %s11815_s10 = inlined_call_operand.vmem [shape: f32[1,128], index: 10, kind: input, shape index: {}]   ;;  %s11816_s11 = inlined_call_operand.vmem [shape: f32[2,16,16,128], index: 11, kind: output, shape index: {}]  }
   0x1 LB: > { %s6681_s18 = sadd.s32 4294967295, %s8834_s17   ;;  %p6685_p0 = scmp.ge.s32.totalorder %s8834_s17, 1  ;;  %s8834_s17 = sphi %s8898_s17, %s21_s17  }
   0x2   : > { %p347_p1 = scmp.lt.s32.totalorder %s8834_s17, 3 }
   0x4   : > { %p348_p2 = pnand %p6685_p0, %p347_p1 }
   0x5   : > { %v8909_v0 = vld [vmem:[%s11807_s2 + $0x40] sm:$0xff] (!%p348_p2)   ;;  %v8836_v2 = vmov (!%p348_p2), 0.0   ;;  %v552_v3 = vlaneseq (!%p348_p2)  ;;  %v8506_v4 = vld [vmem:[%s11807_s2 + $0x48] sm:$0xff] (!%p348_p2)   ;;  %p392_p3 = scmp.lt.s32.totalorder (!%p348_p2), %s6681_s18, 1  ;;  %v8508_v6 = vld [vmem:[%s11807_s2 + $0x50] sm:$0xff] (!%p348_p2)   ;;  %v8837_v7 = vmov (!%p348_p2), 0.0|0.0  }
   0x6   : > { %351 = sbr.rel (%p348_p2) target bundleno = 1519 (0x5ef), region = 64  ;;  %v8914_v1 = vld [vmem:[%s11807_s2] sm:$0xff] (!%p348_p2)   ;;  %409 = vst [vmem:[#allocation2 + $0x8] sm:$0xff] (!%p348_p2), %v8836_v2  ;;  %410 = vst [vmem:[#allocation2 + $0x10] sm:$0xff] (!%p348_p2), %v8836_v2  ;;  %6919 = vmatprep.subr.bf16.mxu0 (!%p348_p2), %v8909_v0  ;;  %8479 = vmatprep.subr.bf16.mxu1 (!%p348_p2), %v8909_v0  ;;  %v8507_v5 = vld [vmem:[%s11807_s2 + $0x8] sm:$0xff] (!%p348_p2)  }
   0x7   : > { %408 = vst [vmem:[#allocation2] sm:$0xff] (!%p348_p2), %v8836_v2  ;;  %411 = vst [vmem:[#allocation2 + $0x18] sm:$0xff] (!%p348_p2), %v8836_v2  ;;  %6920 = vmatpush3.bf16.msra.mxu0 (!%p348_p2), %v8914_v1  ;;  %8487 = vmatpush3.bf16.msra.mxu1 (!%p348_p2), %v8914_v1  ;;  %v9011_v8 = vshrl.u32 (!%p348_p2), %v552_v3, 7  ;;  %v8509_v9 = vld [vmem:[%s11807_s2 + $0x10] sm:$0xff] (!%p348_p2)   ;;  %v8510_v10 = vld [vmem:[%s11807_s2 + $0x58] sm:$0xff] (!%p348_p2)  }
   0x8   : > { %412 = vst [vmem:[#allocation2 + $0x20] sm:$0xff] (!%p348_p2), %v8836_v2  ;;  %415 = vst [vmem:[#allocation2 + $0x38] sm:$0xff] (!%p348_p2), %v8836_v2  ;;  %6921 = vmatprep.subr.bf16.mxu0 (!%p348_p2), %v8506_v4  ;;  %8480 = vmatprep.subr.bf16.mxu1 (!%p348_p2), %v8506_v4  ;;  %v8511_v12 = vld [vmem:[%s11807_s2 + $0x18] sm:$0xff] (!%p348_p2)   ;;  %v8512_v13 = vld [vmem:[%s11807_s2 + $0x60] sm:$0xff] (!%p348_p2)  }
   0x9   : > { %416 = vst [vmem:[#allocation2 + $0x40] sm:$0xff] (!%p348_p2), %v8836_v2  ;;  %419 = vst [vmem:[#allocation2 + $0x58] sm:$0xff] (!%p348_p2), %v8836_v2  ;;  %1787 = vmatprep.mubr.bf16.mxu0 (!%p348_p2), %v8837_v7  ;;  %v9022_v11 = vadd.s32 (!%p348_p2), 8, %v9011_v8  ;;  %v575_v14 = vadd.s32 (!%p348_p2), 176, %v9011_v8  ;;  %v8513_v16 = vld [vmem:[%s11807_s2 + $0x20] sm:$0xff] (!%p348_p2)   ;;  %v8514_v17 = vld [vmem:[%s11807_s2 + $0x68] sm:$0xff] (!%p348_p2)  }
   0xa   : > { %420 = vst [vmem:[#allocation2 + $0x60] sm:$0xff] (!%p348_p2), %v8836_v2  ;;  %423 = vst [vmem:[#allocation2 + $0x78] sm:$0xff] (!%p348_p2), %v8836_v2  ;;  %v8515_v24 = vld [vmem:[%s11807_s2 + $0x28] sm:$0xff] (!%p348_p2)   ;;  %v8516_v25 = vld [vmem:[%s11807_s2 + $0x70] sm:$0xff] (!%p348_p2)   ;;  %v9063_v27 = vadd.s32 (!%p348_p2), 192, %v9011_v8  ;;  %v9114_v54 = vadd.s32 (!%p348_p2), 16, %v9011_v8 }
   0xb   : > { %424 = vst [vmem:[#allocation2 + $0x80] sm:$0xff] (!%p348_p2), %v8836_v2  ;;  %427 = vst [vmem:[#allocation2 + $0x98] sm:$0xff] (!%p348_p2), %v8836_v2  ;;  %6922 = vmatpush3.bf16.msra.mxu0 (!%p348_p2), %v8507_v5  ;;  %8488 = vmatpush3.bf16.msra.mxu1 (!%p348_p2), %v8507_v5  ;;  %v576_v15 = vadd.s32 (!%p348_p2), 176, %v9022_v11  ;;  %v8517_v28 = vld [vmem:[%s11807_s2 + $0x30] sm:$0xff] (!%p348_p2)   ;;  %v9069_v29 = vadd.s32 (!%p348_p2), 192, %v9022_v11  ;;  %v8518_v30 = vld [vmem:[%s11807_s2 + $0x78] sm:$0xff] (!%p348_p2)  }
   0xc   : > { %428 = vst [vmem:[#allocation2 + $0xa0] sm:$0xff] (!%p348_p2), %v8836_v2  ;;  %431 = vst [vmem:[#allocation2 + $0xb8] sm:$0xff] (!%p348_p2), %v8836_v2  ;;  %6923 = vmatprep.subr.bf16.mxu0 (!%p348_p2), %v8508_v6  ;;  %8481 = vmatprep.subr.bf16.mxu1 (!%p348_p2), %v8508_v6  ;;  %v8519_v33 = vld [vmem:[%s11807_s2 + $0x38] sm:$0xff] (!%p348_p2)   ;;  %v8520_v46 = vld [vmem:[%s11807_s2 + $0xc0] sm:$0xff] (!%p348_p2)   ;;  %v9120_v56 = vadd.s32 (!%p348_p2), 16, %v9022_v11  ;;  %v9126_v58 = vadd.s32 (!%p348_p2), 208, %v9011_v8 }
   0xd   : > { %432 = vst [vmem:[#allocation2 + $0xc0] sm:$0xff] %v8836_v2  ;;  %435 = vst [vmem:[#allocation2 + $0xd8] sm:$0xff] %v8836_v2  ;;  %s11844_s18 = smov (!%p392_p3, %s6681_s18), 1  ;;  %v747_v35 = vld [vmem:[#allocation2 + $0xf] sm:$0xff]  ;;  %v8521_v47 = vld [vmem:[%s11807_s2 + $0x140] sm:$0xff]   ;;  %v9136_v62 = vadd.s32 208, %v9022_v11 }
   0xe   : > { %436 = vst [vmem:[#allocation2 + $0xe0] sm:$0xff] %v8836_v2  ;;  %439 = vst [vmem:[#allocation2 + $0xf8] sm:$0xff] %v8836_v2  ;;  %s9024_s14 = sshll.u32 %s11844_s18, 8  ;;  %v746_v34 = vld [vmem:[#allocation2 + $0x7] sm:$0xff]  ;;  %v8526_v1 = vld [vmem:[%s11807_s2 + $0xd0] sm:$0xff]  }
   0xf   : > { %440 = vst [vmem:[#allocation2 + $0x100] sm:$0xff] %v8836_v2  ;;  %443 = vst [vmem:[#allocation2 + $0x118] sm:$0xff] %v8836_v2  ;;  %6924 = vmatpush3.bf16.msra.mxu0 %v8509_v9  ;;  %8489 = vmatpush3.bf16.msra.mxu1 %v8509_v9  ;;  %s9036_s23 = scalar_lea.vmem %s11805_s0, %s9024_s14  ;;  %s9042_s25 = scalar_lea.vmem %s11806_s1, %s9024_s14  ;;  %v8522_v50 = vld [vmem:[%s11807_s2 + $0x80] sm:$0xff]   ;;  %v778_v51 = vpack.c.bf16 %v747_v35, %v746_v34  ;;  %v8524_v55 = vld [vmem:[%s11807_s2 + $0xc8] sm:$0xff]  }
  0x10   : > { %444 = vst [vmem:[#allocation2 + $0x120] sm:$0xff] %v8836_v2  ;;  %447 = vst [vmem:[#allocation2 + $0x138] sm:$0xff] %v8836_v2  ;;  %6925 = vmatprep.subr.bf16.mxu0 %v8510_v10  ;;  %8482 = vmatprep.subr.bf16.mxu1 %v8510_v10  ;;  %v607_v18 = vld [vmem:[%s9042_s25 + $0xb0] sm:$0xff]  ;;  %v608_v19 = vld [vmem:[%s9042_s25 + $0xb8] sm:$0xff]  ;;  %s11678_s24 = scalar_lea.vmem %s11816_s11, %s9024_s14 }
  0x11   : > { %448 = vst [vmem:[#allocation2 + $0x140] sm:$0xff] %v8836_v2  ;;  %451 = vst [vmem:[#allocation2 + $0x158] sm:$0xff] %v8836_v2  ;;  %v671_v20 = vld [vmem:[%s9036_s23 + $0xb0] sm:$0xff]  ;;  %vm639_vm0 = vcmp.eq.s32.totalorder %v607_v18, %v575_v14  ;;  %vm640_vm1 = vcmp.eq.s32.totalorder %v608_v19, %v576_v15  ;;  %v672_v21 = vld [vmem:[%s9036_s23 + $0xb8] sm:$0xff]  ;;  %v9167_v15 = vadd.s32 32, %v9011_v8  ;;  %v9178_v19 = vadd.s32 32, %v9022_v11 }
  0x12   : > { %452 = vst [vmem:[#allocation2 + $0x160] sm:$0xff] %v8836_v2  ;;  %455 = vst [vmem:[#allocation2 + $0x178] sm:$0xff] %v8836_v2  ;;  %v703_v22 = vsel %vm639_vm0, %v671_v20, 0.0  ;;  %v704_v23 = vsel %vm640_vm1, %v672_v21, 0.0  ;;  %v8724_v26 = vpack.c.bf16 %v672_v21, %v671_v20  ;;  %v585_v31 = vld [vmem:[%s9042_s25] sm:$0xff]  ;;  %v586_v32 = vld [vmem:[%s9042_s25 + $0x8] sm:$0xff] }
  0x13   : > { %456 = vst [vmem:[#allocation2 + $0x180] sm:$0xff] %v8836_v2  ;;  %459 = vst [vmem:[#allocation2 + $0x198] sm:$0xff] %v8836_v2  ;;  %6926 = vmatpush3.bf16.msra.mxu0 %v8511_v12  ;;  %8490 = vmatpush3.bf16.msra.mxu1 %v8511_v12  ;;  %vm617_vm3 = vcmp.eq.s32.totalorder %v585_v31, %v9011_v8  ;;  %vm618_vm4 = vcmp.eq.s32.totalorder %v586_v32, %v9022_v11  ;;  %v649_v36 = vld [vmem:[%s9036_s23] sm:$0xff]  ;;  %v650_v37 = vld [vmem:[%s9036_s23 + $0x8] sm:$0xff]  ;;  %v9181_v20 = vadd.s32 224, %v9011_v8 }
  0x14   : > { %460 = vst [vmem:[#allocation2 + $0x1a0] sm:$0xff] %v8836_v2  ;;  %463 = vst [vmem:[#allocation2 + $0x1b8] sm:$0xff] %v8836_v2  ;;  %6927 = vmatprep.subr.bf16.mxu0 %v8512_v13  ;;  %8483 = vmatprep.subr.bf16.mxu1 %v8512_v13  ;;  %v9084_v38 = vld [vmem:[%s9042_s25 + $0xc0] sm:$0xff]  ;;  %v681_v41 = vsel %vm617_vm3, %v649_v36, 0.0  ;;  %v682_v42 = vsel %vm618_vm4, %v650_v37, 0.0  ;;  %v610_v43 = vld [vmem:[%s9042_s25 + $0xc8] sm:$0xff]  ;;  %v9155_v7 = vpack.c.bf16 %v650_v37, %v649_v36 }
  0x15   : > { %464 = vst [vmem:[#allocation2 + $0x1c0] sm:$0xff] %v8836_v2  ;;  %467 = vst [vmem:[#allocation2 + $0x1d8] sm:$0xff] %v8836_v2  ;;  %vm641_vm5 = vcmp.eq.s32.totalorder %v9084_v38, %v9063_v27  ;;  %vm642_vm6 = vcmp.eq.s32.totalorder %v610_v43, %v9069_v29  ;;  %v673_v44 = vld [vmem:[%s9036_s23 + $0xc0] sm:$0xff]  ;;  %v674_v45 = vld [vmem:[%s9036_s23 + $0xc8] sm:$0xff]  ;;  %v582_v27 = vadd.s32 224, %v9022_v11 }
  0x16   : > { %468 = vst [vmem:[#allocation2 + $0x1e0] sm:$0xff] %v8836_v2  ;;  %471 = vst [vmem:[#allocation2 + $0x1f8] sm:$0xff] %v8836_v2  ;;  %v705_v48 = vsel %vm641_vm5, %v673_v44, 0.0  ;;  %v706_v49 = vsel %vm642_vm6, %v674_v45, 0.0  ;;  %v8523_v53 = vld [vmem:[%s11807_s2 + $0x100] sm:$0xff]   ;;  %v8529_v57 = vld [vmem:[%s11807_s2 + $0x148] sm:$0xff]  }
  0x17   : > { %472 = vst [vmem:[#allocation2 + $0x200] sm:$0xff] %v8836_v2  ;;  %475 = vst [vmem:[#allocation2 + $0x218] sm:$0xff] %v8836_v2  ;;  %6928 = vmatpush3.bf16.msra.mxu0 %v8513_v16  ;;  %8491 = vmatpush3.bf16.msra.mxu1 %v8513_v16  ;;  %v8525_v59 = vld [vmem:[%s11807_s2 + $0x88] sm:$0xff]   ;;  %v587_v61 = vld [vmem:[%s9042_s25 + $0x10] sm:$0xff]  ;;  %v8730_v16 = vpack.c.bf16 %v674_v45, %v673_v44 }
  0x18   : > { %476 = vst [vmem:[#allocation2 + $0x220] sm:$0xff] %v8836_v2  ;;  %477 = vst [vmem:[#allocation2 + $0x228] sm:$0xff] %v8836_v2  ;;  %6929 = vmatprep.subr.bf16.mxu0 %v8514_v17  ;;  %8484 = vmatprep.subr.bf16.mxu1 %v8514_v17  ;;  %v8531_v60 = vld [vmem:[%s11807_s2 + $0x108] sm:$0xff]   ;;  %vm619_vm7 = vcmp.eq.s32.totalorder %v587_v61, %v9114_v54  ;;  %v651_v3 = vld [vmem:[%s9036_s23 + $0x10] sm:$0xff] }
  0x19   : > { %478 = vst [vmem:[#allocation2 + $0x230] sm:$0xff] %v8836_v2  ;;  %479 = vst [vmem:[#allocation2 + $0x238] sm:$0xff] %v8836_v2  ;;  %v652_v4 = vld [vmem:[%s9036_s23 + $0x18] sm:$0xff]  ;;  %v611_v5 = vld [vmem:[%s9042_s25 + $0xd0] sm:$0xff]  ;;  %v683_v12 = vsel %vm619_vm7, %v651_v3, 0.0 }
  0x1a   : > { %480 = vst [vmem:[#allocation3] sm:$0xff] %v8836_v2  ;;  %481 = vst [vmem:[#allocation3 + $0x8] sm:$0xff] %v8836_v2  ;;  %v612_v14 = vld [vmem:[%s9042_s25 + $0xd8] sm:$0xff]  ;;  %vm643_vm10 = vcmp.eq.s32.totalorder %v611_v5, %v9126_v58  ;;  %v675_v17 = vld [vmem:[%s9036_s23 + $0xd0] sm:$0xff]  ;;  %v9219_v35 = vpack.c.bf16 %v652_v4, %v651_v3  ;;  %v9289_v5 = vadd.s32 64, %v9022_v11 }
  0x1b   : > { %482 = vst [vmem:[#allocation3 + $0x10] sm:$0xff] %v8836_v2  ;;  %483 = vst [vmem:[#allocation3 + $0x18] sm:$0xff] %v8836_v2  ;;  %6930 = vmatpush3.bf16.msra.mxu0 %v8515_v24  ;;  %8492 = vmatpush3.bf16.msra.mxu1 %v8515_v24  ;;  %vm644_vm12 = vcmp.eq.s32.totalorder %v612_v14, %v9136_v62  ;;  %v676_v18 = vld [vmem:[%s9036_s23 + $0xd8] sm:$0xff]  ;;  %v707_v24 = vsel %vm643_vm10, %v675_v17, 0.0  ;;  %v589_v29 = vld [vmem:[%s9042_s25 + $0x20] sm:$0xff] }
  0x1c   : > { %484 = vst [vmem:[#allocation3 + $0x20] sm:$0xff] %v8836_v2  ;;  %487 = vst [vmem:[#allocation3 + $0x38] sm:$0xff] %v8836_v2  ;;  %6931 = vmatprep.subr.bf16.mxu0 %v8516_v25  ;;  %8485 = vmatprep.subr.bf16.mxu1 %v8516_v25  ;;  %v708_v25 = vsel %vm644_vm12, %v676_v18, 0.0  ;;  %v590_v31 = vld [vmem:[%s9042_s25 + $0x28] sm:$0xff]  ;;  %vm621_vm13 = vcmp.eq.s32.totalorder %v589_v29, %v9167_v15  ;;  %v653_v32 = vld [vmem:[%s9036_s23 + $0x20] sm:$0xff]  ;;  %v9301_v15 = vadd.s32 80, %v9011_v8 }
  0x1d   : > { %488 = vst [vmem:[#allocation3 + $0x40] sm:$0xff] %v8836_v2  ;;  %491 = vst [vmem:[#allocation3 + $0x58] sm:$0xff] %v8836_v2  ;;  %vm622_vm15 = vcmp.eq.s32.totalorder %v590_v31, %v9178_v19  ;;  %v685_v36 = vsel %vm621_vm13, %v653_v32, 0.0  ;;  %v613_v37 = vld [vmem:[%s9042_s25 + $0xe0] sm:$0xff]  ;;  %v614_v38 = vld [vmem:[%s9042_s25 + $0xe8] sm:$0xff] }
  0x1e   : > { %492 = vst [vmem:[#allocation3 + $0x60] sm:$0xff] %v8836_v2  ;;  %495 = vst [vmem:[#allocation3 + $0x78] sm:$0xff] %v8836_v2  ;;  %v678_v44 = vld [vmem:[%s9036_s23 + $0xe8] sm:$0xff]  ;;  %v8539_v54 = vld [vmem:[%s11807_s2 + $0x110] sm:$0xff]  }
  0x1f   : > { %496 = vst [vmem:[#allocation3 + $0x80] sm:$0xff] %v8836_v2  ;;  %499 = vst [vmem:[#allocation3 + $0x98] sm:$0xff] %v8836_v2  ;;  %6932 = vmatpush3.bf16.msra.mxu0 %v8517_v28  ;;  %8493 = vmatpush3.bf16.msra.mxu1 %v8517_v28  ;;  %v8530_v28 = vld [vmem:[%s11807_s2 + $0x98] sm:$0xff]   ;;  %v658_v29 = vld [vmem:[%s9036_s23 + $0x48] sm:$0xff] }
  0x20   : > { %500 = vst [vmem:[#allocation3 + $0xa0] sm:$0xff] %v8836_v2  ;;  %503 = vst [vmem:[#allocation3 + $0xb8] sm:$0xff] %v8836_v2  ;;  %6933 = vmatprep.subr.bf16.mxu0 %v8518_v30  ;;  %8486 = vmatprep.subr.bf16.mxu1 %v8518_v30  ;;  %v8532_v30 = vld [vmem:[%s11807_s2 + $0xe0] sm:$0xff]   ;;  %v592_v3 = vld [vmem:[%s9042_s25 + $0x38] sm:$0xff] }
  0x21   : > { %504 = vst [vmem:[#allocation3 + $0xc0] sm:$0xff] %v8836_v2  ;;  %507 = vst [vmem:[#allocation3 + $0xd8] sm:$0xff] %v8836_v2  ;;  %v656_v14 = vld [vmem:[%s9036_s23 + $0x38] sm:$0xff]  ;;  %v8573_v34 = vld [vmem:[%s11807_s2 + $0x228] sm:$0xff]  }
  0x22   : > { %508 = vst [vmem:[#allocation3 + $0xe0] sm:$0xff] %v8836_v2  ;;  %511 = vst [vmem:[#allocation3 + $0xf8] sm:$0xff] %v8836_v2  ;;  %v8542_v19 = vld [vmem:[%s11807_s2 + $0x158] sm:$0xff]  }
  0x23   : > { %512 = vst [vmem:[#allocation3 + $0x100] sm:$0xff] %v8836_v2  ;;  %515 = vst [vmem:[#allocation3 + $0x118] sm:$0xff] %v8836_v2  ;;  %6934 = vmatpush3.bf16.msra.mxu0 %v8519_v33  ;;  %8494 = vmatpush3.bf16.msra.mxu1 %v8519_v33  ;;  %v654_v33 = vld [vmem:[%s9036_s23 + $0x28] sm:$0xff] }
  0x24   : > { %516 = vst [vmem:[#allocation3 + $0x120] sm:$0xff] %v8836_v2  ;;  %519 = vst [vmem:[#allocation3 + $0x138] sm:$0xff] %v8836_v2  ;;  %7031 = vmatprep.subr.bf16.mxu1 %v8520_v46  ;;  %7143 = vmatprep.subr.bf16.mxu0 %v8521_v47  ;;  %v686_v43 = vsel %vm622_vm15, %v654_v33, 0.0 }
  0x25   : > { %520 = vst [vmem:[#allocation3 + $0x140] sm:$0xff] %v8836_v2  ;;  %523 = vst [vmem:[#allocation3 + $0x158] sm:$0xff] %v8836_v2 }
  0x26   : > { %524 = vst [vmem:[#allocation3 + $0x160] sm:$0xff] %v8836_v2  ;;  %527 = vst [vmem:[#allocation3 + $0x178] sm:$0xff] %v8836_v2  ;;  %1788 = vmatmul.mubr.bf16.vlgmr.msra.gmra.mrb[0].mxu0 %v778_v51 }
  0x27   : > { %528 = vst [vmem:[#allocation3 + $0x180] sm:$0xff] %v8836_v2  ;;  %531 = vst [vmem:[#allocation3 + $0x198] sm:$0xff] %v8836_v2  ;;  %7144 = vmatpush3.bf16.msra.mxu0 %v8523_v53  ;;  %v8534_v53 = vld [vmem:[%s11807_s2 + $0xe8] sm:$0xff]  }
  0x28   : > { %532 = vst [vmem:[#allocation3 + $0x1a0] sm:$0xff] %v8836_v2  ;;  %535 = vst [vmem:[#allocation3 + $0x1b8] sm:$0xff] %v8836_v2  ;;  %7145 = vmatprep.subr.bf16.mxu0 %v8529_v57  ;;  %v560_v57 = vadd.s32 48, %v9022_v11 }
  0x29   : > { %536 = vst [vmem:[#allocation3 + $0x1c0] sm:$0xff] %v8836_v2  ;;  %539 = vst [vmem:[#allocation3 + $0x1d8] sm:$0xff] %v8836_v2 }
  0x2a   : > { %540 = vst [vmem:[#allocation3 + $0x1e0] sm:$0xff] %v8836_v2  ;;  %543 = vst [vmem:[#allocation3 + $0x1f8] sm:$0xff] %v8836_v2 }
  0x2b   : > { %544 = vst [vmem:[#allocation3 + $0x200] sm:$0xff] %v8836_v2  ;;  %547 = vst [vmem:[#allocation3 + $0x218] sm:$0xff] %v8836_v2  ;;  %7146 = vmatpush3.bf16.msra.mxu0 %v8531_v60 }
  0x2c   : > { %548 = vst [vmem:[#allocation3 + $0x220] sm:$0xff] %v8836_v2  ;;  %549 = vst [vmem:[#allocation3 + $0x228] sm:$0xff] %v8836_v2 }
  0x2d   : > { %550 = vst [vmem:[#allocation3 + $0x230] sm:$0xff] %v8836_v2  ;;  %551 = vst [vmem:[#allocation3 + $0x238] sm:$0xff] %v8836_v2  ;;  %v588_v2 = vld [vmem:[%s9042_s25 + $0x18] sm:$0xff] }
  0x2e   : > { %736 = vst [vmem:[#allocation2 + $0x188] sm:$0xff] %v703_v22  ;;  %737 = vst [vmem:[#allocation2 + $0x190] sm:$0xff] %v704_v23  ;;  %vm620_vm8 = vcmp.eq.s32.totalorder %v588_v2, %v9120_v56  ;;  %v8527_v23 = vld [vmem:[%s11807_s2 + $0x90] sm:$0xff]   ;;  %v8535_v56 = vld [vmem:[%s11807_s2 + $0xa8] sm:$0xff]  }
  0x2f   : > { %vm8723_vm2 = vmpackc.low %vm640_vm1, %vm639_vm0  ;;  %714 = vst [vmem:[#allocation2 + $0x28] sm:$0xff] %v681_v41  ;;  %v684_v13 = vsel %vm620_vm8, %v652_v4, 0.0  ;;  %vm645_vm1 = vcmp.eq.s32.totalorder %v613_v37, %v9181_v20  ;;  %v9286_v4 = vadd.s32 64, %v9011_v8  ;;  %v8541_v20 = vld [vmem:[%s11807_s2 + $0xb8] sm:$0xff]   ;;  %v9344_v37 = vld [vmem:[%s9042_s25 + $0x50] sm:$0xff] }
  0x30   : > { %8725 = vmatprep.mubr.msk.bf16.mxu1 %vm8723_vm2, %v8724_v26  ;;  %715 = vst [vmem:[#allocation2 + $0x30] sm:$0xff] %v682_v42  ;;  %738 = vst [vmem:[#allocation2 + $0x1a8] sm:$0xff] %v705_v48  ;;  %v8528_v26 = vld [vmem:[%s11807_s2 + $0xd8] sm:$0xff]   ;;  %vm646_vm2 = vcmp.eq.s32.totalorder %v614_v38, %v582_v27  ;;  %v842_v27 = vld [vmem:[#allocation2 + $0x9] sm:$0xff] }
  0x31   : > { %739 = vst [vmem:[#allocation2 + $0x1b0] sm:$0xff] %v706_v49  ;;  %vm9151_vm9 = vmpackc.low %vm618_vm4, %vm617_vm3  ;;  %v710_v46 = vsel %vm646_vm2, %v678_v44, 0.0  ;;  %v9347_v38 = vld [vmem:[%s9042_s25 + $0x58] sm:$0xff] }
  0x32   : > { %8728 = vmatprep.mubr.msk.bf16.mxu0 %vm9151_vm9, %v9155_v7  ;;  %vm8729_vm11 = vmpackc.low %vm642_vm6, %vm641_vm5  ;;  %716 = vst [vmem:[#allocation2 + $0x48] sm:$0xff] %v683_v12  ;;  %v8538_v12 = vld [vmem:[%s11807_s2 + $0xb0] sm:$0xff]   ;;  %vm624_vm6 = vcmp.eq.s32.totalorder %v592_v3, %v560_v57  ;;  %v9396_v57 = vld [vmem:[%s9036_s23 + $0x68] sm:$0xff] }
  0x33   : > { %717 = vst [vmem:[#allocation2 + $0x50] sm:$0xff] %v684_v13  ;;  %740 = vst [vmem:[#allocation2 + $0x1c8] sm:$0xff] %v707_v24  ;;  %v655_v13 = vld [vmem:[%s9036_s23 + $0x30] sm:$0xff]  ;;  %v593_v24 = vld [vmem:[%s9042_s25 + $0x40] sm:$0xff] }
  0x34   : > { %741 = vst [vmem:[#allocation2 + $0x1d0] sm:$0xff] %v708_v25  ;;  %vm9215_vm14 = vmpackc.low %vm620_vm8, %vm619_vm7  ;;  %v594_v25 = vld [vmem:[%s9042_s25 + $0x48] sm:$0xff]  ;;  %vm625_vm7 = vcmp.eq.s32.totalorder %v593_v24, %v9286_v4  ;;  %v9334_v31 = vpack.c.bf16 %v656_v14, %v655_v13  ;;  %v9468_v24 = vld [vmem:[%s9042_s25 + $0x80] sm:$0xff] }
  0x35   : > { %v770_v39 = vld [vmem:[#allocation2 + $0x187] sm:$0xff]  ;;  %v771_v40 = vld [vmem:[#allocation2 + $0x18f] sm:$0xff]  ;;  %vm8735_vm0 = vmpackc.low %vm644_vm12, %vm643_vm10  ;;  %718 = vst [vmem:[#allocation2 + $0x68] sm:$0xff] %v685_v36  ;;  %vm626_vm8 = vcmp.eq.s32.totalorder %v594_v25, %v9289_v5 }
  0x36   : > { %v790_v52 = vpack.c.bf16 %v771_v40, %v770_v39  ;;  %v748_v63 = vld [vmem:[#allocation2 + $0x27] sm:$0xff]  ;;  %v8736_v40 = vpack.c.bf16 %v676_v18, %v675_v17  ;;  %719 = vst [vmem:[#allocation2 + $0x70] sm:$0xff] %v686_v43  ;;  %743 = vst [vmem:[#allocation2 + $0x1f0] sm:$0xff] %v710_v46  ;;  %v688_v18 = vsel %vm624_vm6, %v656_v14, 0.0  ;;  %v690_v36 = vsel %vm626_vm8, %v658_v29, 0.0  ;;  %v867_v58 = vld [vmem:[#allocation2 + $0x191] sm:$0xff] }
  0x37   : > { %v749_v0 = vld [vmem:[#allocation2 + $0x2f] sm:$0xff]  ;;  %v772_v9 = vld [vmem:[#allocation2 + $0x1a7] sm:$0xff]  ;;  %vm9268_vm3 = vmpackc.low %vm622_vm15, %vm621_vm13  ;;  %721 = vst [vmem:[#allocation2 + $0x90] sm:$0xff] %v688_v18  ;;  %v9443_v14 = vadd.s32 128, %v9022_v11 }
  0x38   : > { %1884 = vmatmul.mubr.bf16.vlgmr.msra.gmra.mrb[0].mxu1 %v790_v52  ;;  %v773_v10 = vld [vmem:[#allocation2 + $0x1af] sm:$0xff]  ;;  %v9183_v21 = vpack.c.bf16 %v749_v0, %v748_v63  ;;  %v677_v39 = vld [vmem:[%s9036_s23 + $0xe0] sm:$0xff]  ;;  %vm8741_vm4 = vmpackc.low %vm646_vm2, %vm645_vm1  ;;  %723 = vst [vmem:[#allocation2 + $0xb0] sm:$0xff] %v690_v36 }
  0x39   : > { %7032 = vmatpush3.bf16.msra.mxu1 %v8522_v50  ;;  %8731 = vmatprep.mubr.msk.bf16.mxu1 %vm8729_vm11, %v8730_v16  ;;  %v9185_v22 = vpack.c.bf16 %v773_v10, %v772_v9  ;;  %v750_v41 = vld [vmem:[#allocation2 + $0x47] sm:$0xff]  ;;  %v709_v45 = vsel %vm645_vm1, %v677_v39, 0.0  ;;  %v8537_v52 = vld [vmem:[%s11807_s2 + $0x150] sm:$0xff]   ;;  %v8742_v61 = vpack.c.bf16 %v678_v44, %v677_v39  ;;  %v8540_v16 = vld [vmem:[%s11807_s2 + $0xf8] sm:$0xff]   ;;  %vm627_vm11 = vcmp.eq.s32.totalorder %v9344_v37, %v9301_v15 }
  0x3a   : > { %7033 = vmatprep.subr.bf16.mxu1 %v8524_v55  ;;  %1796 = vmatmul.mubr.bf16.gmra.mrb[4].mxu0 %v9183_v21  ;;  %v751_v42 = vld [vmem:[#allocation2 + $0x4f] sm:$0xff]  ;;  %v774_v48 = vld [vmem:[#allocation2 + $0x1c7] sm:$0xff]  ;;  %742 = vst [vmem:[#allocation2 + $0x1e8] sm:$0xff] %v709_v45  ;;  %v559_v55 = vadd.s32 48, %v9011_v8 }
  0x3b   : > { %8734 = vmatprep.mubr.msk.bf16.mxu0 %vm9215_vm14, %v9219_v35  ;;  %v9241_v47 = vpack.c.bf16 %v751_v42, %v750_v41  ;;  %v775_v49 = vld [vmem:[#allocation2 + $0x1cf] sm:$0xff]  ;;  %v8533_v50 = vld [vmem:[%s11807_s2 + $0xa0] sm:$0xff]   ;;  %7147 = vmatprep.subr.bf16.mxu0 %v8537_v52  ;;  %v9359_v41 = vadd.s32 96, %v9011_v8  ;;  %v9368_v42 = vadd.s32 96, %v9022_v11 }
  0x3c   : > { %v9246_v51 = vpack.c.bf16 %v775_v49, %v774_v48  ;;  %v752_v60 = vld [vmem:[#allocation2 + $0x67] sm:$0xff]  ;;  %v8536_v63 = vld [vmem:[%s11807_s2 + $0xf0] sm:$0xff]   ;;  %7148 = vmatpush3.bf16.msra.mxu0 %v8539_v54 }
  0x3d   : > { %7034 = vmatpush3.bf16.msra.mxu1 %v8525_v59  ;;  %v9272_v59 = vpack.c.bf16 %v654_v33, %v653_v32  ;;  %v753_v62 = vld [vmem:[#allocation2 + $0x6f] sm:$0xff]  ;;  %7149 = vmatprep.subr.bf16.mxu0 %v8542_v19  ;;  %v8544_v45 = vld [vmem:[%s11807_s2 + $0x160] sm:$0xff]   ;;  %v9457_v19 = vld [vmem:[%s9036_s23 + $0x78] sm:$0xff] }
  0x3e   : > { %7035 = vmatprep.subr.bf16.mxu1 %v8526_v1  ;;  %v591_v0 = vld [vmem:[%s9042_s25 + $0x30] sm:$0xff]  ;;  %v9291_v9 = vpack.c.bf16 %v753_v62, %v752_v60  ;;  %v8545_v49 = vld [vmem:[%s11807_s2 + $0x120] sm:$0xff]   ;;  %v9399_v60 = vadd.s32 112, %v9011_v8  ;;  %v8546_v4 = vld [vmem:[%s11807_s2 + $0x168] sm:$0xff]  }
  0x3f   : > { %vm623_vm5 = vcmp.eq.s32.totalorder %v591_v0, %v559_v55  ;;  %v843_v32 = vld [vmem:[#allocation2 + $0x11] sm:$0xff]  ;;  %v9383_v52 = vld [vmem:[%s9042_s25 + $0x60] sm:$0xff]  ;;  %v844_v55 = vld [vmem:[#allocation2 + $0x29] sm:$0xff] }
  0x40   : > { %1892 = vmatmul.mubr.bf16.gmra.mrb[4].mxu1 %v9185_v22  ;;  %v687_v17 = vsel %vm623_vm5, %v655_v13, 0.0  ;;  %vm9330_vm10 = vmpackc.low %vm624_vm6, %vm623_vm5  ;;  %v9353_v39 = vld [vmem:[%s9036_s23 + $0x50] sm:$0xff]  ;;  %v874_v43 = vpack.c.bf16 %v843_v32, %v842_v27  ;;  %v9389_v54 = vld [vmem:[%s9036_s23 + $0x60] sm:$0xff]  ;;  %vm629_vm13 = vcmp.eq.s32.totalorder %v9383_v52, %v9359_v41 }
  0x41   : > { %7036 = vmatpush3.bf16.msra.mxu1 %v8527_v23  ;;  %8737 = vmatprep.mubr.msk.bf16.mxu1 %vm8735_vm0, %v8736_v40  ;;  %v776_v1 = vld [vmem:[#allocation2 + $0x1e7] sm:$0xff]  ;;  %v777_v2 = vld [vmem:[#allocation2 + $0x1ef] sm:$0xff]  ;;  %720 = vst [vmem:[#allocation2 + $0x88] sm:$0xff] %v687_v17  ;;  %v8543_v23 = vld [vmem:[%s11807_s2 + $0x118] sm:$0xff]   ;;  %v693_v62 = vsel %vm629_vm13, %v9389_v54, 0.0 }
  0x42   : > { %7037 = vmatprep.subr.bf16.mxu1 %v8528_v26  ;;  %1804 = vmatmul.mubr.bf16.gmra.mrb[8].mxu0 %v9241_v47  ;;  %v9293_v10 = vpack.c.bf16 %v777_v2, %v776_v1  ;;  %v9320_v26 = vadd.s32 80, %v9022_v11  ;;  %v9356_v40 = vld [vmem:[%s9036_s23 + $0x58] sm:$0xff]  ;;  %vm9417_vm0 = vmpackc.low %vm626_vm8, %vm625_vm7  ;;  %726 = vst [vmem:[#allocation2 + $0xe8] sm:$0xff] %v693_v62  ;;  %v8547_v5 = vld [vmem:[%s11807_s2 + $0x128] sm:$0xff]  }
  0x43   : > { %8740 = vmatprep.mubr.msk.bf16.mxu0 %vm9268_vm3, %v9272_v59  ;;  %7150 = vmatpush3.bf16.msra.mxu0 %v8543_v23  ;;  %v9440_v13 = vld [vmem:[%s9042_s25 + $0x78] sm:$0xff]  ;;  %v9454_v18 = vld [vmem:[%s9036_s23 + $0x70] sm:$0xff]  ;;  %v9471_v25 = vld [vmem:[%s9042_s25 + $0x88] sm:$0xff] }
  0x44   : > { %vm628_vm12 = vcmp.eq.s32.totalorder %v9347_v38, %v9320_v26  ;;  %7151 = vmatprep.subr.bf16.mxu0 %v8544_v45  ;;  %v9476_v27 = vld [vmem:[%s9036_s23 + $0x80] sm:$0xff]  ;;  %v846_v32 = vld [vmem:[#allocation2 + $0x49] sm:$0xff]  ;;  %vm634_vm5 = vcmp.eq.s32.totalorder %v9471_v25, %v9443_v14  ;;  %v9527_v38 = vld [vmem:[%s9042_s25 + $0x98] sm:$0xff] }
  0x45   : > { %7038 = vmatpush3.bf16.msra.mxu1 %v8530_v28  ;;  %v657_v28 = vld [vmem:[%s9036_s23 + $0x40] sm:$0xff]  ;;  %v692_v44 = vsel %vm628_vm12, %v9356_v40, 0.0  ;;  %vm9505_vm6 = vmpackc.low %vm628_vm12, %vm627_vm11  ;;  %v8548_v15 = vld [vmem:[%s11807_s2 + $0x170] sm:$0xff]  }
  0x46   : > { %7039 = vmatprep.subr.bf16.mxu1 %v8532_v30  ;;  %v689_v33 = vsel %vm625_vm7, %v657_v28, 0.0  ;;  %725 = vst [vmem:[#allocation2 + $0xd0] sm:$0xff] %v692_v44  ;;  %v9421_v1 = vpack.c.bf16 %v658_v29, %v657_v28  ;;  %v9479_v28 = vld [vmem:[%s9036_s23 + $0x88] sm:$0xff]  ;;  %v9482_v29 = vadd.s32 144, %v9011_v8  ;;  %v8549_v26 = vld [vmem:[%s11807_s2 + $0x130] sm:$0xff]   ;;  %v8552_v52 = vld [vmem:[%s11807_s2 + $0x1c0] sm:$0xff]  }
  0x47   : > { %722 = vst [vmem:[#allocation2 + $0xa8] sm:$0xff] %v689_v33  ;;  %7152 = vmatpush3.bf16.msra.mxu0 %v8545_v49  ;;  %v847_v33 = vld [vmem:[#allocation2 + $0x51] sm:$0xff]  ;;  %v698_v45 = vsel %vm634_vm5, %v9479_v28, 0.0  ;;  %v9543_v49 = vadd.s32 160, %v9022_v11  ;;  %v870_v30 = vld [vmem:[#allocation2 + $0x1c9] sm:$0xff] }
  0x48   : > { %1900 = vmatmul.mubr.bf16.gmra.mrb[8].mxu1 %v9246_v51  ;;  %v754_v46 = vld [vmem:[#allocation2 + $0x87] sm:$0xff]  ;;  %v755_v48 = vld [vmem:[#allocation2 + $0x8f] sm:$0xff]  ;;  %7153 = vmatprep.subr.bf16.mxu0 %v8546_v4  ;;  %731 = vst [vmem:[#allocation2 + $0x130] sm:$0xff] %v698_v45  ;;  %v8562_v14 = vld [vmem:[%s11807_s2 + $0x198] sm:$0xff]  }
  0x49   : > { %7040 = vmatpush3.bf16.msra.mxu1 %v8533_v50  ;;  %8743 = vmatprep.mubr.msk.bf16.mxu1 %vm8741_vm4, %v8742_v61  ;;  %v9380_v50 = vpack.c.bf16 %v755_v48, %v754_v46  ;;  %v9402_v61 = vadd.s32 112, %v9022_v11  ;;  %v9511_v48 = vpack.c.bf16 %v9356_v40, %v9353_v39  ;;  %v9524_v37 = vld [vmem:[%s9042_s25 + $0x90] sm:$0xff]  ;;  %v9540_v40 = vadd.s32 160, %v9011_v8  ;;  %v964_v0 = vld [vmem:[#allocation2 + $0x1c8] sm:$0xff]  ;;  %v8577_v46 = vld [vmem:[%s11810_s5] sm:$0xff]  }
  0x4a   : > { %7041 = vmatprep.subr.bf16.mxu1 %v8534_v53  ;;  %1812 = vmatmul.mubr.bf16.gmra.mrb[12].mxu0 %v9291_v9  ;;  %v9386_v53 = vld [vmem:[%s9042_s25 + $0x68] sm:$0xff]  ;;  %vm635_vm7 = vcmp.eq.s32.totalorder %v9524_v37, %v9482_v29  ;;  %v9735_v29 = vld [vmem:[%s9036_s23 + $0xf0] sm:$0xff] }
  0x4b   : > { %8746 = vmatprep.mubr.msk.bf16.mxu0 %vm9330_vm10, %v9334_v31  ;;  %vm630_vm15 = vcmp.eq.s32.totalorder %v9386_v53, %v9368_v42  ;;  %7154 = vmatpush3.bf16.msra.mxu0 %v8547_v5  ;;  %vm632_vm2 = vcmp.eq.s32.totalorder %v9440_v13, %v9402_v61  ;;  %v848_v4 = vld [vmem:[#allocation2 + $0x69] sm:$0xff]  ;;  %v9564_v5 = vld [vmem:[%s9042_s25 + $0xa0] sm:$0xff] }
  0x4c   : > { %v696_v23 = vsel %vm632_vm2, %v9457_v19, 0.0  ;;  %7155 = vmatprep.subr.bf16.mxu0 %v8548_v15  ;;  %v8555_v15 = vld [vmem:[%s11807_s2 + $0x1c8] sm:$0xff]   ;;  %v8558_v13 = vld [vmem:[%s11807_s2 + $0x1d0] sm:$0xff]  }
  0x4d   : > { %7042 = vmatpush3.bf16.msra.mxu1 %v8535_v56  ;;  %v845_v56 = vld [vmem:[#allocation2 + $0x31] sm:$0xff]  ;;  %729 = vst [vmem:[#allocation2 + $0x110] sm:$0xff] %v696_v23  ;;  %v8567_v37 = vld [vmem:[%s11807_s2 + $0x1a8] sm:$0xff]  }
  0x4e   : > { %7043 = vmatprep.subr.bf16.mxu1 %v8536_v63  ;;  %v694_v63 = vsel %vm630_vm15, %v9396_v57, 0.0  ;;  %v756_v2 = vld [vmem:[#allocation2 + $0xa7] sm:$0xff]  ;;  %v757_v3 = vld [vmem:[#allocation2 + $0xaf] sm:$0xff]  ;;  %v9447_v17 = vpack.c.bf16 %v845_v56, %v844_v55  ;;  %v9547_v56 = vpack.c.bf16 %v847_v33, %v846_v32 }
  0x4f   : > { %727 = vst [vmem:[#allocation2 + $0xf0] sm:$0xff] %v694_v63  ;;  %7156 = vmatpush3.bf16.msra.mxu0 %v8549_v26  ;;  %v849_v23 = vld [vmem:[#allocation2 + $0x71] sm:$0xff]  ;;  %v9576_v32 = vld [vmem:[%s9036_s23 + $0xa0] sm:$0xff]  ;;  %v9579_v33 = vld [vmem:[%s9036_s23 + $0xa8] sm:$0xff] }
  0x50   : > { %1908 = vmatmul.mubr.bf16.gmra.mrb[12].mxu1 %v9293_v10  ;;  %v850_v26 = vld [vmem:[#allocation2 + $0x89] sm:$0xff] }
  0x51   : > { %7044 = vmatpush3.bf16.msra.mxu1 %v8538_v12  ;;  %1948 = vmatprep.mubr.bf16.mxu1 %v9183_v21  ;;  %v691_v21 = vsel %vm627_vm11, %v9353_v39, 0.0  ;;  %v9434_v12 = vadd.s32 128, %v9011_v8  ;;  %v9537_v39 = vld [vmem:[%s9036_s23 + $0x98] sm:$0xff]  ;;  %vm637_vm11 = vcmp.eq.s32.totalorder %v9564_v5, %v9540_v40 }
  0x52   : > { %7045 = vmatprep.subr.bf16.mxu1 %v8540_v16  ;;  %724 = vst [vmem:[#allocation2 + $0xc8] sm:$0xff] %v691_v21  ;;  %1820 = vmatmul.mubr.bf16.gmra.mrb[16].mxu0 %v9380_v50  ;;  %v9445_v16 = vpack.c.bf16 %v757_v3, %v756_v2  ;;  %v9491_v21 = vadd.s32 144, %v9022_v11  ;;  %v8550_v2 = vld [vmem:[%s11807_s2 + $0x178] sm:$0xff]   ;;  %v701_v41 = vsel %vm637_vm11, %v9576_v32, 0.0 }
  0x53   : > { %8749 = vmatprep.mubr.msk.bf16.mxu0 %vm9417_vm0, %v9421_v1  ;;  %vm633_vm4 = vcmp.eq.s32.totalorder %v9468_v24, %v9434_v12  ;;  %7157 = vmatprep.subr.bf16.mxu0 %v8550_v2  ;;  %v8551_v3 = vld [vmem:[%s11807_s2 + $0x138] sm:$0xff]   ;;  %734 = vst [vmem:[#allocation2 + $0x168] sm:$0xff] %v701_v41  ;;  %v9643_v2 = vpack.c.bf16 %v9457_v19, %v9454_v18  ;;  %v852_v19 = vld [vmem:[#allocation2 + $0xa9] sm:$0xff] }
  0x54   : > { %v697_v36 = vsel %vm633_vm4, %v9476_v27, 0.0  ;;  %vm11817_vm8 = vcmp.eq.s32.totalorder %v9527_v38, %v9491_v21  ;;  %7158 = vmatpush3.bf16.msra.mxu0 %v8551_v3  ;;  %v8561_v12 = vld [vmem:[%s11807_s2 + $0x1d8] sm:$0xff]  }
  0x55   : > { %7046 = vmatpush3.bf16.msra.mxu1 %v8541_v20  ;;  %730 = vst [vmem:[#allocation2 + $0x128] sm:$0xff] %v697_v36  ;;  %v700_v63 = vsel %vm11817_vm8, %v9537_v39, 0.0  ;;  %vm9587_vm8 = vmpackc.low %vm630_vm15, %vm629_vm13  ;;  %v967_v36 = vld [vmem:[#allocation2 + $0x1f0] sm:$0xff] }
  0x56   : > { %733 = vst [vmem:[#allocation2 + $0x150] sm:$0xff] %v700_v63  ;;  %v761_v45 = vld [vmem:[#allocation2 + $0xef] sm:$0xff]  ;;  %7255 = vmatprep.subr.bf16.mxu1 %v8552_v52  ;;  %vm9667_vm15 = vmpackc.low %vm634_vm5, %vm633_vm4  ;;  %v9696_v52 = vadd.s32 240, %v9022_v11 }
  0x57   : > { %v9707_v11 = vld [vmem:[%s9042_s25 + $0xf0] sm:$0xff] }
  0x58   : > { %1949 = vmatmul.mubr.bf16.vlgmr.msra.gmra.mrb[16].mxu1 %v874_v43  ;;  %v857_v40 = vld [vmem:[#allocation2 + $0xf1] sm:$0xff]  ;;  %v1131_v63 = vld [vmem:[#allocation2 + $0x49] sm:$0xff] }
  0x59   : > { %1956 = vmatprep.mubr.bf16.mxu1 %v9241_v47  ;;  %v9437_v47 = vld [vmem:[%s9042_s25 + $0x70] sm:$0xff]  ;;  %v758_v43 = vld [vmem:[#allocation2 + $0xc7] sm:$0xff] }
  0x5a   : > { %vm631_vm1 = vcmp.eq.s32.totalorder %v9437_v47, %v9399_v60  ;;  %1828 = vmatmul.mubr.bf16.gmra.mrb[20].mxu0 %v9445_v16  ;;  %v759_v44 = vld [vmem:[#allocation2 + $0xcf] sm:$0xff] }
  0x5b   : > { %v695_v20 = vsel %vm631_vm1, %v9454_v18, 0.0  ;;  %8752 = vmatprep.mubr.msk.bf16.mxu0 %vm9505_vm6, %v9511_v48  ;;  %v9545_v55 = vpack.c.bf16 %v759_v44, %v758_v43  ;;  %v9593_v43 = vpack.c.bf16 %v9396_v57, %v9389_v54  ;;  %v760_v44 = vld [vmem:[#allocation2 + $0xe7] sm:$0xff]  ;;  %v9615_v54 = vpack.c.bf16 %v849_v23, %v848_v4  ;;  %vm9637_vm13 = vmpackc.low %vm632_vm2, %vm631_vm1  ;;  %v851_v60 = vld [vmem:[#allocation2 + $0x91] sm:$0xff] }
  0x5c   : > { %728 = vst [vmem:[#allocation2 + $0x108] sm:$0xff] %v695_v20  ;;  %v9567_v20 = vld [vmem:[%s9042_s25 + $0xa8] sm:$0xff]  ;;  %v9613_v53 = vpack.c.bf16 %v761_v45, %v760_v44  ;;  %v9620_v57 = vld [vmem:[%s11807_s2 + $0x200] sm:$0xff]   ;;  %v9651_v47 = vpack.c.bf16 %v851_v60, %v850_v26  ;;  %v8559_v18 = vld [vmem:[%s11807_s2 + $0x190] sm:$0xff]   ;;  %vm11836_vm1 = vcmp.eq.s32.totalorder %v9527_v38, %v9491_v21 }
  0x5d   : > { %vm638_vm12 = vcmp.eq.s32.totalorder %v9567_v20, %v9543_v49  ;;  %8335 = vmatprep.subr.bf16.mxu0 %v9620_v57  ;;  %v853_v23 = vld [vmem:[#allocation2 + $0xb1] sm:$0xff]  ;;  %v764_v44 = vld [vmem:[#allocation2 + $0x127] sm:$0xff]  ;;  %vm9718_vm2 = vmpackc.low %vm11836_vm1, %vm635_vm7 }
  0x5e   : > { %v702_v42 = vsel %vm638_vm12, %v9579_v33, 0.0  ;;  %v765_v45 = vld [vmem:[#allocation2 + $0x12f] sm:$0xff]  ;;  %v9687_v25 = vpack.c.bf16 %v853_v23, %v852_v19  ;;  %v9738_v21 = vld [vmem:[%s9036_s23 + $0xf8] sm:$0xff] }
  0x5f   : > { %735 = vst [vmem:[#allocation2 + $0x170] sm:$0xff] %v702_v42  ;;  %v9673_v42 = vpack.c.bf16 %v9479_v28, %v9476_v27  ;;  %v9685_v24 = vpack.c.bf16 %v765_v45, %v764_v44  ;;  %v8563_v27 = vld [vmem:[%s11807_s2 + $0x1e0] sm:$0xff]   ;;  %v9693_v28 = vadd.s32 240, %v9011_v8  ;;  %v855_v26 = vld [vmem:[#allocation2 + $0xd1] sm:$0xff]  ;;  %v856_v45 = vld [vmem:[#allocation2 + $0xe9] sm:$0xff] }
  0x60   : > { %1957 = vmatmul.mubr.bf16.gmra.mrb[20].mxu1 %v9447_v17  ;;  %v8569_v23 = vld [vmem:[%s11807_s2 + $0x1b0] sm:$0xff]   ;;  %v8570_v44 = vld [vmem:[%s11807_s2 + $0x1f8] sm:$0xff]   ;;  %v9789_v20 = vpack.c.bf16 %v857_v40, %v856_v45 }
  0x61   : > { %1964 = vmatprep.mubr.bf16.mxu1 %v9291_v9  ;;  %v9534_v9 = vld [vmem:[%s9036_s23 + $0x90] sm:$0xff]  ;;  %vm647_vm4 = vcmp.eq.s32.totalorder %v9707_v11, %v9693_v28  ;;  %v8571_v49 = vld [vmem:[%s11807_s2 + $0x1b8] sm:$0xff]  }
  0x62   : > { %v699_v62 = vsel %vm635_vm7, %v9534_v9, 0.0  ;;  %1836 = vmatmul.mubr.bf16.gmra.mrb[24].mxu0 %v9545_v55  ;;  %v9724_v60 = vpack.c.bf16 %v9537_v39, %v9534_v9  ;;  %v711_v38 = vsel %vm647_vm4, %v9735_v29, 0.0  ;;  %v8568_v39 = vld [vmem:[%s11807_s2 + $0x1f0] sm:$0xff]   ;;  %vm9772_vm7 = vmpackc.low %vm638_vm12, %vm637_vm11  ;;  %v8575_v45 = vld [vmem:[%s11807_s2 + $0x238] sm:$0xff]  }
  0x63   : > { %732 = vst [vmem:[#allocation2 + $0x148] sm:$0xff] %v699_v62  ;;  %8755 = vmatprep.mubr.msk.bf16.mxu0 %vm9587_vm8, %v9593_v43  ;;  %v8556_v62 = vld [vmem:[%s11807_s2 + $0x188] sm:$0xff]   ;;  %744 = vst [vmem:[#allocation2 + $0x208] sm:$0xff] %v711_v38 }
  0x64   : > { %v762_v3 = vld [vmem:[#allocation2 + $0x107] sm:$0xff]  ;;  %v763_v4 = vld [vmem:[#allocation2 + $0x10f] sm:$0xff] }
  0x65   : > { %v9649_v61 = vpack.c.bf16 %v763_v4, %v762_v3  ;;  %v9710_v3 = vld [vmem:[%s9042_s25 + $0xf8] sm:$0xff]  ;;  %v913_v38 = vld [vmem:[#allocation2 + $0x18f] sm:$0xff] }
  0x66   : > { %vm648_vm5 = vcmp.eq.s32.totalorder %v9710_v3, %v9696_v52  ;;  %v1133_v28 = vld [vmem:[#allocation2 + $0x69] sm:$0xff]  ;;  %v1134_v52 = vld [vmem:[#allocation2 + $0x71] sm:$0xff] }
  0x67   : > { %v712_v9 = vsel %vm648_vm5, %v9738_v21, 0.0  ;;  %v1135_v11 = vld [vmem:[#allocation2 + $0x89] sm:$0xff]  ;;  %v1136_v3 = vld [vmem:[#allocation2 + $0x91] sm:$0xff] }
  0x68   : > { %1965 = vmatmul.mubr.bf16.gmra.mrb[24].mxu1 %v9547_v56  ;;  %745 = vst [vmem:[#allocation2 + $0x210] sm:$0xff] %v712_v9 }
  0x69   : > { %1972 = vmatprep.mubr.bf16.mxu1 %v9380_v50  ;;  %v8553_v50 = vld [vmem:[%s11807_s2 + $0x180] sm:$0xff]  }
  0x6a   : > { %7256 = vmatpush3.bf16.msra.mxu1 %v8553_v50  ;;  %1844 = vmatmul.mubr.bf16.gmra.mrb[28].mxu0 %v9613_v53  ;;  %v8565_v50 = vld [vmem:[%s11807_s2 + $0x1a0] sm:$0xff]   ;;  %v862_v6 = vld [vmem:[#allocation2 + $0x149] sm:$0xff] }
  0x6b   : > { %8758 = vmatprep.mubr.msk.bf16.mxu0 %vm9637_vm13, %v9643_v2  ;;  %7257 = vmatprep.subr.bf16.mxu1 %v8555_v15  ;;  %v854_v15 = vld [vmem:[#allocation2 + $0xc9] sm:$0xff] }
  0x6c   : > { %v766_v8 = vld [vmem:[#allocation2 + $0x147] sm:$0xff]  ;;  %v9756_v19 = vpack.c.bf16 %v855_v26, %v854_v15 }
  0x6d   : > { %v8557_v26 = vld [vmem:[%s11807_s2 + $0x208] sm:$0xff]  }
  0x6e   : > { %7258 = vmatpush3.bf16.msra.mxu1 %v8556_v62  ;;  %v8566_v62 = vld [vmem:[%s11807_s2 + $0x1e8] sm:$0xff]  }
  0x6f   : > { %7259 = vmatprep.subr.bf16.mxu1 %v8558_v13  ;;  %v767_v13 = vld [vmem:[#allocation2 + $0x14f] sm:$0xff]  ;;  %v920_v40 = vld [vmem:[#allocation2 + $0x207] sm:$0xff] }
  0x70   : > { %1973 = vmatmul.mubr.bf16.gmra.mrb[28].mxu1 %v9615_v54 }
  0x71   : > { %1980 = vmatprep.mubr.bf16.mxu1 %v9445_v16 }
  0x72   : > { %1852 = vmatmul.mubr.bf16.gmra.mrb[32].mxu0 %v9649_v61  ;;  %7260 = vmatpush3.bf16.msra.mxu1 %v8559_v18  ;;  %v9754_v18 = vpack.c.bf16 %v767_v13, %v766_v8  ;;  %v861_v8 = vld [vmem:[#allocation2 + $0x131] sm:$0xff] }
  0x73   : > { %8761 = vmatprep.mubr.msk.bf16.mxu0 %vm9667_vm15, %v9673_v42  ;;  %7261 = vmatprep.subr.bf16.mxu1 %v8561_v12 }
  0x76   : > { %7262 = vmatpush3.bf16.msra.mxu1 %v8562_v14  ;;  %v9778_v14 = vpack.c.bf16 %v9579_v33, %v9576_v32  ;;  %v858_v32 = vld [vmem:[#allocation2 + $0x109] sm:$0xff]  ;;  %v859_v33 = vld [vmem:[#allocation2 + $0x111] sm:$0xff] }
  0x77   : > { %7263 = vmatprep.subr.bf16.mxu1 %v8563_v27  ;;  %v768_v27 = vld [vmem:[#allocation2 + $0x167] sm:$0xff]  ;;  %v9795_v15 = vpack.c.bf16 %v859_v33, %v858_v32 }
  0x78   : > { %1981 = vmatmul.mubr.bf16.gmra.mrb[32].mxu1 %v9651_v47  ;;  %v872_v33 = vld [vmem:[#allocation2 + $0x1e9] sm:$0xff] }
  0x79   : > { %1988 = vmatprep.mubr.bf16.mxu1 %v9545_v55 }
  0x7a   : > { %1860 = vmatmul.mubr.bf16.gmra.mrb[36].mxu0 %v9685_v24  ;;  %7264 = vmatpush3.bf16.msra.mxu1 %v8565_v50  ;;  %v769_v50 = vld [vmem:[#allocation2 + $0x16f] sm:$0xff] }
  0x7b   : > { %8764 = vmatprep.mubr.msk.bf16.mxu0 %vm9718_vm2, %v9724_v60  ;;  %7265 = vmatprep.subr.bf16.mxu1 %v8566_v62  ;;  %v9787_v5 = vpack.c.bf16 %v769_v50, %v768_v27  ;;  %v860_v62 = vld [vmem:[#allocation2 + $0x129] sm:$0xff]  ;;  %v869_v50 = vld [vmem:[#allocation2 + $0x1b1] sm:$0xff] }
  0x7c   : > { %v9810_v13 = vpack.c.bf16 %v861_v8, %v860_v62  ;;  %v866_v27 = vld [vmem:[#allocation2 + $0x189] sm:$0xff] }
  0x7d   : > { %v1083_v62 = vld [vmem:[#allocation2 + $0x48] sm:$0xff]  ;;  %v1084_v8 = vld [vmem:[#allocation2 + $0x50] sm:$0xff] }
  0x7e   : > { %7266 = vmatpush3.bf16.msra.mxu1 %v8567_v37  ;;  %v8564_v37 = vld [vmem:[%s11807_s2 + $0x218] sm:$0xff]  }
  0x7f   : > { %7267 = vmatprep.subr.bf16.mxu1 %v8568_v39 }
  0x80   : > { %1989 = vmatmul.mubr.bf16.gmra.mrb[36].mxu1 %v9687_v25 }
  0x81   : > { %1996 = vmatprep.mubr.bf16.mxu1 %v9613_v53 }
  0x82   : > { %1868 = vmatmul.mubr.bf16.gmra.mrb[40].mxu0 %v9754_v18  ;;  %7268 = vmatpush3.bf16.msra.mxu1 %v8569_v23  ;;  %v865_v23 = vld [vmem:[#allocation2 + $0x171] sm:$0xff] }
  0x83   : > { %8767 = vmatprep.mubr.msk.bf16.mxu0 %vm9772_vm7, %v9778_v14  ;;  %7269 = vmatprep.subr.bf16.mxu1 %v8570_v44 }
  0x86   : > { %7270 = vmatpush3.bf16.msra.mxu1 %v8571_v49  ;;  %v921_v49 = vld [vmem:[#allocation2 + $0x20f] sm:$0xff] }
  0x88   : > { %1997 = vmatmul.mubr.bf16.gmra.mrb[40].mxu1 %v9756_v19 }
  0x89   : > { %2004 = vmatprep.mubr.bf16.mxu1 %v9649_v61 }
  0x8a   : > { %1876 = vmatmul.mubr.bf16.gmra.mrb[44].mxu0 %v9787_v5 }
  0x8b   : > { %2109 = vmatprep.mubr.bf16.mxu0 %v9447_v17  ;;  %v8560_v17 = vld [vmem:[%s11807_s2 + $0x210] sm:$0xff]  }
  0x90   : > { %2005 = vmatmul.mubr.bf16.gmra.mrb[44].mxu1 %v9789_v20 }
  0x91   : > { %2012 = vmatprep.mubr.bf16.mxu1 %v9685_v24 }
  0x92   : > { %8770 = vmatmul.mubr.msk.bf16.vlgmr.msra.gmra.mrb[48].mxu0 %vm9151_vm9, %v9155_v7  ;;  %v863_v7 = vld [vmem:[#allocation2 + $0x151] sm:$0xff]  ;;  %vm9959_vm9 = vmpackc.low %vm648_vm5, %vm647_vm4 }
  0x93   : > { %8336 = vmatpush3.bf16.msra.mxu0 %v9620_v57  ;;  %2117 = vmatprep.mubr.bf16.mxu0 %v9547_v56  ;;  %v912_v57 = vld [vmem:[#allocation2 + $0x187] sm:$0xff]  ;;  %v9824_v9 = vpack.c.bf16 %v863_v7, %v862_v6  ;;  %v1036_v6 = vld [vmem:[#allocation2 + $0x4f] sm:$0xff] }
  0x94   : > { %8337 = vmatprep.subr.bf16.mxu0 %v8557_v26  ;;  %v8572_v56 = vld [vmem:[%s11807_s2 + $0x220] sm:$0xff]   ;;  %v9826_v39 = vpack.c.bf16 %v913_v38, %v912_v57  ;;  %v1085_v7 = vld [vmem:[#allocation2 + $0x68] sm:$0xff]  ;;  %v1086_v57 = vld [vmem:[#allocation2 + $0x70] sm:$0xff] }
  0x97   : > { %8338 = vmatpush3.bf16.msra.mxu0 %v8557_v26  ;;  %v873_v26 = vld [vmem:[#allocation2 + $0x1f1] sm:$0xff] }
  0x98   : > { %2013 = vmatmul.mubr.bf16.gmra.mrb[48].mxu1 %v9795_v15  ;;  %8339 = vmatprep.subr.bf16.mxu0 %v8560_v17 }
  0x99   : > { %2020 = vmatprep.mubr.bf16.mxu1 %v9754_v18 }
  0x9a   : > { %8773 = vmatmul.mubr.msk.bf16.gmra.mrb[52].mxu0 %vm9215_vm14, %v9219_v35  ;;  %v864_v35 = vld [vmem:[#allocation2 + $0x169] sm:$0xff] }
  0x9b   : > { %2125 = vmatprep.mubr.bf16.mxu0 %v9615_v54  ;;  %8340 = vmatpush3.bf16.msra.mxu0 %v8560_v17  ;;  %v8574_v54 = vld [vmem:[%s11807_s2 + $0x230] sm:$0xff]   ;;  %v9840_v44 = vpack.c.bf16 %v865_v23, %v864_v35  ;;  %v1115_v17 = vpack.c.bf16 %v1084_v8, %v1083_v62  ;;  %v1087_v23 = vld [vmem:[#allocation2 + $0x88] sm:$0xff] }
  0x9c   : > { %8341 = vmatprep.subr.bf16.mxu0 %v8564_v37  ;;  %v1038_v35 = vld [vmem:[#allocation2 + $0x6f] sm:$0xff] }
  0x9d   : > { %v1017_v62 = vld [vmem:[#allocation2 + $0x211] sm:$0xff] }
  0x9f   : > { %8342 = vmatpush3.bf16.msra.mxu0 %v8564_v37  ;;  %v1035_v37 = vld [vmem:[#allocation2 + $0x47] sm:$0xff] }
  0xa0   : > { %2021 = vmatmul.mubr.bf16.gmra.mrb[52].mxu1 %v9810_v13  ;;  %8343 = vmatprep.subr.bf16.mxu0 %v8572_v56  ;;  %v1067_v38 = vpack.c.bf16 %v1036_v6, %v1035_v37 }
  0xa1   : > { %2028 = vmatprep.mubr.bf16.mxu1 %v9787_v5 }
  0xa2   : > { %8776 = vmatmul.mubr.msk.bf16.gmra.mrb[56].mxu0 %vm9268_vm3, %v9272_v59  ;;  %v9851_v59 = vpack.c.bf16 %v867_v58, %v866_v27  ;;  %v1039_v58 = vld [vmem:[#allocation2 + $0x87] sm:$0xff] }
  0xa3   : > { %2133 = vmatprep.mubr.bf16.mxu0 %v9651_v47  ;;  %8344 = vmatpush3.bf16.msra.mxu0 %v8572_v56  ;;  %v868_v47 = vld [vmem:[#allocation2 + $0x1a9] sm:$0xff]  ;;  %v1116_v56 = vpack.c.bf16 %v1086_v57, %v1085_v7 }
  0xa4   : > { %8345 = vmatprep.subr.bf16.mxu0 %v8573_v34  ;;  %v8579_v7 = vld [vmem:[%s11810_s5 + $0x8] sm:$0xff]  }
  0xa7   : > { %8346 = vmatpush3.bf16.msra.mxu0 %v8573_v34  ;;  %v1037_v34 = vld [vmem:[#allocation2 + $0x67] sm:$0xff] }
  0xa8   : > { %2029 = vmatmul.mubr.bf16.gmra.mrb[56].mxu1 %v9824_v9  ;;  %8347 = vmatprep.subr.bf16.mxu0 %v8574_v54 }
  0xa9   : > { %2036 = vmatprep.mubr.bf16.mxu1 %v9826_v39 }
  0xaa   : > { %8779 = vmatmul.mubr.msk.bf16.gmra.mrb[60].mxu0 %vm9330_vm10, %v9334_v31  ;;  %v871_v31 = vld [vmem:[#allocation2 + $0x1d1] sm:$0xff] }
  0xab   : > { %2141 = vmatprep.mubr.bf16.mxu0 %v9687_v25  ;;  %8348 = vmatpush3.bf16.msra.mxu0 %v8574_v54  ;;  %v9867_v32 = vpack.c.bf16 %v871_v31, %v870_v30  ;;  %v1088_v54 = vld [vmem:[#allocation2 + $0x90] sm:$0xff]  ;;  %v960_v30 = vld [vmem:[#allocation2 + $0x188] sm:$0xff] }
  0xac   : > { %8349 = vmatprep.subr.bf16.mxu0 %v8575_v45  ;;  %v1117_v27 = vpack.c.bf16 %v1088_v54, %v1087_v23  ;;  %v961_v31 = vld [vmem:[#allocation2 + $0x190] sm:$0xff] }
  0xaf   : > { %8350 = vmatpush3.bf16.msra.mxu0 %v8575_v45  ;;  %v1068_v45 = vpack.c.bf16 %v1038_v35, %v1037_v34 }
  0xb0   : > { %2037 = vmatmul.mubr.bf16.gmra.mrb[60].mxu1 %v9840_v44 }
  0xb1   : > { %2044 = vmatprep.mubr.bf16.mxu1 %v9185_v22  ;;  %v9859_v22 = vpack.c.bf16 %v869_v50, %v868_v47  ;;  %v1040_v47 = vld [vmem:[#allocation2 + $0x8f] sm:$0xff] }
  0xb2   : > { %8782 = vmatmul.mubr.msk.bf16.gmra.mrb[64].mxu0 %vm9417_vm0, %v9421_v1  ;;  %v1069_v50 = vpack.c.bf16 %v1040_v47, %v1039_v58  ;;  %v9965_v58 = vpack.c.bf16 %v9738_v21, %v9735_v29  ;;  %v1164_v29 = vpack.c.bf16 %v1134_v52, %v1133_v28 }
  0xb3   : > { %2149 = vmatprep.mubr.bf16.mxu0 %v9756_v19 }
  0xb8   : > { %2045 = vmatmul.mubr.bf16.gmra.mrb[64].mxu1 %v9851_v59 }
  0xb9   : > { %2052 = vmatprep.mubr.bf16.mxu1 %v9246_v51  ;;  %v9869_v51 = vpack.c.bf16 %v921_v49, %v920_v40  ;;  %v9899_v40 = vpack.c.bf16 %v961_v31, %v960_v30  ;;  %v962_v49 = vld [vmem:[#allocation2 + $0x1a8] sm:$0xff] }
  0xba   : > { %8785 = vmatmul.mubr.msk.bf16.gmra.mrb[68].mxu0 %vm9505_vm6, %v9511_v48 }
  0xbb   : > { %2157 = vmatprep.mubr.bf16.mxu0 %v9789_v20 }
  0xc0   : > { %2053 = vmatmul.mubr.bf16.gmra.mrb[68].mxu1 %v9859_v22 }
  0xc1   : > { %2060 = vmatprep.mubr.bf16.mxu1 %v9293_v10  ;;  %v9877_v10 = vpack.c.bf16 %v873_v26, %v872_v33  ;;  %v963_v33 = vld [vmem:[#allocation2 + $0x1b0] sm:$0xff] }
  0xc2   : > { %8788 = vmatmul.mubr.msk.bf16.gmra.mrb[72].mxu0 %vm9587_vm8, %v9593_v43  ;;  %v9907_v26 = vpack.c.bf16 %v963_v33, %v962_v49  ;;  %v1165_v33 = vpack.c.bf16 %v1136_v3, %v1135_v11 }
  0xc3   : > { %2165 = vmatprep.mubr.bf16.mxu0 %v9795_v15 }
  0xc8   : > { %2061 = vmatmul.mubr.bf16.gmra.mrb[72].mxu1 %v9867_v32 }
  0xc9   : > { %2068 = vmatprep.mubr.bf16.mxu1 %v9869_v51 }
  0xca   : > { %8791 = vmatmul.mubr.msk.bf16.gmra.mrb[76].mxu0 %vm9637_vm13, %v9643_v2 }
  0xcb   : > { %2173 = vmatprep.mubr.bf16.mxu0 %v9810_v13 }
  0xd0   : > { %2069 = vmatmul.mubr.bf16.gmra.mrb[76].mxu1 %v9877_v10 }
  0xd1   : > { %2270 = vmatprep.mubr.bf16.mxu1 %v1115_v17 }
  0xd2   : > { %8794 = vmatmul.mubr.msk.bf16.gmra.mrb[80].mxu0 %vm9667_vm15, %v9673_v42 }
  0xd3   : > { %2181 = vmatprep.mubr.bf16.mxu0 %v9824_v9 }
  0xd8   : > { %2271 = vmatmul.mubr.bf16.vlgmr.msra.gmra.mrb[80].mxu1 %v1067_v38 }
  0xd9   : > { %2278 = vmatprep.mubr.bf16.mxu1 %v1116_v56 }
  0xda   : > { %8797 = vmatmul.mubr.msk.bf16.gmra.mrb[84].mxu0 %vm9718_vm2, %v9724_v60 }
  0xdb   : > { %2189 = vmatprep.mubr.bf16.mxu0 %v9840_v44 }
  0xe0   : > { %2279 = vmatmul.mubr.bf16.gmra.mrb[84].mxu1 %v1068_v45 }
  0xe1   : > { %2286 = vmatprep.mubr.bf16.mxu1 %v1117_v27 }
  0xe2   : > { %8800 = vmatmul.mubr.msk.bf16.gmra.mrb[88].mxu0 %vm9772_vm7, %v9778_v14 }
  0xe3   : > { %2197 = vmatprep.mubr.bf16.mxu0 %v9851_v59 }
  0xe8   : > { %2287 = vmatmul.mubr.bf16.gmra.mrb[88].mxu1 %v1069_v50 }
  0xe9   : > { %8803 = vmatprep.mubr.msk.bf16.mxu1 %vm9417_vm0, %v9421_v1  ;;  %v965_v1 = vld [vmem:[#allocation2 + $0x1d0] sm:$0xff] }
  0xea   : > { %2198 = vmatmul.mubr.bf16.gmra.mrb[92].mxu0 %v9899_v40 }
  0xeb   : > { %2205 = vmatprep.mubr.bf16.mxu0 %v9859_v22 }
  0xf0   : > { %2295 = vmatmul.mubr.bf16.gmra.mrb[92].mxu1 %v9445_v16  ;;  %v8576_v16 = vld [vmem:[%s11810_s5 + $0x40] sm:$0xff]  }
  0xf1   : > { %8806 = vmatprep.mubr.msk.bf16.mxu1 %vm9505_vm6, %v9511_v48  ;;  %7391 = vmatprep.subr.bf16.mxu1 %v8576_v16  ;;  %v9921_v48 = vpack.c.bf16 %v965_v1, %v964_v0 }
  0xf2   : > { %2206 = vmatmul.mubr.bf16.gmra.mrb[96].mxu0 %v9907_v26  ;;  %7392 = vmatpush3.bf16.msra.mxu1 %v8577_v46  ;;  %v8580_v46 = vld [vmem:[%s11810_s5 + $0x50] sm:$0xff]  }
  0xf3   : > { %2213 = vmatprep.mubr.bf16.mxu0 %v9867_v32 }
  0xf8   : > { %2303 = vmatmul.mubr.bf16.gmra.mrb[96].mxu1 %v9545_v55  ;;  %v966_v55 = vld [vmem:[#allocation2 + $0x1e8] sm:$0xff] }
  0xf9   : > { %8809 = vmatprep.mubr.msk.bf16.mxu1 %vm9587_vm8, %v9593_v43  ;;  %v1016_v43 = vld [vmem:[#allocation2 + $0x209] sm:$0xff]  ;;  %v9929_v8 = vpack.c.bf16 %v967_v36, %v966_v55  ;;  %v6935_v37 = vpop.f32.mrb[0].mxu0 }
  0xfa   : > { %2214 = vmatmul.mubr.bf16.gmra.mrb[100].mxu0 %v9921_v48  ;;  %v9931_v17 = vpack.c.bf16 %v1017_v62, %v1016_v43  ;;  %v8581_v43 = vld [vmem:[%s11810_s5 + $0x10] sm:$0xff]  }
  0xfb   : > { %2221 = vmatprep.mubr.bf16.mxu0 %v9877_v10 }
 0x100   : > { %2311 = vmatmul.mubr.bf16.gmra.mrb[100].mxu1 %v9613_v53  ;;  %v8578_v53 = vld [vmem:[%s11810_s5 + $0x48] sm:$0xff]  }
 0x101   : > { %8812 = vmatprep.mubr.msk.bf16.mxu1 %vm9637_vm13, %v9643_v2  ;;  %v1132_v2 = vld [vmem:[#allocation2 + $0x51] sm:$0xff]  ;;  %7393 = vmatprep.subr.bf16.mxu1 %v8578_v53 }
 0x102   : > { %2222 = vmatmul.mubr.bf16.gmra.mrb[104].mxu0 %v9929_v8  ;;  %v1163_v41 = vpack.c.bf16 %v1132_v2, %v1131_v63  ;;  %7394 = vmatpush3.bf16.msra.mxu1 %v8579_v7 }
 0x103   : > { %2229 = vmatprep.mubr.bf16.mxu0 %v9931_v17  ;;  %7395 = vmatprep.subr.bf16.mxu1 %v8580_v46 }
 0x106   : > { %7396 = vmatpush3.bf16.msra.mxu1 %v8581_v43  ;;  %v1060_v43 = vld [vmem:[#allocation2 + $0x1cf] sm:$0xff] }
 0x108   : > { %2319 = vmatmul.mubr.bf16.gmra.mrb[104].mxu1 %v9649_v61  ;;  %v6936_v61 = vpop.f32.mrb[1].mxu0 }
 0x109   : > { %8815 = vmatprep.mubr.msk.bf16.mxu1 %vm9667_vm15, %v9673_v42  ;;  %v9945_v38 = vadd.f32 %v6936_v61, %v6935_v37  ;;  %v6938_v56 = vpop.f32.mrb[2].mxu0 }
 0x10a   : > { %v6939_v35 = vpop.f32.mrb[3].mxu0  ;;  %8818 = vmatmul.mubr.msk.bf16.gmra.mrb[108].mxu0 %vm9959_vm9, %v9965_v58 }
 0x10b   : > { %v7007_v6 = vpop.f32.mrb[0].mxu1  ;;  %v9949_v54 = vadd.f32 %v6939_v35, %v6938_v56  ;;  %8351 = vmatprep.mubr.bf16.mxu0 %v1163_v41 }
 0x10c   : > { %v7008_v57 = vpop.f32.mrb[1].mxu1 }
 0x10d   : > { %v9947_v42 = vadd.f32 %v7008_v57, %v7007_v6  ;;  %v7010_v34 = vpop.f32.mrb[2].mxu1  ;;  %v6941_v47 = vpop.f32.mrb[4].mxu0 }
 0x10e   : > { %v7011_v23 = vpop.f32.mrb[3].mxu1  ;;  %v6942_v30 = vpop.f32.mrb[5].mxu0 }
 0x10f   : > { %v9951_v45 = vadd.f32 %v7011_v23, %v7010_v34  ;;  %v9974_v31 = vadd.f32 %v6942_v30, %v6941_v47  ;;  %v6944_v49 = vpop.f32.mrb[6].mxu0  ;;  %v8583_v30 = vld [vmem:[%s11810_s5 + $0x18] sm:$0xff]  }
 0x110   : > { %2327 = vmatmul.mubr.bf16.gmra.mrb[108].mxu1 %v9685_v24  ;;  %v6945_v1 = vpop.f32.mrb[7].mxu0 }
 0x111   : > { %8821 = vmatprep.mubr.msk.bf16.mxu1 %vm9718_vm2, %v9724_v60  ;;  %v9978_v60 = vadd.f32 %v6945_v1, %v6944_v49 }
 0x112   : > { %8352 = vmatmul.mubr.bf16.vlgmr.msra.gmra.mrb[112].mxu0 %v1164_v29 }
 0x113   : > { %v7013_v50 = vpop.f32.mrb[4].mxu1  ;;  %8355 = vmatprep.mubr.bf16.mxu0 %v1165_v33 }
 0x114   : > { %v7014_v21 = vpop.f32.mrb[5].mxu1 }
 0x115   : > { %v9976_v0 = vadd.f32 %v7014_v21, %v7013_v50  ;;  %v7016_v24 = vpop.f32.mrb[6].mxu1  ;;  %v6947_v55 = vpop.f32.mrb[8].mxu0 }
 0x116   : > { %v7017_v4 = vpop.f32.mrb[7].mxu1  ;;  %v6948_v62 = vpop.f32.mrb[9].mxu0 }
 0x117   : > { %v9980_v16 = vadd.f32 %v7017_v4, %v7016_v24  ;;  %v6950_v63 = vpop.f32.mrb[10].mxu0 }
 0x118   : > { %2335 = vmatmul.mubr.bf16.gmra.mrb[112].mxu1 %v9754_v18  ;;  %v9992_v18 = vadd.f32 %v6948_v62, %v6947_v55 }
 0x119   : > { %8824 = vmatprep.mubr.msk.bf16.mxu1 %vm9772_vm7, %v9778_v14  ;;  %v6951_v14 = vpop.f32.mrb[11].mxu0 }
 0x11a   : > { %v9996_v6 = vadd.f32 %v6951_v14, %v6950_v63  ;;  %8356 = vmatmul.mubr.bf16.gmra.mrb[116].mxu0 %v9687_v25  ;;  %v1057_v25 = vld [vmem:[#allocation2 + $0x1a7] sm:$0xff] }
 0x11b   : > { %v7019_v36 = vpop.f32.mrb[8].mxu1  ;;  %8359 = vmatprep.mubr.bf16.mxu0 %v9756_v19  ;;  %v1058_v19 = vld [vmem:[#allocation2 + $0x1af] sm:$0xff] }
 0x11c   : > { %v7020_v53 = vpop.f32.mrb[9].mxu1 }
 0x11d   : > { %v9994_v2 = vadd.f32 %v7020_v53, %v7019_v36  ;;  %v7022_v12 = vpop.f32.mrb[10].mxu1  ;;  %v6953_v61 = vpop.f32.mrb[12].mxu0  ;;  %v1059_v36 = vld [vmem:[#allocation2 + $0x1c7] sm:$0xff] }
 0x11e   : > { %v7023_v37 = vpop.f32.mrb[11].mxu1  ;;  %v6954_v56 = vpop.f32.mrb[13].mxu0 }
 0x11f   : > { %v9998_v7 = vadd.f32 %v7023_v37, %v7022_v12  ;;  %v10004_v34 = vadd.f32 %v6954_v56, %v6953_v61  ;;  %v6956_v35 = vpop.f32.mrb[14].mxu0  ;;  %v1079_v12 = vpack.c.bf16 %v1060_v43, %v1059_v36 }
 0x120   : > { %2343 = vmatmul.mubr.bf16.gmra.mrb[116].mxu1 %v9787_v5  ;;  %v6957_v52 = vpop.f32.mrb[15].mxu0 }
 0x121   : > { %2350 = vmatprep.mubr.bf16.mxu1 %v9899_v40  ;;  %v10008_v3 = vadd.f32 %v6957_v52, %v6956_v35  ;;  %v8582_v40 = vld [vmem:[%s11810_s5 + $0x58] sm:$0xff]   ;;  %v1061_v35 = vld [vmem:[#allocation2 + $0x1e7] sm:$0xff] }
 0x122   : > { %8360 = vmatmul.mubr.bf16.gmra.mrb[120].mxu0 %v9789_v20  ;;  %7397 = vmatprep.subr.bf16.mxu1 %v8582_v40  ;;  %v1078_v20 = vpack.c.bf16 %v1058_v19, %v1057_v25 }
 0x123   : > { %v7025_v57 = vpop.f32.mrb[12].mxu1  ;;  %8363 = vmatprep.mubr.bf16.mxu0 %v9795_v15  ;;  %7398 = vmatpush3.bf16.msra.mxu1 %v8583_v30 }
 0x124   : > { %v7026_v41 = vpop.f32.mrb[13].mxu1 }
 0x125   : > { %v10006_v23 = vadd.f32 %v7026_v41, %v7025_v57  ;;  %v7028_v28 = vpop.f32.mrb[14].mxu1  ;;  %v6959_v47 = vpop.f32.mrb[16].mxu0 }
 0x126   : > { %v7029_v11 = vpop.f32.mrb[15].mxu1 }
 0x127   : > { %v10010_v5 = vadd.f32 %v7029_v11, %v7028_v28  ;;  %v1062_v28 = vld [vmem:[#allocation2 + $0x1ef] sm:$0xff] }
 0x128   : > { %2351 = vmatmul.mubr.bf16.gmra.mrb[120].mxu1 %v9826_v39  ;;  %v6960_v39 = vpop.f32.mrb[17].mxu0  ;;  %v1080_v19 = vpack.c.bf16 %v1062_v28, %v1061_v35 }
 0x129   : > { %2358 = vmatprep.mubr.bf16.mxu1 %v9907_v26  ;;  %v10022_v21 = vadd.f32 %v6960_v39, %v6959_v47  ;;  %v6962_v15 = vpop.f32.mrb[18].mxu0 }
 0x12a   : > { %v6963_v33 = vpop.f32.mrb[19].mxu0  ;;  %8364 = vmatmul.mubr.bf16.gmra.mrb[124].mxu0 %v9810_v13 }
 0x12b   : > { %v7047_v50 = vpop.f32.mrb[16].mxu1  ;;  %v10027_v4 = vadd.f32 %v6963_v33, %v6962_v15  ;;  %8367 = vmatprep.mubr.bf16.mxu0 %v9824_v9 }
 0x12c   : > { %v7048_v29 = vpop.f32.mrb[17].mxu1 }
 0x12d   : > { %v7049_v26 = vadd.f32 %v7048_v29, %v7047_v50  ;;  %v7050_v49 = vpop.f32.mrb[18].mxu1  ;;  %v6965_v62 = vpop.f32.mrb[20].mxu0 }
 0x12e   : > { %v7051_v24 = vpop.f32.mrb[19].mxu1  ;;  %v6966_v63 = vpop.f32.mrb[21].mxu0 }
 0x12f   : > { %v10025_v1 = vadd.f32 %v7049_v26, %v9945_v38  ;;  %v7052_v46 = vadd.f32 %v7051_v24, %v7050_v49  ;;  %v10035_v14 = vadd.f32 %v6966_v63, %v6965_v62  ;;  %v6968_v61 = vpop.f32.mrb[22].mxu0  ;;  %v8720_v62 = vld [vmem:[#allocation2 + $0x8] sm:$0xff] }
 0x130   : > { %2359 = vmatmul.mubr.bf16.gmra.mrb[124].mxu1 %v1078_v20  ;;  %v6969_v13 = vpop.f32.mrb[23].mxu0 }
 0x131   : > { %v10031_v55 = vadd.f32 %v7052_v46, %v9949_v54  ;;  %2366 = vmatprep.mubr.bf16.mxu1 %v9921_v48  ;;  %v10040_v48 = vadd.f32 %v6969_v13, %v6968_v61  ;;  %v1162_v61 = vld [vmem:[#allocation2 + $0x231] sm:$0xff] }
 0x132   : > { %8368 = vmatmul.mubr.bf16.gmra.mrb[128].mxu0 %v9840_v44  ;;  %v8585_v44 = vld [vmem:[%s11810_s5 + $0x20] sm:$0xff]  }
 0x133   : > { %v7053_v53 = vpop.f32.mrb[20].mxu1  ;;  %8371 = vmatprep.mubr.bf16.mxu0 %v9851_v59 }
 0x134   : > { %v7054_v38 = vpop.f32.mrb[21].mxu1 }
 0x135   : > { %v7055_v37 = vadd.f32 %v7054_v38, %v7053_v53  ;;  %v7056_v57 = vpop.f32.mrb[22].mxu1  ;;  %v6971_v52 = vpop.f32.mrb[24].mxu0  ;;  %v1066_v38 = vld [vmem:[#allocation2 + $0x22f] sm:$0xff] }
 0x136   : > { %v7057_v56 = vpop.f32.mrb[23].mxu1  ;;  %v6972_v25 = vpop.f32.mrb[25].mxu0 }
 0x137   : > { %v10038_v54 = vadd.f32 %v7055_v37, %v9974_v31  ;;  %v7058_v9 = vadd.f32 %v7057_v56, %v7056_v57  ;;  %v8584_v31 = vld [vmem:[%s11810_s5 + $0x60] sm:$0xff]   ;;  %v10054_v40 = vadd.f32 %v6972_v25, %v6971_v52  ;;  %v6974_v59 = vpop.f32.mrb[26].mxu0  ;;  %v1161_v37 = vld [vmem:[#allocation2 + $0x229] sm:$0xff] }
 0x138   : > { %2367 = vmatmul.mubr.bf16.gmra.mrb[128].mxu1 %v1079_v12  ;;  %7399 = vmatprep.subr.bf16.mxu1 %v8584_v31  ;;  %v6975_v50 = vpop.f32.mrb[27].mxu0 }
 0x139   : > { %v10044_v41 = vadd.f32 %v7058_v9, %v9978_v60  ;;  %2374 = vmatprep.mubr.bf16.mxu1 %v9929_v8  ;;  %7400 = vmatpush3.bf16.msra.mxu1 %v8585_v44  ;;  %v10059_v29 = vadd.f32 %v6975_v50, %v6974_v59  ;;  %v1178_v9 = vpack.c.bf16 %v1162_v61, %v1161_v37 }
 0x13a   : > { %8372 = vmatmul.mubr.bf16.gmra.mrb[132].mxu0 %v9859_v22  ;;  %v1130_v22 = vpack.c.bf16 %v8720_v62, %v8720_v62 }
 0x13b   : > { %v7059_v11 = vpop.f32.mrb[24].mxu1  ;;  %8375 = vmatprep.mubr.bf16.mxu0 %v9867_v32  ;;  %v1065_v32 = vld [vmem:[#allocation2 + $0x227] sm:$0xff] }
 0x13c   : > { %v7060_v60 = vpop.f32.mrb[25].mxu1 }
 0x13d   : > { %v7061_v8 = vadd.f32 %v7060_v60, %v7059_v11  ;;  %v7062_v47 = vpop.f32.mrb[26].mxu1  ;;  %v6977_v15 = vpop.f32.mrb[28].mxu0 }
 0x13e   : > { %v7063_v30 = vpop.f32.mrb[27].mxu1  ;;  %v6978_v33 = vpop.f32.mrb[29].mxu0 }
 0x13f   : > { %v10057_v39 = vadd.f32 %v7061_v8, %v9992_v18  ;;  %v7064_v20 = vadd.f32 %v7063_v30, %v7062_v47  ;;  %v10069_v24 = vadd.f32 %v6978_v33, %v6977_v15  ;;  %v6980_v36 = vpop.f32.mrb[30].mxu0 }
 0x140   : > { %2375 = vmatmul.mubr.bf16.gmra.mrb[132].mxu1 %v1080_v19  ;;  %v6981_v53 = vpop.f32.mrb[31].mxu0 }
 0x141   : > { %v10063_v26 = vadd.f32 %v7064_v20, %v9996_v6  ;;  %8827 = vmatprep.mubr.msk.bf16.mxu1 %vm9959_vm9, %v9965_v58  ;;  %v10074_v27 = vadd.f32 %v6981_v53, %v6980_v36  ;;  %v8589_v53 = vld [vmem:[%s11810_s5 + $0x30] sm:$0xff]  }
 0x142   : > { %8376 = vmatmul.mubr.bf16.gmra.mrb[136].mxu0 %v9877_v10 }
 0x143   : > { %v7065_v49 = vpop.f32.mrb[28].mxu1  ;;  %8379 = vmatprep.mubr.bf16.mxu0 %v9931_v17 }
 0x144   : > { %v7066_v18 = vpop.f32.mrb[29].mxu1 }
 0x145   : > { %v7067_v46 = vadd.f32 %v7066_v18, %v7065_v49  ;;  %v7068_v43 = vpop.f32.mrb[30].mxu1  ;;  %v6983_v57 = vpop.f32.mrb[32].mxu0 }
 0x146   : > { %v7069_v6 = vpop.f32.mrb[31].mxu1  ;;  %v6984_v10 = vpop.f32.mrb[33].mxu0 }
 0x147   : > { %v10072_v63 = vadd.f32 %v7067_v46, %v10004_v34  ;;  %v7070_v58 = vadd.f32 %v7069_v6, %v7068_v43  ;;  %v8586_v34 = vld [vmem:[%s11810_s5 + $0x68] sm:$0xff]   ;;  %v10088_v35 = vadd.f32 %v6984_v10, %v6983_v57  ;;  %v6986_v28 = vpop.f32.mrb[34].mxu0  ;;  %v8588_v43 = vld [vmem:[%s11810_s5 + $0x70] sm:$0xff]  }
 0x148   : > { %2383 = vmatmul.mubr.bf16.gmra.mrb[136].mxu1 %v9869_v51  ;;  %7401 = vmatprep.subr.bf16.mxu1 %v8586_v34  ;;  %v8587_v51 = vld [vmem:[%s11810_s5 + $0x28] sm:$0xff]   ;;  %v6987_v52 = vpop.f32.mrb[35].mxu0 }
 0x149   : > { %v10079_v12 = vadd.f32 %v7070_v58, %v10008_v3  ;;  %2390 = vmatprep.mubr.bf16.mxu1 %v1130_v22  ;;  %v1082_v3 = vpack.c.bf16 %v1066_v38, %v1065_v32  ;;  %7402 = vmatpush3.bf16.msra.mxu1 %v8587_v51  ;;  %v10093_v25 = vadd.f32 %v6987_v52, %v6986_v28  ;;  %v8590_v51 = vld [vmem:[%s11810_s5 + $0xc0] sm:$0xff]   ;;  %v8592_v28 = vld [vmem:[%s11810_s5 + $0xc8] sm:$0xff]  }
 0x14a   : > { %8380 = vmatmul.mubr.bf16.gmra.mrb[140].mxu0 %v1178_v9  ;;  %7403 = vmatprep.subr.bf16.mxu1 %v8588_v43 }
 0x14b   : > { %v7071_v13 = vpop.f32.mrb[32].mxu1  ;;  %7503 = vmatprep.subr.bf16.mxu0 %v8590_v51 }
 0x14c   : > { %v7072_v56 = vpop.f32.mrb[33].mxu1 }
 0x14d   : > { %v7073_v17 = vadd.f32 %v7072_v56, %v7071_v13  ;;  %v7074_v31 = vpop.f32.mrb[34].mxu1  ;;  %v6989_v8 = vpop.f32.mrb[36].mxu0  ;;  %7404 = vmatpush3.bf16.msra.mxu1 %v8589_v53  ;;  %v8591_v56 = vld [vmem:[%s11810_s5 + $0x80] sm:$0xff]  }
 0x14e   : > { %v7075_v11 = vpop.f32.mrb[35].mxu1  ;;  %v6990_v47 = vpop.f32.mrb[37].mxu0  ;;  %7504 = vmatpush3.bf16.msra.mxu0 %v8591_v56  ;;  %v8600_v56 = vld [vmem:[%s11810_s5 + $0xe0] sm:$0xff]  }
 0x14f   : > { %v10091_v44 = vadd.f32 %v7073_v17, %v10022_v21  ;;  %v7076_v60 = vadd.f32 %v7075_v11, %v7074_v31  ;;  %v10098_v30 = vadd.f32 %v6990_v47, %v6989_v8  ;;  %v6992_v15 = vpop.f32.mrb[38].mxu0  ;;  %7505 = vmatprep.subr.bf16.mxu0 %v8592_v28  ;;  %v2703_v28 = vld [vmem:[#allocation3 + $0x7] sm:$0xff] }
 0x150   : > { %2391 = vmatmul.mubr.bf16.gmra.mrb[140].mxu1 %v1082_v3  ;;  %v6993_v21 = vpop.f32.mrb[39].mxu0 }
 0x151   : > { %v10096_v19 = vadd.f32 %v7076_v60, %v10027_v4  ;;  %3744 = vmatprep.mubr.bf16.mxu1 %v1130_v22  ;;  %v10103_v46 = vadd.f32 %v6993_v21, %v6992_v15  ;;  %v8593_v60 = vld [vmem:[%s11810_s5 + $0x88] sm:$0xff]   ;;  %v8595_v15 = vld [vmem:[%s11810_s5 + $0xd0] sm:$0xff]   ;;  %v8594_v21 = vld [vmem:[%s11810_s5 + $0x78] sm:$0xff]  }
 0x152   : > { %7506 = vmatpush3.bf16.msra.mxu0 %v8593_v60  ;;  %7405 = vmatprep.subr.bf16.mxu1 %v8594_v21 }
 0x153   : > { %v7077_v59 = vpop.f32.mrb[36].mxu1  ;;  %7507 = vmatprep.subr.bf16.mxu0 %v8595_v15  ;;  %v8603_v15 = vld [vmem:[%s11810_s5 + $0xa8] sm:$0xff]  }
 0x154   : > { %v7078_v50 = vpop.f32.mrb[37].mxu1 }
 0x155   : > { %v7079_v20 = vadd.f32 %v7078_v50, %v7077_v59  ;;  %v7080_v49 = vpop.f32.mrb[38].mxu1  ;;  %v6995_v62 = vpop.f32.mrb[40].mxu0 }
 0x156   : > { %v7081_v33 = vpop.f32.mrb[39].mxu1  ;;  %v6996_v6 = vpop.f32.mrb[41].mxu0 }
 0x157   : > { %v10101_v18 = vadd.f32 %v7079_v20, %v10035_v14  ;;  %v7082_v36 = vadd.f32 %v7081_v33, %v7080_v49  ;;  %v10114_v58 = vadd.f32 %v6996_v6, %v6995_v62  ;;  %v6998_v38 = vpop.f32.mrb[42].mxu0 }
 0x159   : > { %v10106_v4 = vadd.f32 %v7082_v36, %v10040_v48  ;;  %v6999_v48 = vpop.f32.mrb[43].mxu0 }
 0x15a   : > { %v10119_v57 = vadd.f32 %v6999_v48, %v6998_v38 }
 0x15b   : > { %v7083_v22 = vpop.f32.mrb[40].mxu1 }
 0x15c   : > { %v7084_v14 = vpop.f32.mrb[41].mxu1 }
 0x15d   : > { %v7085_v32 = vadd.f32 %v7084_v14, %v7083_v22  ;;  %v7086_v37 = vpop.f32.mrb[42].mxu1  ;;  %v7001_v3 = vpop.f32.mrb[44].mxu0 }
 0x15e   : > { %v7087_v61 = vpop.f32.mrb[43].mxu1 }
 0x15f   : > { %v10117_v34 = vadd.f32 %v7085_v32, %v10054_v40  ;;  %v7088_v13 = vadd.f32 %v7087_v61, %v7086_v37  ;;  %v7002_v40 = vpop.f32.mrb[45].mxu0  ;;  %v8599_v32 = vld [vmem:[%s11810_s5 + $0x98] sm:$0xff]  }
 0x160   : > { %v10133_v31 = vadd.f32 %v7002_v40, %v7001_v3  ;;  %v7004_v11 = vpop.f32.mrb[46].mxu0 }
 0x161   : > { %v10125_v10 = vadd.f32 %v7088_v13, %v10059_v29  ;;  %v7005_v8 = vpop.f32.mrb[47].mxu0 }
 0x162   : > { %v10141_v50 = vadd.f32 %v7005_v8, %v7004_v11 }
 0x163   : > { %v7089_v9 = vpop.f32.mrb[44].mxu1 }
 0x164   : > { %v7090_v17 = vpop.f32.mrb[45].mxu1 }
 0x165   : > { %v7091_v52 = vadd.f32 %v7090_v17, %v7089_v9  ;;  %v7092_v29 = vpop.f32.mrb[46].mxu1  ;;  %v7159_v36 = vpop.f32.mrb[48].mxu0 }
 0x166   : > { %v7093_v59 = vpop.f32.mrb[47].mxu1  ;;  %v7160_v62 = vpop.f32.mrb[49].mxu0 }
 0x167   : > { %v10139_v47 = vadd.f32 %v7091_v52, %v10069_v24  ;;  %v7094_v20 = vadd.f32 %v7093_v59, %v7092_v29  ;;  %v8597_v24 = vld [vmem:[%s11810_s5 + $0x90] sm:$0xff]   ;;  %v7161_v53 = vadd.f32 %v7160_v62, %v7159_v36  ;;  %v7162_v14 = vpop.f32.mrb[50].mxu0 }
 0x168   : > { %7508 = vmatpush3.bf16.msra.mxu0 %v8597_v24  ;;  %v7163_v37 = vpop.f32.mrb[51].mxu0  ;;  %v2704_v52 = vld [vmem:[#allocation3 + $0xf] sm:$0xff] }
 0x169   : > { %v10147_v49 = vadd.f32 %v7094_v20, %v10074_v27  ;;  %v8598_v27 = vld [vmem:[%s11810_s5 + $0xd8] sm:$0xff]   ;;  %v10165_v61 = vadd.f32 %v7161_v53, %v10025_v1  ;;  %v7164_v51 = vadd.f32 %v7163_v37, %v7162_v14  ;;  %v8601_v1 = vld [vmem:[%s11810_s5 + $0xa0] sm:$0xff]   ;;  %v2735_v29 = vpack.c.bf16 %v2704_v52, %v2703_v28 }
 0x16a   : > { %7509 = vmatprep.subr.bf16.mxu0 %v8598_v27  ;;  %v8604_v27 = vld [vmem:[%s11810_s5 + $0xf0] sm:$0xff]   ;;  %v8605_v52 = vld [vmem:[%s11810_s5 + $0x140] sm:$0xff]  }
 0x16b   : > { %v7095_v33 = vpop.f32.mrb[48].mxu1  ;;  %v10174_v9 = vadd.f32 %v7164_v51, %v10031_v55  ;;  %v8602_v55 = vld [vmem:[%s11810_s5 + $0xe8] sm:$0xff]  }
 0x16c   : > { %v7096_v43 = vpop.f32.mrb[49].mxu1  ;;  %7510 = vmatpush3.bf16.msra.mxu0 %v8599_v32 }
 0x16d   : > { %v7097_v22 = vadd.f32 %v7096_v43, %v7095_v33  ;;  %v7098_v6 = vpop.f32.mrb[50].mxu1  ;;  %7511 = vmatprep.subr.bf16.mxu0 %v8600_v56  ;;  %v7165_v17 = vpop.f32.mrb[52].mxu0 }
 0x16e   : > { %v7099_v38 = vpop.f32.mrb[51].mxu1  ;;  %v7166_v11 = vpop.f32.mrb[53].mxu0 }
 0x16f   : > { %v10162_v48 = vadd.f32 %v7097_v22, %v10088_v35  ;;  %v7100_v13 = vadd.f32 %v7099_v38, %v7098_v6  ;;  %v8596_v35 = vld [vmem:[%s11810_s5 + $0x38] sm:$0xff]   ;;  %v7167_v8 = vadd.f32 %v7166_v11, %v7165_v17  ;;  %v7168_v20 = vpop.f32.mrb[54].mxu0 }
 0x170   : > { %7406 = vmatpush3.bf16.msra.mxu1 %v8596_v35  ;;  %7512 = vmatpush3.bf16.msra.mxu0 %v8601_v1  ;;  %v7169_v24 = vpop.f32.mrb[55].mxu0  ;;  %v8608_v38 = vld [vmem:[%s11810_s5 + $0xf8] sm:$0xff]  }
 0x171   : > { %v10171_v3 = vadd.f32 %v7100_v13, %v10093_v25  ;;  %7513 = vmatprep.subr.bf16.mxu0 %v8602_v55  ;;  %v10192_v36 = vadd.f32 %v7167_v8, %v10038_v54  ;;  %v7170_v62 = vadd.f32 %v7169_v24, %v7168_v20  ;;  %7615 = vmatprep.subr.bf16.mxu1 %v8605_v52 }
 0x173   : > { %v7101_v40 = vpop.f32.mrb[52].mxu1  ;;  %3745 = vmatmul.mubr.bf16.vlgmr.msra.gmra.mrb[144].mxu1 %v2735_v29  ;;  %v10201_v53 = vadd.f32 %v7170_v62, %v10044_v41  ;;  %v8609_v41 = vld [vmem:[%s11810_s5 + $0xb8] sm:$0xff]  }
 0x174   : > { %v7102_v25 = vpop.f32.mrb[53].mxu1  ;;  %7514 = vmatpush3.bf16.msra.mxu0 %v8603_v15 }
 0x175   : > { %v7103_v60 = vadd.f32 %v7102_v25, %v7101_v40  ;;  %v7104_v59 = vpop.f32.mrb[54].mxu1  ;;  %7515 = vmatprep.subr.bf16.mxu0 %v8604_v27  ;;  %v7171_v6 = vpop.f32.mrb[56].mxu0 }
 0x176   : > { %v7105_v21 = vpop.f32.mrb[55].mxu1  ;;  %v7172_v32 = vpop.f32.mrb[57].mxu0 }
 0x177   : > { %v10189_v33 = vadd.f32 %v7103_v60, %v10098_v30  ;;  %v7106_v43 = vadd.f32 %v7105_v21, %v7104_v59  ;;  %v8606_v30 = vld [vmem:[%s11810_s5 + $0xb0] sm:$0xff]   ;;  %v7174_v51 = vpop.f32.mrb[58].mxu0 }
 0x178   : > { %7516 = vmatpush3.bf16.msra.mxu0 %v8606_v30  ;;  %v7175_v35 = vpop.f32.mrb[59].mxu0 }
 0x179   : > { %v10198_v22 = vadd.f32 %v7106_v43, %v10103_v46  ;;  %v7173_v46 = vadd.f32 %v7172_v32, %v7171_v6  ;;  %7517 = vmatprep.subr.bf16.mxu0 %v8608_v38  ;;  %v7176_v28 = vadd.f32 %v7175_v35, %v7174_v51 }
 0x17b   : > { %v7107_v54 = vpop.f32.mrb[56].mxu1  ;;  %v10216_v40 = vadd.f32 %v7173_v46, %v10057_v39  ;;  %v10225_v11 = vadd.f32 %v7176_v28, %v10063_v26  ;;  %v8607_v39 = vld [vmem:[%s11810_s5 + $0x100] sm:$0xff]  }
 0x17c   : > { %v7108_v14 = vpop.f32.mrb[57].mxu1  ;;  %7518 = vmatpush3.bf16.msra.mxu0 %v8609_v41  ;;  %7616 = vmatpush3.bf16.msra.mxu1 %v8607_v39 }
 0x17d   : > { %v7109_v37 = vadd.f32 %v7108_v14, %v7107_v54  ;;  %v7110_v13 = vpop.f32.mrb[58].mxu1 }
 0x17e   : > { %v7111_v56 = vpop.f32.mrb[59].mxu1 }
 0x17f   : > { %v10213_v1 = vadd.f32 %v7109_v37, %v10114_v58  ;;  %v7112_v17 = vadd.f32 %v7111_v56, %v7110_v13  ;;  %v7177_v58 = vpop.f32.mrb[60].mxu0 }
 0x180   : > { %v7178_v60 = vpop.f32.mrb[61].mxu0 }
 0x181   : > { %v10222_v25 = vadd.f32 %v7112_v17, %v10119_v57  ;;  %v7179_v59 = vadd.f32 %v7178_v60, %v7177_v58  ;;  %v7180_v15 = vpop.f32.mrb[62].mxu0 }
 0x182   : > { %v7181_v24 = vpop.f32.mrb[63].mxu0 }
 0x183   : > { %v7113_v55 = vpop.f32.mrb[60].mxu1  ;;  %v10234_v26 = vadd.f32 %v7179_v59, %v10072_v63  ;;  %v7182_v62 = vadd.f32 %v7181_v24, %v7180_v15 }
 0x184   : > { %v7114_v29 = vpop.f32.mrb[61].mxu1 }
 0x185   : > { %v7115_v8 = vadd.f32 %v7114_v29, %v7113_v55  ;;  %v7116_v20 = vpop.f32.mrb[62].mxu1  ;;  %v10240_v30 = vadd.f32 %v7182_v62, %v10079_v12  ;;  %v7183_v6 = vpop.f32.mrb[64].mxu0  ;;  %v8610_v12 = vld [vmem:[%s11810_s5 + $0x148] sm:$0xff]  }
 0x186   : > { %v7117_v21 = vpop.f32.mrb[63].mxu1  ;;  %v7184_v32 = vpop.f32.mrb[65].mxu0  ;;  %7617 = vmatprep.subr.bf16.mxu1 %v8610_v12 }
 0x187   : > { %v10231_v57 = vadd.f32 %v7115_v8, %v10133_v31  ;;  %v7118_v43 = vadd.f32 %v7117_v21, %v7116_v20  ;;  %v7185_v37 = vadd.f32 %v7184_v32, %v7183_v6  ;;  %v7186_v31 = vpop.f32.mrb[66].mxu0 }
 0x188   : > { %v7187_v51 = vpop.f32.mrb[67].mxu0 }
 0x189   : > { %v10237_v27 = vadd.f32 %v7118_v43, %v10141_v50  ;;  %v10246_v41 = vadd.f32 %v7185_v37, %v10091_v44  ;;  %v7188_v56 = vadd.f32 %v7187_v51, %v7186_v31  ;;  %v8611_v44 = vld [vmem:[%s11810_s5 + $0x108] sm:$0xff]  }
 0x18a   : > { %7618 = vmatpush3.bf16.msra.mxu1 %v8611_v44 }
 0x18b   : > { %v7119_v54 = vpop.f32.mrb[64].mxu1  ;;  %v10255_v17 = vadd.f32 %v7188_v56, %v10096_v19 }
 0x18c   : > { %v7120_v14 = vpop.f32.mrb[65].mxu1 }
 0x18d   : > { %v7121_v38 = vadd.f32 %v7120_v14, %v7119_v54  ;;  %v7122_v46 = vpop.f32.mrb[66].mxu1  ;;  %v7189_v52 = vpop.f32.mrb[68].mxu0 }
 0x18e   : > { %v7123_v13 = vpop.f32.mrb[67].mxu1  ;;  %v7190_v55 = vpop.f32.mrb[69].mxu0 }
 0x18f   : > { %v10243_v63 = vadd.f32 %v7121_v38, %v9947_v42  ;;  %v7124_v50 = vadd.f32 %v7123_v13, %v7122_v46  ;;  %v7191_v29 = vadd.f32 %v7190_v55, %v7189_v52  ;;  %v7192_v39 = vpop.f32.mrb[70].mxu0 }
 0x190   : > { %v7193_v59 = vpop.f32.mrb[71].mxu0 }
 0x191   : > { %v10252_v35 = vadd.f32 %v7124_v50, %v9951_v45  ;;  %v10264_v19 = vadd.f32 %v7191_v29, %v10101_v18  ;;  %v7194_v15 = vadd.f32 %v7193_v59, %v7192_v39 }
 0x193   : > { %v7125_v28 = vpop.f32.mrb[68].mxu1  ;;  %v10270_v24 = vadd.f32 %v7194_v15, %v10106_v4  ;;  %v8612_v4 = vld [vmem:[%s11810_s5 + $0x150] sm:$0xff]  }
 0x194   : > { %v7126_v42 = vpop.f32.mrb[69].mxu1  ;;  %7619 = vmatprep.subr.bf16.mxu1 %v8612_v4  ;;  %v8614_v4 = vld [vmem:[%s11810_s5 + $0x158] sm:$0xff]  }
 0x195   : > { %v7127_v58 = vadd.f32 %v7126_v42, %v7125_v28  ;;  %v7128_v60 = vpop.f32.mrb[70].mxu1  ;;  %v7195_v62 = vpop.f32.mrb[72].mxu0 }
 0x196   : > { %v7129_v8 = vpop.f32.mrb[71].mxu1  ;;  %v7196_v6 = vpop.f32.mrb[73].mxu0 }
 0x197   : > { %v10261_v45 = vadd.f32 %v7127_v58, %v9976_v0  ;;  %v7130_v20 = vadd.f32 %v7129_v8, %v7128_v60  ;;  %v7197_v32 = vadd.f32 %v7196_v6, %v7195_v62  ;;  %v7198_v0 = vpop.f32.mrb[74].mxu0 }
 0x198   : > { %v7199_v46 = vpop.f32.mrb[75].mxu0 }
 0x199   : > { %v10267_v21 = vadd.f32 %v7130_v20, %v9980_v16  ;;  %v10276_v31 = vadd.f32 %v7197_v32, %v10117_v34  ;;  %v7200_v13 = vadd.f32 %v7199_v46, %v7198_v0  ;;  %v8613_v34 = vld [vmem:[%s11810_s5 + $0x110] sm:$0xff]  }
 0x19a   : > { %7620 = vmatpush3.bf16.msra.mxu1 %v8613_v34 }
 0x19b   : > { %v7131_v43 = vpop.f32.mrb[72].mxu1  ;;  %v10285_v50 = vadd.f32 %v7200_v13, %v10125_v10  ;;  %7621 = vmatprep.subr.bf16.mxu1 %v8614_v4 }
 0x19c   : > { %v7132_v54 = vpop.f32.mrb[73].mxu1 }
 0x19d   : > { %v7133_v14 = vadd.f32 %v7132_v54, %v7131_v43  ;;  %v7134_v38 = vpop.f32.mrb[74].mxu1  ;;  %v7201_v12 = vpop.f32.mrb[76].mxu0 }
 0x19e   : > { %v7135_v37 = vpop.f32.mrb[75].mxu1  ;;  %v7202_v28 = vpop.f32.mrb[77].mxu0 }
 0x19f   : > { %v10273_v18 = vadd.f32 %v7133_v14, %v9994_v2  ;;  %v7136_v16 = vadd.f32 %v7135_v37, %v7134_v38  ;;  %v7203_v42 = vadd.f32 %v7202_v28, %v7201_v12  ;;  %v7204_v44 = vpop.f32.mrb[78].mxu0 }
 0x1a0   : > { %v7205_v29 = vpop.f32.mrb[79].mxu0 }
 0x1a1   : > { %v10282_v51 = vadd.f32 %v7136_v16, %v9998_v7  ;;  %v10294_v10 = vadd.f32 %v7203_v42, %v10139_v47  ;;  %v7206_v39 = vadd.f32 %v7205_v29, %v7204_v44 }
 0x1a3   : > { %v7137_v56 = vpop.f32.mrb[76].mxu1  ;;  %v10300_v59 = vadd.f32 %v7206_v39, %v10147_v49 }
 0x1a4   : > { %v7138_v2 = vpop.f32.mrb[77].mxu1 }
 0x1a5   : > { %v7139_v52 = vadd.f32 %v7138_v2, %v7137_v56  ;;  %v7140_v55 = vpop.f32.mrb[78].mxu1  ;;  %v7207_v20 = vpop.f32.mrb[80].mxu0 }
 0x1a6   : > { %v7141_v58 = vpop.f32.mrb[79].mxu1  ;;  %v7208_v43 = vpop.f32.mrb[81].mxu0 }
 0x1a7   : > { %v10291_v7 = vadd.f32 %v7139_v52, %v10006_v23  ;;  %v7142_v60 = vadd.f32 %v7141_v58, %v7140_v55  ;;  %v7209_v54 = vadd.f32 %v7208_v43, %v7207_v20  ;;  %v7210_v14 = vpop.f32.mrb[82].mxu0 }
 0x1a8   : > { %v7211_v32 = vpop.f32.mrb[83].mxu0 }
 0x1a9   : > { %v10297_v8 = vadd.f32 %v7142_v60, %v10010_v5  ;;  %v10303_v47 = vadd.f32 %v7209_v54, %v10162_v48  ;;  %v7212_v0 = vadd.f32 %v7211_v32, %v7210_v14  ;;  %v8615_v48 = vld [vmem:[%s11810_s5 + $0x118] sm:$0xff]   ;;  %v8616_v60 = vld [vmem:[%s11810_s5 + $0x160] sm:$0xff]  }
 0x1aa   : > { %7622 = vmatpush3.bf16.msra.mxu1 %v8615_v48 }
 0x1ab   : > { %v7271_v15 = vpop.f32.mrb[80].mxu1  ;;  %v10309_v49 = vadd.f32 %v7212_v0, %v10171_v3  ;;  %7623 = vmatprep.subr.bf16.mxu1 %v8616_v60 }
 0x1ac   : > { %v7272_v62 = vpop.f32.mrb[81].mxu1 }
 0x1ad   : > { %v7273_v6 = vadd.f32 %v7272_v62, %v7271_v15  ;;  %v7274_v23 = vpop.f32.mrb[82].mxu1  ;;  %v7213_v16 = vpop.f32.mrb[84].mxu0 }
 0x1ae   : > { %v7275_v38 = vpop.f32.mrb[83].mxu1  ;;  %v7214_v56 = vpop.f32.mrb[85].mxu0 }
 0x1af   : > { %v7276_v37 = vadd.f32 %v7275_v38, %v7274_v23  ;;  %v10306_v5 = vadd.f32 %v7273_v6, %v10165_v61  ;;  %v7215_v61 = vadd.f32 %v7214_v56, %v7213_v16  ;;  %v7216_v28 = vpop.f32.mrb[86].mxu0 }
 0x1b0   : > { %v7217_v34 = vpop.f32.mrb[87].mxu0 }
 0x1b1   : > { %v10312_v46 = vadd.f32 %v7276_v37, %v10174_v9  ;;  %v10321_v52 = vadd.f32 %v7215_v61, %v10189_v33  ;;  %v7218_v42 = vadd.f32 %v7217_v34, %v7216_v28  ;;  %v8617_v33 = vld [vmem:[%s11810_s5 + $0x120] sm:$0xff]  }
 0x1b2   : > { %7624 = vmatpush3.bf16.msra.mxu1 %v8617_v33 }
 0x1b3   : > { %v7277_v13 = vpop.f32.mrb[84].mxu1  ;;  %v10327_v58 = vadd.f32 %v7218_v42, %v10198_v22  ;;  %v8618_v42 = vld [vmem:[%s11810_s5 + $0x168] sm:$0xff]  }
 0x1b4   : > { %v7278_v12 = vpop.f32.mrb[85].mxu1  ;;  %7625 = vmatprep.subr.bf16.mxu1 %v8618_v42 }
 0x1b5   : > { %v7279_v2 = vadd.f32 %v7278_v12, %v7277_v13  ;;  %v7280_v3 = vpop.f32.mrb[86].mxu1  ;;  %v7219_v39 = vpop.f32.mrb[88].mxu0 }
 0x1b6   : > { %v7281_v9 = vpop.f32.mrb[87].mxu1  ;;  %v7220_v15 = vpop.f32.mrb[89].mxu0 }
 0x1b7   : > { %v7282_v55 = vadd.f32 %v7281_v9, %v7280_v3  ;;  %v10324_v44 = vadd.f32 %v7279_v2, %v10192_v36  ;;  %v7221_v36 = vadd.f32 %v7220_v15, %v7219_v39  ;;  %v7222_v22 = vpop.f32.mrb[90].mxu0 }
 0x1b9   : > { %v10330_v29 = vadd.f32 %v7282_v55, %v10201_v53  ;;  %v7223_v53 = vpop.f32.mrb[91].mxu0  ;;  %v10339_v14 = vadd.f32 %v7221_v36, %v10213_v1 }
 0x1ba   : > { %v7224_v23 = vadd.f32 %v7223_v53, %v7222_v22 }
 0x1bb   : > { %v7283_v20 = vpop.f32.mrb[88].mxu1 }
 0x1bc   : > { %v7284_v43 = vpop.f32.mrb[89].mxu1  ;;  %v10345_v0 = vadd.f32 %v7224_v23, %v10222_v25 }
 0x1bd   : > { %v7285_v62 = vadd.f32 %v7284_v43, %v7283_v20  ;;  %v7286_v54 = vpop.f32.mrb[90].mxu1  ;;  %v7225_v16 = vpop.f32.mrb[92].mxu0 }
 0x1be   : > { %v7287_v6 = vpop.f32.mrb[91].mxu1  ;;  %v7226_v4 = vpop.f32.mrb[93].mxu0 }
 0x1bf   : > { %v7288_v32 = vadd.f32 %v7287_v6, %v7286_v54  ;;  %v10342_v38 = vadd.f32 %v7285_v62, %v10216_v40  ;;  %v7227_v56 = vadd.f32 %v7226_v4, %v7225_v16  ;;  %v7228_v61 = vpop.f32.mrb[94].mxu0 }
 0x1c0   : > { %v7229_v2 = vpop.f32.mrb[95].mxu0 }
 0x1c1   : > { %v10348_v37 = vadd.f32 %v7288_v32, %v10225_v11  ;;  %v10351_v3 = vadd.f32 %v7227_v56, %v10231_v57  ;;  %v7230_v40 = vadd.f32 %v7229_v2, %v7228_v61  ;;  %v8619_v57 = vld [vmem:[%s11810_s5 + $0x128] sm:$0xff]  }
 0x1c2   : > { %7626 = vmatpush3.bf16.msra.mxu1 %v8619_v57 }
 0x1c3   : > { %v7289_v13 = vpop.f32.mrb[92].mxu1  ;;  %v10357_v11 = vadd.f32 %v7230_v40, %v10237_v27  ;;  %v8620_v40 = vld [vmem:[%s11810_s5 + $0x170] sm:$0xff]  }
 0x1c4   : > { %v7290_v48 = vpop.f32.mrb[93].mxu1  ;;  %7627 = vmatprep.subr.bf16.mxu1 %v8620_v40 }
 0x1c5   : > { %v7291_v12 = vadd.f32 %v7290_v48, %v7289_v13  ;;  %v7292_v1 = vpop.f32.mrb[94].mxu1  ;;  %v7231_v55 = vpop.f32.mrb[96].mxu0 }
 0x1c6   : > { %v7293_v28 = vpop.f32.mrb[95].mxu1  ;;  %v7232_v39 = vpop.f32.mrb[97].mxu0 }
 0x1c7   : > { %v7294_v34 = vadd.f32 %v7293_v28, %v7292_v1  ;;  %v10354_v25 = vadd.f32 %v7291_v12, %v10234_v26  ;;  %v7233_v26 = vadd.f32 %v7232_v39, %v7231_v55  ;;  %v7234_v27 = vpop.f32.mrb[98].mxu0 }
 0x1c9   : > { %v10360_v9 = vadd.f32 %v7294_v34, %v10240_v30  ;;  %v7235_v30 = vpop.f32.mrb[99].mxu0  ;;  %v10369_v36 = vadd.f32 %v7233_v26, %v10243_v63 }
 0x1ca   : > { %v7236_v62 = vadd.f32 %v7235_v30, %v7234_v27 }
 0x1cb   : > { %v7295_v60 = vpop.f32.mrb[96].mxu1 }
 0x1cc   : > { %v7296_v20 = vpop.f32.mrb[97].mxu1  ;;  %v10375_v53 = vadd.f32 %v7236_v62, %v10252_v35  ;;  %v8622_v62 = vld [vmem:[%s11810_s5 + $0x1c0] sm:$0xff]  }
 0x1cd   : > { %v7297_v33 = vadd.f32 %v7296_v20, %v7295_v60  ;;  %v7298_v15 = vpop.f32.mrb[98].mxu1  ;;  %v7237_v23 = vpop.f32.mrb[100].mxu0  ;;  %7727 = vmatprep.subr.bf16.mxu0 %v8622_v62 }
 0x1ce   : > { %v7299_v43 = vpop.f32.mrb[99].mxu1  ;;  %v7238_v16 = vpop.f32.mrb[101].mxu0 }
 0x1cf   : > { %v7300_v22 = vadd.f32 %v7299_v43, %v7298_v15  ;;  %v10372_v54 = vadd.f32 %v7297_v33, %v10246_v41  ;;  %v7239_v4 = vadd.f32 %v7238_v16, %v7237_v23  ;;  %v7240_v56 = vpop.f32.mrb[102].mxu0 }
 0x1d0   : > { %v7241_v12 = vpop.f32.mrb[103].mxu0 }
 0x1d1   : > { %v10378_v6 = vadd.f32 %v7300_v22, %v10255_v17  ;;  %v10381_v1 = vadd.f32 %v7239_v4, %v10261_v45  ;;  %v7242_v41 = vadd.f32 %v7241_v12, %v7240_v56  ;;  %v8621_v45 = vld [vmem:[%s11810_s5 + $0x130] sm:$0xff]  }
 0x1d2   : > { %7628 = vmatpush3.bf16.msra.mxu1 %v8621_v45  ;;  %v10440_v45 = vld [vmem:[%s11809_s4] ss:$0 sm:$0xff] }
 0x1d3   : > { %v7301_v32 = vpop.f32.mrb[100].mxu1  ;;  %v10387_v17 = vadd.f32 %v7242_v41, %v10267_v21 }
 0x1d4   : > { %v7302_v13 = vpop.f32.mrb[101].mxu1 }
 0x1d5   : > { %v7303_v48 = vadd.f32 %v7302_v13, %v7301_v32  ;;  %v7304_v63 = vpop.f32.mrb[102].mxu1  ;;  %v7243_v34 = vpop.f32.mrb[104].mxu0 }
 0x1d6   : > { %v7305_v61 = vpop.f32.mrb[103].mxu1  ;;  %v7244_v55 = vpop.f32.mrb[105].mxu0 }
 0x1d7   : > { %v7306_v2 = vadd.f32 %v7305_v61, %v7304_v63  ;;  %v10384_v35 = vadd.f32 %v7303_v48, %v10264_v19  ;;  %v7245_v19 = vadd.f32 %v7244_v55, %v7243_v34  ;;  %v7246_v21 = vpop.f32.mrb[106].mxu0 }
 0x1d9   : > { %v10390_v28 = vadd.f32 %v7306_v2, %v10270_v24  ;;  %v7247_v24 = vpop.f32.mrb[107].mxu0  ;;  %v10399_v26 = vadd.f32 %v7245_v19, %v10273_v18  ;;  %v8626_v2 = vld [vmem:[%s11810_s5 + $0x178] sm:$0xff]  }
 0x1da   : > { %v7248_v33 = vadd.f32 %v7247_v24, %v7246_v21  ;;  %7629 = vmatprep.subr.bf16.mxu1 %v8626_v2 }
 0x1db   : > { %v7307_v42 = vpop.f32.mrb[104].mxu1 }
 0x1dc   : > { %v7308_v60 = vpop.f32.mrb[105].mxu1  ;;  %v10405_v30 = vadd.f32 %v7248_v33, %v10282_v51 }
 0x1dd   : > { %v7309_v57 = vadd.f32 %v7308_v60, %v7307_v42  ;;  %v7310_v39 = vpop.f32.mrb[106].mxu1  ;;  %v7249_v22 = vpop.f32.mrb[108].mxu0 }
 0x1de   : > { %v7311_v20 = vpop.f32.mrb[107].mxu1  ;;  %v7250_v32 = vpop.f32.mrb[109].mxu0 }
 0x1df   : > { %v7312_v27 = vadd.f32 %v7311_v20, %v7310_v39  ;;  %v10402_v15 = vadd.f32 %v7309_v57, %v10276_v31  ;;  %v7251_v16 = vadd.f32 %v7250_v32, %v7249_v22  ;;  %v7252_v4 = vpop.f32.mrb[110].mxu0 }
 0x1e0   : > { %v7253_v48 = vpop.f32.mrb[111].mxu0 }
 0x1e1   : > { %v10408_v43 = vadd.f32 %v7312_v27, %v10285_v50  ;;  %v10414_v51 = vadd.f32 %v7251_v16, %v10291_v7  ;;  %v7254_v50 = vadd.f32 %v7253_v48, %v7252_v4  ;;  %v10431_v7 = vld [vmem:[%s11808_s3] ss:$0 sm:$0xff] }
 0x1e3   : > { %v7313_v23 = vpop.f32.mrb[108].mxu1  ;;  %v10420_v61 = vadd.f32 %v7254_v50, %v10297_v8 }
 0x1e4   : > { %v7314_v18 = vpop.f32.mrb[109].mxu1 }
 0x1e5   : > { %v7315_v13 = vadd.f32 %v7314_v18, %v7313_v23  ;;  %v7316_v31 = vpop.f32.mrb[110].mxu1  ;;  %v8353_v34 = vpop.f32.mrb[112].mxu0 }
 0x1e6   : > { %v7317_v56 = vpop.f32.mrb[111].mxu1  ;;  %v2442_v8 = vadd.f32 %v8353_v34, %v10324_v44 }
 0x1e7   : > { %v7318_v63 = vadd.f32 %v7317_v56, %v7316_v31  ;;  %v10417_v12 = vadd.f32 %v7315_v13, %v10294_v10  ;;  %v8628_v10 = vld [vmem:[%s11810_s5 + $0x138] sm:$0xff]  }
 0x1e8   : > { %7630 = vmatpush3.bf16.msra.mxu1 %v8628_v10  ;;  %v2569_v21 = vmul.f32 %v10431_v7, %v2442_v8 }
 0x1e9   : > { %v10423_v41 = vadd.f32 %v7318_v63, %v10300_v59  ;;  %v2433_v59 = vpop.f32.mrb[113].mxu0 }
 0x1ea   : > { %v2434_v60 = vadd.f32 %v2433_v59, %v10306_v5  ;;  %v8354_v57 = vpop.f32.mrb[114].mxu0  ;;  %v2608_v22 = vadd.f32 %v10440_v45, %v2569_v21 }
 0x1eb   : > { %v7319_v40 = vpop.f32.mrb[112].mxu1  ;;  %v2445_v39 = vadd.f32 %v8354_v57, %v10330_v29  ;;  %v2436_v44 = vpop.f32.mrb[115].mxu0 }
 0x1ec   : > { %v7320_v42 = vpop.f32.mrb[113].mxu1  ;;  %v2567_v20 = vmul.f32 %v10431_v7, %v2434_v60  ;;  %v2437_v27 = vadd.f32 %v2436_v44, %v10312_v46  ;;  %v2640_v18 = vmax.f32 %v2608_v22, 0.0 }
 0x1ed   : > { %v7321_v55 = vadd.f32 %v7320_v42, %v7319_v40  ;;  %v7322_v19 = vpop.f32.mrb[114].mxu1  ;;  %v2570_v5 = vmul.f32 %v10431_v7, %v2445_v39 }
 0x1ee   : > { %v7323_v24 = vpop.f32.mrb[115].mxu1  ;;  %v2606_v23 = vadd.f32 %v10440_v45, %v2567_v20  ;;  %v2568_v32 = vmul.f32 %v10431_v7, %v2437_v27  ;;  %2673 = vst [vmem:[#allocation3 + $0x48] sm:$0xff] %v2640_v18 }
 0x1ef   : > { %v7324_v33 = vadd.f32 %v7323_v24, %v7322_v19  ;;  %v10448_v62 = vadd.f32 %v7321_v55, %v10303_v47  ;;  %v2609_v16 = vadd.f32 %v10440_v45, %v2570_v5  ;;  %v8357_v47 = vpop.f32.mrb[116].mxu0 }
 0x1f0   : > { %v2638_v13 = vmax.f32 %v2606_v23, 0.0  ;;  %v2607_v46 = vadd.f32 %v10440_v45, %v2568_v32  ;;  %v2458_v48 = vadd.f32 %v8357_v47, %v10354_v25  ;;  %v2449_v50 = vpop.f32.mrb[117].mxu0  ;;  %v2799_v23 = vld [vmem:[#allocation3 + $0x9] sm:$0xff]  ;;  %v2800_v32 = vld [vmem:[#allocation3 + $0x11] sm:$0xff] }
 0x1f1   : > { %v10455_v29 = vadd.f32 %v7324_v33, %v10309_v49  ;;  %v2641_v31 = vmax.f32 %v2609_v16, 0.0  ;;  %v2450_v49 = vadd.f32 %v2449_v50, %v10342_v38  ;;  %v8358_v34 = vpop.f32.mrb[118].mxu0 }
 0x1f2   : > { %2671 = vst [vmem:[#allocation3 + $0x28] sm:$0xff] %v2638_v13  ;;  %v2639_v63 = vmax.f32 %v2607_v46, 0.0  ;;  %v2573_v10 = vmul.f32 %v10431_v7, %v2458_v48  ;;  %v2461_v8 = vadd.f32 %v8358_v34, %v10360_v9  ;;  %v2452_v59 = vpop.f32.mrb[119].mxu0  ;;  %v2831_v34 = vpack.c.bf16 %v2800_v32, %v2799_v23 }
 0x1f3   : > { %v7325_v4 = vpop.f32.mrb[116].mxu1  ;;  %2674 = vst [vmem:[#allocation3 + $0x50] sm:$0xff] %v2641_v31  ;;  %v2785_v55 = vpack.c.bf16 %v2641_v31, %v2640_v18  ;;  %v2571_v25 = vmul.f32 %v10431_v7, %v2450_v49  ;;  %v2453_v19 = vadd.f32 %v2452_v59, %v10348_v37  ;;  %v10479_v37 = vld [vmem:[%s11810_s5 + $0x200] sm:$0xff]  }
 0x1f4   : > { %v7326_v56 = vpop.f32.mrb[117].mxu1  ;;  %2672 = vst [vmem:[#allocation3 + $0x30] sm:$0xff] %v2639_v63  ;;  %v2784_v57 = vpack.c.bf16 %v2639_v63, %v2638_v13  ;;  %v2612_v21 = vadd.f32 %v10440_v45, %v2573_v10  ;;  %v2574_v38 = vmul.f32 %v10431_v7, %v2461_v8  ;;  %8383 = vmatprep.subr.bf16.mxu1 %v10479_v37 }
 0x1f5   : > { %v7327_v2 = vadd.f32 %v7326_v56, %v7325_v4  ;;  %v7328_v40 = vpop.f32.mrb[118].mxu1  ;;  %v2610_v24 = vadd.f32 %v10440_v45, %v2571_v25  ;;  %v2572_v9 = vmul.f32 %v10431_v7, %v2453_v19  ;;  %v8361_v5 = vpop.f32.mrb[120].mxu0  ;;  %v2849_v59 = vld [vmem:[#allocation3 + $0x47] sm:$0xff] }
 0x1f6   : > { %v7329_v42 = vpop.f32.mrb[119].mxu1  ;;  %3752 = vmatprep.mubr.bf16.mxu1 %v2784_v57  ;;  %v2644_v20 = vmax.f32 %v2612_v21, 0.0  ;;  %v2613_v33 = vadd.f32 %v10440_v45, %v2574_v38  ;;  %v2465_v13 = vpop.f32.mrb[121].mxu0  ;;  %v8623_v25 = vld [vmem:[%s11810_s5 + $0x180] sm:$0xff]   ;;  %v8624_v21 = vld [vmem:[%s11810_s5 + $0x1c8] sm:$0xff]  }
 0x1f7   : > { %v7330_v60 = vadd.f32 %v7329_v42, %v7328_v40  ;;  %v10468_v39 = vadd.f32 %v7327_v2, %v10321_v52  ;;  %v2642_v27 = vmax.f32 %v2610_v24, 0.0  ;;  %v2611_v52 = vadd.f32 %v10440_v45, %v2572_v9  ;;  %v8362_v48 = vpop.f32.mrb[122].mxu0 }
 0x1f8   : > { %2677 = vst [vmem:[#allocation3 + $0x88] sm:$0xff] %v2644_v20  ;;  %v2645_v18 = vmax.f32 %v2613_v33, 0.0  ;;  %v2466_v47 = vadd.f32 %v2465_v13, %v10372_v54  ;;  %v2477_v63 = vadd.f32 %v8362_v48, %v10390_v28  ;;  %v2468_v49 = vpop.f32.mrb[123].mxu0  ;;  %v8627_v13 = vld [vmem:[%s11810_s5 + $0x1d0] sm:$0xff]  }
 0x1f9   : > { %v10473_v44 = vadd.f32 %v7330_v60, %v10327_v58  ;;  %v2474_v58 = vadd.f32 %v8361_v5, %v10384_v35  ;;  %2675 = vst [vmem:[#allocation3 + $0x68] sm:$0xff] %v2642_v27  ;;  %v2643_v46 = vmax.f32 %v2611_v52, 0.0  ;;  %v2847_v35 = vld [vmem:[#allocation3 + $0x27] sm:$0xff]  ;;  %v2469_v42 = vadd.f32 %v2468_v49, %v10378_v6 }
 0x1fa   : > { %v2850_v56 = vld [vmem:[#allocation3 + $0x4f] sm:$0xff]  ;;  %2678 = vst [vmem:[#allocation3 + $0x90] sm:$0xff] %v2645_v18  ;;  %v2575_v10 = vmul.f32 %v10431_v7, %v2466_v47  ;;  %v2578_v28 = vmul.f32 %v10431_v7, %v2477_v63  ;;  %v10501_v24 = vpack.c.bf16 %v2645_v18, %v2644_v20 }
 0x1fb   : > { %v7331_v22 = vpop.f32.mrb[120].mxu1  ;;  %v2577_v50 = vmul.f32 %v10431_v7, %v2474_v58  ;;  %v2848_v40 = vld [vmem:[#allocation3 + $0x2f] sm:$0xff]  ;;  %2676 = vst [vmem:[#allocation3 + $0x70] sm:$0xff] %v2643_v46  ;;  %v2880_v19 = vpack.c.bf16 %v2850_v56, %v2849_v59  ;;  %v2786_v57 = vpack.c.bf16 %v2643_v46, %v2642_v27  ;;  %v2576_v6 = vmul.f32 %v10431_v7, %v2469_v42 }
 0x1fc   : > { %v7332_v16 = vpop.f32.mrb[121].mxu1  ;;  %v2879_v54 = vpack.c.bf16 %v2848_v40, %v2847_v35  ;;  %v2614_v38 = vadd.f32 %v10440_v45, %v2575_v10  ;;  %v2617_v33 = vadd.f32 %v10440_v45, %v2578_v28  ;;  %v8625_v20 = vld [vmem:[%s11810_s5 + $0x188] sm:$0xff]  }
 0x1fd   : > { %v7333_v4 = vadd.f32 %v7332_v16, %v7331_v22  ;;  %v7334_v31 = vpop.f32.mrb[122].mxu1  ;;  %v10493_v60 = vadd.f32 %v10440_v45, %v2577_v50  ;;  %v2615_v5 = vadd.f32 %v10440_v45, %v2576_v6  ;;  %v8365_v32 = vpop.f32.mrb[124].mxu0  ;;  %v2801_v16 = vld [vmem:[#allocation3 + $0x29] sm:$0xff] }
 0x1fe   : > { %v7335_v2 = vpop.f32.mrb[123].mxu1  ;;  %3905 = vmatprep.mubr.bf16.mxu0 %v2879_v54  ;;  %3753 = vmatmul.mubr.bf16.gmra.mrb[148].mxu1 %v2879_v54  ;;  %v2646_v22 = vmax.f32 %v2614_v38, 0.0  ;;  %v2649_v18 = vmax.f32 %v2617_v33, 0.0  ;;  %v2481_v58 = vpop.f32.mrb[125].mxu0 }
 0x1ff   : > { %v7336_v8 = vadd.f32 %v7335_v2, %v7334_v31  ;;  %v2648_v9 = vmax.f32 %v10493_v60, 0.0  ;;  %3906 = vmatmul.mubr.bf16.vlgmr.msra.gmra.mrb[144].mxu0 %v2831_v34  ;;  %3760 = vmatprep.mubr.bf16.mxu1 %v2785_v55  ;;  %v10506_v27 = vadd.f32 %v7333_v4, %v10339_v14  ;;  %v2490_v55 = vadd.f32 %v8365_v32, %v10417_v12  ;;  %v8366_v48 = vpop.f32.mrb[126].mxu0 }
 0x200   : > { %3913 = vmatprep.mubr.bf16.mxu0 %v2880_v19  ;;  %7728 = vmatpush3.bf16.msra.mxu0 %v8623_v25  ;;  %2679 = vst [vmem:[#allocation3 + $0xa8] sm:$0xff] %v2646_v22  ;;  %v2647_v46 = vmax.f32 %v2615_v5, 0.0  ;;  %v2482_v47 = vadd.f32 %v2481_v58, %v10402_v15  ;;  %2682 = vst [vmem:[#allocation3 + $0xd0] sm:$0xff] %v2649_v18  ;;  %v2493_v12 = vadd.f32 %v8366_v48, %v10423_v41  ;;  %v2484_v63 = vpop.f32.mrb[127].mxu0  ;;  %v2851_v10 = vld [vmem:[#allocation3 + $0x67] sm:$0xff]  ;;  %v8629_v15 = vld [vmem:[%s11810_s5 + $0x190] sm:$0xff]  }
 0x201   : > { %v10509_v52 = vadd.f32 %v7336_v8, %v10345_v0  ;;  %2681 = vst [vmem:[#allocation3 + $0xc8] sm:$0xff] %v2648_v9  ;;  %v2802_v0 = vld [vmem:[#allocation3 + $0x31] sm:$0xff]  ;;  %7729 = vmatprep.subr.bf16.mxu0 %v8624_v21  ;;  %v2581_v56 = vmul.f32 %v10431_v7, %v2490_v55  ;;  %v2485_v40 = vadd.f32 %v2484_v63, %v10408_v43 }
 0x202   : > { %v2852_v2 = vld [vmem:[#allocation3 + $0x6f] sm:$0xff]  ;;  %2680 = vst [vmem:[#allocation3 + $0xb0] sm:$0xff] %v2647_v46  ;;  %v2579_v49 = vmul.f32 %v10431_v7, %v2482_v47  ;;  %v10524_v34 = vpack.c.bf16 %v2802_v0, %v2801_v16  ;;  %v2582_v41 = vmul.f32 %v10431_v7, %v2493_v12  ;;  %v8630_v43 = vld [vmem:[%s11810_s5 + $0x1d8] sm:$0xff]   ;;  %v10546_v28 = vpack.c.bf16 %v2647_v46, %v2646_v22 }
 0x203   : > { %v7337_v23 = vpop.f32.mrb[124].mxu1  ;;  %v10530_v8 = vadd.f32 %v10440_v45, %v2581_v56  ;;  %v10533_v42 = vpack.c.bf16 %v2852_v2, %v2851_v10  ;;  %v2580_v25 = vmul.f32 %v10431_v7, %v2485_v40  ;;  %v10551_v38 = vpack.c.bf16 %v2649_v18, %v2648_v9  ;;  %v2803_v9 = vld [vmem:[#allocation3 + $0x49] sm:$0xff]  ;;  %v8632_v18 = vld [vmem:[%s11810_s5 + $0x1e0] sm:$0xff]  }
 0x204   : > { %v7338_v14 = vpop.f32.mrb[125].mxu1  ;;  %7730 = vmatpush3.bf16.msra.mxu0 %v8625_v20  ;;  %v2618_v59 = vadd.f32 %v10440_v45, %v2579_v49  ;;  %v2804_v20 = vld [vmem:[#allocation3 + $0x51] sm:$0xff] }
 0x205   : > { %v7339_v4 = vadd.f32 %v7338_v14, %v7337_v23  ;;  %v7340_v31 = vpop.f32.mrb[126].mxu1  ;;  %7731 = vmatprep.subr.bf16.mxu0 %v8627_v13  ;;  %v2652_v21 = vmax.f32 %v10530_v8, 0.0  ;;  %v2619_v33 = vadd.f32 %v10440_v45, %v2580_v25  ;;  %v8369_v23 = vpop.f32.mrb[128].mxu0  ;;  %v2854_v13 = vld [vmem:[#allocation3 + $0x8f] sm:$0xff]  ;;  %v10567_v12 = vpack.c.bf16 %v2804_v20, %v2803_v9 }
 0x206   : > { %v7341_v50 = vpop.f32.mrb[127].mxu1  ;;  %3761 = vmatmul.mubr.bf16.gmra.mrb[152].mxu1 %v2880_v19  ;;  %v2650_v6 = vmax.f32 %v2618_v59, 0.0  ;;  %v2506_v22 = vadd.f32 %v8369_v23, %v10468_v39  ;;  %v2806_v9 = vld [vmem:[#allocation3 + $0x71] sm:$0xff] }
 0x207   : > { %v7342_v35 = vadd.f32 %v7341_v50, %v7340_v31  ;;  %v10536_v54 = vadd.f32 %v7339_v4, %v10351_v3  ;;  %v2621_v3 = vadd.f32 %v10440_v45, %v2582_v41  ;;  %3914 = vmatmul.mubr.bf16.gmra.mrb[148].mxu0 %v10524_v34  ;;  %3768 = vmatprep.mubr.bf16.mxu1 %v2786_v57  ;;  %v2497_v57 = vpop.f32.mrb[129].mxu0  ;;  %v2651_v55 = vmax.f32 %v2619_v33, 0.0  ;;  %v2853_v50 = vld [vmem:[#allocation3 + $0x87] sm:$0xff] }
 0x208   : > { %3921 = vmatprep.mubr.bf16.mxu0 %v10533_v42  ;;  %7732 = vmatpush3.bf16.msra.mxu0 %v8629_v15  ;;  %2685 = vst [vmem:[#allocation3 + $0x108] sm:$0xff] %v2652_v21  ;;  %2683 = vst [vmem:[#allocation3 + $0xe8] sm:$0xff] %v2650_v6  ;;  %v2498_v58 = vadd.f32 %v2497_v57, %v10448_v62  ;;  %v8370_v0 = vpop.f32.mrb[130].mxu0  ;;  %v2585_v39 = vmul.f32 %v10431_v7, %v2506_v22  ;;  %v8633_v62 = vld [vmem:[%s11810_s5 + $0x1a0] sm:$0xff]   ;;  %v2805_v57 = vld [vmem:[#allocation3 + $0x69] sm:$0xff] }
 0x209   : > { %v10544_v60 = vadd.f32 %v7342_v35, %v10357_v11  ;;  %v8631_v11 = vld [vmem:[%s11810_s5 + $0x198] sm:$0xff]   ;;  %v2653_v19 = vmax.f32 %v2621_v3, 0.0  ;;  %7733 = vmatprep.subr.bf16.mxu0 %v8630_v43  ;;  %v2509_v46 = vadd.f32 %v8370_v0, %v10473_v44  ;;  %v2500_v47 = vpop.f32.mrb[131].mxu0  ;;  %2684 = vst [vmem:[#allocation3 + $0xf0] sm:$0xff] %v2651_v55  ;;  %v10576_v2 = vpack.c.bf16 %v2854_v13, %v2853_v50  ;;  %v2856_v20 = vld [vmem:[#allocation3 + $0xaf] sm:$0xff]  ;;  %v2855_v13 = vld [vmem:[#allocation3 + $0xa7] sm:$0xff] }
 0x20a   : > { %v2583_v31 = vmul.f32 %v10431_v7, %v2498_v58  ;;  %v2501_v56 = vadd.f32 %v2500_v47, %v10455_v29  ;;  %v10573_v63 = vadd.f32 %v10440_v45, %v2585_v39  ;;  %v8634_v29 = vld [vmem:[%s11810_s5 + $0x1e8] sm:$0xff]   ;;  %v10590_v15 = vpack.c.bf16 %v2651_v55, %v2650_v6  ;;  %v8638_v39 = vld [vmem:[%s11810_s5 + $0x1b0] sm:$0xff]  }
 0x20b   : > { %v7343_v5 = vpop.f32.mrb[128].mxu1  ;;  %2686 = vst [vmem:[#allocation3 + $0x110] sm:$0xff] %v2653_v19  ;;  %v2586_v44 = vmul.f32 %v10431_v7, %v2509_v46  ;;  %v10596_v41 = vpack.c.bf16 %v2653_v19, %v2652_v21  ;;  %v8636_v21 = vld [vmem:[%s11810_s5 + $0x1f0] sm:$0xff]   ;;  %v10622_v47 = vpack.c.bf16 %v2856_v20, %v2855_v13 }
 0x20c   : > { %v7344_v32 = vpop.f32.mrb[129].mxu1  ;;  %7734 = vmatpush3.bf16.msra.mxu0 %v8631_v11  ;;  %v2622_v35 = vadd.f32 %v10440_v45, %v2583_v31  ;;  %v2584_v40 = vmul.f32 %v10431_v7, %v2501_v56  ;;  %v2656_v8 = vmax.f32 %v10573_v63, 0.0 }
 0x20d   : > { %v7345_v14 = vadd.f32 %v7344_v32, %v7343_v5  ;;  %v7346_v16 = vpop.f32.mrb[130].mxu1  ;;  %7735 = vmatprep.subr.bf16.mxu0 %v8632_v18  ;;  %v8373_v3 = vpop.f32.mrb[132].mxu0 }
 0x20e   : > { %v7347_v4 = vpop.f32.mrb[131].mxu1  ;;  %3769 = vmatmul.mubr.bf16.gmra.mrb[156].mxu1 %v10533_v42  ;;  %v2654_v43 = vmax.f32 %v2622_v35, 0.0  ;;  %v2623_v59 = vadd.f32 %v10440_v45, %v2584_v40  ;;  %2689 = vst [vmem:[#allocation3 + $0x148] sm:$0xff] %v2656_v8  ;;  %v2522_v33 = vadd.f32 %v8373_v3, %v10536_v54 }
 0x20f   : > { %v7348_v48 = vadd.f32 %v7347_v4, %v7346_v16  ;;  %v10579_v49 = vadd.f32 %v7345_v14, %v10369_v36  ;;  %v2625_v36 = vadd.f32 %v10440_v45, %v2586_v44  ;;  %3922 = vmatmul.mubr.bf16.gmra.mrb[152].mxu0 %v10567_v12  ;;  %3776 = vmatprep.mubr.bf16.mxu1 %v10501_v24  ;;  %v2513_v24 = vpop.f32.mrb[133].mxu0 }
 0x210   : > { %3929 = vmatprep.mubr.bf16.mxu0 %v10576_v2  ;;  %7736 = vmatpush3.bf16.msra.mxu0 %v8633_v62  ;;  %2687 = vst [vmem:[#allocation3 + $0x128] sm:$0xff] %v2654_v43  ;;  %v2655_v23 = vmax.f32 %v2623_v59, 0.0  ;;  %v2514_v19 = vadd.f32 %v2513_v24, %v10506_v27  ;;  %v8374_v32 = vpop.f32.mrb[134].mxu0  ;;  %v2589_v54 = vmul.f32 %v10431_v7, %v2522_v33  ;;  %v2807_v33 = vld [vmem:[#allocation3 + $0x89] sm:$0xff] }
 0x211   : > { %v10588_v10 = vadd.f32 %v7348_v48, %v10375_v53  ;;  %v8635_v53 = vld [vmem:[%s11810_s5 + $0x1a8] sm:$0xff]   ;;  %v2657_v6 = vmax.f32 %v2625_v36, 0.0  ;;  %7737 = vmatprep.subr.bf16.mxu0 %v8634_v29  ;;  %v2525_v18 = vadd.f32 %v8374_v32, %v10544_v60  ;;  %v2516_v14 = vpop.f32.mrb[135].mxu0  ;;  %v10620_v4 = vpack.c.bf16 %v2806_v9, %v2805_v57 }
 0x212   : > { %2688 = vst [vmem:[#allocation3 + $0x130] sm:$0xff] %v2655_v23  ;;  %v2587_v58 = vmul.f32 %v10431_v7, %v2514_v19  ;;  %v2517_v0 = vadd.f32 %v2516_v14, %v10509_v52  ;;  %v10617_v46 = vadd.f32 %v10440_v45, %v2589_v54  ;;  %v10631_v56 = vpack.c.bf16 %v2655_v23, %v2654_v43  ;;  %v2858_v24 = vld [vmem:[#allocation3 + $0xcf] sm:$0xff]  ;;  %v2857_v9 = vld [vmem:[#allocation3 + $0xc7] sm:$0xff] }
 0x213   : > { %v7349_v25 = vpop.f32.mrb[132].mxu1  ;;  %2690 = vst [vmem:[#allocation3 + $0x150] sm:$0xff] %v2657_v6  ;;  %v2590_v60 = vmul.f32 %v10431_v7, %v2525_v18  ;;  %v10637_v63 = vpack.c.bf16 %v2657_v6, %v2656_v8 }
 0x214   : > { %v7350_v5 = vpop.f32.mrb[133].mxu1  ;;  %7738 = vmatpush3.bf16.msra.mxu0 %v8635_v53  ;;  %v2626_v52 = vadd.f32 %v10440_v45, %v2587_v58  ;;  %v2588_v31 = vmul.f32 %v10431_v7, %v2517_v0  ;;  %v2660_v50 = vmax.f32 %v10617_v46, 0.0 }
 0x215   : > { %v7351_v11 = vadd.f32 %v7350_v5, %v7349_v25  ;;  %v7352_v22 = vpop.f32.mrb[134].mxu1  ;;  %7739 = vmatprep.subr.bf16.mxu0 %v8636_v21  ;;  %v2629_v62 = vadd.f32 %v10440_v45, %v2590_v60  ;;  %v8377_v40 = vpop.f32.mrb[136].mxu0  ;;  %v2808_v5 = vld [vmem:[#allocation3 + $0x91] sm:$0xff] }
 0x216   : > { %v7353_v55 = vpop.f32.mrb[135].mxu1  ;;  %3777 = vmatmul.mubr.bf16.gmra.mrb[160].mxu1 %v10576_v2  ;;  %v2658_v44 = vmax.f32 %v2626_v52, 0.0  ;;  %v2627_v29 = vadd.f32 %v10440_v45, %v2588_v31  ;;  %2693 = vst [vmem:[#allocation3 + $0x188] sm:$0xff] %v2660_v50  ;;  %v2529_v25 = vpop.f32.mrb[137].mxu0  ;;  %v10651_v18 = vpack.c.bf16 %v2808_v5, %v2807_v33 }
 0x217   : > { %v7354_v16 = vadd.f32 %v7353_v55, %v7352_v22  ;;  %v2377_v27 = vadd.f32 %v7351_v11, %v10381_v1  ;;  %v8639_v1 = vld [vmem:[%s11810_s5 + $0x1f8] sm:$0xff]   ;;  %3930 = vmatmul.mubr.bf16.gmra.mrb[156].mxu0 %v10620_v4  ;;  %3784 = vmatprep.mubr.bf16.mxu1 %v10546_v28  ;;  %v2661_v36 = vmax.f32 %v2629_v62, 0.0  ;;  %v2530_v3 = vadd.f32 %v2529_v25, %v10579_v49  ;;  %v8378_v6 = vpop.f32.mrb[138].mxu0 }
 0x218   : > { %3937 = vmatprep.mubr.bf16.mxu0 %v10622_v47  ;;  %7740 = vmatpush3.bf16.msra.mxu0 %v8638_v39  ;;  %2691 = vst [vmem:[#allocation3 + $0x168] sm:$0xff] %v2658_v44  ;;  %v2659_v28 = vmax.f32 %v2627_v29, 0.0  ;;  %v2532_v19 = vpop.f32.mrb[139].mxu0  ;;  %v10653_v55 = vpack.c.bf16 %v2858_v24, %v2857_v9  ;;  %v2812_v9 = vld [vmem:[#allocation3 + $0xd1] sm:$0xff] }
 0x219   : > { %v2380_v48 = vadd.f32 %v7354_v16, %v10387_v17  ;;  %v8640_v17 = vld [vmem:[%s11810_s5 + $0x1b8] sm:$0xff]   ;;  %v2538_v43 = vadd.f32 %v8377_v40, %v2377_v27  ;;  %7741 = vmatprep.subr.bf16.mxu0 %v8639_v1  ;;  %2694 = vst [vmem:[#allocation3 + $0x190] sm:$0xff] %v2661_v36  ;;  %v2591_v22 = vmul.f32 %v10431_v7, %v2530_v3 }
 0x21a   : > { %2692 = vst [vmem:[#allocation3 + $0x170] sm:$0xff] %v2659_v28  ;;  %v2533_v57 = vadd.f32 %v2532_v19, %v10588_v10  ;;  %v10659_v16 = vpack.c.bf16 %v2659_v28, %v2658_v44  ;;  %v10664_v27 = vpack.c.bf16 %v2661_v36, %v2660_v50  ;;  %v2810_v50 = vld [vmem:[#allocation3 + $0xb1] sm:$0xff] }
 0x21b   : > { %v7355_v35 = vpop.f32.mrb[136].mxu1  ;;  %v2593_v21 = vmul.f32 %v10431_v7, %v2538_v43  ;;  %v2541_v23 = vadd.f32 %v8378_v6, %v2380_v48  ;;  %v2630_v14 = vadd.f32 %v10440_v45, %v2591_v22 }
 0x21c   : > { %v7356_v59 = vpop.f32.mrb[137].mxu1  ;;  %7742 = vmatpush3.bf16.msra.mxu0 %v8640_v17  ;;  %v2592_v58 = vmul.f32 %v10431_v7, %v2533_v57  ;;  %v2811_v57 = vld [vmem:[#allocation3 + $0xc9] sm:$0xff] }
 0x21d   : > { %v7357_v8 = vadd.f32 %v7356_v59, %v7355_v35  ;;  %v7358_v53 = vpop.f32.mrb[138].mxu1  ;;  %v2632_v20 = vadd.f32 %v10440_v45, %v2593_v21  ;;  %v2594_v54 = vmul.f32 %v10431_v7, %v2541_v23  ;;  %v2662_v13 = vmax.f32 %v2630_v14, 0.0  ;;  %v8381_v60 = vpop.f32.mrb[140].mxu0  ;;  %v2860_v35 = vld [vmem:[#allocation3 + $0xef] sm:$0xff]  ;;  %v2861_v14 = vld [vmem:[#allocation3 + $0x107] sm:$0xff] }
 0x21e   : > { %v7359_v11 = vpop.f32.mrb[139].mxu1  ;;  %3785 = vmatmul.mubr.bf16.gmra.mrb[164].mxu1 %v10622_v47  ;;  %v2631_v39 = vadd.f32 %v10440_v45, %v2592_v58  ;;  %v2545_v52 = vpop.f32.mrb[141].mxu0 }
 0x21f   : > { %v7360_v32 = vadd.f32 %v7359_v11, %v7358_v53  ;;  %v2385_v49 = vadd.f32 %v7357_v8, %v10399_v26  ;;  %v2664_v26 = vmax.f32 %v2632_v20, 0.0  ;;  %v2633_v0 = vadd.f32 %v10440_v45, %v2594_v54  ;;  %3938 = vmatmul.mubr.bf16.gmra.mrb[160].mxu0 %v10651_v18  ;;  %3792 = vmatprep.mubr.bf16.mxu1 %v10551_v38  ;;  %v8382_v29 = vpop.f32.mrb[142].mxu0  ;;  %v2809_v38 = vld [vmem:[#allocation3 + $0xa9] sm:$0xff] }
 0x220   : > { %3945 = vmatprep.mubr.bf16.mxu0 %v10653_v55  ;;  %2695 = vst [vmem:[#allocation3 + $0x1a8] sm:$0xff] %v2662_v13  ;;  %v2663_v31 = vmax.f32 %v2631_v39, 0.0  ;;  %v2548_v17 = vpop.f32.mrb[143].mxu0  ;;  %v2859_v8 = vld [vmem:[#allocation3 + $0xe7] sm:$0xff]  ;;  %v10672_v3 = vpack.c.bf16 %v2810_v50, %v2809_v38  ;;  %v10690_v54 = vpack.c.bf16 %v2812_v9, %v2811_v57 }
 0x221   : > { %v2388_v10 = vadd.f32 %v7360_v32, %v10405_v30  ;;  %2697 = vst [vmem:[#allocation3 + $0x1c8] sm:$0xff] %v2664_v26  ;;  %v2665_v30 = vmax.f32 %v2633_v0, 0.0  ;;  %v2546_v62 = vadd.f32 %v2545_v52, %v2385_v49  ;;  %v10674_v53 = vpack.c.bf16 %v2860_v35, %v2859_v8  ;;  %v2862_v49 = vld [vmem:[#allocation3 + $0x10f] sm:$0xff]  ;;  %v2863_v39 = vld [vmem:[#allocation3 + $0x127] sm:$0xff] }
 0x222   : > { %2696 = vst [vmem:[#allocation3 + $0x1b0] sm:$0xff] %v2663_v31  ;;  %v10676_v6 = vpack.c.bf16 %v2663_v31, %v2662_v13  ;;  %v2864_v0 = vld [vmem:[#allocation3 + $0x12f] sm:$0xff]  ;;  %v2865_v52 = vld [vmem:[#allocation3 + $0x147] sm:$0xff] }
 0x223   : > { %v7361_v46 = vpop.f32.mrb[140].mxu1  ;;  %2698 = vst [vmem:[#allocation3 + $0x1d0] sm:$0xff] %v2665_v30  ;;  %v10668_v36 = vpack.c.bf16 %v2665_v30, %v2664_v26  ;;  %v2595_v59 = vmul.f32 %v10431_v7, %v2546_v62  ;;  %v2549_v28 = vadd.f32 %v2548_v17, %v2388_v10  ;;  %v10695_v26 = vpack.c.bf16 %v2862_v49, %v2861_v14  ;;  %v2866_v30 = vld [vmem:[#allocation3 + $0x14f] sm:$0xff] }
 0x224   : > { %v7362_v1 = vpop.f32.mrb[141].mxu1  ;;  %v10711_v31 = vpack.c.bf16 %v2866_v30, %v2865_v52  ;;  %v2868_v62 = vld [vmem:[#allocation3 + $0x16f] sm:$0xff] }
 0x225   : > { %v7363_v48 = vadd.f32 %v7362_v1, %v7361_v46  ;;  %v7364_v44 = vpop.f32.mrb[142].mxu1  ;;  %v2634_v5 = vadd.f32 %v10440_v45, %v2595_v59  ;;  %v2596_v21 = vmul.f32 %v10431_v7, %v2549_v28  ;;  %v10703_v46 = vpack.c.bf16 %v2864_v0, %v2863_v39  ;;  %v2819_v17 = vld [vmem:[#allocation3 + $0x149] sm:$0xff] }
 0x226   : > { %v7365_v40 = vpop.f32.mrb[143].mxu1  ;;  %3793 = vmatmul.mubr.bf16.gmra.mrb[168].mxu1 %v10653_v55  ;;  %v2895_v30 = vld [vmem:[#allocation3 + $0x28] sm:$0xff]  ;;  %v3041_v52 = vld [vmem:[#allocation3 + $0x50] sm:$0xff] }
 0x227   : > { %v2393_v43 = vadd.f32 %v7363_v48, %v10414_v51  ;;  %v7366_v25 = vadd.f32 %v7365_v40, %v7364_v44  ;;  %3946 = vmatmul.mubr.bf16.gmra.mrb[164].mxu0 %v10672_v3  ;;  %3800 = vmatprep.mubr.bf16.mxu1 %v10590_v15  ;;  %v2666_v23 = vmax.f32 %v2634_v5, 0.0  ;;  %v2635_v19 = vadd.f32 %v10440_v45, %v2596_v21  ;;  %v2817_v48 = vld [vmem:[#allocation3 + $0x129] sm:$0xff] }
 0x228   : > { %3953 = vmatprep.mubr.bf16.mxu0 %v10674_v53 }
 0x229   : > { %v2554_v33 = vadd.f32 %v8381_v60, %v2393_v43  ;;  %v2396_v24 = vadd.f32 %v7366_v25, %v10420_v61  ;;  %2699 = vst [vmem:[#allocation3 + $0x1e8] sm:$0xff] %v2666_v23  ;;  %v2667_v32 = vmax.f32 %v2635_v19, 0.0  ;;  %v2816_v60 = vld [vmem:[#allocation3 + $0x111] sm:$0xff]  ;;  %v2823_v19 = vld [vmem:[#allocation3 + $0x189] sm:$0xff] }
 0x22a   : > { %v2820_v43 = vld [vmem:[#allocation3 + $0x151] sm:$0xff]  ;;  %v2825_v9 = vld [vmem:[#allocation3 + $0x1a9] sm:$0xff] }
 0x22b   : > { %v2597_v51 = vmul.f32 %v10431_v7, %v2554_v33  ;;  %v2557_v11 = vadd.f32 %v8382_v29, %v2396_v24  ;;  %2700 = vst [vmem:[#allocation3 + $0x1f0] sm:$0xff] %v2667_v32  ;;  %v10692_v58 = vpack.c.bf16 %v2667_v32, %v2666_v23  ;;  %v2867_v29 = vld [vmem:[#allocation3 + $0x167] sm:$0xff]  ;;  %v2870_v25 = vld [vmem:[#allocation3 + $0x18f] sm:$0xff]  ;;  %v10728_v8 = vpack.c.bf16 %v2820_v43, %v2819_v17 }
 0x22c   : > { %v10719_v38 = vpack.c.bf16 %v2868_v62, %v2867_v29  ;;  %v2869_v33 = vld [vmem:[#allocation3 + $0x187] sm:$0xff]  ;;  %v2822_v24 = vld [vmem:[#allocation3 + $0x171] sm:$0xff] }
 0x22d   : > { %v2636_v22 = vadd.f32 %v10440_v45, %v2597_v51  ;;  %v2598_v61 = vmul.f32 %v10431_v7, %v2557_v11  ;;  %v2813_v7 = vld [vmem:[#allocation3 + $0xe9] sm:$0xff]  ;;  %v10731_v5 = vpack.c.bf16 %v2870_v25, %v2869_v33  ;;  %v8643_v25 = vld [vmem:[%s11810_s5 + $0x218] sm:$0xff]  }
 0x22e   : > { %3801 = vmatmul.mubr.bf16.gmra.mrb[172].mxu1 %v10674_v53  ;;  %v2872_v21 = vld [vmem:[#allocation3 + $0x1af] sm:$0xff]  ;;  %v2871_v23 = vld [vmem:[#allocation3 + $0x1a7] sm:$0xff] }
 0x22f   : > { %v2668_v20 = vmax.f32 %v2636_v22, 0.0  ;;  %v2637_v15 = vadd.f32 %v10440_v45, %v2598_v61  ;;  %3954 = vmatmul.mubr.bf16.gmra.mrb[168].mxu0 %v10690_v54  ;;  %3808 = vmatprep.mubr.bf16.mxu1 %v10596_v41  ;;  %v2814_v45 = vld [vmem:[#allocation3 + $0xf1] sm:$0xff]  ;;  %v2815_v41 = vld [vmem:[#allocation3 + $0x109] sm:$0xff]  ;;  %v10739_v11 = vpack.c.bf16 %v2872_v21, %v2871_v23 }
 0x230   : > { %3961 = vmatprep.mubr.bf16.mxu0 %v10695_v26  ;;  %v10700_v13 = vpack.c.bf16 %v2814_v45, %v2813_v7  ;;  %v10708_v1 = vpack.c.bf16 %v2816_v60, %v2815_v41  ;;  %v2874_v22 = vld [vmem:[#allocation3 + $0x1cf] sm:$0xff]  ;;  %v2873_v32 = vld [vmem:[#allocation3 + $0x1c7] sm:$0xff] }
 0x231   : > { %2701 = vst [vmem:[#allocation3 + $0x208] sm:$0xff] %v2668_v20  ;;  %v2669_v10 = vmax.f32 %v2637_v15, 0.0  ;;  %v10747_v57 = vpack.c.bf16 %v2874_v22, %v2873_v32  ;;  %v2875_v15 = vld [vmem:[#allocation3 + $0x1e7] sm:$0xff]  ;;  %v2896_v41 = vld [vmem:[#allocation3 + $0x30] sm:$0xff] }
 0x232   : > { %v2876_v49 = vld [vmem:[#allocation3 + $0x1ef] sm:$0xff]  ;;  %v2992_v17 = vld [vmem:[#allocation3 + $0x47] sm:$0xff] }
 0x233   : > { %2702 = vst [vmem:[#allocation3 + $0x210] sm:$0xff] %v2669_v10  ;;  %v10755_v14 = vpack.c.bf16 %v2876_v49, %v2875_v15  ;;  %v2827_v10 = vld [vmem:[#allocation3 + $0x1c9] sm:$0xff]  ;;  %v2830_v60 = vld [vmem:[#allocation3 + $0x1f1] sm:$0xff] }
 0x234   : > { %v3040_v62 = vld [vmem:[#allocation3 + $0x48] sm:$0xff]  ;;  %v3045_v33 = vld [vmem:[#allocation3 + $0x90] sm:$0xff] }
 0x235   : > { %v8641_v29 = vld [vmem:[%s11810_s5 + $0x208] sm:$0xff]   ;;  %v3047_v23 = vld [vmem:[#allocation3 + $0xb0] sm:$0xff] }
 0x236   : > { %3809 = vmatmul.mubr.bf16.gmra.mrb[176].mxu1 %v10695_v26 }
 0x237   : > { %3962 = vmatmul.mubr.bf16.gmra.mrb[172].mxu0 %v10700_v13  ;;  %3816 = vmatprep.mubr.bf16.mxu1 %v10631_v56  ;;  %v2818_v56 = vld [vmem:[#allocation3 + $0x131] sm:$0xff] }
 0x238   : > { %3969 = vmatprep.mubr.bf16.mxu0 %v10703_v46  ;;  %v10716_v44 = vpack.c.bf16 %v2818_v56, %v2817_v48  ;;  %v2877_v0 = vld [vmem:[#allocation3 + $0x207] sm:$0xff]  ;;  %v2927_v48 = vpack.c.bf16 %v2896_v41, %v2895_v30 }
 0x23a   : > { %v2878_v7 = vld [vmem:[#allocation3 + $0x20f] sm:$0xff] }
 0x23b   : > { %v10763_v39 = vpack.c.bf16 %v2878_v7, %v2877_v0 }
 0x23e   : > { %3817 = vmatmul.mubr.bf16.gmra.mrb[180].mxu1 %v10703_v46 }
 0x23f   : > { %3970 = vmatmul.mubr.bf16.gmra.mrb[176].mxu0 %v10708_v1  ;;  %3824 = vmatprep.mubr.bf16.mxu1 %v10637_v63 }
 0x240   : > { %3977 = vmatprep.mubr.bf16.mxu0 %v10711_v31 }
 0x246   : > { %3825 = vmatmul.mubr.bf16.gmra.mrb[184].mxu1 %v10711_v31  ;;  %v7407_v50 = vpop.f32.mrb[144].mxu1 }
 0x247   : > { %3978 = vmatmul.mubr.bf16.gmra.mrb[180].mxu0 %v10716_v44  ;;  %3832 = vmatprep.mubr.bf16.mxu1 %v10659_v16  ;;  %v7408_v63 = vpop.f32.mrb[145].mxu1  ;;  %v2821_v16 = vld [vmem:[#allocation3 + $0x169] sm:$0xff] }
 0x248   : > { %3985 = vmatprep.mubr.bf16.mxu0 %v10719_v38  ;;  %v10724_v35 = vadd.f32 %v7408_v63, %v7407_v50  ;;  %v7410_v40 = vpop.f32.mrb[146].mxu1  ;;  %v10736_v51 = vpack.c.bf16 %v2822_v24, %v2821_v16  ;;  %v3072_v50 = vpack.c.bf16 %v3041_v52, %v3040_v62  ;;  %v2993_v63 = vld [vmem:[#allocation3 + $0x4f] sm:$0xff] }
 0x249   : > { %v7411_v59 = vpop.f32.mrb[147].mxu1  ;;  %v3024_v43 = vpack.c.bf16 %v2993_v63, %v2992_v17  ;;  %v3044_v16 = vld [vmem:[#allocation3 + $0x88] sm:$0xff] }
 0x24a   : > { %v10726_v28 = vadd.f32 %v7411_v59, %v7410_v40  ;;  %v3043_v40 = vld [vmem:[#allocation3 + $0x70] sm:$0xff]  ;;  %v3042_v59 = vld [vmem:[#allocation3 + $0x68] sm:$0xff]  ;;  %v3074_v21 = vpack.c.bf16 %v3045_v33, %v3044_v16 }
 0x24b   : > { %v8645_v24 = vld [vmem:[%s11810_s5 + $0x228] sm:$0xff]  }
 0x24e   : > { %3833 = vmatmul.mubr.bf16.gmra.mrb[188].mxu1 %v10719_v38 }
 0x24f   : > { %3986 = vmatmul.mubr.bf16.gmra.mrb[184].mxu0 %v10728_v8  ;;  %3840 = vmatprep.mubr.bf16.mxu1 %v10664_v27  ;;  %v2824_v27 = vld [vmem:[#allocation3 + $0x191] sm:$0xff] }
 0x250   : > { %3993 = vmatprep.mubr.bf16.mxu0 %v10731_v5  ;;  %v10744_v61 = vpack.c.bf16 %v2824_v27, %v2823_v19  ;;  %v3046_v19 = vld [vmem:[#allocation3 + $0xa8] sm:$0xff]  ;;  %v8647_v27 = vld [vmem:[%s11810_s5 + $0x238] sm:$0xff]  }
 0x251   : > { %v3075_v22 = vpack.c.bf16 %v3047_v23, %v3046_v19 }
 0x256   : > { %3841 = vmatmul.mubr.bf16.gmra.mrb[192].mxu1 %v10731_v5 }
 0x257   : > { %3994 = vmatmul.mubr.bf16.gmra.mrb[188].mxu0 %v10736_v51  ;;  %3848 = vmatprep.mubr.bf16.mxu1 %v10676_v6  ;;  %v2826_v6 = vld [vmem:[#allocation3 + $0x1b1] sm:$0xff] }
 0x258   : > { %4001 = vmatprep.mubr.bf16.mxu0 %v10739_v11  ;;  %v10752_v20 = vpack.c.bf16 %v2826_v6, %v2825_v9  ;;  %v3051_v9 = vld [vmem:[#allocation3 + $0xf0] sm:$0xff]  ;;  %v3050_v6 = vld [vmem:[#allocation3 + $0xe8] sm:$0xff] }
 0x259   : > { %v3077_v49 = vpack.c.bf16 %v3051_v9, %v3050_v6  ;;  %v2973_v9 = vld [vmem:[#allocation3 + $0x209] sm:$0xff]  ;;  %v2974_v6 = vld [vmem:[#allocation3 + $0x211] sm:$0xff] }
 0x25e   : > { %3849 = vmatmul.mubr.bf16.gmra.mrb[196].mxu1 %v10739_v11 }
 0x25f   : > { %4002 = vmatmul.mubr.bf16.gmra.mrb[192].mxu0 %v10744_v61  ;;  %3856 = vmatprep.mubr.bf16.mxu1 %v10668_v36  ;;  %v2828_v36 = vld [vmem:[#allocation3 + $0x1d1] sm:$0xff] }
 0x260   : > { %4009 = vmatprep.mubr.bf16.mxu0 %v10747_v57  ;;  %v10760_v45 = vpack.c.bf16 %v2828_v36, %v2827_v10 }
 0x266   : > { %3857 = vmatmul.mubr.bf16.gmra.mrb[200].mxu1 %v10747_v57 }
 0x267   : > { %4010 = vmatmul.mubr.bf16.gmra.mrb[196].mxu0 %v10752_v20  ;;  %3864 = vmatprep.mubr.bf16.mxu1 %v10692_v58  ;;  %v2829_v58 = vld [vmem:[#allocation3 + $0x1e9] sm:$0xff] }
 0x268   : > { %4017 = vmatprep.mubr.bf16.mxu0 %v10755_v14  ;;  %v10768_v56 = vpack.c.bf16 %v2830_v60, %v2829_v58 }
 0x26e   : > { %3865 = vmatmul.mubr.bf16.gmra.mrb[204].mxu1 %v10755_v14 }
 0x26f   : > { %4018 = vmatmul.mubr.bf16.gmra.mrb[200].mxu0 %v10760_v45  ;;  %4066 = vmatprep.mubr.bf16.mxu1 %v10524_v34  ;;  %v8642_v34 = vld [vmem:[%s11810_s5 + $0x210] sm:$0xff]  }
 0x270   : > { %4025 = vmatprep.mubr.bf16.mxu0 %v10763_v39 }
 0x276   : > { %4067 = vmatmul.mubr.bf16.vlgmr.msra.gmra.mrb[208].mxu1 %v2927_v48  ;;  %v3065_v48 = vld [vmem:[#allocation3 + $0x1d0] sm:$0xff] }
 0x277   : > { %4026 = vmatmul.mubr.bf16.gmra.mrb[204].mxu0 %v10768_v56  ;;  %4074 = vmatprep.mubr.bf16.mxu1 %v10567_v12  ;;  %v3073_v12 = vpack.c.bf16 %v3043_v40, %v3042_v59 }
 0x278   : > { %4227 = vmatprep.mubr.bf16.mxu0 %v3072_v50  ;;  %8384 = vmatpush3.bf16.msra.mxu1 %v10479_v37  ;;  %v8644_v37 = vld [vmem:[%s11810_s5 + $0x220] sm:$0xff]  }
 0x279   : > { %8385 = vmatprep.subr.bf16.mxu1 %v8641_v29 }
 0x27c   : > { %8386 = vmatpush3.bf16.msra.mxu1 %v8641_v29 }
 0x27d   : > { %8387 = vmatprep.subr.bf16.mxu1 %v8642_v34 }
 0x27e   : > { %4075 = vmatmul.mubr.bf16.gmra.mrb[212].mxu1 %v3072_v50 }
 0x27f   : > { %4228 = vmatmul.mubr.bf16.vlgmr.msra.gmra.mrb[208].mxu0 %v3024_v43  ;;  %4082 = vmatprep.mubr.bf16.mxu1 %v10620_v4  ;;  %v8646_v4 = vld [vmem:[%s11810_s5 + $0x230] sm:$0xff]  }
 0x280   : > { %4235 = vmatprep.mubr.bf16.mxu0 %v3073_v12  ;;  %8388 = vmatpush3.bf16.msra.mxu1 %v8642_v34  ;;  %v3064_v34 = vld [vmem:[#allocation3 + $0x1c8] sm:$0xff] }
 0x281   : > { %8389 = vmatprep.subr.bf16.mxu1 %v8643_v25  ;;  %v3084_v40 = vpack.c.bf16 %v3065_v48, %v3064_v34 }
 0x284   : > { %8390 = vmatpush3.bf16.msra.mxu1 %v8643_v25 }
 0x285   : > { %8391 = vmatprep.subr.bf16.mxu1 %v8644_v37 }
 0x286   : > { %4083 = vmatmul.mubr.bf16.gmra.mrb[216].mxu1 %v3073_v12 }
 0x287   : > { %4236 = vmatmul.mubr.bf16.gmra.mrb[212].mxu0 %v10533_v42  ;;  %4090 = vmatprep.mubr.bf16.mxu1 %v10651_v18  ;;  %v3049_v42 = vld [vmem:[#allocation3 + $0xd0] sm:$0xff]  ;;  %v3048_v18 = vld [vmem:[#allocation3 + $0xc8] sm:$0xff] }
 0x288   : > { %4243 = vmatprep.mubr.bf16.mxu0 %v3074_v21  ;;  %8392 = vmatpush3.bf16.msra.mxu1 %v8644_v37  ;;  %v3076_v32 = vpack.c.bf16 %v3049_v42, %v3048_v18 }
 0x289   : > { %8393 = vmatprep.subr.bf16.mxu1 %v8645_v24 }
 0x28c   : > { %8394 = vmatpush3.bf16.msra.mxu1 %v8645_v24 }
 0x28d   : > { %8395 = vmatprep.subr.bf16.mxu1 %v8646_v4 }
 0x28e   : > { %4091 = vmatmul.mubr.bf16.gmra.mrb[220].mxu1 %v3074_v21 }
 0x28f   : > { %4244 = vmatmul.mubr.bf16.gmra.mrb[216].mxu0 %v10576_v2  ;;  %4098 = vmatprep.mubr.bf16.mxu1 %v10672_v3  ;;  %v3053_v2 = vld [vmem:[#allocation3 + $0x110] sm:$0xff]  ;;  %v3052_v3 = vld [vmem:[#allocation3 + $0x108] sm:$0xff] }
 0x290   : > { %4251 = vmatprep.mubr.bf16.mxu0 %v3075_v22  ;;  %8396 = vmatpush3.bf16.msra.mxu1 %v8646_v4  ;;  %v3078_v15 = vpack.c.bf16 %v3053_v2, %v3052_v3 }
 0x291   : > { %8397 = vmatprep.subr.bf16.mxu1 %v8647_v27 }
 0x294   : > { %8398 = vmatpush3.bf16.msra.mxu1 %v8647_v27 }
 0x296   : > { %4099 = vmatmul.mubr.bf16.gmra.mrb[224].mxu1 %v3075_v22 }
 0x297   : > { %4252 = vmatmul.mubr.bf16.gmra.mrb[220].mxu0 %v10622_v47  ;;  %4106 = vmatprep.mubr.bf16.mxu1 %v10690_v54  ;;  %v3055_v47 = vld [vmem:[#allocation3 + $0x130] sm:$0xff]  ;;  %v3054_v54 = vld [vmem:[#allocation3 + $0x128] sm:$0xff] }
 0x298   : > { %4259 = vmatprep.mubr.bf16.mxu0 %v3076_v32  ;;  %v3079_v10 = vpack.c.bf16 %v3055_v47, %v3054_v54 }
 0x29e   : > { %4107 = vmatmul.mubr.bf16.gmra.mrb[228].mxu1 %v3076_v32 }
 0x29f   : > { %4260 = vmatmul.mubr.bf16.gmra.mrb[224].mxu0 %v10653_v55  ;;  %4114 = vmatprep.mubr.bf16.mxu1 %v10700_v13  ;;  %v3057_v55 = vld [vmem:[#allocation3 + $0x150] sm:$0xff]  ;;  %v3056_v13 = vld [vmem:[#allocation3 + $0x148] sm:$0xff] }
 0x2a0   : > { %4267 = vmatprep.mubr.bf16.mxu0 %v3077_v49  ;;  %v3080_v36 = vpack.c.bf16 %v3057_v55, %v3056_v13 }
 0x2a6   : > { %4115 = vmatmul.mubr.bf16.gmra.mrb[232].mxu1 %v3077_v49 }
 0x2a7   : > { %4268 = vmatmul.mubr.bf16.gmra.mrb[228].mxu0 %v10674_v53  ;;  %4122 = vmatprep.mubr.bf16.mxu1 %v10708_v1  ;;  %v3059_v53 = vld [vmem:[#allocation3 + $0x170] sm:$0xff]  ;;  %v3058_v1 = vld [vmem:[#allocation3 + $0x168] sm:$0xff] }
 0x2a8   : > { %4275 = vmatprep.mubr.bf16.mxu0 %v3078_v15  ;;  %v3081_v7 = vpack.c.bf16 %v3059_v53, %v3058_v1 }
 0x2ae   : > { %4123 = vmatmul.mubr.bf16.gmra.mrb[236].mxu1 %v3078_v15  ;;  %v3069_v15 = vld [vmem:[#allocation3 + $0x210] sm:$0xff] }
 0x2af   : > { %4276 = vmatmul.mubr.bf16.gmra.mrb[232].mxu0 %v10695_v26  ;;  %4130 = vmatprep.mubr.bf16.mxu1 %v10716_v44  ;;  %v3061_v26 = vld [vmem:[#allocation3 + $0x190] sm:$0xff]  ;;  %v3060_v44 = vld [vmem:[#allocation3 + $0x188] sm:$0xff] }
 0x2b0   : > { %4283 = vmatprep.mubr.bf16.mxu0 %v3079_v10  ;;  %v3082_v0 = vpack.c.bf16 %v3061_v26, %v3060_v44  ;;  %v8650_v26 = vld [vmem:[%s11813_s8 + $0x48] sm:$0xff]  }
 0x2b6   : > { %4131 = vmatmul.mubr.bf16.gmra.mrb[240].mxu1 %v3079_v10 }
 0x2b7   : > { %4284 = vmatmul.mubr.bf16.gmra.mrb[236].mxu0 %v10703_v46  ;;  %4138 = vmatprep.mubr.bf16.mxu1 %v10728_v8  ;;  %v3063_v46 = vld [vmem:[#allocation3 + $0x1b0] sm:$0xff]  ;;  %v3062_v8 = vld [vmem:[#allocation3 + $0x1a8] sm:$0xff] }
 0x2b8   : > { %4291 = vmatprep.mubr.bf16.mxu0 %v3080_v36  ;;  %v3083_v41 = vpack.c.bf16 %v3063_v46, %v3062_v8 }
 0x2be   : > { %4139 = vmatmul.mubr.bf16.gmra.mrb[244].mxu1 %v3080_v36  ;;  %v3068_v36 = vld [vmem:[#allocation3 + $0x208] sm:$0xff] }
 0x2bf   : > { %4292 = vmatmul.mubr.bf16.gmra.mrb[240].mxu0 %v10711_v31  ;;  %4146 = vmatprep.mubr.bf16.mxu1 %v10736_v51  ;;  %v3086_v1 = vpack.c.bf16 %v3069_v15, %v3068_v36  ;;  %v3095_v15 = vld [vmem:[#allocation3 + $0xb1] sm:$0xff] }
 0x2c0   : > { %4299 = vmatprep.mubr.bf16.mxu0 %v3081_v7 }
 0x2c6   : > { %4147 = vmatmul.mubr.bf16.gmra.mrb[248].mxu1 %v3081_v7 }
 0x2c7   : > { %4300 = vmatmul.mubr.bf16.gmra.mrb[244].mxu0 %v10719_v38  ;;  %4154 = vmatprep.mubr.bf16.mxu1 %v10744_v61 }
 0x2c8   : > { %4307 = vmatprep.mubr.bf16.mxu0 %v3082_v0 }
 0x2ce   : > { %4155 = vmatmul.mubr.bf16.gmra.mrb[252].mxu1 %v3082_v0 }
 0x2cf   : > { %4308 = vmatmul.mubr.bf16.gmra.mrb[248].mxu0 %v10731_v5  ;;  %4162 = vmatprep.mubr.bf16.mxu1 %v10752_v20  ;;  %v8648_v20 = vld [vmem:[%s11813_s8 + $0x40] sm:$0xff]  }
 0x2d0   : > { %4315 = vmatprep.mubr.bf16.mxu0 %v3083_v41  ;;  %7863 = vmatprep.subr.bf16.mxu0 %v8648_v20  ;;  %v3023_v20 = vld [vmem:[#allocation3 + $0x22f] sm:$0xff] }
 0x2d1   : > { %v7413_v31 = vpop.f32.mrb[148].mxu1 }
 0x2d2   : > { %v7519_v51 = vpop.f32.mrb[144].mxu0  ;;  %v7414_v58 = vpop.f32.mrb[149].mxu1 }
 0x2d3   : > { %v7415_v60 = vadd.f32 %v7414_v58, %v7413_v31  ;;  %v7520_v30 = vpop.f32.mrb[145].mxu0  ;;  %v7416_v52 = vpop.f32.mrb[150].mxu1  ;;  %v3089_v31 = vld [vmem:[#allocation3 + $0x51] sm:$0xff] }
 0x2d4   : > { %v7521_v38 = vadd.f32 %v7520_v30, %v7519_v51  ;;  %v7522_v62 = vpop.f32.mrb[146].mxu0  ;;  %v7417_v61 = vpop.f32.mrb[151].mxu1  ;;  %v8651_v51 = vld [vmem:[%s11813_s8 + $0x8] sm:$0xff]  }
 0x2d5   : > { %v7418_v29 = vadd.f32 %v7417_v61, %v7416_v52  ;;  %v7523_v50 = vpop.f32.mrb[147].mxu0 }
 0x2d6   : > { %v7524_v63 = vadd.f32 %v7523_v50, %v7522_v62  ;;  %4163 = vmatmul.mubr.bf16.gmra.mrb[0].mxu1 %v3083_v41  ;;  %v10816_v5 = vadd.f32 %v7521_v38, %v10724_v35  ;;  %v8649_v35 = vld [vmem:[%s11813_s8] sm:$0xff]   ;;  %v3088_v41 = vld [vmem:[#allocation3 + $0x49] sm:$0xff] }
 0x2d7   : > { %4316 = vmatmul.mubr.bf16.gmra.mrb[252].mxu0 %v10739_v11  ;;  %4170 = vmatprep.mubr.bf16.mxu1 %v10760_v45  ;;  %v3067_v45 = vld [vmem:[#allocation3 + $0x1f0] sm:$0xff]  ;;  %v8721_v38 = vld [vmem:[#allocation2 + $0x8] sm:$0xff]  ;;  %v3120_v50 = vpack.c.bf16 %v3089_v31, %v3088_v41 }
 0x2d8   : > { %4323 = vmatprep.mubr.bf16.mxu0 %v3084_v40  ;;  %v10824_v17 = vadd.f32 %v7524_v63, %v10726_v28  ;;  %7864 = vmatpush3.bf16.msra.mxu0 %v8649_v35  ;;  %v3066_v28 = vld [vmem:[#allocation3 + $0x1e8] sm:$0xff]  ;;  %v10849_v62 = vpack.c.bf16 %v8721_v38, %v8721_v38  ;;  %v3091_v35 = vld [vmem:[#allocation3 + $0x71] sm:$0xff] }
 0x2d9   : > { %v7419_v43 = vpop.f32.mrb[152].mxu1  ;;  %v3085_v19 = vpack.c.bf16 %v3067_v45, %v3066_v28  ;;  %7865 = vmatprep.subr.bf16.mxu0 %v8650_v26  ;;  %v3093_v45 = vld [vmem:[#allocation3 + $0x91] sm:$0xff] }
 0x2da   : > { %v7525_v59 = vpop.f32.mrb[148].mxu0  ;;  %v7420_v25 = vpop.f32.mrb[153].mxu1 }
 0x2db   : > { %v7421_v12 = vadd.f32 %v7420_v25, %v7419_v43  ;;  %v7526_v11 = vpop.f32.mrb[149].mxu0  ;;  %v7422_v37 = vpop.f32.mrb[154].mxu1  ;;  %v3090_v25 = vld [vmem:[#allocation3 + $0x69] sm:$0xff] }
 0x2dc   : > { %v7527_v33 = vadd.f32 %v7526_v11, %v7525_v59  ;;  %v7528_v16 = vpop.f32.mrb[150].mxu0  ;;  %v7423_v24 = vpop.f32.mrb[155].mxu1  ;;  %7866 = vmatpush3.bf16.msra.mxu0 %v8651_v51 }
 0x2dd   : > { %v7424_v21 = vadd.f32 %v7423_v24, %v7422_v37  ;;  %v7529_v4 = vpop.f32.mrb[151].mxu0  ;;  %v3092_v37 = vld [vmem:[#allocation3 + $0x89] sm:$0xff] }
 0x2de   : > { %v7530_v23 = vadd.f32 %v7529_v4, %v7528_v16  ;;  %4171 = vmatmul.mubr.bf16.gmra.mrb[4].mxu1 %v3084_v40  ;;  %v10829_v27 = vadd.f32 %v7527_v33, %v7415_v60  ;;  %v3022_v40 = vld [vmem:[#allocation3 + $0x227] sm:$0xff] }
 0x2df   : > { %4324 = vmatmul.mubr.bf16.gmra.mrb[0].mxu0 %v10747_v57  ;;  %4178 = vmatprep.mubr.bf16.mxu1 %v10768_v56  ;;  %v10835_v57 = vpack.c.bf16 %v2974_v6, %v2973_v9  ;;  %v8652_v6 = vld [vmem:[%s11813_s8 + $0x50] sm:$0xff]  }
 0x2e0   : > { %4331 = vmatprep.mubr.bf16.mxu0 %v3085_v19  ;;  %v10833_v22 = vadd.f32 %v7530_v23, %v7418_v29  ;;  %v3121_v23 = vpack.c.bf16 %v3091_v35, %v3090_v25  ;;  %7867 = vmatprep.subr.bf16.mxu0 %v8652_v6 }
 0x2e1   : > { %v7425_v42 = vpop.f32.mrb[156].mxu1 }
 0x2e2   : > { %v7531_v18 = vpop.f32.mrb[152].mxu0  ;;  %v7426_v32 = vpop.f32.mrb[157].mxu1 }
 0x2e3   : > { %v7427_v49 = vadd.f32 %v7426_v32, %v7425_v42  ;;  %v7532_v2 = vpop.f32.mrb[153].mxu0  ;;  %v7428_v3 = vpop.f32.mrb[158].mxu1 }
 0x2e4   : > { %v7533_v47 = vadd.f32 %v7532_v2, %v7531_v18  ;;  %v7534_v54 = vpop.f32.mrb[154].mxu0  ;;  %v7429_v10 = vpop.f32.mrb[159].mxu1  ;;  %v3122_v18 = vpack.c.bf16 %v3093_v45, %v3092_v37 }
 0x2e5   : > { %v7430_v55 = vadd.f32 %v7429_v10, %v7428_v3  ;;  %v7535_v13 = vpop.f32.mrb[155].mxu0  ;;  %v3094_v3 = vld [vmem:[#allocation3 + $0xa9] sm:$0xff] }
 0x2e6   : > { %v7536_v53 = vadd.f32 %v7535_v13, %v7534_v54  ;;  %4179 = vmatmul.mubr.bf16.gmra.mrb[8].mxu1 %v3085_v19  ;;  %v10837_v7 = vadd.f32 %v7533_v47, %v7421_v12  ;;  %v3096_v10 = vld [vmem:[#allocation3 + $0xc9] sm:$0xff] }
 0x2e7   : > { %4332 = vmatmul.mubr.bf16.gmra.mrb[4].mxu0 %v10755_v14  ;;  %4186 = vmatprep.mubr.bf16.mxu1 %v10835_v57  ;;  %v8653_v13 = vld [vmem:[%s11813_s8 + $0x10] sm:$0xff]  }
 0x2e8   : > { %4339 = vmatprep.mubr.bf16.mxu0 %v3086_v1  ;;  %v10844_v44 = vadd.f32 %v7536_v53, %v7424_v21  ;;  %v3039_v21 = vpack.c.bf16 %v3023_v20, %v3022_v40  ;;  %7868 = vmatpush3.bf16.msra.mxu0 %v8653_v13 }
 0x2e9   : > { %v7431_v0 = vpop.f32.mrb[160].mxu1 }
 0x2ea   : > { %v7537_v46 = vpop.f32.mrb[156].mxu0  ;;  %v7432_v8 = vpop.f32.mrb[161].mxu1 }
 0x2eb   : > { %v7433_v14 = vadd.f32 %v7432_v8, %v7431_v0  ;;  %v7538_v58 = vpop.f32.mrb[157].mxu0  ;;  %v7434_v60 = vpop.f32.mrb[162].mxu1  ;;  %v3123_v8 = vpack.c.bf16 %v3095_v15, %v3094_v3 }
 0x2ec   : > { %v7539_v30 = vadd.f32 %v7538_v58, %v7537_v46  ;;  %v7540_v52 = vpop.f32.mrb[158].mxu0  ;;  %v7435_v48 = vpop.f32.mrb[163].mxu1 }
 0x2ed   : > { %v7436_v61 = vadd.f32 %v7435_v48, %v7434_v60  ;;  %v7541_v29 = vpop.f32.mrb[159].mxu0  ;;  %v3099_v48 = vld [vmem:[#allocation3 + $0xf1] sm:$0xff] }
 0x2ee   : > { %v7542_v34 = vadd.f32 %v7541_v29, %v7540_v52  ;;  %4187 = vmatmul.mubr.bf16.gmra.mrb[12].mxu1 %v3086_v1  ;;  %v10851_v63 = vadd.f32 %v7539_v30, %v7427_v49  ;;  %v3098_v52 = vld [vmem:[#allocation3 + $0xe9] sm:$0xff] }
 0x2ef   : > { %4340 = vmatmul.mubr.bf16.gmra.mrb[8].mxu0 %v10763_v39  ;;  %8399 = vmatprep.mubr.bf16.mxu1 %v3120_v50  ;;  %v3100_v29 = vld [vmem:[#allocation3 + $0x109] sm:$0xff]  ;;  %v3101_v50 = vld [vmem:[#allocation3 + $0x111] sm:$0xff] }
 0x2f0   : > { %4347 = vmatprep.mubr.bf16.mxu0 %v10849_v62  ;;  %v10855_v43 = vadd.f32 %v7542_v34, %v7430_v55  ;;  %v3097_v55 = vld [vmem:[#allocation3 + $0xd1] sm:$0xff]  ;;  %v3126_v45 = vpack.c.bf16 %v3101_v50, %v3100_v29 }
 0x2f1   : > { %v7437_v59 = vpop.f32.mrb[164].mxu1  ;;  %v3124_v51 = vpack.c.bf16 %v3097_v55, %v3096_v10 }
 0x2f2   : > { %v7543_v12 = vpop.f32.mrb[160].mxu0  ;;  %v7438_v11 = vpop.f32.mrb[165].mxu1 }
 0x2f3   : > { %v7439_v33 = vadd.f32 %v7438_v11, %v7437_v59  ;;  %v7544_v16 = vpop.f32.mrb[161].mxu0  ;;  %v7440_v24 = vpop.f32.mrb[166].mxu1 }
 0x2f4   : > { %v7545_v4 = vadd.f32 %v7544_v16, %v7543_v12  ;;  %v7546_v39 = vpop.f32.mrb[162].mxu0  ;;  %v7441_v28 = vpop.f32.mrb[167].mxu1  ;;  %v3125_v12 = vpack.c.bf16 %v3099_v48, %v3098_v52 }
 0x2f5   : > { %v7442_v19 = vadd.f32 %v7441_v28, %v7440_v24  ;;  %v7547_v42 = vpop.f32.mrb[163].mxu0  ;;  %v8654_v24 = vld [vmem:[%s11813_s8 + $0x58] sm:$0xff]  }
 0x2f6   : > { %v7548_v32 = vadd.f32 %v7547_v42, %v7546_v39  ;;  %8400 = vmatmul.mubr.bf16.vlgmr.msra.gmra.mrb[16].mxu1 %v3121_v23  ;;  %v10857_v9 = vadd.f32 %v7545_v4, %v7433_v14  ;;  %v3102_v39 = vld [vmem:[#allocation3 + $0x129] sm:$0xff]  ;;  %v3103_v28 = vld [vmem:[#allocation3 + $0x131] sm:$0xff]  ;;  %7869 = vmatprep.subr.bf16.mxu0 %v8654_v24 }
 0x2f7   : > { %4348 = vmatmul.mubr.bf16.gmra.mrb[12].mxu0 %v3039_v21  ;;  %8403 = vmatprep.mubr.bf16.mxu1 %v3122_v18  ;;  %v3104_v42 = vld [vmem:[#allocation3 + $0x149] sm:$0xff]  ;;  %v3105_v18 = vld [vmem:[#allocation3 + $0x151] sm:$0xff]  ;;  %v3127_v10 = vpack.c.bf16 %v3103_v28, %v3102_v39  ;;  %v8657_v28 = vld [vmem:[%s11813_s8 + $0x20] sm:$0xff]  }
 0x2f8   : > { %v10862_v49 = vadd.f32 %v7548_v32, %v7436_v61  ;;  %v8655_v32 = vld [vmem:[%s11813_s8 + $0x18] sm:$0xff]   ;;  %5699 = vmatprep.mubr.bf16.mxu0 %v10849_v62 }
 0x2f9   : > { %v7443_v2 = vpop.f32.mrb[168].mxu1  ;;  %7870 = vmatpush3.bf16.msra.mxu0 %v8655_v32  ;;  %v3113_v39 = vld [vmem:[#allocation3 + $0x1d1] sm:$0xff] }
 0x2fa   : > { %v7549_v47 = vpop.f32.mrb[164].mxu0  ;;  %v7444_v54 = vpop.f32.mrb[169].mxu1 }
 0x2fb   : > { %v7445_v36 = vadd.f32 %v7444_v54, %v7443_v2  ;;  %v7550_v53 = vpop.f32.mrb[165].mxu0  ;;  %v7446_v1 = vpop.f32.mrb[170].mxu1 }
 0x2fc   : > { %v7551_v26 = vadd.f32 %v7550_v53, %v7549_v47  ;;  %v7552_v0 = vpop.f32.mrb[166].mxu0  ;;  %v7447_v46 = vpop.f32.mrb[171].mxu1 }
 0x2fd   : > { %v7448_v41 = vadd.f32 %v7447_v46, %v7446_v1  ;;  %v7553_v31 = vpop.f32.mrb[167].mxu0  ;;  %v3106_v46 = vld [vmem:[#allocation3 + $0x169] sm:$0xff] }
 0x2fe   : > { %v7554_v14 = vadd.f32 %v7553_v31, %v7552_v0  ;;  %8404 = vmatmul.mubr.bf16.gmra.mrb[20].mxu1 %v3123_v8  ;;  %v10867_v58 = vadd.f32 %v7551_v26, %v7439_v33  ;;  %v3107_v8 = vld [vmem:[#allocation3 + $0x171] sm:$0xff] }
 0x2ff   : > { %8407 = vmatprep.mubr.bf16.mxu1 %v3124_v51  ;;  %v3108_v51 = vld [vmem:[#allocation3 + $0x189] sm:$0xff]  ;;  %v3129_v50 = vpack.c.bf16 %v3107_v8, %v3106_v46 }
 0x300   : > { %v10869_v60 = vadd.f32 %v7554_v14, %v7442_v19  ;;  %v3109_v14 = vld [vmem:[#allocation3 + $0x191] sm:$0xff] }
 0x301   : > { %v7449_v30 = vpop.f32.mrb[172].mxu1 }
 0x302   : > { %v7555_v38 = vpop.f32.mrb[168].mxu0  ;;  %v7450_v61 = vpop.f32.mrb[173].mxu1 }
 0x303   : > { %v7451_v34 = vadd.f32 %v7450_v61, %v7449_v30  ;;  %v7556_v40 = vpop.f32.mrb[169].mxu0  ;;  %v7452_v20 = vpop.f32.mrb[174].mxu1 }
 0x304   : > { %v7557_v59 = vadd.f32 %v7556_v40, %v7555_v38  ;;  %v7558_v25 = vpop.f32.mrb[170].mxu0  ;;  %v7453_v35 = vpop.f32.mrb[175].mxu1 }
 0x305   : > { %v7454_v11 = vadd.f32 %v7453_v35, %v7452_v20  ;;  %v7559_v37 = vpop.f32.mrb[171].mxu0  ;;  %v3130_v20 = vpack.c.bf16 %v3109_v14, %v3108_v51  ;;  %v8656_v35 = vld [vmem:[%s11813_s8 + $0x60] sm:$0xff]  }
 0x306   : > { %v7560_v33 = vadd.f32 %v7559_v37, %v7558_v25  ;;  %8408 = vmatmul.mubr.bf16.gmra.mrb[24].mxu1 %v3125_v12  ;;  %v10871_v16 = vadd.f32 %v7557_v59, %v7445_v36  ;;  %v3128_v36 = vpack.c.bf16 %v3105_v18, %v3104_v42  ;;  %v3110_v37 = vld [vmem:[#allocation3 + $0x1a9] sm:$0xff]  ;;  %7871 = vmatprep.subr.bf16.mxu0 %v8656_v35 }
 0x307   : > { %8411 = vmatprep.mubr.bf16.mxu1 %v3126_v45  ;;  %v3111_v45 = vld [vmem:[#allocation3 + $0x1b1] sm:$0xff]  ;;  %7872 = vmatpush3.bf16.msra.mxu0 %v8657_v28  ;;  %v8659_v35 = vld [vmem:[%s11813_s8 + $0x28] sm:$0xff]  }
 0x308   : > { %v10876_v21 = vadd.f32 %v7560_v33, %v7448_v41 }
 0x309   : > { %v7455_v4 = vpop.f32.mrb[176].mxu1 }
 0x30a   : > { %v7561_v23 = vpop.f32.mrb[172].mxu0  ;;  %v7456_v19 = vpop.f32.mrb[177].mxu1 }
 0x30b   : > { %v7457_v6 = vadd.f32 %v7456_v19, %v7455_v4  ;;  %v7562_v2 = vpop.f32.mrb[173].mxu0  ;;  %v7458_v3 = vpop.f32.mrb[178].mxu1  ;;  %v3112_v4 = vld [vmem:[#allocation3 + $0x1c9] sm:$0xff] }
 0x30c   : > { %v7563_v15 = vadd.f32 %v7562_v2, %v7561_v23  ;;  %v7564_v47 = vpop.f32.mrb[174].mxu0  ;;  %v7459_v54 = vpop.f32.mrb[179].mxu1  ;;  %v3131_v2 = vpack.c.bf16 %v3111_v45, %v3110_v37 }
 0x30d   : > { %v7460_v55 = vadd.f32 %v7459_v54, %v7458_v3  ;;  %v7565_v13 = vpop.f32.mrb[175].mxu0 }
 0x30e   : > { %v7566_v53 = vadd.f32 %v7565_v13, %v7564_v47  ;;  %8412 = vmatmul.mubr.bf16.gmra.mrb[28].mxu1 %v3127_v10  ;;  %v10881_v1 = vadd.f32 %v7563_v15, %v7451_v34  ;;  %v3132_v47 = vpack.c.bf16 %v3113_v39, %v3112_v4 }
 0x30f   : > { %8415 = vmatprep.mubr.bf16.mxu1 %v3128_v36 }
 0x310   : > { %v10883_v26 = vadd.f32 %v7566_v53, %v7454_v11 }
 0x311   : > { %v7461_v0 = vpop.f32.mrb[180].mxu1 }
 0x312   : > { %v7567_v41 = vpop.f32.mrb[176].mxu0  ;;  %v7462_v31 = vpop.f32.mrb[181].mxu1 }
 0x313   : > { %v7463_v30 = vadd.f32 %v7462_v31, %v7461_v0  ;;  %v7568_v52 = vpop.f32.mrb[177].mxu0  ;;  %v7464_v48 = vpop.f32.mrb[182].mxu1 }
 0x314   : > { %v7569_v38 = vadd.f32 %v7568_v52, %v7567_v41  ;;  %v7570_v61 = vpop.f32.mrb[178].mxu0  ;;  %v7465_v29 = vpop.f32.mrb[183].mxu1 }
 0x315   : > { %v7466_v40 = vadd.f32 %v7465_v29, %v7464_v48  ;;  %v7571_v34 = vpop.f32.mrb[179].mxu0  ;;  %v8658_v29 = vld [vmem:[%s11813_s8 + $0x68] sm:$0xff]  }
 0x316   : > { %v10885_v59 = vadd.f32 %v7569_v38, %v7457_v6  ;;  %v7572_v25 = vadd.f32 %v7571_v34, %v7570_v61  ;;  %8416 = vmatmul.mubr.bf16.gmra.mrb[32].mxu1 %v3129_v50  ;;  %v3118_v38 = vld [vmem:[#allocation3 + $0x229] sm:$0xff]  ;;  %v3119_v61 = vld [vmem:[#allocation3 + $0x231] sm:$0xff]  ;;  %7873 = vmatprep.subr.bf16.mxu0 %v8658_v29 }
 0x317   : > { %8419 = vmatprep.mubr.bf16.mxu1 %v3130_v20  ;;  %7874 = vmatpush3.bf16.msra.mxu0 %v8659_v35  ;;  %v8662_v35 = vld [vmem:[%s11813_s8 + $0xc0] sm:$0xff]  }
 0x318   : > { %v10890_v12 = vadd.f32 %v7572_v25, %v7460_v55  ;;  %v3135_v25 = vpack.c.bf16 %v3119_v61, %v3118_v38  ;;  %7975 = vmatprep.subr.bf16.mxu1 %v8662_v35 }
 0x319   : > { %v7467_v11 = vpop.f32.mrb[184].mxu1 }
 0x31a   : > { %v7573_v33 = vpop.f32.mrb[180].mxu0  ;;  %v7468_v24 = vpop.f32.mrb[185].mxu1 }
 0x31b   : > { %v7469_v23 = vadd.f32 %v7468_v24, %v7467_v11  ;;  %v7574_v19 = vpop.f32.mrb[181].mxu0  ;;  %v7470_v42 = vpop.f32.mrb[186].mxu1 }
 0x31c   : > { %v7575_v18 = vadd.f32 %v7574_v19, %v7573_v33  ;;  %v7576_v32 = vpop.f32.mrb[182].mxu0  ;;  %v7471_v6 = vpop.f32.mrb[187].mxu1 }
 0x31d   : > { %v7472_v3 = vadd.f32 %v7471_v6, %v7470_v42  ;;  %v7577_v15 = vpop.f32.mrb[183].mxu0 }
 0x31e   : > { %v10895_v54 = vadd.f32 %v7575_v18, %v7463_v30  ;;  %v7578_v10 = vadd.f32 %v7577_v15, %v7576_v32  ;;  %8420 = vmatmul.mubr.bf16.gmra.mrb[36].mxu1 %v3131_v2 }
 0x31f   : > { %8423 = vmatprep.mubr.bf16.mxu1 %v3132_v47 }
 0x320   : > { %v10897_v55 = vadd.f32 %v7578_v10, %v7466_v40 }
 0x321   : > { %v7473_v13 = vpop.f32.mrb[188].mxu1 }
 0x322   : > { %v7579_v36 = vpop.f32.mrb[184].mxu0  ;;  %v7474_v53 = vpop.f32.mrb[189].mxu1 }
 0x323   : > { %v7475_v0 = vadd.f32 %v7474_v53, %v7473_v13  ;;  %v7580_v46 = vpop.f32.mrb[185].mxu0  ;;  %v7476_v8 = vpop.f32.mrb[190].mxu1 }
 0x324   : > { %v7581_v41 = vadd.f32 %v7580_v46, %v7579_v36  ;;  %v7582_v31 = vpop.f32.mrb[186].mxu0  ;;  %v7477_v51 = vpop.f32.mrb[191].mxu1 }
 0x325   : > { %v7478_v14 = vadd.f32 %v7477_v51, %v7476_v8  ;;  %v7583_v52 = vpop.f32.mrb[187].mxu0  ;;  %v8661_v51 = vld [vmem:[%s11813_s8 + $0x30] sm:$0xff]  }
 0x326   : > { %v10899_v48 = vadd.f32 %v7581_v41, %v7469_v23  ;;  %v7584_v30 = vadd.f32 %v7583_v52, %v7582_v31  ;;  %8424 = vmatmul.mubr.bf16.gmra.mrb[40].mxu1 %v10768_v56 }
 0x327   : > { %8427 = vmatprep.mubr.bf16.mxu1 %v10835_v57 }
 0x328   : > { %v10906_v50 = vadd.f32 %v7584_v30, %v7472_v3 }
 0x329   : > { %v7479_v40 = vpop.f32.mrb[192].mxu1 }
 0x32a   : > { %v7585_v34 = vpop.f32.mrb[188].mxu0  ;;  %v7480_v20 = vpop.f32.mrb[193].mxu1 }
 0x32b   : > { %v7481_v56 = vadd.f32 %v7480_v20, %v7479_v40  ;;  %v7586_v11 = vpop.f32.mrb[189].mxu0  ;;  %v7482_v57 = vpop.f32.mrb[194].mxu1 }
 0x32c   : > { %v7587_v37 = vadd.f32 %v7586_v11, %v7585_v34  ;;  %v7588_v45 = vpop.f32.mrb[190].mxu0  ;;  %v7483_v33 = vpop.f32.mrb[195].mxu1 }
 0x32d   : > { %v7484_v24 = vadd.f32 %v7483_v33, %v7482_v57  ;;  %v7589_v4 = vpop.f32.mrb[191].mxu0 }
 0x32e   : > { %v10911_v39 = vadd.f32 %v7587_v37, %v7475_v0  ;;  %v7590_v28 = vadd.f32 %v7589_v4, %v7588_v45  ;;  %8428 = vmatmul.mubr.bf16.gmra.mrb[44].mxu1 %v3135_v25  ;;  %v8660_v0 = vld [vmem:[%s11813_s8 + $0x70] sm:$0xff]   ;;  %v8663_v45 = vld [vmem:[%s11813_s8 + $0x80] sm:$0xff]  }
 0x32f   : > { %7875 = vmatprep.subr.bf16.mxu0 %v8660_v0  ;;  %7976 = vmatpush3.bf16.msra.mxu1 %v8663_v45 }
 0x330   : > { %v10913_v23 = vadd.f32 %v7590_v28, %v7478_v14  ;;  %7876 = vmatpush3.bf16.msra.mxu0 %v8661_v51 }
 0x331   : > { %v7485_v19 = vpop.f32.mrb[196].mxu1 }
 0x332   : > { %v7591_v42 = vpop.f32.mrb[192].mxu0  ;;  %v7486_v18 = vpop.f32.mrb[197].mxu1 }
 0x333   : > { %v7487_v32 = vadd.f32 %v7486_v18, %v7485_v19  ;;  %v7592_v6 = vpop.f32.mrb[193].mxu0  ;;  %v7488_v2 = vpop.f32.mrb[198].mxu1 }
 0x334   : > { %v7593_v3 = vadd.f32 %v7592_v6, %v7591_v42  ;;  %v7594_v15 = vpop.f32.mrb[194].mxu0  ;;  %v7489_v47 = vpop.f32.mrb[199].mxu1 }
 0x335   : > { %v7490_v10 = vadd.f32 %v7489_v47, %v7488_v2  ;;  %v7595_v13 = vpop.f32.mrb[195].mxu0  ;;  %v8666_v47 = vld [vmem:[%s11813_s8 + $0x78] sm:$0xff]  }
 0x336   : > { %v10915_v36 = vadd.f32 %v7593_v3, %v7481_v56  ;;  %v7596_v53 = vadd.f32 %v7595_v13, %v7594_v15  ;;  %v8664_v3 = vld [vmem:[%s11813_s8 + $0xc8] sm:$0xff]   ;;  %v8667_v13 = vld [vmem:[%s11813_s8 + $0xd0] sm:$0xff]   ;;  %7877 = vmatprep.subr.bf16.mxu0 %v8666_v47  ;;  %v8673_v47 = vld [vmem:[%s11813_s8 + $0xa0] sm:$0xff]  }
 0x337   : > { %v8665_v15 = vld [vmem:[%s11813_s8 + $0x88] sm:$0xff]   ;;  %7977 = vmatprep.subr.bf16.mxu1 %v8664_v3 }
 0x338   : > { %v10920_v46 = vadd.f32 %v7596_v53, %v7484_v24  ;;  %7978 = vmatpush3.bf16.msra.mxu1 %v8665_v15 }
 0x339   : > { %v7491_v8 = vpop.f32.mrb[200].mxu1  ;;  %7979 = vmatprep.subr.bf16.mxu1 %v8667_v13 }
 0x33a   : > { %v7597_v41 = vpop.f32.mrb[196].mxu0  ;;  %v7492_v31 = vpop.f32.mrb[201].mxu1 }
 0x33b   : > { %v7493_v14 = vadd.f32 %v7492_v31, %v7491_v8  ;;  %v7598_v52 = vpop.f32.mrb[197].mxu0  ;;  %v7494_v30 = vpop.f32.mrb[202].mxu1 }
 0x33c   : > { %v7599_v38 = vadd.f32 %v7598_v52, %v7597_v41  ;;  %v7600_v61 = vpop.f32.mrb[198].mxu0  ;;  %v7495_v29 = vpop.f32.mrb[203].mxu1 }
 0x33d   : > { %v7496_v40 = vadd.f32 %v7495_v29, %v7494_v30  ;;  %v7601_v34 = vpop.f32.mrb[199].mxu0 }
 0x33e   : > { %v10925_v20 = vadd.f32 %v7599_v38, %v7487_v32  ;;  %v7602_v25 = vadd.f32 %v7601_v34, %v7600_v61 }
 0x340   : > { %v10930_v56 = vadd.f32 %v7602_v25, %v7490_v10 }
 0x341   : > { %v7497_v11 = vpop.f32.mrb[204].mxu1 }
 0x342   : > { %v7603_v57 = vpop.f32.mrb[200].mxu0  ;;  %v7498_v37 = vpop.f32.mrb[205].mxu1 }
 0x343   : > { %v7499_v33 = vadd.f32 %v7498_v37, %v7497_v11  ;;  %v7604_v24 = vpop.f32.mrb[201].mxu0  ;;  %v7500_v4 = vpop.f32.mrb[206].mxu1 }
 0x344   : > { %v7605_v28 = vadd.f32 %v7604_v24, %v7603_v57  ;;  %v7606_v19 = vpop.f32.mrb[202].mxu0  ;;  %v7501_v42 = vpop.f32.mrb[207].mxu1  ;;  %v8670_v57 = vld [vmem:[%s11813_s8 + $0xd8] sm:$0xff]  }
 0x345   : > { %v7502_v18 = vadd.f32 %v7501_v42, %v7500_v4  ;;  %v7607_v32 = vpop.f32.mrb[203].mxu0 }
 0x346   : > { %v10935_v6 = vadd.f32 %v7605_v28, %v7493_v14  ;;  %v7608_v2 = vadd.f32 %v7607_v32, %v7606_v19  ;;  %v8672_v32 = vld [vmem:[%s11813_s8 + $0xe0] sm:$0xff]  }
 0x348   : > { %v10946_v10 = vadd.f32 %v7608_v2, %v7496_v40  ;;  %v8669_v40 = vld [vmem:[%s11813_s8 + $0x90] sm:$0xff]  }
 0x349   : > { %v7631_v53 = vpop.f32.mrb[208].mxu1  ;;  %7980 = vmatpush3.bf16.msra.mxu1 %v8669_v40 }
 0x34a   : > { %v7609_v0 = vpop.f32.mrb[204].mxu0  ;;  %v7632_v8 = vpop.f32.mrb[209].mxu1  ;;  %7981 = vmatprep.subr.bf16.mxu1 %v8670_v57  ;;  %v8676_v57 = vld [vmem:[%s11813_s8 + $0xf0] sm:$0xff]  }
 0x34b   : > { %v7610_v41 = vpop.f32.mrb[205].mxu0  ;;  %v7633_v31 = vadd.f32 %v7632_v8, %v7631_v53  ;;  %v7634_v51 = vpop.f32.mrb[210].mxu1  ;;  %v4659_v8 = vld [vmem:[#allocation2 + $0x7] sm:$0xff] }
 0x34c   : > { %v7611_v14 = vadd.f32 %v7610_v41, %v7609_v0  ;;  %v7612_v52 = vpop.f32.mrb[206].mxu0  ;;  %v7635_v30 = vpop.f32.mrb[211].mxu1  ;;  %v4660_v41 = vld [vmem:[#allocation2 + $0xf] sm:$0xff] }
 0x34d   : > { %v4069_v38 = vadd.f32 %v7633_v31, %v10816_v5  ;;  %v7613_v61 = vpop.f32.mrb[207].mxu0  ;;  %v7636_v29 = vadd.f32 %v7635_v30, %v7634_v51  ;;  %v8671_v5 = vld [vmem:[%s11813_s8 + $0x98] sm:$0xff]   ;;  %v4691_v51 = vpack.c.bf16 %v4660_v41, %v4659_v8 }
 0x34e   : > { %v10955_v34 = vadd.f32 %v7611_v14, %v7499_v33  ;;  %v7614_v25 = vadd.f32 %v7613_v61, %v7612_v52  ;;  %v8668_v33 = vld [vmem:[%s11813_s8 + $0x38] sm:$0xff]   ;;  %7982 = vmatpush3.bf16.msra.mxu1 %v8671_v5  ;;  %v8675_v52 = vld [vmem:[%s11813_s8 + $0xa8] sm:$0xff]  }
 0x34f   : > { %v4072_v35 = vadd.f32 %v7636_v29, %v10824_v17  ;;  %7878 = vmatpush3.bf16.msra.mxu0 %v8668_v33  ;;  %7983 = vmatprep.subr.bf16.mxu1 %v8672_v32 }
 0x350   : > { %v10958_v11 = vadd.f32 %v7614_v25, %v7502_v18 }
 0x351   : > { %v7637_v37 = vpop.f32.mrb[212].mxu1 }
 0x352   : > { %v7743_v45 = vpop.f32.mrb[208].mxu0  ;;  %v7638_v24 = vpop.f32.mrb[213].mxu1  ;;  %7984 = vmatpush3.bf16.msra.mxu1 %v8673_v47  ;;  %5700 = vmatmul.mubr.bf16.vlgmr.msra.gmra.mrb[16].mxu0 %v4691_v51 }
 0x353   : > { %v7639_v17 = vadd.f32 %v7638_v24, %v7637_v37  ;;  %v7744_v4 = vpop.f32.mrb[209].mxu0  ;;  %v7640_v28 = vpop.f32.mrb[214].mxu1  ;;  %v8678_v24 = vld [vmem:[%s11813_s8 + $0xb0] sm:$0xff]  }
 0x354   : > { %v7745_v19 = vadd.f32 %v7744_v4, %v7743_v45  ;;  %v7746_v42 = vpop.f32.mrb[210].mxu0  ;;  %v7641_v18 = vpop.f32.mrb[215].mxu1  ;;  %v8677_v45 = vld [vmem:[%s11813_s8 + $0x140] sm:$0xff]  }
 0x355   : > { %v4077_v2 = vadd.f32 %v7639_v17, %v10829_v27  ;;  %v7642_v3 = vadd.f32 %v7641_v18, %v7640_v28  ;;  %v7747_v15 = vpop.f32.mrb[211].mxu0  ;;  %v8674_v27 = vld [vmem:[%s11813_s8 + $0xe8] sm:$0xff]   ;;  %8087 = vmatprep.subr.bf16.mxu0 %v8677_v45 }
 0x356   : > { %v7748_v13 = vadd.f32 %v7747_v15, %v7746_v42  ;;  %v10976_v53 = vadd.f32 %v7745_v19, %v4069_v38  ;;  %7985 = vmatprep.subr.bf16.mxu1 %v8674_v27  ;;  %v8681_v42 = vld [vmem:[%s11813_s8 + $0xb8] sm:$0xff]  }
 0x357   : > { %v4080_v0 = vadd.f32 %v7642_v3, %v10833_v22  ;;  %7986 = vmatpush3.bf16.msra.mxu1 %v8675_v52 }
 0x358   : > { %v10979_v31 = vadd.f32 %v7748_v13, %v4072_v35  ;;  %7987 = vmatprep.subr.bf16.mxu1 %v8676_v57 }
 0x359   : > { %v7643_v14 = vpop.f32.mrb[216].mxu1 }
 0x35a   : > { %v7749_v30 = vpop.f32.mrb[212].mxu0  ;;  %v7644_v38 = vpop.f32.mrb[217].mxu1 }
 0x35b   : > { %v7645_v22 = vadd.f32 %v7644_v38, %v7643_v14  ;;  %v7750_v61 = vpop.f32.mrb[213].mxu0  ;;  %v7646_v29 = vpop.f32.mrb[218].mxu1  ;;  %7988 = vmatpush3.bf16.msra.mxu1 %v8678_v24 }
 0x35c   : > { %v7751_v40 = vadd.f32 %v7750_v61, %v7749_v30  ;;  %v7752_v25 = vpop.f32.mrb[214].mxu0  ;;  %v7647_v35 = vpop.f32.mrb[219].mxu1 }
 0x35d   : > { %v4085_v62 = vadd.f32 %v7645_v22, %v10837_v7  ;;  %v7648_v37 = vadd.f32 %v7647_v35, %v7646_v29  ;;  %v7753_v5 = vpop.f32.mrb[215].mxu0  ;;  %v8680_v7 = vld [vmem:[%s11813_s8 + $0xf8] sm:$0xff]  }
 0x35e   : > { %v7754_v33 = vadd.f32 %v7753_v5, %v7752_v25  ;;  %v10998_v17 = vadd.f32 %v7751_v40, %v4077_v2  ;;  %v8679_v2 = vld [vmem:[%s11813_s8 + $0x100] sm:$0xff]   ;;  %7989 = vmatprep.subr.bf16.mxu1 %v8680_v7 }
 0x35f   : > { %v4088_v4 = vadd.f32 %v7648_v37, %v10844_v44  ;;  %7990 = vmatpush3.bf16.msra.mxu1 %v8681_v42  ;;  %8088 = vmatpush3.bf16.msra.mxu0 %v8679_v2 }
 0x360   : > { %v11001_v28 = vadd.f32 %v7754_v33, %v4080_v0 }
 0x361   : > { %v7649_v19 = vpop.f32.mrb[220].mxu1 }
 0x362   : > { %v7755_v18 = vpop.f32.mrb[216].mxu0  ;;  %v7650_v32 = vpop.f32.mrb[221].mxu1 }
 0x363   : > { %v7651_v44 = vadd.f32 %v7650_v32, %v7649_v19  ;;  %v7756_v3 = vpop.f32.mrb[217].mxu0  ;;  %v7652_v15 = vpop.f32.mrb[222].mxu1 }
 0x364   : > { %v7757_v47 = vadd.f32 %v7756_v3, %v7755_v18  ;;  %v7758_v13 = vpop.f32.mrb[218].mxu0  ;;  %v7653_v0 = vpop.f32.mrb[223].mxu1 }
 0x365   : > { %v4093_v8 = vadd.f32 %v7651_v44, %v10851_v63  ;;  %v7654_v41 = vadd.f32 %v7653_v0, %v7652_v15  ;;  %v7759_v27 = vpop.f32.mrb[219].mxu0 }
 0x366   : > { %v7760_v51 = vadd.f32 %v7759_v27, %v7758_v13  ;;  %v11013_v14 = vadd.f32 %v7757_v47, %v4085_v62  ;;  %v8682_v62 = vld [vmem:[%s11813_s8 + $0x148] sm:$0xff]  }
 0x367   : > { %v4096_v52 = vadd.f32 %v7654_v41, %v10855_v43  ;;  %8089 = vmatprep.subr.bf16.mxu0 %v8682_v62 }
 0x368   : > { %v11016_v30 = vadd.f32 %v7760_v51, %v4088_v4 }
 0x369   : > { %v7655_v38 = vpop.f32.mrb[224].mxu1 }
 0x36a   : > { %v7761_v22 = vpop.f32.mrb[220].mxu0  ;;  %v7656_v61 = vpop.f32.mrb[225].mxu1 }
 0x36b   : > { %v7657_v29 = vadd.f32 %v7656_v61, %v7655_v38  ;;  %v7762_v40 = vpop.f32.mrb[221].mxu0  ;;  %v7658_v25 = vpop.f32.mrb[226].mxu1 }
 0x36c   : > { %v7763_v35 = vadd.f32 %v7762_v40, %v7761_v22  ;;  %v7764_v57 = vpop.f32.mrb[222].mxu0  ;;  %v7659_v37 = vpop.f32.mrb[227].mxu1 }
 0x36d   : > { %v4101_v63 = vadd.f32 %v7657_v29, %v10857_v9  ;;  %v7660_v5 = vadd.f32 %v7659_v37, %v7658_v25  ;;  %v7765_v45 = vpop.f32.mrb[223].mxu0  ;;  %v8683_v9 = vld [vmem:[%s11813_s8 + $0x108] sm:$0xff]  }
 0x36e   : > { %v7766_v43 = vadd.f32 %v7765_v45, %v7764_v57  ;;  %v11022_v24 = vadd.f32 %v7763_v35, %v4093_v8  ;;  %8090 = vmatpush3.bf16.msra.mxu0 %v8683_v9 }
 0x36f   : > { %v4104_v33 = vadd.f32 %v7660_v5, %v10862_v49 }
 0x370   : > { %v11025_v4 = vadd.f32 %v7766_v43, %v4096_v52 }
 0x371   : > { %v7661_v7 = vpop.f32.mrb[228].mxu1 }
 0x372   : > { %v7767_v19 = vpop.f32.mrb[224].mxu0  ;;  %v7662_v42 = vpop.f32.mrb[229].mxu1 }
 0x373   : > { %v7663_v18 = vadd.f32 %v7662_v42, %v7661_v7  ;;  %v7768_v32 = vpop.f32.mrb[225].mxu0  ;;  %v7664_v2 = vpop.f32.mrb[230].mxu1 }
 0x374   : > { %v7769_v44 = vadd.f32 %v7768_v32, %v7767_v19  ;;  %v7770_v3 = vpop.f32.mrb[226].mxu0  ;;  %v7665_v15 = vpop.f32.mrb[231].mxu1 }
 0x375   : > { %v4109_v47 = vadd.f32 %v7663_v18, %v10867_v58  ;;  %v7666_v49 = vadd.f32 %v7665_v15, %v7664_v2  ;;  %v7771_v13 = vpop.f32.mrb[227].mxu0 }
 0x376   : > { %v7772_v0 = vadd.f32 %v7771_v13, %v7770_v3  ;;  %v11031_v8 = vadd.f32 %v7769_v44, %v4101_v63  ;;  %v8684_v63 = vld [vmem:[%s11813_s8 + $0x150] sm:$0xff]  }
 0x377   : > { %v4112_v41 = vadd.f32 %v7666_v49, %v10869_v60  ;;  %8091 = vmatprep.subr.bf16.mxu0 %v8684_v63 }
 0x378   : > { %v11034_v27 = vadd.f32 %v7772_v0, %v4104_v33 }
 0x379   : > { %v7667_v51 = vpop.f32.mrb[232].mxu1 }
 0x37a   : > { %v7773_v52 = vpop.f32.mrb[228].mxu0  ;;  %v7668_v38 = vpop.f32.mrb[233].mxu1 }
 0x37b   : > { %v7669_v22 = vadd.f32 %v7668_v38, %v7667_v51  ;;  %v7774_v61 = vpop.f32.mrb[229].mxu0  ;;  %v7670_v29 = vpop.f32.mrb[234].mxu1 }
 0x37c   : > { %v7775_v40 = vadd.f32 %v7774_v61, %v7773_v52  ;;  %v7776_v25 = vpop.f32.mrb[230].mxu0  ;;  %v7671_v35 = vpop.f32.mrb[235].mxu1 }
 0x37d   : > { %v4117_v58 = vadd.f32 %v7669_v22, %v10871_v16  ;;  %v7672_v57 = vadd.f32 %v7671_v35, %v7670_v29  ;;  %v7777_v37 = vpop.f32.mrb[231].mxu0  ;;  %v8685_v16 = vld [vmem:[%s11813_s8 + $0x110] sm:$0xff]  }
 0x37e   : > { %v7778_v60 = vadd.f32 %v7777_v37, %v7776_v25  ;;  %v11040_v5 = vadd.f32 %v7775_v40, %v4109_v47  ;;  %8092 = vmatpush3.bf16.msra.mxu0 %v8685_v16 }
 0x37f   : > { %v4120_v45 = vadd.f32 %v7672_v57, %v10876_v21 }
 0x380   : > { %v11043_v62 = vadd.f32 %v7778_v60, %v4112_v41 }
 0x381   : > { %v7673_v43 = vpop.f32.mrb[236].mxu1 }
 0x382   : > { %v7779_v33 = vpop.f32.mrb[232].mxu0  ;;  %v7674_v7 = vpop.f32.mrb[237].mxu1 }
 0x383   : > { %v7675_v19 = vadd.f32 %v7674_v7, %v7673_v43  ;;  %v7780_v42 = vpop.f32.mrb[233].mxu0  ;;  %v7676_v9 = vpop.f32.mrb[238].mxu1 }
 0x384   : > { %v7781_v18 = vadd.f32 %v7780_v42, %v7779_v33  ;;  %v7782_v32 = vpop.f32.mrb[234].mxu0  ;;  %v7677_v2 = vpop.f32.mrb[239].mxu1 }
 0x385   : > { %v4125_v44 = vadd.f32 %v7675_v19, %v10881_v1  ;;  %v7678_v21 = vadd.f32 %v7677_v2, %v7676_v9  ;;  %v7783_v3 = vpop.f32.mrb[235].mxu0 }
 0x386   : > { %v7784_v15 = vadd.f32 %v7783_v3, %v7782_v32  ;;  %v11049_v47 = vadd.f32 %v7781_v18, %v4117_v58  ;;  %v8686_v58 = vld [vmem:[%s11813_s8 + $0x158] sm:$0xff]  }
 0x387   : > { %v4128_v49 = vadd.f32 %v7678_v21, %v10883_v26  ;;  %v8687_v26 = vld [vmem:[%s11813_s8 + $0x118] sm:$0xff]   ;;  %8093 = vmatprep.subr.bf16.mxu0 %v8686_v58 }
 0x388   : > { %v11052_v13 = vadd.f32 %v7784_v15, %v4120_v45  ;;  %8094 = vmatpush3.bf16.msra.mxu0 %v8687_v26  ;;  %v8688_v45 = vld [vmem:[%s11813_s8 + $0x1c0] sm:$0xff]  }
 0x389   : > { %v7679_v0 = vpop.f32.mrb[240].mxu1  ;;  %8199 = vmatprep.subr.bf16.mxu1 %v8688_v45 }
 0x38a   : > { %v7785_v41 = vpop.f32.mrb[236].mxu0  ;;  %v7680_v51 = vpop.f32.mrb[241].mxu1 }
 0x38b   : > { %v7681_v52 = vadd.f32 %v7680_v51, %v7679_v0  ;;  %v7786_v38 = vpop.f32.mrb[237].mxu0  ;;  %v7682_v22 = vpop.f32.mrb[242].mxu1 }
 0x38c   : > { %v7787_v61 = vadd.f32 %v7786_v38, %v7785_v41  ;;  %v7788_v29 = vpop.f32.mrb[238].mxu0  ;;  %v7683_v40 = vpop.f32.mrb[243].mxu1  ;;  %v8691_v41 = vld [vmem:[%s11813_s8 + $0x120] sm:$0xff]  }
 0x38d   : > { %v4133_v1 = vadd.f32 %v7681_v52, %v10885_v59  ;;  %v7684_v25 = vadd.f32 %v7683_v40, %v7682_v22  ;;  %v7789_v35 = vpop.f32.mrb[239].mxu0 }
 0x38e   : > { %v7790_v57 = vadd.f32 %v7789_v35, %v7788_v29  ;;  %v11061_v37 = vadd.f32 %v7787_v61, %v4125_v44 }
 0x38f   : > { %v4136_v63 = vadd.f32 %v7684_v25, %v10890_v12 }
 0x390   : > { %v11064_v60 = vadd.f32 %v7790_v57, %v4128_v49  ;;  %v8690_v49 = vld [vmem:[%s11813_s8 + $0x160] sm:$0xff]  }
 0x391   : > { %v7685_v59 = vpop.f32.mrb[244].mxu1  ;;  %8095 = vmatprep.subr.bf16.mxu0 %v8690_v49  ;;  %v8695_v49 = vld [vmem:[%s11813_s8 + $0x128] sm:$0xff]  }
 0x392   : > { %v7791_v43 = vpop.f32.mrb[240].mxu0  ;;  %v7686_v33 = vpop.f32.mrb[245].mxu1  ;;  %8096 = vmatpush3.bf16.msra.mxu0 %v8691_v41 }
 0x393   : > { %v7687_v7 = vadd.f32 %v7686_v33, %v7685_v59  ;;  %v7792_v16 = vpop.f32.mrb[241].mxu0  ;;  %v7688_v19 = vpop.f32.mrb[246].mxu1 }
 0x394   : > { %v7793_v42 = vadd.f32 %v7792_v16, %v7791_v43  ;;  %v7794_v9 = vpop.f32.mrb[242].mxu0  ;;  %v7689_v18 = vpop.f32.mrb[247].mxu1 }
 0x395   : > { %v4141_v12 = vadd.f32 %v7687_v7, %v10895_v54  ;;  %v7690_v32 = vadd.f32 %v7689_v18, %v7688_v19  ;;  %v7795_v2 = vpop.f32.mrb[243].mxu0 }
 0x396   : > { %v7796_v44 = vadd.f32 %v7795_v2, %v7794_v9  ;;  %v11070_v21 = vadd.f32 %v7793_v42, %v4133_v1 }
 0x397   : > { %v4144_v3 = vadd.f32 %v7690_v32, %v10897_v55 }
 0x398   : > { %v11073_v15 = vadd.f32 %v7796_v44, %v4136_v63  ;;  %v8694_v44 = vld [vmem:[%s11813_s8 + $0x168] sm:$0xff]  }
 0x399   : > { %v7691_v0 = vpop.f32.mrb[248].mxu1  ;;  %8097 = vmatprep.subr.bf16.mxu0 %v8694_v44  ;;  %v8699_v44 = vld [vmem:[%s11813_s8 + $0x130] sm:$0xff]  }
 0x39a   : > { %v7797_v51 = vpop.f32.mrb[244].mxu0  ;;  %v7692_v54 = vpop.f32.mrb[249].mxu1  ;;  %8098 = vmatpush3.bf16.msra.mxu0 %v8695_v49 }
 0x39b   : > { %v7693_v52 = vadd.f32 %v7692_v54, %v7691_v0  ;;  %v7798_v38 = vpop.f32.mrb[245].mxu0  ;;  %v7694_v22 = vpop.f32.mrb[250].mxu1 }
 0x39c   : > { %v7799_v61 = vadd.f32 %v7798_v38, %v7797_v51  ;;  %v7800_v55 = vpop.f32.mrb[246].mxu0  ;;  %v7695_v29 = vpop.f32.mrb[251].mxu1 }
 0x39d   : > { %v4149_v40 = vadd.f32 %v7693_v52, %v10899_v48  ;;  %v7696_v1 = vadd.f32 %v7695_v29, %v7694_v22  ;;  %v7801_v25 = vpop.f32.mrb[247].mxu0 }
 0x39e   : > { %v7802_v35 = vadd.f32 %v7801_v25, %v7800_v55  ;;  %v11082_v58 = vadd.f32 %v7799_v61, %v4141_v12 }
 0x39f   : > { %v4152_v26 = vadd.f32 %v7696_v1, %v10906_v50 }
 0x3a0   : > { %v11085_v57 = vadd.f32 %v7802_v35, %v4144_v3 }
 0x3a1   : > { %v7697_v63 = vpop.f32.mrb[252].mxu1 }
 0x3a2   : > { %v7803_v59 = vpop.f32.mrb[248].mxu0  ;;  %v7698_v45 = vpop.f32.mrb[253].mxu1 }
 0x3a3   : > { %v7699_v43 = vadd.f32 %v7698_v45, %v7697_v63  ;;  %v7804_v33 = vpop.f32.mrb[249].mxu0  ;;  %v7700_v7 = vpop.f32.mrb[254].mxu1 }
 0x3a4   : > { %v7805_v16 = vadd.f32 %v7804_v33, %v7803_v59  ;;  %v7806_v19 = vpop.f32.mrb[250].mxu0  ;;  %v7701_v42 = vpop.f32.mrb[255].mxu1 }
 0x3a5   : > { %v4157_v48 = vadd.f32 %v7699_v43, %v10911_v39  ;;  %v7702_v9 = vadd.f32 %v7701_v42, %v7700_v7  ;;  %v7807_v18 = vpop.f32.mrb[251].mxu0 }
 0x3a6   : > { %v7808_v32 = vadd.f32 %v7807_v18, %v7806_v19  ;;  %v11088_v12 = vadd.f32 %v7805_v16, %v4149_v40 }
 0x3a7   : > { %v4160_v50 = vadd.f32 %v7702_v9, %v10913_v23 }
 0x3a8   : > { %v11091_v2 = vadd.f32 %v7808_v32, %v4152_v26  ;;  %v8698_v32 = vld [vmem:[%s11813_s8 + $0x170] sm:$0xff]  }
 0x3a9   : > { %v7703_v3 = vpop.f32.mrb[0].mxu1  ;;  %8099 = vmatprep.subr.bf16.mxu0 %v8698_v32  ;;  %v11135_v32 = vld [vmem:[%s11811_s6] ss:$0 sm:$0xff] }
 0x3aa   : > { %v7809_v0 = vpop.f32.mrb[252].mxu0  ;;  %v7704_v39 = vpop.f32.mrb[1].mxu1  ;;  %8100 = vmatpush3.bf16.msra.mxu0 %v8699_v44 }
 0x3ab   : > { %v7705_v41 = vadd.f32 %v7704_v39, %v7703_v3  ;;  %v7810_v51 = vpop.f32.mrb[253].mxu0  ;;  %v7706_v54 = vpop.f32.mrb[2].mxu1 }
 0x3ac   : > { %v7811_v52 = vadd.f32 %v7810_v51, %v7809_v0  ;;  %v7812_v23 = vpop.f32.mrb[254].mxu0  ;;  %v7707_v38 = vpop.f32.mrb[3].mxu1 }
 0x3ad   : > { %v4165_v22 = vadd.f32 %v7705_v41, %v10915_v36  ;;  %v7708_v61 = vadd.f32 %v7707_v38, %v7706_v54  ;;  %v7813_v55 = vpop.f32.mrb[255].mxu0 }
 0x3ae   : > { %v7814_v29 = vadd.f32 %v7813_v55, %v7812_v23  ;;  %v11100_v40 = vadd.f32 %v7811_v52, %v4157_v48 }
 0x3af   : > { %v4168_v1 = vadd.f32 %v7708_v61, %v10920_v46 }
 0x3b0   : > { %v11103_v25 = vadd.f32 %v7814_v29, %v4160_v50 }
 0x3b1   : > { %v7709_v35 = vpop.f32.mrb[4].mxu1 }
 0x3b2   : > { %v7815_v26 = vpop.f32.mrb[0].mxu0  ;;  %v7710_v63 = vpop.f32.mrb[5].mxu1 }
 0x3b3   : > { %v7711_v59 = vadd.f32 %v7710_v63, %v7709_v35  ;;  %v7816_v45 = vpop.f32.mrb[1].mxu0  ;;  %v7712_v43 = vpop.f32.mrb[6].mxu1 }
 0x3b4   : > { %v7817_v33 = vadd.f32 %v7816_v45, %v7815_v26  ;;  %v7818_v7 = vpop.f32.mrb[2].mxu0  ;;  %v7713_v16 = vpop.f32.mrb[7].mxu1 }
 0x3b5   : > { %v4173_v36 = vadd.f32 %v7711_v59, %v10925_v20  ;;  %v7714_v19 = vadd.f32 %v7713_v16, %v7712_v43  ;;  %v7819_v42 = vpop.f32.mrb[3].mxu0 }
 0x3b6   : > { %v7820_v9 = vadd.f32 %v7819_v42, %v7818_v7  ;;  %v11106_v48 = vadd.f32 %v7817_v33, %v4165_v22 }
 0x3b7   : > { %v4176_v46 = vadd.f32 %v7714_v19, %v10930_v56 }
 0x3b8   : > { %v11109_v18 = vadd.f32 %v7820_v9, %v4168_v1  ;;  %v8702_v9 = vld [vmem:[%s11813_s8 + $0x178] sm:$0xff]  }
 0x3b9   : > { %v7715_v50 = vpop.f32.mrb[8].mxu1  ;;  %8101 = vmatprep.subr.bf16.mxu0 %v8702_v9 }
 0x3ba   : > { %v7821_v3 = vpop.f32.mrb[4].mxu0  ;;  %v7716_v20 = vpop.f32.mrb[9].mxu1 }
 0x3bb   : > { %v7717_v49 = vadd.f32 %v7716_v20, %v7715_v50  ;;  %v7822_v0 = vpop.f32.mrb[5].mxu0  ;;  %v7718_v39 = vpop.f32.mrb[10].mxu1 }
 0x3bc   : > { %v7823_v41 = vadd.f32 %v7822_v0, %v7821_v3  ;;  %v7824_v56 = vpop.f32.mrb[6].mxu0  ;;  %v7719_v51 = vpop.f32.mrb[11].mxu1  ;;  %v11144_v3 = vld [vmem:[%s11812_s7] ss:$0 sm:$0xff] }
 0x3bd   : > { %v4181_v54 = vadd.f32 %v7717_v49, %v10935_v6  ;;  %v7720_v52 = vadd.f32 %v7719_v51, %v7718_v39  ;;  %v7825_v23 = vpop.f32.mrb[7].mxu0 }
 0x3be   : > { %v7826_v38 = vadd.f32 %v7825_v23, %v7824_v56  ;;  %v11118_v22 = vadd.f32 %v7823_v41, %v4173_v36 }
 0x3bf   : > { %v4184_v61 = vadd.f32 %v7720_v52, %v10946_v10 }
 0x3c0   : > { %v11121_v55 = vadd.f32 %v7826_v38, %v4176_v46 }
 0x3c1   : > { %v7721_v29 = vpop.f32.mrb[12].mxu1 }
 0x3c2   : > { %v7827_v1 = vpop.f32.mrb[8].mxu0  ;;  %v7722_v35 = vpop.f32.mrb[13].mxu1 }
 0x3c3   : > { %v7723_v26 = vadd.f32 %v7722_v35, %v7721_v29  ;;  %v7828_v63 = vpop.f32.mrb[9].mxu0  ;;  %v7724_v59 = vpop.f32.mrb[14].mxu1 }
 0x3c4   : > { %v7829_v45 = vadd.f32 %v7828_v63, %v7827_v1  ;;  %v7830_v43 = vpop.f32.mrb[10].mxu0  ;;  %v7725_v33 = vpop.f32.mrb[15].mxu1 }
 0x3c5   : > { %v4189_v6 = vadd.f32 %v7723_v26, %v10955_v34  ;;  %v7726_v7 = vadd.f32 %v7725_v33, %v7724_v59  ;;  %v7831_v16 = vpop.f32.mrb[11].mxu0  ;;  %v8703_v34 = vld [vmem:[%s11813_s8 + $0x138] sm:$0xff]  }
 0x3c6   : > { %v7832_v19 = vadd.f32 %v7831_v16, %v7830_v43  ;;  %v11124_v36 = vadd.f32 %v7829_v45, %v4181_v54  ;;  %8102 = vmatpush3.bf16.msra.mxu0 %v8703_v34 }
 0x3c7   : > { %v4192_v10 = vadd.f32 %v7726_v7, %v10958_v11 }
 0x3c8   : > { %v11127_v42 = vadd.f32 %v7832_v19, %v4184_v61 }
 0x3c9   : > { %v8401_v46 = vpop.f32.mrb[16].mxu1 }
 0x3ca   : > { %v7833_v50 = vpop.f32.mrb[12].mxu0  ;;  %v4399_v44 = vadd.f32 %v8401_v46, %v10998_v17  ;;  %v4390_v11 = vpop.f32.mrb[17].mxu1 }
 0x3cb   : > { %v7834_v20 = vpop.f32.mrb[13].mxu0  ;;  %v4391_v49 = vadd.f32 %v4390_v11, %v10976_v53  ;;  %v8402_v0 = vpop.f32.mrb[18].mxu1 }
 0x3cc   : > { %v4526_v39 = vmul.f32 %v11135_v32, %v4399_v44  ;;  %v7835_v41 = vadd.f32 %v7834_v20, %v7833_v50  ;;  %v7836_v56 = vpop.f32.mrb[14].mxu0  ;;  %v4402_v51 = vadd.f32 %v8402_v0, %v11001_v28  ;;  %v4393_v54 = vpop.f32.mrb[19].mxu1 }
 0x3cd   : > { %v4524_v17 = vmul.f32 %v11135_v32, %v4391_v49  ;;  %v7837_v52 = vpop.f32.mrb[15].mxu0  ;;  %v4394_v23 = vadd.f32 %v4393_v54, %v10979_v31  ;;  %v4756_v54 = vld [vmem:[#allocation2 + $0x11] sm:$0xff] }
 0x3ce   : > { %v4565_v38 = vadd.f32 %v11144_v3, %v4526_v39  ;;  %v4527_v61 = vmul.f32 %v11135_v32, %v4402_v51  ;;  %v7838_v29 = vadd.f32 %v7837_v52, %v7836_v56  ;;  %v11153_v53 = vadd.f32 %v7835_v41, %v4189_v6  ;;  %v11175_v39 = vld [vmem:[%s11813_s8 + $0x200] sm:$0xff]   ;;  %v4755_v51 = vld [vmem:[#allocation2 + $0x9] sm:$0xff] }
 0x3cf   : > { %v4563_v1 = vadd.f32 %v11144_v3, %v4524_v17  ;;  %v4525_v35 = vmul.f32 %v11135_v32, %v4394_v23  ;;  %8431 = vmatprep.subr.bf16.mxu0 %v11175_v39 }
 0x3d0   : > { %v4597_v26 = vmax.f32 %v4565_v38, 0.0  ;;  %v4566_v28 = vadd.f32 %v11144_v3, %v4527_v61  ;;  %v11158_v63 = vadd.f32 %v7838_v29, %v4192_v10 }
 0x3d1   : > { %v4595_v59 = vmax.f32 %v4563_v1, 0.0  ;;  %v4564_v45 = vadd.f32 %v11144_v3, %v4525_v35  ;;  %v8405_v31 = vpop.f32.mrb[20].mxu1 }
 0x3d2   : > { %4629 = vst [vmem:[#allocation2 + $0x48] sm:$0xff] %v4597_v26  ;;  %v4598_v43 = vmax.f32 %v4566_v28, 0.0  ;;  %v4415_v33 = vadd.f32 %v8405_v31, %v11022_v24  ;;  %v4406_v7 = vpop.f32.mrb[21].mxu1 }
 0x3d3   : > { %4627 = vst [vmem:[#allocation2 + $0x28] sm:$0xff] %v4595_v59  ;;  %v4596_v6 = vmax.f32 %v4564_v45, 0.0  ;;  %v4407_v16 = vadd.f32 %v4406_v7, %v11013_v14  ;;  %v8406_v19 = vpop.f32.mrb[22].mxu1  ;;  %v4787_v45 = vpack.c.bf16 %v4756_v54, %v4755_v51 }
 0x3d4   : > { %4630 = vst [vmem:[#allocation2 + $0x50] sm:$0xff] %v4598_v43  ;;  %v4530_v9 = vmul.f32 %v11135_v32, %v4415_v33  ;;  %v4418_v10 = vadd.f32 %v8406_v19, %v11025_v4  ;;  %v4409_v46 = vpop.f32.mrb[23].mxu1  ;;  %v4741_v34 = vpack.c.bf16 %v4598_v43, %v4597_v26 }
 0x3d5   : > { %4628 = vst [vmem:[#allocation2 + $0x30] sm:$0xff] %v4596_v6  ;;  %v4528_v50 = vmul.f32 %v11135_v32, %v4407_v16  ;;  %v4410_v44 = vadd.f32 %v4409_v46, %v11016_v30  ;;  %v4740_v11 = vpack.c.bf16 %v4596_v6, %v4595_v59 }
 0x3d6   : > { %v4569_v24 = vadd.f32 %v11144_v3, %v4530_v9  ;;  %v4531_v20 = vmul.f32 %v11135_v32, %v4418_v10  ;;  %v8692_v9 = vld [vmem:[%s11813_s8 + $0x1c8] sm:$0xff]  }
 0x3d7   : > { %v4567_v14 = vadd.f32 %v11144_v3, %v4528_v50  ;;  %v4529_v49 = vmul.f32 %v11135_v32, %v4410_v44  ;;  %5707 = vmatprep.mubr.bf16.mxu0 %v4740_v11 }
 0x3d8   : > { %v4601_v0 = vmax.f32 %v4569_v24, 0.0  ;;  %v4570_v4 = vadd.f32 %v11144_v3, %v4531_v20 }
 0x3d9   : > { %v4599_v41 = vmax.f32 %v4567_v14, 0.0  ;;  %v4568_v30 = vadd.f32 %v11144_v3, %v4529_v49  ;;  %v8409_v56 = vpop.f32.mrb[24].mxu1  ;;  %v8693_v14 = vld [vmem:[%s11813_s8 + $0x188] sm:$0xff]  }
 0x3da   : > { %4633 = vst [vmem:[#allocation2 + $0x88] sm:$0xff] %v4601_v0  ;;  %v4602_v17 = vmax.f32 %v4570_v4, 0.0  ;;  %v4431_v52 = vadd.f32 %v8409_v56, %v11040_v5  ;;  %v4422_v23 = vpop.f32.mrb[25].mxu1  ;;  %v4803_v28 = vld [vmem:[#allocation2 + $0x27] sm:$0xff] }
 0x3db   : > { %4631 = vst [vmem:[#allocation2 + $0x68] sm:$0xff] %v4599_v41  ;;  %v4600_v38 = vmax.f32 %v4568_v30, 0.0  ;;  %v4423_v61 = vadd.f32 %v4422_v23, %v11031_v8  ;;  %v8410_v29 = vpop.f32.mrb[26].mxu1  ;;  %v4806_v31 = vld [vmem:[#allocation2 + $0x4f] sm:$0xff]  ;;  %v8689_v8 = vld [vmem:[%s11813_s8 + $0x180] sm:$0xff]  }
 0x3dc   : > { %4634 = vst [vmem:[#allocation2 + $0x90] sm:$0xff] %v4602_v17  ;;  %v4534_v1 = vmul.f32 %v11135_v32, %v4431_v52  ;;  %v4434_v35 = vadd.f32 %v8410_v29, %v11043_v62  ;;  %v4425_v26 = vpop.f32.mrb[27].mxu1  ;;  %v4804_v59 = vld [vmem:[#allocation2 + $0x2f] sm:$0xff]  ;;  %v4805_v62 = vld [vmem:[#allocation2 + $0x47] sm:$0xff]  ;;  %v11190_v19 = vpack.c.bf16 %v4602_v17, %v4601_v0 }
 0x3dd   : > { %4632 = vst [vmem:[#allocation2 + $0x70] sm:$0xff] %v4600_v38  ;;  %v4532_v5 = vmul.f32 %v11135_v32, %v4423_v61  ;;  %v4426_v43 = vadd.f32 %v4425_v26, %v11034_v27  ;;  %v4835_v33 = vpack.c.bf16 %v4804_v59, %v4803_v28  ;;  %v4742_v16 = vpack.c.bf16 %v4600_v38, %v4599_v41  ;;  %v4757_v41 = vld [vmem:[#allocation2 + $0x29] sm:$0xff]  ;;  %v4758_v30 = vld [vmem:[#allocation2 + $0x31] sm:$0xff] }
 0x3de   : > { %v4573_v7 = vadd.f32 %v11144_v3, %v4534_v1  ;;  %v4535_v6 = vmul.f32 %v11135_v32, %v4434_v35  ;;  %v11197_v46 = vpack.c.bf16 %v4806_v31, %v4805_v62  ;;  %v11214_v29 = vpack.c.bf16 %v4758_v30, %v4757_v41 }
 0x3df   : > { %v4571_v10 = vadd.f32 %v11144_v3, %v4532_v5  ;;  %v4533_v27 = vmul.f32 %v11135_v32, %v4426_v43  ;;  %5860 = vmatprep.mubr.bf16.mxu1 %v4835_v33  ;;  %5708 = vmatmul.mubr.bf16.gmra.mrb[20].mxu0 %v4835_v33 }
 0x3e0   : > { %v4605_v50 = vmax.f32 %v4573_v7, 0.0  ;;  %v4574_v44 = vadd.f32 %v11144_v3, %v4535_v6  ;;  %5861 = vmatmul.mubr.bf16.vlgmr.msra.gmra.mrb[48].mxu1 %v4787_v45  ;;  %5715 = vmatprep.mubr.bf16.mxu0 %v4741_v34  ;;  %v8696_v34 = vld [vmem:[%s11813_s8 + $0x1d0] sm:$0xff]   ;;  %v8701_v6 = vld [vmem:[%s11813_s8 + $0x198] sm:$0xff]  }
 0x3e1   : > { %v4603_v11 = vmax.f32 %v4571_v10, 0.0  ;;  %v4572_v24 = vadd.f32 %v11144_v3, %v4533_v27  ;;  %v8413_v20 = vpop.f32.mrb[28].mxu1  ;;  %5868 = vmatprep.mubr.bf16.mxu1 %v11197_v46  ;;  %8200 = vmatpush3.bf16.msra.mxu1 %v8689_v8  ;;  %v4759_v27 = vld [vmem:[#allocation2 + $0x49] sm:$0xff] }
 0x3e2   : > { %4637 = vst [vmem:[#allocation2 + $0xc8] sm:$0xff] %v4605_v50  ;;  %v4606_v49 = vmax.f32 %v4574_v44, 0.0  ;;  %v4447_v0 = vadd.f32 %v8413_v20, %v11061_v37  ;;  %v4438_v4 = vpop.f32.mrb[29].mxu1  ;;  %8201 = vmatprep.subr.bf16.mxu1 %v8692_v9  ;;  %v4807_v26 = vld [vmem:[#allocation2 + $0x67] sm:$0xff] }
 0x3e3   : > { %4635 = vst [vmem:[#allocation2 + $0xa8] sm:$0xff] %v4603_v11  ;;  %v4604_v56 = vmax.f32 %v4572_v24, 0.0  ;;  %v4439_v51 = vadd.f32 %v4438_v4, %v11049_v47  ;;  %v8414_v54 = vpop.f32.mrb[30].mxu1  ;;  %v8697_v47 = vld [vmem:[%s11813_s8 + $0x190] sm:$0xff]  }
 0x3e4   : > { %4638 = vst [vmem:[#allocation2 + $0xd0] sm:$0xff] %v4606_v49  ;;  %v4538_v17 = vmul.f32 %v11135_v32, %v4447_v0  ;;  %v4450_v52 = vadd.f32 %v8414_v54, %v11064_v60  ;;  %v4441_v23 = vpop.f32.mrb[31].mxu1  ;;  %v4808_v37 = vld [vmem:[#allocation2 + $0x6f] sm:$0xff]  ;;  %v11223_v28 = vpack.c.bf16 %v4606_v49, %v4605_v50 }
 0x3e5   : > { %4636 = vst [vmem:[#allocation2 + $0xb0] sm:$0xff] %v4604_v56  ;;  %v4536_v38 = vmul.f32 %v11135_v32, %v4439_v51  ;;  %v4442_v61 = vadd.f32 %v4441_v23, %v11052_v13  ;;  %8202 = vmatpush3.bf16.msra.mxu1 %v8693_v14  ;;  %v11221_v60 = vpack.c.bf16 %v4604_v56, %v4603_v11  ;;  %v8700_v13 = vld [vmem:[%s11813_s8 + $0x1d8] sm:$0xff]   ;;  %v4809_v56 = vld [vmem:[#allocation2 + $0x87] sm:$0xff] }
 0x3e6   : > { %v4577_v1 = vadd.f32 %v11144_v3, %v4538_v17  ;;  %v4539_v35 = vmul.f32 %v11135_v32, %v4450_v52  ;;  %8203 = vmatprep.subr.bf16.mxu1 %v8696_v34  ;;  %v11231_v31 = vpack.c.bf16 %v4808_v37, %v4807_v26  ;;  %v4760_v50 = vld [vmem:[#allocation2 + $0x51] sm:$0xff] }
 0x3e7   : > { %v4575_v59 = vadd.f32 %v11144_v3, %v4536_v38  ;;  %v4537_v45 = vmul.f32 %v11135_v32, %v4442_v61  ;;  %5716 = vmatmul.mubr.bf16.gmra.mrb[24].mxu0 %v11197_v46  ;;  %v11249_v41 = vpack.c.bf16 %v4760_v50, %v4759_v27 }
 0x3e8   : > { %v4609_v5 = vmax.f32 %v4577_v1, 0.0  ;;  %v4578_v43 = vadd.f32 %v11144_v3, %v4539_v35  ;;  %5869 = vmatmul.mubr.bf16.gmra.mrb[52].mxu1 %v11214_v29  ;;  %5723 = vmatprep.mubr.bf16.mxu0 %v4742_v16  ;;  %v8704_v16 = vld [vmem:[%s11813_s8 + $0x1e0] sm:$0xff]   ;;  %v8707_v1 = vld [vmem:[%s11813_s8 + $0x1a8] sm:$0xff]  }
 0x3e9   : > { %v4607_v33 = vmax.f32 %v4575_v59, 0.0  ;;  %v4576_v8 = vadd.f32 %v11144_v3, %v4537_v45  ;;  %v8417_v7 = vpop.f32.mrb[32].mxu1  ;;  %5876 = vmatprep.mubr.bf16.mxu1 %v11231_v31  ;;  %8204 = vmatpush3.bf16.msra.mxu1 %v8697_v47  ;;  %v4761_v59 = vld [vmem:[#allocation2 + $0x69] sm:$0xff]  ;;  %v4762_v45 = vld [vmem:[#allocation2 + $0x71] sm:$0xff] }
 0x3ea   : > { %4641 = vst [vmem:[#allocation2 + $0x108] sm:$0xff] %v4609_v5  ;;  %v4610_v62 = vmax.f32 %v4578_v43, 0.0  ;;  %v4463_v9 = vadd.f32 %v8417_v7, %v11082_v58  ;;  %v4454_v10 = vpop.f32.mrb[33].mxu1  ;;  %8205 = vmatprep.subr.bf16.mxu1 %v8700_v13  ;;  %v4810_v58 = vld [vmem:[#allocation2 + $0x8f] sm:$0xff] }
 0x3eb   : > { %4639 = vst [vmem:[#allocation2 + $0xe8] sm:$0xff] %v4607_v33  ;;  %v4608_v44 = vmax.f32 %v4576_v8, 0.0  ;;  %v4455_v11 = vadd.f32 %v4454_v10, %v11070_v21  ;;  %v8418_v24 = vpop.f32.mrb[34].mxu1  ;;  %v8705_v21 = vld [vmem:[%s11813_s8 + $0x1a0] sm:$0xff]   ;;  %v11266_v52 = vpack.c.bf16 %v4810_v58, %v4809_v56  ;;  %v11285_v10 = vpack.c.bf16 %v4762_v45, %v4761_v59 }
 0x3ec   : > { %4642 = vst [vmem:[#allocation2 + $0x110] sm:$0xff] %v4610_v62  ;;  %v4542_v20 = vmul.f32 %v11135_v32, %v4463_v9  ;;  %v4466_v14 = vadd.f32 %v8418_v24, %v11085_v57  ;;  %v4457_v49 = vpop.f32.mrb[35].mxu1  ;;  %v11258_v51 = vpack.c.bf16 %v4610_v62, %v4609_v5 }
 0x3ed   : > { %4640 = vst [vmem:[#allocation2 + $0xf0] sm:$0xff] %v4608_v44  ;;  %v4540_v0 = vmul.f32 %v11135_v32, %v4455_v11  ;;  %v4458_v4 = vadd.f32 %v4457_v49, %v11073_v15  ;;  %8206 = vmatpush3.bf16.msra.mxu1 %v8701_v6  ;;  %v11256_v57 = vpack.c.bf16 %v4608_v44, %v4607_v33  ;;  %v8706_v15 = vld [vmem:[%s11813_s8 + $0x1e8] sm:$0xff]  }
 0x3ee   : > { %v4581_v30 = vadd.f32 %v11144_v3, %v4542_v20  ;;  %v4543_v34 = vmul.f32 %v11135_v32, %v4466_v14  ;;  %8207 = vmatprep.subr.bf16.mxu1 %v8704_v16  ;;  %v4811_v16 = vld [vmem:[#allocation2 + $0xa7] sm:$0xff] }
 0x3ef   : > { %v4579_v54 = vadd.f32 %v11144_v3, %v4540_v0  ;;  %v4541_v17 = vmul.f32 %v11135_v32, %v4458_v4  ;;  %5724 = vmatmul.mubr.bf16.gmra.mrb[28].mxu0 %v11231_v31 }
 0x3f0   : > { %v4613_v23 = vmax.f32 %v4581_v30, 0.0  ;;  %v4582_v37 = vadd.f32 %v11144_v3, %v4543_v34  ;;  %5877 = vmatmul.mubr.bf16.gmra.mrb[56].mxu1 %v11249_v41  ;;  %5731 = vmatprep.mubr.bf16.mxu0 %v11190_v19  ;;  %v8708_v19 = vld [vmem:[%s11813_s8 + $0x1f0] sm:$0xff]  }
 0x3f1   : > { %v4611_v38 = vmax.f32 %v4579_v54, 0.0  ;;  %v4580_v61 = vadd.f32 %v11144_v3, %v4541_v17  ;;  %v8421_v47 = vpop.f32.mrb[36].mxu1  ;;  %5884 = vmatprep.mubr.bf16.mxu1 %v11266_v52  ;;  %8208 = vmatpush3.bf16.msra.mxu1 %v8705_v21  ;;  %v8712_v21 = vld [vmem:[%s11813_s8 + $0x1b8] sm:$0xff]  }
 0x3f2   : > { %4645 = vst [vmem:[#allocation2 + $0x148] sm:$0xff] %v4613_v23  ;;  %v4614_v35 = vmax.f32 %v4582_v37, 0.0  ;;  %v4479_v26 = vadd.f32 %v8421_v47, %v11100_v40  ;;  %v4470_v13 = vpop.f32.mrb[37].mxu1  ;;  %8209 = vmatprep.subr.bf16.mxu1 %v8706_v15  ;;  %v4812_v40 = vld [vmem:[#allocation2 + $0xaf] sm:$0xff] }
 0x3f3   : > { %4643 = vst [vmem:[#allocation2 + $0x128] sm:$0xff] %v4611_v38  ;;  %v4612_v5 = vmax.f32 %v4580_v61, 0.0  ;;  %v4471_v43 = vadd.f32 %v4470_v13, %v11088_v12  ;;  %v8422_v33 = vpop.f32.mrb[38].mxu1  ;;  %v8710_v12 = vld [vmem:[%s11813_s8 + $0x1b0] sm:$0xff]   ;;  %v11302_v20 = vpack.c.bf16 %v4812_v40, %v4811_v16  ;;  %v4813_v13 = vld [vmem:[#allocation2 + $0xc7] sm:$0xff] }
 0x3f4   : > { %4646 = vst [vmem:[#allocation2 + $0x150] sm:$0xff] %v4614_v35  ;;  %v4546_v8 = vmul.f32 %v11135_v32, %v4479_v26  ;;  %v4482_v7 = vadd.f32 %v8422_v33, %v11103_v25  ;;  %v4473_v6 = vpop.f32.mrb[39].mxu1  ;;  %v11294_v44 = vpack.c.bf16 %v4614_v35, %v4613_v23  ;;  %v4763_v15 = vld [vmem:[#allocation2 + $0x89] sm:$0xff]  ;;  %v4764_v54 = vld [vmem:[#allocation2 + $0x91] sm:$0xff] }
 0x3f5   : > { %4644 = vst [vmem:[#allocation2 + $0x130] sm:$0xff] %v4612_v5  ;;  %v4544_v62 = vmul.f32 %v11135_v32, %v4471_v43  ;;  %v4474_v9 = vadd.f32 %v4473_v6, %v11091_v2  ;;  %8210 = vmatpush3.bf16.msra.mxu1 %v8707_v1  ;;  %v11292_v25 = vpack.c.bf16 %v4612_v5, %v4611_v38  ;;  %v8711_v2 = vld [vmem:[%s11813_s8 + $0x1f8] sm:$0xff]   ;;  %v4814_v47 = vld [vmem:[#allocation2 + $0xcf] sm:$0xff] }
 0x3f6   : > { %v4585_v27 = vadd.f32 %v11144_v3, %v4546_v8  ;;  %v4547_v50 = vmul.f32 %v11135_v32, %v4482_v7  ;;  %8211 = vmatprep.subr.bf16.mxu1 %v8708_v19  ;;  %v11318_v35 = vpack.c.bf16 %v4764_v54, %v4763_v15  ;;  %v11329_v5 = vpack.c.bf16 %v4814_v47, %v4813_v13  ;;  %v4817_v47 = vld [vmem:[#allocation2 + $0x107] sm:$0xff] }
 0x3f7   : > { %v4583_v11 = vadd.f32 %v11144_v3, %v4544_v62  ;;  %v4545_v24 = vmul.f32 %v11135_v32, %v4474_v9  ;;  %5732 = vmatmul.mubr.bf16.gmra.mrb[32].mxu0 %v11266_v52  ;;  %v4765_v9 = vld [vmem:[#allocation2 + $0xa9] sm:$0xff] }
 0x3f8   : > { %v4617_v14 = vmax.f32 %v4585_v27, 0.0  ;;  %v4586_v49 = vadd.f32 %v11144_v3, %v4547_v50  ;;  %5885 = vmatmul.mubr.bf16.gmra.mrb[60].mxu1 %v11285_v10  ;;  %5739 = vmatprep.mubr.bf16.mxu0 %v11221_v60 }
 0x3f9   : > { %v4615_v58 = vmax.f32 %v4583_v11, 0.0  ;;  %v4584_v0 = vadd.f32 %v11144_v3, %v4545_v24  ;;  %v8425_v4 = vpop.f32.mrb[40].mxu1  ;;  %5892 = vmatprep.mubr.bf16.mxu1 %v11302_v20  ;;  %8212 = vmatpush3.bf16.msra.mxu1 %v8710_v12  ;;  %v4766_v12 = vld [vmem:[#allocation2 + $0xb1] sm:$0xff] }
 0x3fa   : > { %4649 = vst [vmem:[#allocation2 + $0x188] sm:$0xff] %v4617_v14  ;;  %v4618_v30 = vmax.f32 %v4586_v49, 0.0  ;;  %v4495_v34 = vadd.f32 %v8425_v4, %v11118_v22  ;;  %v4486_v56 = vpop.f32.mrb[41].mxu1  ;;  %8213 = vmatprep.subr.bf16.mxu1 %v8711_v2  ;;  %v4816_v24 = vld [vmem:[#allocation2 + $0xef] sm:$0xff]  ;;  %v11342_v49 = vpack.c.bf16 %v4766_v12, %v4765_v9 }
 0x3fb   : > { %4647 = vst [vmem:[#allocation2 + $0x168] sm:$0xff] %v4615_v58  ;;  %v4616_v60 = vmax.f32 %v4584_v0, 0.0  ;;  %v4487_v17 = vadd.f32 %v4486_v56, %v11106_v48  ;;  %v8426_v23 = vpop.f32.mrb[42].mxu1  ;;  %v4775_v9 = vld [vmem:[#allocation2 + $0x149] sm:$0xff] }
 0x3fc   : > { %4650 = vst [vmem:[#allocation2 + $0x190] sm:$0xff] %v4618_v30  ;;  %v4550_v37 = vmul.f32 %v11135_v32, %v4495_v34  ;;  %v4498_v38 = vadd.f32 %v8426_v23, %v11121_v55  ;;  %v4489_v61 = vpop.f32.mrb[43].mxu1  ;;  %v11324_v45 = vpack.c.bf16 %v4618_v30, %v4617_v14  ;;  %v4768_v23 = vld [vmem:[#allocation2 + $0xd1] sm:$0xff] }
 0x3fd   : > { %4648 = vst [vmem:[#allocation2 + $0x170] sm:$0xff] %v4616_v60  ;;  %v4548_v1 = vmul.f32 %v11135_v32, %v4487_v17  ;;  %v4490_v22 = vadd.f32 %v4489_v61, %v11109_v18  ;;  %8214 = vmatpush3.bf16.msra.mxu1 %v8712_v21  ;;  %v11322_v59 = vpack.c.bf16 %v4616_v60, %v4615_v58  ;;  %v4767_v17 = vld [vmem:[#allocation2 + $0xc9] sm:$0xff] }
 0x3fe   : > { %v4589_v26 = vadd.f32 %v11144_v3, %v4550_v37  ;;  %v4551_v48 = vmul.f32 %v11135_v32, %v4498_v38  ;;  %v4818_v37 = vld [vmem:[#allocation2 + $0x10f] sm:$0xff]  ;;  %v11362_v61 = vpack.c.bf16 %v4768_v23, %v4767_v17 }
 0x3ff   : > { %v4587_v55 = vadd.f32 %v11144_v3, %v4548_v1  ;;  %v4549_v19 = vmul.f32 %v11135_v32, %v4490_v22  ;;  %5740 = vmatmul.mubr.bf16.gmra.mrb[36].mxu0 %v11302_v20  ;;  %v4770_v1 = vld [vmem:[#allocation2 + $0xf1] sm:$0xff] }
 0x400   : > { %v4621_v18 = vmax.f32 %v4589_v26, 0.0  ;;  %v4590_v43 = vadd.f32 %v11144_v3, %v4551_v48  ;;  %5893 = vmatmul.mubr.bf16.gmra.mrb[64].mxu1 %v11318_v35  ;;  %5747 = vmatprep.mubr.bf16.mxu0 %v11223_v28  ;;  %v4820_v22 = vld [vmem:[#allocation2 + $0x12f] sm:$0xff]  ;;  %v4819_v48 = vld [vmem:[#allocation2 + $0x127] sm:$0xff] }
 0x401   : > { %v4619_v33 = vmax.f32 %v4587_v55, 0.0  ;;  %v4588_v8 = vadd.f32 %v11144_v3, %v4549_v19  ;;  %v8429_v7 = vpop.f32.mrb[44].mxu1  ;;  %5900 = vmatprep.mubr.bf16.mxu1 %v11329_v5  ;;  %v11373_v13 = vpack.c.bf16 %v4820_v22, %v4819_v48  ;;  %v4771_v55 = vld [vmem:[#allocation2 + $0x109] sm:$0xff] }
 0x402   : > { %4653 = vst [vmem:[#allocation2 + $0x1c8] sm:$0xff] %v4621_v18  ;;  %v4622_v6 = vmax.f32 %v4590_v43, 0.0  ;;  %v4511_v40 = vadd.f32 %v8429_v7, %v11153_v53  ;;  %v4502_v62 = vpop.f32.mrb[45].mxu1  ;;  %v4822_v19 = vld [vmem:[#allocation2 + $0x14f] sm:$0xff]  ;;  %v4821_v43 = vld [vmem:[#allocation2 + $0x147] sm:$0xff] }
 0x403   : > { %4651 = vst [vmem:[#allocation2 + $0x1a8] sm:$0xff] %v4619_v33  ;;  %v4620_v27 = vmax.f32 %v4588_v8, 0.0  ;;  %v4503_v50 = vadd.f32 %v4502_v62, %v11124_v36  ;;  %v8430_v16 = vpop.f32.mrb[46].mxu1  ;;  %v4815_v36 = vld [vmem:[#allocation2 + $0xe7] sm:$0xff]  ;;  %v4826_v12 = vld [vmem:[#allocation2 + $0x18f] sm:$0xff] }
 0x404   : > { %4654 = vst [vmem:[#allocation2 + $0x1d0] sm:$0xff] %v4622_v6  ;;  %v4554_v28 = vmul.f32 %v11135_v32, %v4511_v40  ;;  %v4514_v2 = vadd.f32 %v8430_v16, %v11158_v63  ;;  %v4505_v11 = vpop.f32.mrb[47].mxu1  ;;  %v11348_v21 = vpack.c.bf16 %v4622_v6, %v4621_v18  ;;  %v11353_v34 = vpack.c.bf16 %v4816_v24, %v4815_v36  ;;  %v4773_v8 = vld [vmem:[#allocation2 + $0x129] sm:$0xff] }
 0x405   : > { %4652 = vst [vmem:[#allocation2 + $0x1b0] sm:$0xff] %v4620_v27  ;;  %v4552_v14 = vmul.f32 %v11135_v32, %v4503_v50  ;;  %v4506_v53 = vadd.f32 %v4505_v11, %v11127_v42  ;;  %v11346_v4 = vpack.c.bf16 %v4620_v27, %v4619_v33  ;;  %v11381_v33 = vpack.c.bf16 %v4822_v19, %v4821_v43  ;;  %v4824_v7 = vld [vmem:[#allocation2 + $0x16f] sm:$0xff]  ;;  %v4823_v40 = vld [vmem:[#allocation2 + $0x167] sm:$0xff] }
 0x406   : > { %v4593_v58 = vadd.f32 %v11144_v3, %v4554_v28  ;;  %v4555_v0 = vmul.f32 %v11135_v32, %v4514_v2  ;;  %v11389_v62 = vpack.c.bf16 %v4824_v7, %v4823_v40  ;;  %v4825_v16 = vld [vmem:[#allocation2 + $0x187] sm:$0xff] }
 0x407   : > { %v4591_v63 = vadd.f32 %v11144_v3, %v4552_v14  ;;  %v4553_v30 = vmul.f32 %v11135_v32, %v4506_v53  ;;  %5748 = vmatmul.mubr.bf16.gmra.mrb[40].mxu0 %v11329_v5  ;;  %v11397_v2 = vpack.c.bf16 %v4826_v12, %v4825_v16  ;;  %v4777_v53 = vld [vmem:[#allocation2 + $0x169] sm:$0xff]  ;;  %v8715_v16 = vld [vmem:[%s11813_s8 + $0x218] sm:$0xff]  }
 0x408   : > { %v4625_v42 = vmax.f32 %v4593_v58, 0.0  ;;  %v4594_v56 = vadd.f32 %v11144_v3, %v4555_v0  ;;  %5901 = vmatmul.mubr.bf16.gmra.mrb[68].mxu1 %v11342_v49  ;;  %5755 = vmatprep.mubr.bf16.mxu0 %v11256_v57  ;;  %v11365_v57 = vpack.c.bf16 %v4818_v37, %v4817_v47  ;;  %v4778_v58 = vld [vmem:[#allocation2 + $0x171] sm:$0xff]  ;;  %v4851_v43 = vld [vmem:[#allocation2 + $0x28] sm:$0xff] }
 0x409   : > { %v4623_v15 = vmax.f32 %v4591_v63, 0.0  ;;  %v4592_v54 = vadd.f32 %v11144_v3, %v4553_v30  ;;  %5908 = vmatprep.mubr.bf16.mxu1 %v11353_v34  ;;  %v4769_v3 = vld [vmem:[#allocation2 + $0xe9] sm:$0xff]  ;;  %v11406_v36 = vpack.c.bf16 %v4778_v58, %v4777_v53 }
 0x40a   : > { %4657 = vst [vmem:[#allocation2 + $0x208] sm:$0xff] %v4625_v42  ;;  %v4626_v60 = vmax.f32 %v4594_v56, 0.0  ;;  %v11370_v26 = vpack.c.bf16 %v4770_v1, %v4769_v3  ;;  %v4827_v63 = vld [vmem:[#allocation2 + $0x1a7] sm:$0xff]  ;;  %v4780_v42 = vld [vmem:[#allocation2 + $0x191] sm:$0xff] }
 0x40b   : > { %4655 = vst [vmem:[#allocation2 + $0x1e8] sm:$0xff] %v4623_v15  ;;  %v4624_v32 = vmax.f32 %v4592_v54, 0.0  ;;  %v4830_v56 = vld [vmem:[#allocation2 + $0x1cf] sm:$0xff]  ;;  %v4829_v54 = vld [vmem:[#allocation2 + $0x1c7] sm:$0xff] }
 0x40c   : > { %4658 = vst [vmem:[#allocation2 + $0x210] sm:$0xff] %v4626_v60  ;;  %v4828_v0 = vld [vmem:[#allocation2 + $0x1af] sm:$0xff]  ;;  %v11417_v60 = vpack.c.bf16 %v4830_v56, %v4829_v54 }
 0x40d   : > { %4656 = vst [vmem:[#allocation2 + $0x1f0] sm:$0xff] %v4624_v32  ;;  %v11360_v38 = vpack.c.bf16 %v4624_v32, %v4623_v15  ;;  %v11409_v30 = vpack.c.bf16 %v4828_v0, %v4827_v63  ;;  %v4781_v32 = vld [vmem:[#allocation2 + $0x1a9] sm:$0xff]  ;;  %v8719_v0 = vld [vmem:[%s11813_s8 + $0x238] sm:$0xff]  }
 0x40e   : > { %v4783_v3 = vld [vmem:[#allocation2 + $0x1c9] sm:$0xff] }
 0x40f   : > { %5756 = vmatmul.mubr.bf16.gmra.mrb[44].mxu0 %v11353_v34  ;;  %v4995_v40 = vld [vmem:[#allocation2 + $0x48] sm:$0xff]  ;;  %v4998_v12 = vld [vmem:[#allocation2 + $0x70] sm:$0xff] }
 0x410   : > { %5909 = vmatmul.mubr.bf16.gmra.mrb[72].mxu1 %v11362_v61  ;;  %5763 = vmatprep.mubr.bf16.mxu0 %v11258_v51  ;;  %v4772_v51 = vld [vmem:[#allocation2 + $0x111] sm:$0xff]  ;;  %v5001_v58 = vld [vmem:[#allocation2 + $0xa8] sm:$0xff] }
 0x411   : > { %5916 = vmatprep.mubr.bf16.mxu1 %v11365_v57  ;;  %v11378_v18 = vpack.c.bf16 %v4772_v51, %v4771_v55  ;;  %v4833_v48 = vld [vmem:[#allocation2 + $0x207] sm:$0xff]  ;;  %v4852_v51 = vld [vmem:[#allocation2 + $0x30] sm:$0xff] }
 0x412   : > { %v4831_v37 = vld [vmem:[#allocation2 + $0x1e7] sm:$0xff] }
 0x413   : > { %v4834_v1 = vld [vmem:[#allocation2 + $0x20f] sm:$0xff] }
 0x414   : > { %v4832_v17 = vld [vmem:[#allocation2 + $0x1ef] sm:$0xff]  ;;  %v11433_v55 = vpack.c.bf16 %v4834_v1, %v4833_v48 }
 0x415   : > { %v11425_v47 = vpack.c.bf16 %v4832_v17, %v4831_v37  ;;  %v4786_v19 = vld [vmem:[#allocation2 + $0x1f1] sm:$0xff]  ;;  %v5005_v56 = vld [vmem:[#allocation2 + $0xe8] sm:$0xff] }
 0x417   : > { %5764 = vmatmul.mubr.bf16.gmra.mrb[48].mxu0 %v11365_v57 }
 0x418   : > { %5917 = vmatmul.mubr.bf16.gmra.mrb[76].mxu1 %v11370_v26  ;;  %5771 = vmatprep.mubr.bf16.mxu0 %v11292_v25  ;;  %v4774_v25 = vld [vmem:[#allocation2 + $0x131] sm:$0xff] }
 0x419   : > { %5924 = vmatprep.mubr.bf16.mxu1 %v11373_v13  ;;  %v11386_v6 = vpack.c.bf16 %v4774_v25, %v4773_v8  ;;  %v4996_v8 = vld [vmem:[#allocation2 + $0x50] sm:$0xff]  ;;  %v4883_v25 = vpack.c.bf16 %v4852_v51, %v4851_v43 }
 0x41f   : > { %5772 = vmatmul.mubr.bf16.gmra.mrb[52].mxu0 %v11373_v13 }
 0x420   : > { %5925 = vmatmul.mubr.bf16.gmra.mrb[80].mxu1 %v11378_v18  ;;  %5779 = vmatprep.mubr.bf16.mxu0 %v11294_v44  ;;  %v4776_v44 = vld [vmem:[#allocation2 + $0x151] sm:$0xff] }
 0x421   : > { %5932 = vmatprep.mubr.bf16.mxu1 %v11381_v33  ;;  %v11394_v50 = vpack.c.bf16 %v4776_v44, %v4775_v9  ;;  %v8713_v9 = vld [vmem:[%s11813_s8 + $0x208] sm:$0xff]   ;;  %v5027_v44 = vpack.c.bf16 %v4996_v8, %v4995_v40 }
 0x422   : > { %v5019_v40 = vld [vmem:[#allocation2 + $0x1c8] sm:$0xff] }
 0x425   : > { %v7879_v27 = vpop.f32.mrb[16].mxu0 }
 0x426   : > { %v7880_v28 = vpop.f32.mrb[17].mxu0 }
 0x427   : > { %5780 = vmatmul.mubr.bf16.gmra.mrb[56].mxu0 %v11381_v33  ;;  %v11399_v11 = vadd.f32 %v7880_v28, %v7879_v27  ;;  %v7882_v24 = vpop.f32.mrb[18].mxu0  ;;  %v4997_v27 = vld [vmem:[#allocation2 + $0x68] sm:$0xff] }
 0x428   : > { %5933 = vmatmul.mubr.bf16.gmra.mrb[84].mxu1 %v11386_v6  ;;  %5787 = vmatprep.mubr.bf16.mxu0 %v11322_v59  ;;  %v7883_v59 = vpop.f32.mrb[19].mxu0  ;;  %v5028_v28 = vpack.c.bf16 %v4998_v12, %v4997_v27 }
 0x429   : > { %5940 = vmatprep.mubr.bf16.mxu1 %v11389_v62  ;;  %v11404_v14 = vadd.f32 %v7883_v59, %v7882_v24  ;;  %v4999_v24 = vld [vmem:[#allocation2 + $0x88] sm:$0xff] }
 0x42a   : > { %v8717_v59 = vld [vmem:[%s11813_s8 + $0x228] sm:$0xff]  }
 0x42f   : > { %5788 = vmatmul.mubr.bf16.gmra.mrb[60].mxu0 %v11389_v62 }
 0x430   : > { %5941 = vmatmul.mubr.bf16.gmra.mrb[88].mxu1 %v11394_v50  ;;  %5795 = vmatprep.mubr.bf16.mxu0 %v11324_v45  ;;  %v4779_v45 = vld [vmem:[#allocation2 + $0x189] sm:$0xff] }
 0x431   : > { %5948 = vmatprep.mubr.bf16.mxu1 %v11397_v2  ;;  %v11414_v15 = vpack.c.bf16 %v4780_v42, %v4779_v45  ;;  %v5006_v42 = vld [vmem:[#allocation2 + $0xf0] sm:$0xff] }
 0x432   : > { %v5032_v54 = vpack.c.bf16 %v5006_v42, %v5005_v56 }
 0x437   : > { %5796 = vmatmul.mubr.bf16.gmra.mrb[64].mxu0 %v11397_v2 }
 0x438   : > { %5949 = vmatmul.mubr.bf16.gmra.mrb[92].mxu1 %v11406_v36  ;;  %5803 = vmatprep.mubr.bf16.mxu0 %v11346_v4  ;;  %v4782_v4 = vld [vmem:[#allocation2 + $0x1b1] sm:$0xff] }
 0x439   : > { %5956 = vmatprep.mubr.bf16.mxu1 %v11409_v30  ;;  %v11422_v23 = vpack.c.bf16 %v4782_v4, %v4781_v32 }
 0x43f   : > { %5804 = vmatmul.mubr.bf16.gmra.mrb[68].mxu0 %v11409_v30 }
 0x440   : > { %5957 = vmatmul.mubr.bf16.gmra.mrb[96].mxu1 %v11414_v15  ;;  %5811 = vmatprep.mubr.bf16.mxu0 %v11348_v21  ;;  %v4784_v21 = vld [vmem:[#allocation2 + $0x1d1] sm:$0xff] }
 0x441   : > { %5964 = vmatprep.mubr.bf16.mxu1 %v11417_v60  ;;  %v11430_v22 = vpack.c.bf16 %v4784_v21, %v4783_v3 }
 0x447   : > { %5812 = vmatmul.mubr.bf16.gmra.mrb[72].mxu0 %v11417_v60 }
 0x448   : > { %5965 = vmatmul.mubr.bf16.gmra.mrb[100].mxu1 %v11422_v23  ;;  %5819 = vmatprep.mubr.bf16.mxu0 %v11360_v38  ;;  %v4785_v38 = vld [vmem:[#allocation2 + $0x1e9] sm:$0xff] }
 0x449   : > { %5972 = vmatprep.mubr.bf16.mxu1 %v11425_v47  ;;  %v11438_v7 = vpack.c.bf16 %v4786_v19, %v4785_v38  ;;  %v5020_v19 = vld [vmem:[#allocation2 + $0x1d0] sm:$0xff] }
 0x44f   : > { %5820 = vmatmul.mubr.bf16.gmra.mrb[76].mxu0 %v11425_v47 }
 0x450   : > { %5973 = vmatmul.mubr.bf16.gmra.mrb[104].mxu1 %v11430_v22  ;;  %6021 = vmatprep.mubr.bf16.mxu0 %v11214_v29  ;;  %v8714_v29 = vld [vmem:[%s11813_s8 + $0x210] sm:$0xff]  }
 0x451   : > { %5980 = vmatprep.mubr.bf16.mxu1 %v11433_v55 }
 0x457   : > { %6022 = vmatmul.mubr.bf16.vlgmr.msra.gmra.mrb[80].mxu0 %v4883_v25 }
 0x458   : > { %5981 = vmatmul.mubr.bf16.gmra.mrb[108].mxu1 %v11438_v7  ;;  %6029 = vmatprep.mubr.bf16.mxu0 %v11249_v41  ;;  %v5000_v41 = vld [vmem:[#allocation2 + $0x90] sm:$0xff] }
 0x459   : > { %6182 = vmatprep.mubr.bf16.mxu1 %v5027_v44  ;;  %8432 = vmatpush3.bf16.msra.mxu0 %v11175_v39  ;;  %v8716_v39 = vld [vmem:[%s11813_s8 + $0x220] sm:$0xff]   ;;  %v5029_v53 = vpack.c.bf16 %v5000_v41, %v4999_v24  ;;  %v5022_v41 = vld [vmem:[#allocation2 + $0x1f0] sm:$0xff] }
 0x45a   : > { %8433 = vmatprep.subr.bf16.mxu0 %v8713_v9 }
 0x45d   : > { %8434 = vmatpush3.bf16.msra.mxu0 %v8713_v9 }
 0x45e   : > { %8435 = vmatprep.subr.bf16.mxu0 %v8714_v29 }
 0x45f   : > { %6030 = vmatmul.mubr.bf16.gmra.mrb[84].mxu0 %v5027_v44 }
 0x460   : > { %6183 = vmatmul.mubr.bf16.vlgmr.msra.gmra.mrb[112].mxu1 %v11197_v46  ;;  %6037 = vmatprep.mubr.bf16.mxu0 %v11285_v10  ;;  %v8718_v46 = vld [vmem:[%s11813_s8 + $0x230] sm:$0xff]  }
 0x461   : > { %6190 = vmatprep.mubr.bf16.mxu1 %v5028_v28  ;;  %8436 = vmatpush3.bf16.msra.mxu0 %v8714_v29  ;;  %v5002_v10 = vld [vmem:[#allocation2 + $0xb0] sm:$0xff] }
 0x462   : > { %8437 = vmatprep.subr.bf16.mxu0 %v8715_v16  ;;  %v5030_v63 = vpack.c.bf16 %v5002_v10, %v5001_v58  ;;  %v5021_v10 = vld [vmem:[#allocation2 + $0x1e8] sm:$0xff] }
 0x465   : > { %8438 = vmatpush3.bf16.msra.mxu0 %v8715_v16 }
 0x466   : > { %8439 = vmatprep.subr.bf16.mxu0 %v8716_v39 }
 0x467   : > { %6038 = vmatmul.mubr.bf16.gmra.mrb[88].mxu0 %v5028_v28 }
 0x468   : > { %6191 = vmatmul.mubr.bf16.gmra.mrb[116].mxu1 %v11231_v31  ;;  %6045 = vmatprep.mubr.bf16.mxu0 %v11318_v35  ;;  %v5004_v31 = vld [vmem:[#allocation2 + $0xd0] sm:$0xff]  ;;  %v5003_v35 = vld [vmem:[#allocation2 + $0xc8] sm:$0xff] }
 0x469   : > { %6198 = vmatprep.mubr.bf16.mxu1 %v5029_v53  ;;  %8440 = vmatpush3.bf16.msra.mxu0 %v8716_v39  ;;  %v5031_v45 = vpack.c.bf16 %v5004_v31, %v5003_v35  ;;  %v4929_v35 = vld [vmem:[#allocation2 + $0x209] sm:$0xff] }
 0x46a   : > { %8441 = vmatprep.subr.bf16.mxu0 %v8717_v59 }
 0x46d   : > { %8442 = vmatpush3.bf16.msra.mxu0 %v8717_v59 }
 0x46e   : > { %8443 = vmatprep.subr.bf16.mxu0 %v8718_v46 }
 0x46f   : > { %6046 = vmatmul.mubr.bf16.gmra.mrb[92].mxu0 %v5029_v53 }
 0x470   : > { %6199 = vmatmul.mubr.bf16.gmra.mrb[120].mxu1 %v11266_v52  ;;  %6053 = vmatprep.mubr.bf16.mxu0 %v11342_v49  ;;  %v5008_v52 = vld [vmem:[#allocation2 + $0x110] sm:$0xff]  ;;  %v5007_v49 = vld [vmem:[#allocation2 + $0x108] sm:$0xff] }
 0x471   : > { %6206 = vmatprep.mubr.bf16.mxu1 %v5030_v63  ;;  %8444 = vmatpush3.bf16.msra.mxu0 %v8718_v46  ;;  %v5033_v32 = vpack.c.bf16 %v5008_v52, %v5007_v49  ;;  %v5024_v52 = vld [vmem:[#allocation2 + $0x210] sm:$0xff] }
 0x472   : > { %8445 = vmatprep.subr.bf16.mxu0 %v8719_v0 }
 0x475   : > { %8446 = vmatpush3.bf16.msra.mxu0 %v8719_v0 }
 0x477   : > { %6054 = vmatmul.mubr.bf16.gmra.mrb[96].mxu0 %v5030_v63 }
 0x478   : > { %6207 = vmatmul.mubr.bf16.gmra.mrb[124].mxu1 %v11302_v20  ;;  %6061 = vmatprep.mubr.bf16.mxu0 %v11362_v61  ;;  %v5010_v20 = vld [vmem:[#allocation2 + $0x130] sm:$0xff]  ;;  %v5009_v61 = vld [vmem:[#allocation2 + $0x128] sm:$0xff] }
 0x479   : > { %6214 = vmatprep.mubr.bf16.mxu1 %v5031_v45  ;;  %v5034_v4 = vpack.c.bf16 %v5010_v20, %v5009_v61 }
 0x47f   : > { %6062 = vmatmul.mubr.bf16.gmra.mrb[100].mxu0 %v5031_v45  ;;  %v4930_v45 = vld [vmem:[#allocation2 + $0x211] sm:$0xff] }
 0x480   : > { %6215 = vmatmul.mubr.bf16.gmra.mrb[128].mxu1 %v11329_v5  ;;  %6069 = vmatprep.mubr.bf16.mxu0 %v11370_v26  ;;  %v5012_v5 = vld [vmem:[#allocation2 + $0x150] sm:$0xff]  ;;  %v5011_v26 = vld [vmem:[#allocation2 + $0x148] sm:$0xff] }
 0x481   : > { %6222 = vmatprep.mubr.bf16.mxu1 %v5032_v54  ;;  %v5035_v17 = vpack.c.bf16 %v5012_v5, %v5011_v26 }
 0x487   : > { %6070 = vmatmul.mubr.bf16.gmra.mrb[104].mxu0 %v5032_v54 }
 0x488   : > { %6223 = vmatmul.mubr.bf16.gmra.mrb[132].mxu1 %v11353_v34  ;;  %6077 = vmatprep.mubr.bf16.mxu0 %v11378_v18  ;;  %v5014_v34 = vld [vmem:[#allocation2 + $0x170] sm:$0xff]  ;;  %v5013_v18 = vld [vmem:[#allocation2 + $0x168] sm:$0xff] }
 0x489   : > { %6230 = vmatprep.mubr.bf16.mxu1 %v5033_v32  ;;  %v5036_v37 = vpack.c.bf16 %v5014_v34, %v5013_v18 }
 0x48f   : > { %6078 = vmatmul.mubr.bf16.gmra.mrb[108].mxu0 %v5033_v32 }
 0x490   : > { %6231 = vmatmul.mubr.bf16.gmra.mrb[136].mxu1 %v11365_v57  ;;  %6085 = vmatprep.mubr.bf16.mxu0 %v11386_v6  ;;  %v5016_v57 = vld [vmem:[#allocation2 + $0x190] sm:$0xff]  ;;  %v5015_v6 = vld [vmem:[#allocation2 + $0x188] sm:$0xff] }
 0x491   : > { %6238 = vmatprep.mubr.bf16.mxu1 %v5034_v4  ;;  %v5037_v3 = vpack.c.bf16 %v5016_v57, %v5015_v6  ;;  %v5043_v6 = vld [vmem:[#allocation2 + $0x49] sm:$0xff] }
 0x497   : > { %6086 = vmatmul.mubr.bf16.gmra.mrb[112].mxu0 %v5034_v4 }
 0x498   : > { %6239 = vmatmul.mubr.bf16.gmra.mrb[140].mxu1 %v11373_v13  ;;  %6093 = vmatprep.mubr.bf16.mxu0 %v11394_v50  ;;  %v5018_v13 = vld [vmem:[#allocation2 + $0x1b0] sm:$0xff]  ;;  %v5017_v50 = vld [vmem:[#allocation2 + $0x1a8] sm:$0xff] }
 0x499   : > { %6246 = vmatprep.mubr.bf16.mxu1 %v5035_v17  ;;  %v5038_v21 = vpack.c.bf16 %v5018_v13, %v5017_v50 }
 0x49f   : > { %6094 = vmatmul.mubr.bf16.gmra.mrb[116].mxu0 %v5035_v17 }
 0x4a0   : > { %6247 = vmatmul.mubr.bf16.gmra.mrb[144].mxu1 %v11381_v33  ;;  %6101 = vmatprep.mubr.bf16.mxu0 %v11406_v36 }
 0x4a1   : > { %6254 = vmatprep.mubr.bf16.mxu1 %v5036_v37 }
 0x4a7   : > { %6102 = vmatmul.mubr.bf16.gmra.mrb[120].mxu0 %v5036_v37 }
 0x4a8   : > { %6255 = vmatmul.mubr.bf16.gmra.mrb[148].mxu1 %v11389_v62  ;;  %6109 = vmatprep.mubr.bf16.mxu0 %v11414_v15 }
 0x4a9   : > { %6262 = vmatprep.mubr.bf16.mxu1 %v5037_v3 }
 0x4af   : > { %6110 = vmatmul.mubr.bf16.gmra.mrb[124].mxu0 %v5037_v3  ;;  %v5044_v3 = vld [vmem:[#allocation2 + $0x51] sm:$0xff] }
 0x4b0   : > { %6263 = vmatmul.mubr.bf16.gmra.mrb[152].mxu1 %v11397_v2  ;;  %6117 = vmatprep.mubr.bf16.mxu0 %v11422_v23  ;;  %v5039_v23 = vpack.c.bf16 %v5020_v19, %v5019_v40  ;;  %v5075_v19 = vpack.c.bf16 %v5044_v3, %v5043_v6 }
 0x4b1   : > { %6270 = vmatprep.mubr.bf16.mxu1 %v5038_v21 }
 0x4b2   : > { %v7885_v33 = vpop.f32.mrb[20].mxu0 }
 0x4b3   : > { %v7991_v36 = vpop.f32.mrb[48].mxu1  ;;  %v7886_v1 = vpop.f32.mrb[21].mxu0 }
 0x4b4   : > { %v7887_v48 = vadd.f32 %v7886_v1, %v7885_v33  ;;  %v7992_v51 = vpop.f32.mrb[49].mxu1  ;;  %v7888_v38 = vpop.f32.mrb[22].mxu0 }
 0x4b5   : > { %v7993_v62 = vadd.f32 %v7992_v51, %v7991_v36  ;;  %v7994_v43 = vpop.f32.mrb[50].mxu1  ;;  %v7889_v15 = vpop.f32.mrb[23].mxu0 }
 0x4b6   : > { %v7890_v8 = vadd.f32 %v7889_v15, %v7888_v38  ;;  %v7995_v25 = vpop.f32.mrb[51].mxu1 }
 0x4b7   : > { %v11487_v9 = vadd.f32 %v7993_v62, %v11399_v11  ;;  %v7996_v2 = vadd.f32 %v7995_v25, %v7994_v43  ;;  %6118 = vmatmul.mubr.bf16.gmra.mrb[128].mxu0 %v5038_v21  ;;  %v4978_v25 = vld [vmem:[#allocation2 + $0x22f] sm:$0xff] }
 0x4b8   : > { %6271 = vmatmul.mubr.bf16.gmra.mrb[156].mxu1 %v11409_v30  ;;  %6125 = vmatprep.mubr.bf16.mxu0 %v11430_v22 }
 0x4b9   : > { %v11492_v44 = vadd.f32 %v7996_v2, %v11404_v14  ;;  %6278 = vmatprep.mubr.bf16.mxu1 %v5039_v23  ;;  %v5040_v14 = vpack.c.bf16 %v5022_v41, %v5021_v10  ;;  %v5045_v2 = vld [vmem:[#allocation2 + $0x69] sm:$0xff] }
 0x4ba   : > { %v7891_v29 = vpop.f32.mrb[24].mxu0 }
 0x4bb   : > { %v7997_v12 = vpop.f32.mrb[52].mxu1  ;;  %v7892_v27 = vpop.f32.mrb[25].mxu0 }
 0x4bc   : > { %v7893_v16 = vadd.f32 %v7892_v27, %v7891_v29  ;;  %v7998_v28 = vpop.f32.mrb[53].mxu1  ;;  %v7894_v39 = vpop.f32.mrb[26].mxu0  ;;  %v5047_v27 = vld [vmem:[#allocation2 + $0x89] sm:$0xff] }
 0x4bd   : > { %v7999_v11 = vadd.f32 %v7998_v28, %v7997_v12  ;;  %v8000_v24 = vpop.f32.mrb[54].mxu1  ;;  %v7895_v59 = vpop.f32.mrb[27].mxu0 }
 0x4be   : > { %v7896_v53 = vadd.f32 %v7895_v59, %v7894_v39  ;;  %v8001_v46 = vpop.f32.mrb[55].mxu1 }
 0x4bf   : > { %v11494_v30 = vadd.f32 %v7999_v11, %v7887_v48  ;;  %v8002_v22 = vadd.f32 %v8001_v46, %v8000_v24  ;;  %6126 = vmatmul.mubr.bf16.gmra.mrb[132].mxu0 %v5039_v23  ;;  %v8722_v48 = vld [vmem:[#allocation2 + $0x8] sm:$0xff]  ;;  %v5046_v23 = vld [vmem:[#allocation2 + $0x71] sm:$0xff] }
 0x4c0   : > { %6279 = vmatmul.mubr.bf16.gmra.mrb[160].mxu1 %v11417_v60  ;;  %6133 = vmatprep.mubr.bf16.mxu0 %v11438_v7  ;;  %v11500_v60 = vpack.c.bf16 %v4930_v45, %v4929_v35  ;;  %v5023_v7 = vld [vmem:[#allocation2 + $0x208] sm:$0xff]  ;;  %v5042_v51 = vpack.c.bf16 %v8722_v48, %v8722_v48  ;;  %v5050_v45 = vld [vmem:[#allocation2 + $0xb1] sm:$0xff] }
 0x4c1   : > { %v11498_v58 = vadd.f32 %v8002_v22, %v7890_v8  ;;  %6286 = vmatprep.mubr.bf16.mxu1 %v5040_v14  ;;  %v5041_v17 = vpack.c.bf16 %v5024_v52, %v5023_v7  ;;  %v4977_v8 = vld [vmem:[#allocation2 + $0x227] sm:$0xff]  ;;  %v5052_v52 = vld [vmem:[#allocation2 + $0xd1] sm:$0xff] }
 0x4c2   : > { %v7897_v0 = vpop.f32.mrb[28].mxu0  ;;  %v4994_v11 = vpack.c.bf16 %v4978_v25, %v4977_v8  ;;  %v5049_v35 = vld [vmem:[#allocation2 + $0xa9] sm:$0xff]  ;;  %v5056_v48 = vld [vmem:[#allocation2 + $0x111] sm:$0xff] }
 0x4c3   : > { %v8003_v63 = vpop.f32.mrb[56].mxu1  ;;  %v7898_v31 = vpop.f32.mrb[29].mxu0 }
 0x4c4   : > { %v7899_v42 = vadd.f32 %v7898_v31, %v7897_v0  ;;  %v8004_v56 = vpop.f32.mrb[57].mxu1  ;;  %v7900_v54 = vpop.f32.mrb[30].mxu0 }
 0x4c5   : > { %v8005_v49 = vadd.f32 %v8004_v56, %v8003_v63  ;;  %v8006_v32 = vpop.f32.mrb[58].mxu1  ;;  %v7901_v20 = vpop.f32.mrb[31].mxu0 }
 0x4c6   : > { %v7902_v61 = vadd.f32 %v7901_v20, %v7900_v54  ;;  %v8007_v4 = vpop.f32.mrb[59].mxu1  ;;  %v5051_v54 = vld [vmem:[#allocation2 + $0xc9] sm:$0xff] }
 0x4c7   : > { %v11502_v5 = vadd.f32 %v8005_v49, %v7893_v16  ;;  %v8008_v26 = vadd.f32 %v8007_v4, %v8006_v32  ;;  %6134 = vmatmul.mubr.bf16.gmra.mrb[136].mxu0 %v5040_v14  ;;  %v5048_v16 = vld [vmem:[#allocation2 + $0x91] sm:$0xff] }
 0x4c8   : > { %6287 = vmatmul.mubr.bf16.gmra.mrb[164].mxu1 %v11425_v47  ;;  %6141 = vmatprep.mubr.bf16.mxu0 %v11500_v60  ;;  %v5077_v22 = vpack.c.bf16 %v5048_v16, %v5047_v27 }
 0x4c9   : > { %v11506_v34 = vadd.f32 %v8008_v26, %v7896_v53  ;;  %6294 = vmatprep.mubr.bf16.mxu1 %v5041_v17  ;;  %v5076_v53 = vpack.c.bf16 %v5046_v23, %v5045_v2  ;;  %v5078_v26 = vpack.c.bf16 %v5050_v45, %v5049_v35 }
 0x4ca   : > { %v7903_v18 = vpop.f32.mrb[32].mxu0 }
 0x4cb   : > { %v8009_v37 = vpop.f32.mrb[60].mxu1  ;;  %v7904_v57 = vpop.f32.mrb[33].mxu0 }
 0x4cc   : > { %v7905_v13 = vadd.f32 %v7904_v57, %v7903_v18  ;;  %v8010_v50 = vpop.f32.mrb[61].mxu1  ;;  %v7906_v21 = vpop.f32.mrb[34].mxu0 }
 0x4cd   : > { %v8011_v33 = vadd.f32 %v8010_v50, %v8009_v37  ;;  %v8012_v36 = vpop.f32.mrb[62].mxu1  ;;  %v7907_v1 = vpop.f32.mrb[35].mxu0  ;;  %v5079_v37 = vpack.c.bf16 %v5052_v52, %v5051_v54  ;;  %v5053_v50 = vld [vmem:[#allocation2 + $0xe9] sm:$0xff] }
 0x4ce   : > { %v7908_v38 = vadd.f32 %v7907_v1, %v7906_v21  ;;  %v8013_v47 = vpop.f32.mrb[63].mxu1  ;;  %v5054_v21 = vld [vmem:[#allocation2 + $0xf1] sm:$0xff]  ;;  %v5055_v1 = vld [vmem:[#allocation2 + $0x109] sm:$0xff] }
 0x4cf   : > { %v11508_v62 = vadd.f32 %v8011_v33, %v7899_v42  ;;  %v8014_v43 = vadd.f32 %v8013_v47, %v8012_v36  ;;  %6142 = vmatmul.mubr.bf16.gmra.mrb[140].mxu0 %v5041_v17  ;;  %v5080_v25 = vpack.c.bf16 %v5054_v21, %v5053_v50  ;;  %v5081_v23 = vpack.c.bf16 %v5056_v48, %v5055_v1 }
 0x4d0   : > { %6295 = vmatmul.mubr.bf16.gmra.mrb[168].mxu1 %v11433_v55  ;;  %8447 = vmatprep.mubr.bf16.mxu0 %v5075_v19 }
 0x4d1   : > { %v11511_v15 = vadd.f32 %v8014_v43, %v7902_v61  ;;  %6302 = vmatprep.mubr.bf16.mxu1 %v5042_v51 }
 0x4d2   : > { %v7909_v40 = vpop.f32.mrb[36].mxu0 }
 0x4d3   : > { %v8015_v29 = vpop.f32.mrb[64].mxu1  ;;  %v7910_v12 = vpop.f32.mrb[37].mxu0 }
 0x4d4   : > { %v7911_v28 = vadd.f32 %v7910_v12, %v7909_v40  ;;  %v8016_v39 = vpop.f32.mrb[65].mxu1  ;;  %v7912_v41 = vpop.f32.mrb[38].mxu0 }
 0x4d5   : > { %v8017_v24 = vadd.f32 %v8016_v39, %v8015_v29  ;;  %v8018_v59 = vpop.f32.mrb[66].mxu1  ;;  %v7913_v55 = vpop.f32.mrb[39].mxu0  ;;  %v5058_v39 = vld [vmem:[#allocation2 + $0x131] sm:$0xff] }
 0x4d6   : > { %v7914_v46 = vadd.f32 %v7913_v55, %v7912_v41  ;;  %v8019_v10 = vpop.f32.mrb[67].mxu1 }
 0x4d7   : > { %v11513_v14 = vadd.f32 %v8017_v24, %v7905_v13  ;;  %v8020_v0 = vadd.f32 %v8019_v10, %v8018_v59  ;;  %8448 = vmatmul.mubr.bf16.vlgmr.msra.gmra.mrb[144].mxu0 %v5076_v53  ;;  %v5059_v24 = vld [vmem:[#allocation2 + $0x149] sm:$0xff]  ;;  %v5060_v59 = vld [vmem:[#allocation2 + $0x151] sm:$0xff] }
 0x4d8   : > { %6303 = vmatmul.mubr.bf16.gmra.mrb[172].mxu1 %v4994_v11  ;;  %8451 = vmatprep.mubr.bf16.mxu0 %v5077_v22 }
 0x4d9   : > { %v11515_v63 = vadd.f32 %v8020_v0, %v7908_v38 }
 0x4da   : > { %v7915_v31 = vpop.f32.mrb[40].mxu0 }
 0x4db   : > { %v8021_v42 = vpop.f32.mrb[68].mxu1  ;;  %v7916_v56 = vpop.f32.mrb[41].mxu0 }
 0x4dc   : > { %v7917_v49 = vadd.f32 %v7916_v56, %v7915_v31  ;;  %v8022_v32 = vpop.f32.mrb[69].mxu1  ;;  %v7918_v20 = vpop.f32.mrb[42].mxu0 }
 0x4dd   : > { %v8023_v61 = vadd.f32 %v8022_v32, %v8021_v42  ;;  %v8024_v4 = vpop.f32.mrb[70].mxu1  ;;  %v7919_v7 = vpop.f32.mrb[43].mxu0  ;;  %v5083_v42 = vpack.c.bf16 %v5060_v59, %v5059_v24  ;;  %v5061_v32 = vld [vmem:[#allocation2 + $0x169] sm:$0xff] }
 0x4de   : > { %v7920_v17 = vadd.f32 %v7919_v7, %v7918_v20  ;;  %v8025_v18 = vpop.f32.mrb[71].mxu1  ;;  %v5062_v20 = vld [vmem:[#allocation2 + $0x171] sm:$0xff]  ;;  %v5063_v7 = vld [vmem:[#allocation2 + $0x189] sm:$0xff] }
 0x4df   : > { %v11517_v57 = vadd.f32 %v8023_v61, %v7911_v28  ;;  %v8026_v6 = vadd.f32 %v8025_v18, %v8024_v4  ;;  %8452 = vmatmul.mubr.bf16.gmra.mrb[148].mxu0 %v5078_v26  ;;  %v5057_v28 = vld [vmem:[#allocation2 + $0x129] sm:$0xff]  ;;  %v5064_v26 = vld [vmem:[#allocation2 + $0x191] sm:$0xff]  ;;  %v5084_v21 = vpack.c.bf16 %v5062_v20, %v5061_v32 }
 0x4e0   : > { %8455 = vmatprep.mubr.bf16.mxu0 %v5079_v37  ;;  %v5082_v31 = vpack.c.bf16 %v5058_v39, %v5057_v28  ;;  %v5085_v1 = vpack.c.bf16 %v5064_v26, %v5063_v7 }
 0x4e1   : > { %v11519_v3 = vadd.f32 %v8026_v6, %v7914_v46 }
 0x4e2   : > { %v7921_v13 = vpop.f32.mrb[44].mxu0 }
 0x4e3   : > { %v8027_v33 = vpop.f32.mrb[72].mxu1  ;;  %v7922_v36 = vpop.f32.mrb[45].mxu0 }
 0x4e4   : > { %v7923_v51 = vadd.f32 %v7922_v36, %v7921_v13  ;;  %v8028_v38 = vpop.f32.mrb[73].mxu1  ;;  %v7924_v47 = vpop.f32.mrb[46].mxu0 }
 0x4e5   : > { %v8029_v19 = vadd.f32 %v8028_v38, %v8027_v33  ;;  %v8030_v43 = vpop.f32.mrb[74].mxu1  ;;  %v7925_v8 = vpop.f32.mrb[47].mxu0 }
 0x4e6   : > { %v7926_v40 = vadd.f32 %v7925_v8, %v7924_v47  ;;  %v8031_v2 = vpop.f32.mrb[75].mxu1 }
 0x4e7   : > { %v11521_v29 = vadd.f32 %v8029_v19, %v7917_v49  ;;  %v8032_v12 = vadd.f32 %v8031_v2, %v8030_v43  ;;  %8456 = vmatmul.mubr.bf16.gmra.mrb[152].mxu0 %v5080_v25  ;;  %v5065_v19 = vld [vmem:[#allocation2 + $0x1a9] sm:$0xff]  ;;  %v5066_v43 = vld [vmem:[#allocation2 + $0x1b1] sm:$0xff] }
 0x4e8   : > { %8459 = vmatprep.mubr.bf16.mxu0 %v5081_v23  ;;  %v5068_v2 = vld [vmem:[#allocation2 + $0x1d1] sm:$0xff] }
 0x4e9   : > { %v11523_v27 = vadd.f32 %v8032_v12, %v7920_v17 }
 0x4ea   : > { %v7927_v16 = vpop.f32.mrb[48].mxu0 }
 0x4eb   : > { %v8033_v41 = vpop.f32.mrb[76].mxu1  ;;  %v7928_v11 = vpop.f32.mrb[49].mxu0 }
 0x4ec   : > { %v7929_v55 = vadd.f32 %v7928_v11, %v7927_v16  ;;  %v8034_v53 = vpop.f32.mrb[77].mxu1  ;;  %v7930_v46 = vpop.f32.mrb[50].mxu0  ;;  %v5086_v11 = vpack.c.bf16 %v5066_v43, %v5065_v19 }
 0x4ed   : > { %v8035_v10 = vadd.f32 %v8034_v53, %v8033_v41  ;;  %v8036_v22 = vpop.f32.mrb[78].mxu1  ;;  %v7931_v0 = vpop.f32.mrb[51].mxu0 }
 0x4ee   : > { %v7932_v35 = vadd.f32 %v7931_v0, %v7930_v46  ;;  %v8037_v45 = vpop.f32.mrb[79].mxu1  ;;  %v5069_v0 = vld [vmem:[#allocation2 + $0x1e9] sm:$0xff] }
 0x4ef   : > { %v11525_v56 = vadd.f32 %v8035_v10, %v7923_v51  ;;  %v8038_v54 = vadd.f32 %v8037_v45, %v8036_v22  ;;  %8460 = vmatmul.mubr.bf16.gmra.mrb[156].mxu0 %v5082_v31  ;;  %v5070_v31 = vld [vmem:[#allocation2 + $0x1f1] sm:$0xff] }
 0x4f0   : > { %8463 = vmatprep.mubr.bf16.mxu0 %v5083_v42 }
 0x4f1   : > { %v11527_v52 = vadd.f32 %v8038_v54, %v7926_v40  ;;  %v5067_v40 = vld [vmem:[#allocation2 + $0x1c9] sm:$0xff] }
 0x4f2   : > { %v7933_v49 = vpop.f32.mrb[52].mxu0 }
 0x4f3   : > { %v8039_v61 = vpop.f32.mrb[80].mxu1  ;;  %v7934_v4 = vpop.f32.mrb[53].mxu0 }
 0x4f4   : > { %v7935_v17 = vadd.f32 %v7934_v4, %v7933_v49  ;;  %v8040_v18 = vpop.f32.mrb[81].mxu1  ;;  %v7936_v37 = vpop.f32.mrb[54].mxu0  ;;  %v5088_v4 = vpack.c.bf16 %v5070_v31, %v5069_v0 }
 0x4f5   : > { %v8041_v6 = vadd.f32 %v8040_v18, %v8039_v61  ;;  %v8042_v13 = vpop.f32.mrb[82].mxu1  ;;  %v7937_v50 = vpop.f32.mrb[55].mxu0 }
 0x4f6   : > { %v7938_v33 = vadd.f32 %v7937_v50, %v7936_v37  ;;  %v8043_v36 = vpop.f32.mrb[83].mxu1  ;;  %v5073_v37 = vld [vmem:[#allocation2 + $0x229] sm:$0xff] }
 0x4f7   : > { %v11529_v48 = vadd.f32 %v8041_v6, %v7929_v55  ;;  %v8044_v51 = vadd.f32 %v8043_v36, %v8042_v13  ;;  %8464 = vmatmul.mubr.bf16.gmra.mrb[160].mxu0 %v5084_v21  ;;  %v5087_v55 = vpack.c.bf16 %v5068_v2, %v5067_v40  ;;  %v5074_v6 = vld [vmem:[#allocation2 + $0x231] sm:$0xff] }
 0x4f8   : > { %8467 = vmatprep.mubr.bf16.mxu0 %v5085_v1  ;;  %v5090_v36 = vpack.c.bf16 %v5074_v6, %v5073_v37 }
 0x4f9   : > { %v11531_v38 = vadd.f32 %v8044_v51, %v7932_v35 }
 0x4fa   : > { %v7939_v47 = vpop.f32.mrb[56].mxu0 }
 0x4fb   : > { %v8045_v8 = vpop.f32.mrb[84].mxu1  ;;  %v7940_v25 = vpop.f32.mrb[57].mxu0 }
 0x4fc   : > { %v7941_v23 = vadd.f32 %v7940_v25, %v7939_v47  ;;  %v8046_v12 = vpop.f32.mrb[85].mxu1  ;;  %v7942_v16 = vpop.f32.mrb[58].mxu0 }
 0x4fd   : > { %v8047_v28 = vadd.f32 %v8046_v12, %v8045_v8  ;;  %v8048_v39 = vpop.f32.mrb[86].mxu1  ;;  %v7943_v41 = vpop.f32.mrb[59].mxu0 }
 0x4fe   : > { %v7944_v24 = vadd.f32 %v7943_v41, %v7942_v16  ;;  %v8049_v59 = vpop.f32.mrb[87].mxu1 }
 0x4ff   : > { %v11533_v53 = vadd.f32 %v8047_v28, %v7935_v17  ;;  %v8050_v46 = vadd.f32 %v8049_v59, %v8048_v39  ;;  %8468 = vmatmul.mubr.bf16.gmra.mrb[164].mxu0 %v5086_v11 }
 0x500   : > { %8471 = vmatprep.mubr.bf16.mxu0 %v5087_v55 }
 0x501   : > { %v11535_v10 = vadd.f32 %v8050_v46, %v7938_v33 }
 0x502   : > { %v7945_v22 = vpop.f32.mrb[60].mxu0 }
 0x503   : > { %v8051_v35 = vpop.f32.mrb[88].mxu1  ;;  %v7946_v45 = vpop.f32.mrb[61].mxu0 }
 0x504   : > { %v7947_v42 = vadd.f32 %v7946_v45, %v7945_v22  ;;  %v8052_v54 = vpop.f32.mrb[89].mxu1  ;;  %v7948_v49 = vpop.f32.mrb[62].mxu0 }
 0x505   : > { %v8053_v32 = vadd.f32 %v8052_v54, %v8051_v35  ;;  %v8054_v20 = vpop.f32.mrb[90].mxu1  ;;  %v7949_v61 = vpop.f32.mrb[63].mxu0 }
 0x506   : > { %v7950_v7 = vadd.f32 %v7949_v61, %v7948_v49  ;;  %v8055_v26 = vpop.f32.mrb[91].mxu1 }
 0x507   : > { %v11537_v17 = vadd.f32 %v8053_v32, %v7941_v23  ;;  %v8056_v18 = vadd.f32 %v8055_v26, %v8054_v20  ;;  %8472 = vmatmul.mubr.bf16.gmra.mrb[168].mxu0 %v5088_v4 }
 0x508   : > { %8475 = vmatprep.mubr.bf16.mxu0 %v11500_v60 }
 0x509   : > { %v11540_v13 = vadd.f32 %v8056_v18, %v7944_v24 }
 0x50a   : > { %v7951_v50 = vpop.f32.mrb[64].mxu0 }
 0x50b   : > { %v8057_v21 = vpop.f32.mrb[92].mxu1  ;;  %v7952_v33 = vpop.f32.mrb[65].mxu0 }
 0x50c   : > { %v7953_v1 = vadd.f32 %v7952_v33, %v7951_v50  ;;  %v8058_v51 = vpop.f32.mrb[93].mxu1  ;;  %v7954_v47 = vpop.f32.mrb[66].mxu0 }
 0x50d   : > { %v8059_v19 = vadd.f32 %v8058_v51, %v8057_v21  ;;  %v8060_v43 = vpop.f32.mrb[94].mxu1  ;;  %v7955_v8 = vpop.f32.mrb[67].mxu0 }
 0x50e   : > { %v7956_v25 = vadd.f32 %v7955_v8, %v7954_v47  ;;  %v8061_v40 = vpop.f32.mrb[95].mxu1 }
 0x50f   : > { %v11542_v2 = vadd.f32 %v8059_v19, %v7947_v42  ;;  %v8062_v23 = vadd.f32 %v8061_v40, %v8060_v43  ;;  %8476 = vmatmul.mubr.bf16.gmra.mrb[172].mxu0 %v5090_v36 }
 0x511   : > { %v11544_v60 = vadd.f32 %v8062_v23, %v7950_v7 }
 0x512   : > { %v7957_v12 = vpop.f32.mrb[68].mxu0 }
 0x513   : > { %v8063_v16 = vpop.f32.mrb[96].mxu1  ;;  %v7958_v28 = vpop.f32.mrb[69].mxu0 }
 0x514   : > { %v7959_v39 = vadd.f32 %v7958_v28, %v7957_v12  ;;  %v8064_v41 = vpop.f32.mrb[97].mxu1  ;;  %v7960_v11 = vpop.f32.mrb[70].mxu0 }
 0x515   : > { %v8065_v24 = vadd.f32 %v8064_v41, %v8063_v16  ;;  %v8066_v59 = vpop.f32.mrb[98].mxu1  ;;  %v7961_v55 = vpop.f32.mrb[71].mxu0 }
 0x516   : > { %v7962_v46 = vadd.f32 %v7961_v55, %v7960_v11  ;;  %v8067_v22 = vpop.f32.mrb[99].mxu1 }
 0x517   : > { %v11546_v0 = vadd.f32 %v8065_v24, %v7953_v1  ;;  %v8068_v31 = vadd.f32 %v8067_v22, %v8066_v59 }
 0x519   : > { %v11548_v35 = vadd.f32 %v8068_v31, %v7956_v25 }
 0x51a   : > { %v7963_v45 = vpop.f32.mrb[72].mxu0 }
 0x51b   : > { %v8069_v42 = vpop.f32.mrb[100].mxu1  ;;  %v7964_v54 = vpop.f32.mrb[73].mxu0 }
 0x51c   : > { %v7965_v49 = vadd.f32 %v7964_v54, %v7963_v45  ;;  %v8070_v32 = vpop.f32.mrb[101].mxu1  ;;  %v7966_v20 = vpop.f32.mrb[74].mxu0 }
 0x51d   : > { %v8071_v61 = vadd.f32 %v8070_v32, %v8069_v42  ;;  %v8072_v4 = vpop.f32.mrb[102].mxu1  ;;  %v7967_v7 = vpop.f32.mrb[75].mxu0 }
 0x51e   : > { %v7968_v26 = vadd.f32 %v7967_v7, %v7966_v20  ;;  %v8073_v18 = vpop.f32.mrb[103].mxu1 }
 0x51f   : > { %v11550_v37 = vadd.f32 %v8071_v61, %v7959_v39  ;;  %v8074_v6 = vadd.f32 %v8073_v18, %v8072_v4 }
 0x521   : > { %v11552_v50 = vadd.f32 %v8074_v6, %v7962_v46 }
 0x522   : > { %v7969_v21 = vpop.f32.mrb[76].mxu0 }
 0x523   : > { %v8075_v33 = vpop.f32.mrb[104].mxu1  ;;  %v7970_v36 = vpop.f32.mrb[77].mxu0 }
 0x524   : > { %v7971_v1 = vadd.f32 %v7970_v36, %v7969_v21  ;;  %v8076_v51 = vpop.f32.mrb[105].mxu1  ;;  %v7972_v47 = vpop.f32.mrb[78].mxu0 }
 0x525   : > { %v8077_v19 = vadd.f32 %v8076_v51, %v8075_v33  ;;  %v8078_v43 = vpop.f32.mrb[106].mxu1  ;;  %v7973_v8 = vpop.f32.mrb[79].mxu0 }
 0x526   : > { %v7974_v25 = vadd.f32 %v7973_v8, %v7972_v47  ;;  %v8079_v40 = vpop.f32.mrb[107].mxu1 }
 0x527   : > { %v11554_v23 = vadd.f32 %v8077_v19, %v7965_v49  ;;  %v8080_v12 = vadd.f32 %v8079_v40, %v8078_v43 }
 0x529   : > { %v11556_v16 = vadd.f32 %v8080_v12, %v7968_v26 }
 0x52a   : > { %v8103_v28 = vpop.f32.mrb[80].mxu0 }
 0x52b   : > { %v8081_v39 = vpop.f32.mrb[108].mxu1  ;;  %v8104_v41 = vpop.f32.mrb[81].mxu0 }
 0x52c   : > { %v8082_v11 = vpop.f32.mrb[109].mxu1  ;;  %v8105_v24 = vadd.f32 %v8104_v41, %v8103_v28  ;;  %v8106_v59 = vpop.f32.mrb[82].mxu0 }
 0x52d   : > { %v8083_v55 = vadd.f32 %v8082_v11, %v8081_v39  ;;  %v8084_v46 = vpop.f32.mrb[110].mxu1  ;;  %v8107_v22 = vpop.f32.mrb[83].mxu0 }
 0x52e   : > { %v6024_v31 = vadd.f32 %v8105_v24, %v11487_v9  ;;  %v8085_v45 = vpop.f32.mrb[111].mxu1  ;;  %v8108_v42 = vadd.f32 %v8107_v22, %v8106_v59 }
 0x52f   : > { %v11559_v54 = vadd.f32 %v8083_v55, %v7971_v1  ;;  %v8086_v49 = vadd.f32 %v8085_v45, %v8084_v46 }
 0x530   : > { %v6027_v32 = vadd.f32 %v8108_v42, %v11492_v44 }
 0x531   : > { %v11562_v20 = vadd.f32 %v8086_v49, %v7974_v25 }
 0x532   : > { %v8109_v61 = vpop.f32.mrb[84].mxu0 }
 0x533   : > { %v8215_v4 = vpop.f32.mrb[112].mxu1  ;;  %v8110_v7 = vpop.f32.mrb[85].mxu0 }
 0x534   : > { %v8111_v26 = vadd.f32 %v8110_v7, %v8109_v61  ;;  %v8216_v18 = vpop.f32.mrb[113].mxu1  ;;  %v8112_v6 = vpop.f32.mrb[86].mxu0 }
 0x535   : > { %v8217_v21 = vadd.f32 %v8216_v18, %v8215_v4  ;;  %v8218_v33 = vpop.f32.mrb[114].mxu1  ;;  %v8113_v36 = vpop.f32.mrb[87].mxu0 }
 0x536   : > { %v6032_v9 = vadd.f32 %v8111_v26, %v11494_v30  ;;  %v8114_v51 = vadd.f32 %v8113_v36, %v8112_v6  ;;  %v8219_v47 = vpop.f32.mrb[115].mxu1 }
 0x537   : > { %v8220_v1 = vadd.f32 %v8219_v47, %v8218_v33  ;;  %v11565_v19 = vadd.f32 %v8217_v21, %v6024_v31 }
 0x538   : > { %v6035_v44 = vadd.f32 %v8114_v51, %v11498_v58 }
 0x539   : > { %v11568_v43 = vadd.f32 %v8220_v1, %v6027_v32 }
 0x53a   : > { %v8115_v8 = vpop.f32.mrb[88].mxu0 }
 0x53b   : > { %v8221_v25 = vpop.f32.mrb[116].mxu1  ;;  %v8116_v40 = vpop.f32.mrb[89].mxu0 }
 0x53c   : > { %v8117_v12 = vadd.f32 %v8116_v40, %v8115_v8  ;;  %v8222_v28 = vpop.f32.mrb[117].mxu1  ;;  %v8118_v39 = vpop.f32.mrb[90].mxu0 }
 0x53d   : > { %v8223_v41 = vadd.f32 %v8222_v28, %v8221_v25  ;;  %v8224_v11 = vpop.f32.mrb[118].mxu1  ;;  %v8119_v24 = vpop.f32.mrb[91].mxu0 }
 0x53e   : > { %v6040_v30 = vadd.f32 %v8117_v12, %v11502_v5  ;;  %v8120_v59 = vadd.f32 %v8119_v24, %v8118_v39  ;;  %v8225_v55 = vpop.f32.mrb[119].mxu1 }
 0x53f   : > { %v8226_v46 = vadd.f32 %v8225_v55, %v8224_v11  ;;  %v11571_v22 = vadd.f32 %v8223_v41, %v6032_v9 }
 0x540   : > { %v6043_v58 = vadd.f32 %v8120_v59, %v11506_v34 }
 0x541   : > { %v11574_v31 = vadd.f32 %v8226_v46, %v6035_v44 }
 0x542   : > { %v8121_v45 = vpop.f32.mrb[92].mxu0 }
 0x543   : > { %v8227_v42 = vpop.f32.mrb[120].mxu1  ;;  %v8122_v49 = vpop.f32.mrb[93].mxu0 }
 0x544   : > { %v8123_v32 = vadd.f32 %v8122_v49, %v8121_v45  ;;  %v8228_v61 = vpop.f32.mrb[121].mxu1  ;;  %v8124_v4 = vpop.f32.mrb[94].mxu0 }
 0x545   : > { %v8229_v7 = vadd.f32 %v8228_v61, %v8227_v42  ;;  %v8230_v26 = vpop.f32.mrb[122].mxu1  ;;  %v8125_v18 = vpop.f32.mrb[95].mxu0 }
 0x546   : > { %v6048_v5 = vadd.f32 %v8123_v32, %v11508_v62  ;;  %v8126_v6 = vadd.f32 %v8125_v18, %v8124_v4  ;;  %v8231_v21 = vpop.f32.mrb[123].mxu1 }
 0x547   : > { %v8232_v33 = vadd.f32 %v8231_v21, %v8230_v26  ;;  %v11577_v36 = vadd.f32 %v8229_v7, %v6040_v30 }
 0x548   : > { %v6051_v34 = vadd.f32 %v8126_v6, %v11511_v15 }
 0x549   : > { %v11580_v9 = vadd.f32 %v8232_v33, %v6043_v58 }
 0x54a   : > { %v8127_v51 = vpop.f32.mrb[96].mxu0 }
 0x54b   : > { %v8233_v47 = vpop.f32.mrb[124].mxu1  ;;  %v8128_v1 = vpop.f32.mrb[97].mxu0 }
 0x54c   : > { %v8129_v44 = vadd.f32 %v8128_v1, %v8127_v51  ;;  %v8234_v8 = vpop.f32.mrb[125].mxu1  ;;  %v8130_v25 = vpop.f32.mrb[98].mxu0 }
 0x54d   : > { %v8235_v40 = vadd.f32 %v8234_v8, %v8233_v47  ;;  %v8236_v12 = vpop.f32.mrb[126].mxu1  ;;  %v8131_v28 = vpop.f32.mrb[99].mxu0 }
 0x54e   : > { %v6056_v62 = vadd.f32 %v8129_v44, %v11513_v14  ;;  %v8132_v39 = vadd.f32 %v8131_v28, %v8130_v25  ;;  %v8237_v41 = vpop.f32.mrb[127].mxu1 }
 0x54f   : > { %v8238_v11 = vadd.f32 %v8237_v41, %v8236_v12  ;;  %v11583_v24 = vadd.f32 %v8235_v40, %v6048_v5 }
 0x550   : > { %v6059_v15 = vadd.f32 %v8132_v39, %v11515_v63 }
 0x551   : > { %v11586_v30 = vadd.f32 %v8238_v11, %v6051_v34 }
 0x552   : > { %v8133_v59 = vpop.f32.mrb[100].mxu0 }
 0x553   : > { %v8239_v55 = vpop.f32.mrb[128].mxu1  ;;  %v8134_v46 = vpop.f32.mrb[101].mxu0 }
 0x554   : > { %v8135_v58 = vadd.f32 %v8134_v46, %v8133_v59  ;;  %v8240_v45 = vpop.f32.mrb[129].mxu1  ;;  %v8136_v42 = vpop.f32.mrb[102].mxu0 }
 0x555   : > { %v8241_v49 = vadd.f32 %v8240_v45, %v8239_v55  ;;  %v8242_v32 = vpop.f32.mrb[130].mxu1  ;;  %v8137_v61 = vpop.f32.mrb[103].mxu0 }
 0x556   : > { %v6064_v14 = vadd.f32 %v8135_v58, %v11517_v57  ;;  %v8138_v4 = vadd.f32 %v8137_v61, %v8136_v42  ;;  %v8243_v7 = vpop.f32.mrb[131].mxu1 }
 0x557   : > { %v8244_v26 = vadd.f32 %v8243_v7, %v8242_v32  ;;  %v11589_v18 = vadd.f32 %v8241_v49, %v6056_v62 }
 0x558   : > { %v6067_v63 = vadd.f32 %v8138_v4, %v11519_v3 }
 0x559   : > { %v11592_v5 = vadd.f32 %v8244_v26, %v6059_v15 }
 0x55a   : > { %v8139_v6 = vpop.f32.mrb[104].mxu0 }
 0x55b   : > { %v8245_v21 = vpop.f32.mrb[132].mxu1  ;;  %v8140_v33 = vpop.f32.mrb[105].mxu0 }
 0x55c   : > { %v8141_v34 = vadd.f32 %v8140_v33, %v8139_v6  ;;  %v8246_v51 = vpop.f32.mrb[133].mxu1  ;;  %v8142_v47 = vpop.f32.mrb[106].mxu0 }
 0x55d   : > { %v8247_v1 = vadd.f32 %v8246_v51, %v8245_v21  ;;  %v8248_v44 = vpop.f32.mrb[134].mxu1  ;;  %v8143_v8 = vpop.f32.mrb[107].mxu0 }
 0x55e   : > { %v6072_v57 = vadd.f32 %v8141_v34, %v11521_v29  ;;  %v8144_v25 = vadd.f32 %v8143_v8, %v8142_v47  ;;  %v8249_v40 = vpop.f32.mrb[135].mxu1 }
 0x55f   : > { %v8250_v12 = vadd.f32 %v8249_v40, %v8248_v44  ;;  %v11595_v28 = vadd.f32 %v8247_v1, %v6064_v14 }
 0x560   : > { %v6075_v3 = vadd.f32 %v8144_v25, %v11523_v27 }
 0x561   : > { %v11598_v62 = vadd.f32 %v8250_v12, %v6067_v63 }
 0x562   : > { %v8145_v39 = vpop.f32.mrb[108].mxu0 }
 0x563   : > { %v8251_v41 = vpop.f32.mrb[136].mxu1  ;;  %v8146_v11 = vpop.f32.mrb[109].mxu0 }
 0x564   : > { %v8147_v15 = vadd.f32 %v8146_v11, %v8145_v39  ;;  %v8252_v59 = vpop.f32.mrb[137].mxu1  ;;  %v8148_v55 = vpop.f32.mrb[110].mxu0 }
 0x565   : > { %v8253_v46 = vadd.f32 %v8252_v59, %v8251_v41  ;;  %v8254_v58 = vpop.f32.mrb[138].mxu1  ;;  %v8149_v45 = vpop.f32.mrb[111].mxu0 }
 0x566   : > { %v6080_v29 = vadd.f32 %v8147_v15, %v11525_v56  ;;  %v8150_v42 = vadd.f32 %v8149_v45, %v8148_v55  ;;  %v8255_v49 = vpop.f32.mrb[139].mxu1 }
 0x567   : > { %v8256_v32 = vadd.f32 %v8255_v49, %v8254_v58  ;;  %v11601_v61 = vadd.f32 %v8253_v46, %v6072_v57 }
 0x568   : > { %v6083_v27 = vadd.f32 %v8150_v42, %v11527_v52 }
 0x569   : > { %v11604_v14 = vadd.f32 %v8256_v32, %v6075_v3 }
 0x56a   : > { %v8151_v4 = vpop.f32.mrb[112].mxu0 }
 0x56b   : > { %v8257_v7 = vpop.f32.mrb[140].mxu1  ;;  %v8152_v26 = vpop.f32.mrb[113].mxu0 }
 0x56c   : > { %v8153_v63 = vadd.f32 %v8152_v26, %v8151_v4  ;;  %v8258_v6 = vpop.f32.mrb[141].mxu1  ;;  %v8154_v21 = vpop.f32.mrb[114].mxu0 }
 0x56d   : > { %v8259_v33 = vadd.f32 %v8258_v6, %v8257_v7  ;;  %v8260_v34 = vpop.f32.mrb[142].mxu1  ;;  %v8155_v51 = vpop.f32.mrb[115].mxu0 }
 0x56e   : > { %v6088_v56 = vadd.f32 %v8153_v63, %v11529_v48  ;;  %v8156_v47 = vadd.f32 %v8155_v51, %v8154_v21  ;;  %v8261_v1 = vpop.f32.mrb[143].mxu1 }
 0x56f   : > { %v8262_v44 = vadd.f32 %v8261_v1, %v8260_v34  ;;  %v11607_v8 = vadd.f32 %v8259_v33, %v6080_v29 }
 0x570   : > { %v6091_v52 = vadd.f32 %v8156_v47, %v11531_v38 }
 0x571   : > { %v11610_v57 = vadd.f32 %v8262_v44, %v6083_v27 }
 0x572   : > { %v8157_v25 = vpop.f32.mrb[116].mxu0 }
 0x573   : > { %v8263_v40 = vpop.f32.mrb[144].mxu1  ;;  %v8158_v12 = vpop.f32.mrb[117].mxu0 }
 0x574   : > { %v8159_v3 = vadd.f32 %v8158_v12, %v8157_v25  ;;  %v8264_v39 = vpop.f32.mrb[145].mxu1  ;;  %v8160_v41 = vpop.f32.mrb[118].mxu0 }
 0x575   : > { %v8265_v11 = vadd.f32 %v8264_v39, %v8263_v40  ;;  %v8266_v15 = vpop.f32.mrb[146].mxu1  ;;  %v8161_v59 = vpop.f32.mrb[119].mxu0 }
 0x576   : > { %v6096_v48 = vadd.f32 %v8159_v3, %v11533_v53  ;;  %v8162_v55 = vadd.f32 %v8161_v59, %v8160_v41  ;;  %v8267_v46 = vpop.f32.mrb[147].mxu1 }
 0x577   : > { %v8268_v58 = vadd.f32 %v8267_v46, %v8266_v15  ;;  %v11613_v45 = vadd.f32 %v8265_v11, %v6088_v56 }
 0x578   : > { %v6099_v38 = vadd.f32 %v8162_v55, %v11535_v10 }
 0x579   : > { %v11616_v29 = vadd.f32 %v8268_v58, %v6091_v52 }
 0x57a   : > { %v8163_v42 = vpop.f32.mrb[120].mxu0 }
 0x57b   : > { %v8269_v49 = vpop.f32.mrb[148].mxu1  ;;  %v8164_v32 = vpop.f32.mrb[121].mxu0 }
 0x57c   : > { %v8165_v27 = vadd.f32 %v8164_v32, %v8163_v42  ;;  %v8270_v4 = vpop.f32.mrb[149].mxu1  ;;  %v8166_v7 = vpop.f32.mrb[122].mxu0 }
 0x57d   : > { %v8271_v26 = vadd.f32 %v8270_v4, %v8269_v49  ;;  %v8272_v63 = vpop.f32.mrb[150].mxu1  ;;  %v8167_v6 = vpop.f32.mrb[123].mxu0 }
 0x57e   : > { %v6104_v53 = vadd.f32 %v8165_v27, %v11537_v17  ;;  %v8168_v21 = vadd.f32 %v8167_v6, %v8166_v7  ;;  %v8273_v33 = vpop.f32.mrb[151].mxu1 }
 0x57f   : > { %v8274_v34 = vadd.f32 %v8273_v33, %v8272_v63  ;;  %v11619_v51 = vadd.f32 %v8271_v26, %v6096_v48 }
 0x580   : > { %v6107_v10 = vadd.f32 %v8168_v21, %v11540_v13 }
 0x581   : > { %v11622_v56 = vadd.f32 %v8274_v34, %v6099_v38 }
 0x582   : > { %v8169_v47 = vpop.f32.mrb[124].mxu0 }
 0x583   : > { %v8275_v1 = vpop.f32.mrb[152].mxu1  ;;  %v8170_v44 = vpop.f32.mrb[125].mxu0 }
 0x584   : > { %v8171_v52 = vadd.f32 %v8170_v44, %v8169_v47  ;;  %v8276_v25 = vpop.f32.mrb[153].mxu1  ;;  %v8172_v40 = vpop.f32.mrb[126].mxu0 }
 0x585   : > { %v8277_v12 = vadd.f32 %v8276_v25, %v8275_v1  ;;  %v8278_v3 = vpop.f32.mrb[154].mxu1  ;;  %v8173_v39 = vpop.f32.mrb[127].mxu0 }
 0x586   : > { %v6112_v17 = vadd.f32 %v8171_v52, %v11542_v2  ;;  %v8174_v41 = vadd.f32 %v8173_v39, %v8172_v40  ;;  %v8279_v11 = vpop.f32.mrb[155].mxu1 }
 0x587   : > { %v8280_v15 = vadd.f32 %v8279_v11, %v8278_v3  ;;  %v11625_v59 = vadd.f32 %v8277_v12, %v6104_v53 }
 0x588   : > { %v6115_v13 = vadd.f32 %v8174_v41, %v11544_v60 }
 0x589   : > { %v11628_v48 = vadd.f32 %v8280_v15, %v6107_v10 }
 0x58a   : > { %v8175_v55 = vpop.f32.mrb[128].mxu0 }
 0x58b   : > { %v8281_v46 = vpop.f32.mrb[156].mxu1  ;;  %v8176_v58 = vpop.f32.mrb[129].mxu0 }
 0x58c   : > { %v8177_v38 = vadd.f32 %v8176_v58, %v8175_v55  ;;  %v8282_v42 = vpop.f32.mrb[157].mxu1  ;;  %v8178_v49 = vpop.f32.mrb[130].mxu0 }
 0x58d   : > { %v8283_v32 = vadd.f32 %v8282_v42, %v8281_v46  ;;  %v8284_v27 = vpop.f32.mrb[158].mxu1  ;;  %v8179_v4 = vpop.f32.mrb[131].mxu0 }
 0x58e   : > { %v6120_v2 = vadd.f32 %v8177_v38, %v11546_v0  ;;  %v8180_v7 = vadd.f32 %v8179_v4, %v8178_v49  ;;  %v8285_v26 = vpop.f32.mrb[159].mxu1 }
 0x58f   : > { %v8286_v63 = vadd.f32 %v8285_v26, %v8284_v27  ;;  %v11631_v6 = vadd.f32 %v8283_v32, %v6112_v17 }
 0x590   : > { %v6123_v60 = vadd.f32 %v8180_v7, %v11548_v35 }
 0x591   : > { %v11634_v53 = vadd.f32 %v8286_v63, %v6115_v13 }
 0x592   : > { %v8181_v21 = vpop.f32.mrb[132].mxu0 }
 0x593   : > { %v8287_v33 = vpop.f32.mrb[160].mxu1  ;;  %v8182_v34 = vpop.f32.mrb[133].mxu0 }
 0x594   : > { %v8183_v10 = vadd.f32 %v8182_v34, %v8181_v21  ;;  %v8288_v47 = vpop.f32.mrb[161].mxu1  ;;  %v8184_v1 = vpop.f32.mrb[134].mxu0 }
 0x595   : > { %v8289_v44 = vadd.f32 %v8288_v47, %v8287_v33  ;;  %v8290_v52 = vpop.f32.mrb[162].mxu1  ;;  %v8185_v25 = vpop.f32.mrb[135].mxu0 }
 0x596   : > { %v6128_v0 = vadd.f32 %v8183_v10, %v11550_v37  ;;  %v8186_v40 = vadd.f32 %v8185_v25, %v8184_v1  ;;  %v8291_v12 = vpop.f32.mrb[163].mxu1 }
 0x597   : > { %v8292_v3 = vadd.f32 %v8291_v12, %v8290_v52  ;;  %v11637_v39 = vadd.f32 %v8289_v44, %v6120_v2  ;;  %v11657_v12 = vld [vmem:[%s11814_s9] ss:$0 sm:$0xff] }
 0x598   : > { %v6131_v35 = vadd.f32 %v8186_v40, %v11552_v50 }
 0x599   : > { %v11640_v17 = vadd.f32 %v8292_v3, %v6123_v60 }
 0x59a   : > { %v8187_v41 = vpop.f32.mrb[136].mxu0 }
 0x59b   : > { %v8293_v11 = vpop.f32.mrb[164].mxu1  ;;  %v8188_v15 = vpop.f32.mrb[137].mxu0 }
 0x59c   : > { %v8189_v13 = vadd.f32 %v8188_v15, %v8187_v41  ;;  %v8294_v55 = vpop.f32.mrb[165].mxu1  ;;  %v8190_v46 = vpop.f32.mrb[138].mxu0 }
 0x59d   : > { %v8295_v58 = vadd.f32 %v8294_v55, %v8293_v11  ;;  %v8296_v38 = vpop.f32.mrb[166].mxu1  ;;  %v8191_v42 = vpop.f32.mrb[139].mxu0 }
 0x59e   : > { %v6136_v37 = vadd.f32 %v8189_v13, %v11554_v23  ;;  %v8192_v49 = vadd.f32 %v8191_v42, %v8190_v46  ;;  %v8297_v32 = vpop.f32.mrb[167].mxu1 }
 0x59f   : > { %v8298_v27 = vadd.f32 %v8297_v32, %v8296_v38  ;;  %v11643_v4 = vadd.f32 %v8295_v58, %v6128_v0 }
 0x5a0   : > { %v6139_v50 = vadd.f32 %v8192_v49, %v11556_v16 }
 0x5a1   : > { %v11646_v2 = vadd.f32 %v8298_v27, %v6131_v35 }
 0x5a2   : > { %v8193_v7 = vpop.f32.mrb[140].mxu0 }
 0x5a3   : > { %v8299_v26 = vpop.f32.mrb[168].mxu1  ;;  %v8194_v63 = vpop.f32.mrb[141].mxu0 }
 0x5a4   : > { %v8195_v60 = vadd.f32 %v8194_v63, %v8193_v7  ;;  %v8300_v21 = vpop.f32.mrb[169].mxu1  ;;  %v8196_v33 = vpop.f32.mrb[142].mxu0 }
 0x5a5   : > { %v8301_v34 = vadd.f32 %v8300_v21, %v8299_v26  ;;  %v8302_v10 = vpop.f32.mrb[170].mxu1  ;;  %v8197_v47 = vpop.f32.mrb[143].mxu0 }
 0x5a6   : > { %v6144_v23 = vadd.f32 %v8195_v60, %v11559_v54  ;;  %v8198_v1 = vadd.f32 %v8197_v47, %v8196_v33  ;;  %v8303_v44 = vpop.f32.mrb[171].mxu1  ;;  %v11663_v54 = vld [vmem:[%s11815_s10] ss:$0 sm:$0xff] }
 0x5a7   : > { %v8304_v52 = vadd.f32 %v8303_v44, %v8302_v10  ;;  %v11649_v25 = vadd.f32 %v8301_v34, %v6136_v37 }
 0x5a8   : > { %v6147_v16 = vadd.f32 %v8198_v1, %v11562_v20 }
 0x5a9   : > { %v11652_v0 = vadd.f32 %v8304_v52, %v6139_v50 }
 0x5aa   : > { %v8449_v40 = vpop.f32.mrb[144].mxu0 }
 0x5ab   : > { %v8305_v3 = vpop.f32.mrb[172].mxu1  ;;  %v6354_v35 = vadd.f32 %v8449_v40, %v11571_v22  ;;  %v6345_v41 = vpop.f32.mrb[145].mxu0 }
 0x5ac   : > { %v8306_v11 = vpop.f32.mrb[173].mxu1  ;;  %v6346_v20 = vadd.f32 %v6345_v41, %v11565_v19  ;;  %v8450_v15 = vpop.f32.mrb[146].mxu0 }
 0x5ad   : > { %v6481_v13 = vmul.f32 %v11657_v12, %v6354_v35  ;;  %v8307_v55 = vadd.f32 %v8306_v11, %v8305_v3  ;;  %v8308_v46 = vpop.f32.mrb[174].mxu1  ;;  %v6357_v58 = vadd.f32 %v8450_v15, %v11574_v31  ;;  %v6348_v38 = vpop.f32.mrb[147].mxu0 }
 0x5ae   : > { %v6479_v22 = vmul.f32 %v11657_v12, %v6346_v20  ;;  %v8309_v42 = vpop.f32.mrb[175].mxu1  ;;  %v6349_v37 = vadd.f32 %v6348_v38, %v11568_v43 }
 0x5af   : > { %v6520_v49 = vadd.f32 %v11663_v54, %v6481_v13  ;;  %v6482_v32 = vmul.f32 %v11657_v12, %v6357_v58  ;;  %v8310_v27 = vadd.f32 %v8309_v42, %v8308_v46  ;;  %v11672_v50 = vadd.f32 %v8307_v55, %v6144_v23 }
 0x5b0   : > { %v6518_v19 = vadd.f32 %v11663_v54, %v6479_v22  ;;  %v6480_v31 = vmul.f32 %v11657_v12, %v6349_v37 }
 0x5b1   : > { %v6552_v43 = vmax.f32 %v6520_v49, 0.0  ;;  %v6521_v7 = vadd.f32 %v11663_v54, %v6482_v32  ;;  %v11683_v26 = vadd.f32 %v8310_v27, %v6147_v16 }
 0x5b2   : > { %v6550_v63 = vmax.f32 %v6518_v19, 0.0  ;;  %v6519_v60 = vadd.f32 %v11663_v54, %v6480_v31  ;;  %v8453_v21 = vpop.f32.mrb[148].mxu0 }
 0x5b3   : > { %6584 = vst [vmem:[%s11678_s24 + $0x10] sm:$0xff] %v6552_v43  ;;  %v6553_v33 = vmax.f32 %v6521_v7, 0.0  ;;  %v6370_v34 = vadd.f32 %v8453_v21, %v11583_v24  ;;  %v6361_v10 = vpop.f32.mrb[149].mxu0 }
 0x5b4   : > { %6582 = vst [vmem:[%s11678_s24] sm:$0xff] %v6550_v63  ;;  %v6551_v47 = vmax.f32 %v6519_v60, 0.0  ;;  %v6362_v23 = vadd.f32 %v6361_v10, %v11577_v36  ;;  %v8454_v1 = vpop.f32.mrb[150].mxu0 }
 0x5b5   : > { %6585 = vst [vmem:[%s11678_s24 + $0x18] sm:$0xff] %v6553_v33  ;;  %v6485_v44 = vmul.f32 %v11657_v12, %v6370_v34  ;;  %v6373_v52 = vadd.f32 %v8454_v1, %v11586_v30  ;;  %v6364_v16 = vpop.f32.mrb[151].mxu0 }
 0x5b6   : > { %6583 = vst [vmem:[%s11678_s24 + $0x8] sm:$0xff] %v6551_v47  ;;  %v6483_v40 = vmul.f32 %v11657_v12, %v6362_v23  ;;  %v6365_v3 = vadd.f32 %v6364_v16, %v11580_v9 }
 0x5b7   : > { %v6524_v24 = vadd.f32 %v11663_v54, %v6485_v44  ;;  %v6486_v35 = vmul.f32 %v11657_v12, %v6373_v52 }
 0x5b8   : > { %v6522_v36 = vadd.f32 %v11663_v54, %v6483_v40  ;;  %v6484_v41 = vmul.f32 %v11657_v12, %v6365_v3 }
 0x5b9   : > { %v6556_v11 = vmax.f32 %v6524_v24, 0.0  ;;  %v6525_v20 = vadd.f32 %v11663_v54, %v6486_v35 }
 0x5ba   : > { %v6554_v30 = vmax.f32 %v6522_v36, 0.0  ;;  %v6523_v15 = vadd.f32 %v11663_v54, %v6484_v41  ;;  %v8457_v13 = vpop.f32.mrb[152].mxu0 }
 0x5bb   : > { %6588 = vst [vmem:[%s11678_s24 + $0x30] sm:$0xff] %v6556_v11  ;;  %v6557_v55 = vmax.f32 %v6525_v20, 0.0  ;;  %v6386_v9 = vadd.f32 %v8457_v13, %v11595_v28  ;;  %v6377_v46 = vpop.f32.mrb[153].mxu0 }
 0x5bc   : > { %6586 = vst [vmem:[%s11678_s24 + $0x20] sm:$0xff] %v6554_v30  ;;  %v6555_v58 = vmax.f32 %v6523_v15, 0.0  ;;  %v6378_v38 = vadd.f32 %v6377_v46, %v11589_v18  ;;  %v8458_v22 = vpop.f32.mrb[154].mxu0 }
 0x5bd   : > { %6589 = vst [vmem:[%s11678_s24 + $0x38] sm:$0xff] %v6557_v55  ;;  %v6489_v42 = vmul.f32 %v11657_v12, %v6386_v9  ;;  %v6389_v37 = vadd.f32 %v8458_v22, %v11598_v62  ;;  %v6380_v49 = vpop.f32.mrb[155].mxu0 }
 0x5be   : > { %6587 = vst [vmem:[%s11678_s24 + $0x28] sm:$0xff] %v6555_v58  ;;  %v6487_v32 = vmul.f32 %v11657_v12, %v6378_v38  ;;  %v6381_v27 = vadd.f32 %v6380_v49, %v11592_v5 }
 0x5bf   : > { %v6528_v28 = vadd.f32 %v11663_v54, %v6489_v42  ;;  %v6490_v19 = vmul.f32 %v11657_v12, %v6389_v37 }
 0x5c0   : > { %v6526_v18 = vadd.f32 %v11663_v54, %v6487_v32  ;;  %v6488_v31 = vmul.f32 %v11657_v12, %v6381_v27 }
 0x5c1   : > { %v6560_v43 = vmax.f32 %v6528_v28, 0.0  ;;  %v6529_v7 = vadd.f32 %v11663_v54, %v6490_v19 }
 0x5c2   : > { %v6558_v62 = vmax.f32 %v6526_v18, 0.0  ;;  %v6527_v63 = vadd.f32 %v11663_v54, %v6488_v31  ;;  %v8461_v60 = vpop.f32.mrb[156].mxu0 }
 0x5c3   : > { %6592 = vst [vmem:[%s11678_s24 + $0x50] sm:$0xff] %v6560_v43  ;;  %v6561_v21 = vmax.f32 %v6529_v7, 0.0  ;;  %v6402_v5 = vadd.f32 %v8461_v60, %v11607_v8  ;;  %v6393_v33 = vpop.f32.mrb[157].mxu0 }
 0x5c4   : > { %6590 = vst [vmem:[%s11678_s24 + $0x40] sm:$0xff] %v6558_v62  ;;  %v6559_v34 = vmax.f32 %v6527_v63, 0.0  ;;  %v6394_v10 = vadd.f32 %v6393_v33, %v11601_v61  ;;  %v8462_v47 = vpop.f32.mrb[158].mxu0 }
 0x5c5   : > { %6593 = vst [vmem:[%s11678_s24 + $0x58] sm:$0xff] %v6561_v21  ;;  %v6493_v23 = vmul.f32 %v11657_v12, %v6402_v5  ;;  %v6405_v1 = vadd.f32 %v8462_v47, %v11610_v57  ;;  %v6396_v44 = vpop.f32.mrb[159].mxu0 }
 0x5c6   : > { %6591 = vst [vmem:[%s11678_s24 + $0x48] sm:$0xff] %v6559_v34  ;;  %v6491_v52 = vmul.f32 %v11657_v12, %v6394_v10  ;;  %v6397_v16 = vadd.f32 %v6396_v44, %v11604_v14 }
 0x5c7   : > { %v6532_v8 = vadd.f32 %v11663_v54, %v6493_v23  ;;  %v6494_v40 = vmul.f32 %v11657_v12, %v6405_v1 }
 0x5c8   : > { %v6530_v61 = vadd.f32 %v11663_v54, %v6491_v52  ;;  %v6492_v3 = vmul.f32 %v11657_v12, %v6397_v16 }
 0x5c9   : > { %v6564_v24 = vmax.f32 %v6532_v8, 0.0  ;;  %v6533_v35 = vadd.f32 %v11663_v54, %v6494_v40 }
 0x5ca   : > { %v6562_v57 = vmax.f32 %v6530_v61, 0.0  ;;  %v6531_v36 = vadd.f32 %v11663_v54, %v6492_v3  ;;  %v8465_v41 = vpop.f32.mrb[160].mxu0 }
 0x5cb   : > { %6596 = vst [vmem:[%s11678_s24 + $0x70] sm:$0xff] %v6564_v24  ;;  %v6565_v11 = vmax.f32 %v6533_v35, 0.0  ;;  %v6418_v14 = vadd.f32 %v8465_v41, %v11619_v51  ;;  %v6409_v20 = vpop.f32.mrb[161].mxu0 }
 0x5cc   : > { %6594 = vst [vmem:[%s11678_s24 + $0x60] sm:$0xff] %v6562_v57  ;;  %v6563_v30 = vmax.f32 %v6531_v36, 0.0  ;;  %v6410_v15 = vadd.f32 %v6409_v20, %v11613_v45  ;;  %v8466_v13 = vpop.f32.mrb[162].mxu0 }
 0x5cd   : > { %6597 = vst [vmem:[%s11678_s24 + $0x78] sm:$0xff] %v6565_v11  ;;  %v6497_v55 = vmul.f32 %v11657_v12, %v6418_v14  ;;  %v6421_v9 = vadd.f32 %v8466_v13, %v11622_v56  ;;  %v6412_v46 = vpop.f32.mrb[163].mxu0 }
 0x5ce   : > { %6595 = vst [vmem:[%s11678_s24 + $0x68] sm:$0xff] %v6563_v30  ;;  %v6495_v58 = vmul.f32 %v11657_v12, %v6410_v15  ;;  %v6413_v38 = vadd.f32 %v6412_v46, %v11616_v29 }
 0x5cf   : > { %v6536_v51 = vadd.f32 %v11663_v54, %v6497_v55  ;;  %v6498_v22 = vmul.f32 %v11657_v12, %v6421_v9 }
 0x5d0   : > { %v6534_v45 = vadd.f32 %v11663_v54, %v6495_v58  ;;  %v6496_v42 = vmul.f32 %v11657_v12, %v6413_v38 }
 0x5d1   : > { %v6568_v37 = vmax.f32 %v6536_v51, 0.0  ;;  %v6537_v49 = vadd.f32 %v11663_v54, %v6498_v22 }
 0x5d2   : > { %v6566_v56 = vmax.f32 %v6534_v45, 0.0  ;;  %v6535_v32 = vadd.f32 %v11663_v54, %v6496_v42  ;;  %v8469_v27 = vpop.f32.mrb[164].mxu0 }
 0x5d3   : > { %6600 = vst [vmem:[%s11678_s24 + $0x90] sm:$0xff] %v6568_v37  ;;  %v6569_v28 = vmax.f32 %v6537_v49, 0.0  ;;  %v6434_v29 = vadd.f32 %v8469_v27, %v11631_v6  ;;  %v6425_v19 = vpop.f32.mrb[165].mxu0 }
 0x5d4   : > { %6598 = vst [vmem:[%s11678_s24 + $0x80] sm:$0xff] %v6566_v56  ;;  %v6567_v18 = vmax.f32 %v6535_v32, 0.0  ;;  %v6426_v31 = vadd.f32 %v6425_v19, %v11625_v59  ;;  %v8470_v43 = vpop.f32.mrb[166].mxu0 }
 0x5d5   : > { %6601 = vst [vmem:[%s11678_s24 + $0x98] sm:$0xff] %v6569_v28  ;;  %v6501_v7 = vmul.f32 %v11657_v12, %v6434_v29  ;;  %v6437_v62 = vadd.f32 %v8470_v43, %v11634_v53  ;;  %v6428_v63 = vpop.f32.mrb[167].mxu0 }
 0x5d6   : > { %6599 = vst [vmem:[%s11678_s24 + $0x88] sm:$0xff] %v6567_v18  ;;  %v6499_v60 = vmul.f32 %v11657_v12, %v6426_v31  ;;  %v6429_v21 = vadd.f32 %v6428_v63, %v11628_v48 }
 0x5d7   : > { %v6540_v6 = vadd.f32 %v11663_v54, %v6501_v7  ;;  %v6502_v5 = vmul.f32 %v11657_v12, %v6437_v62 }
 0x5d8   : > { %v6538_v59 = vadd.f32 %v11663_v54, %v6499_v60  ;;  %v6500_v33 = vmul.f32 %v11657_v12, %v6429_v21 }
 0x5d9   : > { %v6572_v34 = vmax.f32 %v6540_v6, 0.0  ;;  %v6541_v10 = vadd.f32 %v11663_v54, %v6502_v5 }
 0x5da   : > { %v6570_v53 = vmax.f32 %v6538_v59, 0.0  ;;  %v6539_v47 = vadd.f32 %v11663_v54, %v6500_v33  ;;  %v8473_v23 = vpop.f32.mrb[168].mxu0 }
 0x5db   : > { %6604 = vst [vmem:[%s11678_s24 + $0xb0] sm:$0xff] %v6572_v34  ;;  %v6573_v1 = vmax.f32 %v6541_v10, 0.0  ;;  %v6450_v48 = vadd.f32 %v8473_v23, %v11643_v4  ;;  %v6441_v44 = vpop.f32.mrb[169].mxu0 }
 0x5dc   : > { %6602 = vst [vmem:[%s11678_s24 + $0xa0] sm:$0xff] %v6570_v53  ;;  %v6571_v52 = vmax.f32 %v6539_v47, 0.0  ;;  %v6442_v16 = vadd.f32 %v6441_v44, %v11637_v39  ;;  %v8474_v8 = vpop.f32.mrb[170].mxu0 }
 0x5dd   : > { %6605 = vst [vmem:[%s11678_s24 + $0xb8] sm:$0xff] %v6573_v1  ;;  %v6505_v40 = vmul.f32 %v11657_v12, %v6450_v48  ;;  %v6453_v61 = vadd.f32 %v8474_v8, %v11646_v2  ;;  %v6444_v3 = vpop.f32.mrb[171].mxu0 }
 0x5de   : > { %6603 = vst [vmem:[%s11678_s24 + $0xa8] sm:$0xff] %v6571_v52  ;;  %v6503_v24 = vmul.f32 %v11657_v12, %v6442_v16  ;;  %v6445_v35 = vadd.f32 %v6444_v3, %v11640_v17 }
 0x5df   : > { %v6544_v4 = vadd.f32 %v11663_v54, %v6505_v40  ;;  %v6506_v57 = vmul.f32 %v11657_v12, %v6453_v61 }
 0x5e0   : > { %v6542_v39 = vadd.f32 %v11663_v54, %v6503_v24  ;;  %v6504_v36 = vmul.f32 %v11657_v12, %v6445_v35 }
 0x5e1   : > { %v6576_v41 = vmax.f32 %v6544_v4, 0.0  ;;  %v6545_v11 = vadd.f32 %v11663_v54, %v6506_v57 }
 0x5e2   : > { %v6574_v2 = vmax.f32 %v6542_v39, 0.0  ;;  %v6543_v14 = vadd.f32 %v11663_v54, %v6504_v36  ;;  %v8477_v20 = vpop.f32.mrb[172].mxu0 }
 0x5e3   : > { %6608 = vst [vmem:[%s11678_s24 + $0xd0] sm:$0xff] %v6576_v41  ;;  %v6577_v30 = vmax.f32 %v6545_v11, 0.0  ;;  %v6466_v17 = vadd.f32 %v8477_v20, %v11672_v50  ;;  %v6457_v15 = vpop.f32.mrb[173].mxu0 }
 0x5e4   : > { %6606 = vst [vmem:[%s11678_s24 + $0xc0] sm:$0xff] %v6574_v2  ;;  %v6575_v13 = vmax.f32 %v6543_v14, 0.0  ;;  %v6458_v55 = vadd.f32 %v6457_v15, %v11649_v25  ;;  %v8478_v9 = vpop.f32.mrb[174].mxu0 }
 0x5e5   : > { %6609 = vst [vmem:[%s11678_s24 + $0xd8] sm:$0xff] %v6577_v30  ;;  %v6509_v46 = vmul.f32 %v11657_v12, %v6466_v17  ;;  %v6469_v58 = vadd.f32 %v8478_v9, %v11683_v26  ;;  %v6460_v38 = vpop.f32.mrb[175].mxu0 }
 0x5e6   : > { %6607 = vst [vmem:[%s11678_s24 + $0xc8] sm:$0xff] %v6575_v13  ;;  %v6507_v51 = vmul.f32 %v11657_v12, %v6458_v55  ;;  %v6461_v50 = vadd.f32 %v6460_v38, %v11652_v0 }
 0x5e7   : > { %v6548_v22 = vadd.f32 %v11663_v54, %v6509_v46  ;;  %v6510_v25 = vmul.f32 %v11657_v12, %v6469_v58 }
 0x5e8   : > { %v6546_v45 = vadd.f32 %v11663_v54, %v6507_v51  ;;  %v6508_v42 = vmul.f32 %v11657_v12, %v6461_v50 }
 0x5e9   : > { %v6580_v37 = vmax.f32 %v6548_v22, 0.0  ;;  %v6549_v49 = vadd.f32 %v11663_v54, %v6510_v25 }
 0x5ea   : > { %v6578_v26 = vmax.f32 %v6546_v45, 0.0  ;;  %v6547_v56 = vadd.f32 %v11663_v54, %v6508_v42 }
 0x5eb   : > { %6612 = vst [vmem:[%s11678_s24 + $0xf0] sm:$0xff] %v6580_v37  ;;  %v6581_v32 = vmax.f32 %v6549_v49, 0.0 }
 0x5ec   : > { %6610 = vst [vmem:[%s11678_s24 + $0xe0] sm:$0xff] %v6578_v26  ;;  %v6579_v27 = vmax.f32 %v6547_v56, 0.0 }
 0x5ed   : > { %6613 = vst [vmem:[%s11678_s24 + $0xf8] sm:$0xff] %v6581_v32 }
 0x5ee   : > { %6611 = vst [vmem:[%s11678_s24 + $0xe8] sm:$0xff] %v6579_v27 }
 0x5ef PF: > { %s21_s17 = sadd.s32 1, %s8834_s17  }
 0x5f0   : > { %p18_p4 = scmp.ge.s32.totalorder %s21_s17, 4  }
 0x5f2   :  { %20 = sbr.rel (!%p18_p4) target bundleno = 1 (0x1), region = 101 }

</bundles_post_ra>
